<compile_context>
chip_gen: v7x
topology: tpu7x:2x2x1
jax: 0.10.0
libtpu: 0.0.40
codegen_flags: <defaults>
</compile_context>

<pallas_src>
import numpy as np
import jax
import jax.numpy as jnp
from jax.experimental import pallas as pl
from jax.experimental.pallas import tpu as pltpu

NSH = 45          # even SH coefficients up to l_max = 8 (1 + 5 + 9 + 13 + 17)
NSHP = 48         # SH axis padded to a multiple of 8 (zero padded)
NGRID = 128       # sphere sampling directions
NDEG = 5          # even degrees {0, 2, 4, 6, 8}
NCH_SHELL = 16    # channels per shell conv
NCH = 3 * NCH_SHELL
TB = 8            # batch elements per grid step
SLOPE = 0.1       # LeakyReLU slope used by the module (attention + nonlinearity)


def scnn_kernel(xrep_ref, xflat_ref, misc_ref, attsel_ref, selsum_ref,
                isft_ref, sft_ref,
                wc2_ref, wc3_ref, wc3a_ref, wc4_ref, wc4a_ref, wc5_ref,
                att1_ref, att2_ref, h1_ref, h2_ref, h3_ref, out_ref):
    f32 = jnp.float32
    bf16 = jnp.bfloat16

    misc = misc_ref[...]                                  # [224, 48] f32
    wshell = misc[0:NCH, :]                               # [48, 48] shell conv weights
    deg_bf = misc[48:48 + NDEG, :].astype(bf16)           # [5, 48] degree one-hot masks
    isft_mean = misc[56:57, :]                            # [1, 48] mean_g isft[g, k]
    w6_exp = misc[64:80, :]                               # [16, 48] conv6 expanded over k
    wa = misc[80:224, :]                                  # [144, 48] attention-input map

    isft_t = isft_ref[...]                                # [48, 128] bf16 (= isft.T, padded)
    sft_t = sft_ref[...]                                  # [128, 48] bf16 (= sft.T, padded)

    def leaky(v):
        return jnp.where(v > 0, v, SLOPE * v)

    def sphconv(w_ref, xin, cin):
        # per-degree channel mixing collapsed to one expanded-K matmul per element:
        #   out[b, o, k] = sum_{d,i} Wflat[o, d*cin+i] * x[b, i, k] * deg1h[d, k]
        x3 = xin.astype(bf16).reshape(TB, cin, NSHP)
        xexp = jnp.concatenate(
            [x3 * deg_bf[d:d + 1, :] for d in range(NDEG)], axis=1)   # [TB, 5*cin, 48]
        w = w_ref[...]                                                # [cout, 5*cin] bf16
        outs = [jnp.dot(w, xexp[b], preferred_element_type=f32) for b in range(TB)]
        return jnp.concatenate(outs, axis=0)                          # [TB*cout, 48] f32

    def nonlin(v):  # sft @ leaky_relu(isft @ v), batched over all (b, c) rows
        g = leaky(jnp.dot(v.astype(bf16), isft_t, preferred_element_type=f32))
        return jnp.dot(g.astype(bf16), sft_t, preferred_element_type=f32)

    def gpool(v, c):  # mean over sphere grid == dot with precomputed mean(isft) vector
        return jnp.sum(v.reshape(TB, c, NSHP) * isft_mean, axis=-1)   # [TB, c]

    # --- per-shell SphConv(1, 16) for all TB elements (pure VPU) ------------
    xrep = xrep_ref[...]                                  # [TB*48, 48] (shell signal per row)
    wshell_rep = jnp.concatenate([wshell] * TB, axis=0)   # [TB*48, 48]
    s_all = xrep * wshell_rep                             # rows (b, shell-channel)

    # --- shell attention -----------------------------------------------------
    att_in = jnp.dot(xflat_ref[...], wa, preferred_element_type=f32)  # [TB, 48] == cat(mean(s_j))
    a1 = att1_ref[...]
    a2 = att2_ref[...]
    h = leaky(jnp.dot(att_in, a1[0:48, :], preferred_element_type=f32) + a1[48:49, :])
    logits = jnp.dot(h, a2[0:24, :], preferred_element_type=f32) + a2[24:25, :]   # [TB, 3]
    logits = logits - jnp.max(logits, axis=-1, keepdims=True)
    e = jnp.exp(logits)
    attw = e / jnp.sum(e, axis=-1, keepdims=True)                                  # [TB, 3]
    attsel = attsel_ref[...]                                                       # [TB*48, TB+3]
    per_row = jnp.dot(attsel[:, 0:TB], attw, preferred_element_type=f32)           # [TB*48, 3]
    scale = jnp.sum(per_row * attsel[:, TB:TB + 3], axis=-1, keepdims=True)        # [TB*48, 1]
    xs = s_all * scale                                                             # [TB*48, 48]

    # --- spherical conv trunk ------------------------------------------------
    x1 = nonlin(sphconv(wc2_ref, xs, 48))                 # [TB*32, 48]
    t = sphconv(wc3_ref, x1, 32)                          # [TB*64, 48]
    x2 = nonlin(sphconv(wc3a_ref, t, 64))                 # [TB*64, 48]
    t = sphconv(wc4_ref, x2, 64)                          # [TB*32, 48]
    x3 = nonlin(sphconv(wc4a_ref, t, 32))                 # [TB*32, 48]
    x5 = nonlin(sphconv(wc5_ref, x3, 32))                 # [TB*16, 48]

    # conv6 (16 -> 1): masked multiply + per-element row-sum via selector matmul
    w6_rep = jnp.concatenate([w6_exp] * TB, axis=0)       # [TB*16, 48]
    odfs = jnp.dot(selsum_ref[...], x5 * w6_rep, preferred_element_type=f32)   # [TB, 48]

    # --- global pooling + FC head (BatchNorm folded, eval mode) --------------
    feat = jnp.concatenate([gpool(x1, 32), gpool(x2, 64), gpool(x3, 32)], axis=1)  # [TB, 128]
    h1 = h1_ref[...]
    h2 = h2_ref[...]
    h3 = h3_ref[...]
    f1 = jnp.maximum(jnp.dot(feat, h1[0:128, :], preferred_element_type=f32)
                     + h1[128:129, :], 0.0)
    f2 = jnp.maximum(jnp.dot(f1, h2[0:128, :], preferred_element_type=f32)
                     + h2[128:129, :], 0.0)
    f3 = jnp.dot(f2, h3[0:128, :], preferred_element_type=f32) + h3[128:129, :]    # [TB, 48]

    out_ref[...] = (odfs + f3).astype(out_ref.dtype)


def scnn_forward(x, params, tb=TB):
    B = x.shape[0]
    nb = max(1, (B + tb - 1) // tb)
    b_pad = nb * tb

    # layout plumbing done once in the XLA wrapper (outside the kernel):
    xp = jnp.pad(x, ((0, b_pad - B), (0, 0), (0, NSHP - NSH)))          # [B_pad, 3, 48]
    # each shell signal repeated per shell-conv output channel -> rows (b, channel)
    xrep = jnp.repeat(xp, NCH_SHELL, axis=1).reshape(b_pad * NCH, NSHP)  # [B_pad*48, 48]
    # flat per-element view for the attention-input matmul
    xflat = xp.reshape(b_pad, 3 * NSHP)                                  # [B_pad, 144]

    def full_spec(p):
        n = p.ndim
        return pl.BlockSpec(p.shape, lambda g, _n=n: (0,) * _n)

    in_specs = [pl.BlockSpec((tb * NCH, NSHP), lambda g: (g, 0)),
                pl.BlockSpec((tb, 3 * NSHP), lambda g: (g, 0))]
    in_specs += [full_spec(p) for p in params]

    out = pl.pallas_call(
        scnn_kernel,
        out_shape=jax.ShapeDtypeStruct((b_pad, NSHP), jnp.float32),
        grid=(nb,),
        in_specs=in_specs,
        out_specs=pl.BlockSpec((tb, NSHP), lambda g: (g, 0)),
        compiler_params=pltpu.CompilerParams(dimension_semantics=("parallel",)),
    )(xrep, xflat, *params)
    return out[:B, :NSH]


def init_params(key):
    ks = jax.random.split(key, 32)
    it = iter(ks)

    def nrm(shape, scale):
        return jax.random.normal(next(it), shape, jnp.float32) * jnp.float32(scale)

    # degree layout of the even SH basis (the `ls` buffer)
    ls = np.concatenate([np.full(2 * l + 1, l) for l in (0, 2, 4, 6, 8)])
    assert ls.shape[0] == NSH
    deg_idx = (ls // 2).astype(np.int32)                                 # 0..4
    deg1h = np.zeros((NDEG, NSHP), np.float32)
    deg1h[deg_idx, np.arange(NSH)] = 1.0

    # synthetic (deterministic) SH <-> sphere transform matrices
    isft = nrm((NGRID, NSH), 1.0 / np.sqrt(NSH))                         # [128, 45]
    sft = nrm((NSH, NGRID), 1.0 / np.sqrt(NGRID))                        # [45, 128]
    isft_t = jnp.pad(isft.T, ((0, NSHP - NSH), (0, 0))).astype(jnp.bfloat16)  # [48, 128]
    sft_t = jnp.pad(sft.T, ((0, 0), (0, NSHP - NSH))).astype(jnp.bfloat16)    # [128, 48]
    isft_mean = jnp.pad(jnp.mean(isft, axis=0), (0, NSHP - NSH))[None, :]     # [1, 48]

    def sphconv_w(cout, cin):
        return nrm((NDEG, cout, cin), 1.0 / np.sqrt(cin))

    def flat(w):      # [NDEG, cout, cin] -> [cout, NDEG*cin] (degree-major), bf16
        cout, cin = w.shape[1], w.shape[2]
        return jnp.transpose(w, (1, 0, 2)).reshape(cout, NDEG * cin).astype(jnp.bfloat16)

    def shell_exp():  # SphConv(1, 16) expanded over the SH index k -> [16, 48]
        w = sphconv_w(NCH_SHELL, 1)[:, :, 0]                             # [5, 16]
        e = jnp.transpose(w[jnp.asarray(deg_idx)])                       # [16, 45]
        return jnp.pad(e, ((0, 0), (0, NSHP - NSH)))

    wshell = jnp.concatenate([shell_exp() for _ in range(3)], axis=0)    # [48, 48]

    wc2, wc3, wc3a = sphconv_w(32, 48), sphconv_w(64, 32), sphconv_w(64, 64)
    wc4, wc4a, wc5 = sphconv_w(32, 64), sphconv_w(32, 32), sphconv_w(16, 32)
    wc6 = sphconv_w(1, 16)
    w6_exp = jnp.pad(jnp.transpose(wc6[:, 0, :][jnp.asarray(deg_idx)]),
                     ((0, 0), (0, NSHP - NSH)))                          # [16, 48]

    # attention-input map: cat([mean_k s_j]) == xflat @ WA
    wshell_np = np.asarray(wshell)
    WA = np.zeros((3 * NSHP, NCH), np.float32)
    for c in range(NCH):
        j = c // NCH_SHELL
        WA[j * NSHP:(j + 1) * NSHP, c] = wshell_np[c, :] / float(NSH)

    # packed small-parameter table [224, 48]
    misc = jnp.zeros((224, NSHP), jnp.float32)
    misc = misc.at[0:NCH, :].set(wshell)
    misc = misc.at[48:48 + NDEG, :].set(jnp.asarray(deg1h))
    misc = misc.at[56:57, :].set(isft_mean)
    misc = misc.at[64:80, :].set(w6_exp)
    misc = misc.at[80:224, :].set(jnp.asarray(WA))

    # attention row-selection constants: cols 0..TB-1 pick the batch element,
    # cols TB..TB+2 pick the shell of each channel row
    attsel = np.zeros((TB * NCH, TB + 3), np.float32)
    for b in range(TB):
        attsel[b * NCH:(b + 1) * NCH, b] = 1.0
        for c in range(NCH):
            attsel[b * NCH + c, TB + c // NCH_SHELL] = 1.0
    attsel = jnp.asarray(attsel)

    # conv6 per-element row-sum selector [TB, TB*16]
    selsum = np.zeros((TB, TB * NCH_SHELL), np.float32)
    for b in range(TB):
        selsum[b, b * NCH_SHELL:(b + 1) * NCH_SHELL] = 1.0
    selsum = jnp.asarray(selsum)

    def linear(cin, cout):
        w = nrm((cout, cin), 1.0 / np.sqrt(cin))
        b = nrm((cout,), 1.0 / np.sqrt(cin))
        return w, b

    a1w, a1b = linear(48, 24)
    a2w, a2b = linear(24, 3)
    att1 = jnp.concatenate([a1w.T, a1b[None, :]], axis=0)                # [49, 24]
    att2 = jnp.concatenate([a2w.T, a2b[None, :]], axis=0)                # [25, 3]

    fc1w, fc1b = linear(128, 128)
    fc2w, fc2b = linear(128, 128)
    fc3w, fc3b = linear(128, NSH)
    # BatchNorm1d folded to affine (eval mode; defaults: mean=0, var=1, gamma=1, beta=0)
    bn_scale = jnp.float32(1.0 / np.sqrt(1.0 + 1e-5))
    head1 = jnp.concatenate([(fc1w * bn_scale).T, (fc1b * bn_scale)[None, :]], axis=0)  # [129,128]
    head2 = jnp.concatenate([(fc2w * bn_scale).T, (fc2b * bn_scale)[None, :]], axis=0)  # [129,128]
    head3 = jnp.concatenate([jnp.pad(fc3w.T, ((0, 0), (0, NSHP - NSH))),
                             jnp.pad(fc3b, (0, NSHP - NSH))[None, :]], axis=0)          # [129,48]

    return [misc, attsel, selsum, isft_t, sft_t,
            flat(wc2), flat(wc3), flat(wc3a), flat(wc4), flat(wc4a), flat(wc5),
            att1, att2, head1, head2, head3]


if __name__ == "__main__":
    key = jax.random.PRNGKey(0)
    kp, kx = jax.random.split(key)
    params = init_params(kp)

    B = 16   # two grid steps of TB=8 (keeps both v7x TensorCores busy)
    # input: [batch, 3 shells, 45 SH coefficients]
    x = jax.random.normal(kx, (B, 3, NSH), jnp.float32)

    out = jax.block_until_ready(scnn_forward(x, params))
    assert out.shape == (B, NSH)
    assert bool(jnp.all(jnp.isfinite(out)))
    print("KERNEL_OK")
</pallas_src>

<mosaic_0001>
module attributes {stable_mosaic.version = 11 : i64} {
  func.func @scnn_kernel(%arg0: i32, %arg1: memref<384x48xf32, #tpu.memory_space<vmem>>, %arg2: memref<8x144xf32, #tpu.memory_space<vmem>>, %arg3: memref<224x48xf32, #tpu.memory_space<vmem>>, %arg4: memref<384x11xf32, #tpu.memory_space<vmem>>, %arg5: memref<8x128xf32, #tpu.memory_space<vmem>>, %arg6: memref<48x128xbf16, #tpu.memory_space<vmem>>, %arg7: memref<128x48xbf16, #tpu.memory_space<vmem>>, %arg8: memref<32x240xbf16, #tpu.memory_space<vmem>>, %arg9: memref<64x160xbf16, #tpu.memory_space<vmem>>, %arg10: memref<64x320xbf16, #tpu.memory_space<vmem>>, %arg11: memref<32x320xbf16, #tpu.memory_space<vmem>>, %arg12: memref<32x160xbf16, #tpu.memory_space<vmem>>, %arg13: memref<16x160xbf16, #tpu.memory_space<vmem>>, %arg14: memref<49x24xf32, #tpu.memory_space<vmem>>, %arg15: memref<25x3xf32, #tpu.memory_space<vmem>>, %arg16: memref<129x128xf32, #tpu.memory_space<vmem>>, %arg17: memref<129x128xf32, #tpu.memory_space<vmem>>, %arg18: memref<129x48xf32, #tpu.memory_space<vmem>>, %arg19: memref<8x48xf32, #tpu.memory_space<vmem>>) attributes {dimension_semantics = [#tpu.dimension_semantics<parallel>], iteration_bounds = array<i64: 2>, scalar_prefetch = 0 : i64, scratch_operands = 0 : i64, tpu.core_type = #tpu.core_type<tc>, window_params = [{transform_indices = @transform_0, window_bounds = array<i64: 384, 48>}, {transform_indices = @transform_1, window_bounds = array<i64: 8, 144>}, {pipeline_mode = #tpu.pipeline_mode<synchronous>, transform_indices = @transform_2, window_bounds = array<i64: 224, 48>}, {pipeline_mode = #tpu.pipeline_mode<synchronous>, transform_indices = @transform_3, window_bounds = array<i64: 384, 11>}, {pipeline_mode = #tpu.pipeline_mode<synchronous>, transform_indices = @transform_4, window_bounds = array<i64: 8, 128>}, {pipeline_mode = #tpu.pipeline_mode<synchronous>, transform_indices = @transform_5, window_bounds = array<i64: 48, 128>}, {pipeline_mode = #tpu.pipeline_mode<synchronous>, transform_indices = @transform_6, window_bounds = array<i64: 128, 48>}, {pipeline_mode = #tpu.pipeline_mode<synchronous>, transform_indices = @transform_7, window_bounds = array<i64: 32, 240>}, {pipeline_mode = #tpu.pipeline_mode<synchronous>, transform_indices = @transform_8, window_bounds = array<i64: 64, 160>}, {pipeline_mode = #tpu.pipeline_mode<synchronous>, transform_indices = @transform_9, window_bounds = array<i64: 64, 320>}, {pipeline_mode = #tpu.pipeline_mode<synchronous>, transform_indices = @transform_10, window_bounds = array<i64: 32, 320>}, {pipeline_mode = #tpu.pipeline_mode<synchronous>, transform_indices = @transform_11, window_bounds = array<i64: 32, 160>}, {pipeline_mode = #tpu.pipeline_mode<synchronous>, transform_indices = @transform_12, window_bounds = array<i64: 16, 160>}, {pipeline_mode = #tpu.pipeline_mode<synchronous>, transform_indices = @transform_13, window_bounds = array<i64: 49, 24>}, {pipeline_mode = #tpu.pipeline_mode<synchronous>, transform_indices = @transform_14, window_bounds = array<i64: 25, 3>}, {pipeline_mode = #tpu.pipeline_mode<synchronous>, transform_indices = @transform_15, window_bounds = array<i64: 129, 128>}, {pipeline_mode = #tpu.pipeline_mode<synchronous>, transform_indices = @transform_16, window_bounds = array<i64: 129, 128>}, {pipeline_mode = #tpu.pipeline_mode<synchronous>, transform_indices = @transform_17, window_bounds = array<i64: 129, 48>}, {transform_indices = @transform_18, window_bounds = array<i64: 8, 48>}]} {
    %c0 = arith.constant 0 : index
    %c0_0 = arith.constant 0 : index
    %0 = vector.load %arg3[%c0, %c0_0] : memref<224x48xf32, #tpu.memory_space<vmem>>, vector<224x48xf32>
    %1 = vector.extract_strided_slice %0 {offsets = [0, 0], sizes = [48, 48], strides = [1, 1]} : vector<224x48xf32> to vector<48x48xf32>
    %2 = vector.extract_strided_slice %0 {offsets = [48, 0], sizes = [5, 48], strides = [1, 1]} : vector<224x48xf32> to vector<5x48xf32>
    %3 = arith.truncf %2 : vector<5x48xf32> to vector<5x48xbf16>
    %4 = vector.extract_strided_slice %0 {offsets = [56, 0], sizes = [1, 48], strides = [1, 1]} : vector<224x48xf32> to vector<1x48xf32>
    %5 = vector.extract_strided_slice %0 {offsets = [64, 0], sizes = [16, 48], strides = [1, 1]} : vector<224x48xf32> to vector<16x48xf32>
    %6 = vector.extract_strided_slice %0 {offsets = [80, 0], sizes = [144, 48], strides = [1, 1]} : vector<224x48xf32> to vector<144x48xf32>
    %c0_1 = arith.constant 0 : index
    %c0_2 = arith.constant 0 : index
    %7 = vector.load %arg6[%c0_1, %c0_2] : memref<48x128xbf16, #tpu.memory_space<vmem>>, vector<48x128xbf16>
    %c0_3 = arith.constant 0 : index
    %c0_4 = arith.constant 0 : index
    %8 = vector.load %arg7[%c0_3, %c0_4] : memref<128x48xbf16, #tpu.memory_space<vmem>>, vector<128x48xbf16>
    %c0_5 = arith.constant 0 : index
    %c0_6 = arith.constant 0 : index
    %9 = vector.load %arg1[%c0_5, %c0_6] : memref<384x48xf32, #tpu.memory_space<vmem>>, vector<384x48xf32>
    %10 = tpu.concatenate %1, %1, %1, %1, %1, %1, %1, %1 in 0 : vector<48x48xf32>, vector<48x48xf32>, vector<48x48xf32>, vector<48x48xf32>, vector<48x48xf32>, vector<48x48xf32>, vector<48x48xf32>, vector<48x48xf32> -> vector<384x48xf32>
    %11 = arith.mulf %9, %10 : vector<384x48xf32>
    %c0_7 = arith.constant 0 : index
    %c0_8 = arith.constant 0 : index
    %12 = vector.load %arg2[%c0_7, %c0_8] : memref<8x144xf32, #tpu.memory_space<vmem>>, vector<8x144xf32>
    %cst = arith.constant dense<0.000000e+00> : vector<8x48xf32>
    %13 = tpu.matmul %12, %6, %cst {dimension_numbers = #tpu.dot_dimension_numbers<[1], [0], [0], [1], [0, 0, 1, 1], [], []>} : vector<8x144xf32>, vector<144x48xf32>, vector<8x48xf32> -> vector<8x48xf32>
    %c0_9 = arith.constant 0 : index
    %c0_10 = arith.constant 0 : index
    %14 = vector.load %arg14[%c0_9, %c0_10] : memref<49x24xf32, #tpu.memory_space<vmem>>, vector<49x24xf32>
    %c0_11 = arith.constant 0 : index
    %c0_12 = arith.constant 0 : index
    %15 = vector.load %arg15[%c0_11, %c0_12] : memref<25x3xf32, #tpu.memory_space<vmem>>, vector<25x3xf32>
    %16 = vector.extract_strided_slice %14 {offsets = [0, 0], sizes = [48, 24], strides = [1, 1]} : vector<49x24xf32> to vector<48x24xf32>
    %cst_13 = arith.constant dense<0.000000e+00> : vector<8x24xf32>
    %17 = tpu.matmul %13, %16, %cst_13 {dimension_numbers = #tpu.dot_dimension_numbers<[1], [0], [0], [1], [0, 0, 1, 1], [], []>} : vector<8x48xf32>, vector<48x24xf32>, vector<8x24xf32> -> vector<8x24xf32>
    %18 = vector.extract_strided_slice %14 {offsets = [48, 0], sizes = [1, 24], strides = [1, 1]} : vector<49x24xf32> to vector<1x24xf32>
    %19 = vector.broadcast %18 : vector<1x24xf32> to vector<8x24xf32>
    %20 = arith.addf %17, %19 : vector<8x24xf32>
    %cst_14 = arith.constant 0.000000e+00 : f32
    %21 = vector.broadcast %cst_14 : f32 to vector<8x24xf32>
    %22 = arith.cmpf ogt, %20, %21 : vector<8x24xf32>
    %cst_15 = arith.constant 1.000000e-01 : f32
    %23 = vector.broadcast %cst_15 : f32 to vector<8x24xf32>
    %24 = arith.mulf %23, %20 : vector<8x24xf32>
    %25 = arith.select %22, %20, %24 : vector<8x24xi1>, vector<8x24xf32>
    %26 = vector.extract_strided_slice %15 {offsets = [0, 0], sizes = [24, 3], strides = [1, 1]} : vector<25x3xf32> to vector<24x3xf32>
    %cst_16 = arith.constant dense<0.000000e+00> : vector<8x3xf32>
    %27 = tpu.matmul %25, %26, %cst_16 {dimension_numbers = #tpu.dot_dimension_numbers<[1], [0], [0], [1], [0, 0, 1, 1], [], []>} : vector<8x24xf32>, vector<24x3xf32>, vector<8x3xf32> -> vector<8x3xf32>
    %28 = vector.extract_strided_slice %15 {offsets = [24, 0], sizes = [1, 3], strides = [1, 1]} : vector<25x3xf32> to vector<1x3xf32>
    %29 = vector.broadcast %28 : vector<1x3xf32> to vector<8x3xf32>
    %30 = arith.addf %27, %29 : vector<8x3xf32>
    %cst_17 = arith.constant dense<0xFF800000> : vector<8xf32>
    %31 = vector.multi_reduction <maximumf>, %30, %cst_17 [1] : vector<8x3xf32> to vector<8xf32>
    %32 = vector.shape_cast %31 : vector<8xf32> to vector<8x1xf32>
    %33 = vector.broadcast %32 : vector<8x1xf32> to vector<8x3xf32>
    %34 = arith.subf %30, %33 : vector<8x3xf32>
    %35 = math.exp %34 : vector<8x3xf32>
    %cst_18 = arith.constant dense<0.000000e+00> : vector<8xf32>
    %36 = vector.multi_reduction <add>, %35, %cst_18 [1] : vector<8x3xf32> to vector<8xf32>
    %37 = vector.shape_cast %36 : vector<8xf32> to vector<8x1xf32>
    %38 = vector.broadcast %37 : vector<8x1xf32> to vector<8x3xf32>
    %39 = arith.divf %35, %38 : vector<8x3xf32>
    %c0_19 = arith.constant 0 : index
    %c0_20 = arith.constant 0 : index
    %40 = vector.load %arg4[%c0_19, %c0_20] : memref<384x11xf32, #tpu.memory_space<vmem>>, vector<384x11xf32>
    %41 = vector.extract_strided_slice %40 {offsets = [0, 0], sizes = [384, 8], strides = [1, 1]} : vector<384x11xf32> to vector<384x8xf32>
    %cst_21 = arith.constant dense<0.000000e+00> : vector<384x3xf32>
    %42 = tpu.matmul %41, %39, %cst_21 {dimension_numbers = #tpu.dot_dimension_numbers<[1], [0], [0], [1], [0, 0, 1, 1], [], []>} : vector<384x8xf32>, vector<8x3xf32>, vector<384x3xf32> -> vector<384x3xf32>
    %43 = vector.extract_strided_slice %40 {offsets = [0, 8], sizes = [384, 3], strides = [1, 1]} : vector<384x11xf32> to vector<384x3xf32>
    %44 = arith.mulf %42, %43 : vector<384x3xf32>
    %cst_22 = arith.constant dense<0.000000e+00> : vector<384xf32>
    %45 = vector.multi_reduction <add>, %44, %cst_22 [1] : vector<384x3xf32> to vector<384xf32>
    %46 = vector.shape_cast %45 : vector<384xf32> to vector<384x1xf32>
    %47 = vector.broadcast %46 : vector<384x1xf32> to vector<384x48xf32>
    %48 = arith.mulf %11, %47 : vector<384x48xf32>
    %49 = arith.truncf %48 : vector<384x48xf32> to vector<384x48xbf16>
    %50 = vector.shape_cast %49 : vector<384x48xbf16> to vector<8x48x48xbf16>
    %51 = vector.extract_strided_slice %3 {offsets = [0, 0], sizes = [1, 48], strides = [1, 1]} : vector<5x48xbf16> to vector<1x48xbf16>
    %52 = vector.shape_cast %51 : vector<1x48xbf16> to vector<1x1x48xbf16>
    %53 = vector.broadcast %52 : vector<1x1x48xbf16> to vector<8x48x48xbf16>
    %54 = arith.mulf %50, %53 : vector<8x48x48xbf16>
    %55 = vector.extract_strided_slice %3 {offsets = [1, 0], sizes = [1, 48], strides = [1, 1]} : vector<5x48xbf16> to vector<1x48xbf16>
    %56 = vector.shape_cast %55 : vector<1x48xbf16> to vector<1x1x48xbf16>
    %57 = vector.broadcast %56 : vector<1x1x48xbf16> to vector<8x48x48xbf16>
    %58 = arith.mulf %50, %57 : vector<8x48x48xbf16>
    %59 = vector.extract_strided_slice %3 {offsets = [2, 0], sizes = [1, 48], strides = [1, 1]} : vector<5x48xbf16> to vector<1x48xbf16>
    %60 = vector.shape_cast %59 : vector<1x48xbf16> to vector<1x1x48xbf16>
    %61 = vector.broadcast %60 : vector<1x1x48xbf16> to vector<8x48x48xbf16>
    %62 = arith.mulf %50, %61 : vector<8x48x48xbf16>
    %63 = vector.extract_strided_slice %3 {offsets = [3, 0], sizes = [1, 48], strides = [1, 1]} : vector<5x48xbf16> to vector<1x48xbf16>
    %64 = vector.shape_cast %63 : vector<1x48xbf16> to vector<1x1x48xbf16>
    %65 = vector.broadcast %64 : vector<1x1x48xbf16> to vector<8x48x48xbf16>
    %66 = arith.mulf %50, %65 : vector<8x48x48xbf16>
    %67 = vector.extract_strided_slice %3 {offsets = [4, 0], sizes = [1, 48], strides = [1, 1]} : vector<5x48xbf16> to vector<1x48xbf16>
    %68 = vector.shape_cast %67 : vector<1x48xbf16> to vector<1x1x48xbf16>
    %69 = vector.broadcast %68 : vector<1x1x48xbf16> to vector<8x48x48xbf16>
    %70 = arith.mulf %50, %69 : vector<8x48x48xbf16>
    %71 = tpu.concatenate %54, %58, %62, %66, %70 in 1 : vector<8x48x48xbf16>, vector<8x48x48xbf16>, vector<8x48x48xbf16>, vector<8x48x48xbf16>, vector<8x48x48xbf16> -> vector<8x240x48xbf16>
    %c0_23 = arith.constant 0 : index
    %c0_24 = arith.constant 0 : index
    %72 = vector.load %arg8[%c0_23, %c0_24] : memref<32x240xbf16, #tpu.memory_space<vmem>>, vector<32x240xbf16>
    %73 = vector.extract_strided_slice %71 {offsets = [0, 0, 0], sizes = [1, 240, 48], strides = [1, 1, 1]} : vector<8x240x48xbf16> to vector<1x240x48xbf16>
    %74 = vector.shape_cast %73 : vector<1x240x48xbf16> to vector<240x48xbf16>
    %cst_25 = arith.constant dense<0.000000e+00> : vector<32x48xf32>
    %75 = tpu.matmul %72, %74, %cst_25 {dimension_numbers = #tpu.dot_dimension_numbers<[1], [0], [0], [1], [0, 0, 1, 1], [], []>} : vector<32x240xbf16>, vector<240x48xbf16>, vector<32x48xf32> -> vector<32x48xf32>
    %76 = vector.extract_strided_slice %71 {offsets = [1, 0, 0], sizes = [1, 240, 48], strides = [1, 1, 1]} : vector<8x240x48xbf16> to vector<1x240x48xbf16>
    %77 = vector.shape_cast %76 : vector<1x240x48xbf16> to vector<240x48xbf16>
    %cst_26 = arith.constant dense<0.000000e+00> : vector<32x48xf32>
    %78 = tpu.matmul %72, %77, %cst_26 {dimension_numbers = #tpu.dot_dimension_numbers<[1], [0], [0], [1], [0, 0, 1, 1], [], []>} : vector<32x240xbf16>, vector<240x48xbf16>, vector<32x48xf32> -> vector<32x48xf32>
    %79 = vector.extract_strided_slice %71 {offsets = [2, 0, 0], sizes = [1, 240, 48], strides = [1, 1, 1]} : vector<8x240x48xbf16> to vector<1x240x48xbf16>
    %80 = vector.shape_cast %79 : vector<1x240x48xbf16> to vector<240x48xbf16>
    %cst_27 = arith.constant dense<0.000000e+00> : vector<32x48xf32>
    %81 = tpu.matmul %72, %80, %cst_27 {dimension_numbers = #tpu.dot_dimension_numbers<[1], [0], [0], [1], [0, 0, 1, 1], [], []>} : vector<32x240xbf16>, vector<240x48xbf16>, vector<32x48xf32> -> vector<32x48xf32>
    %82 = vector.extract_strided_slice %71 {offsets = [3, 0, 0], sizes = [1, 240, 48], strides = [1, 1, 1]} : vector<8x240x48xbf16> to vector<1x240x48xbf16>
    %83 = vector.shape_cast %82 : vector<1x240x48xbf16> to vector<240x48xbf16>
    %cst_28 = arith.constant dense<0.000000e+00> : vector<32x48xf32>
    %84 = tpu.matmul %72, %83, %cst_28 {dimension_numbers = #tpu.dot_dimension_numbers<[1], [0], [0], [1], [0, 0, 1, 1], [], []>} : vector<32x240xbf16>, vector<240x48xbf16>, vector<32x48xf32> -> vector<32x48xf32>
    %85 = vector.extract_strided_slice %71 {offsets = [4, 0, 0], sizes = [1, 240, 48], strides = [1, 1, 1]} : vector<8x240x48xbf16> to vector<1x240x48xbf16>
    %86 = vector.shape_cast %85 : vector<1x240x48xbf16> to vector<240x48xbf16>
    %cst_29 = arith.constant dense<0.000000e+00> : vector<32x48xf32>
    %87 = tpu.matmul %72, %86, %cst_29 {dimension_numbers = #tpu.dot_dimension_numbers<[1], [0], [0], [1], [0, 0, 1, 1], [], []>} : vector<32x240xbf16>, vector<240x48xbf16>, vector<32x48xf32> -> vector<32x48xf32>
    %88 = vector.extract_strided_slice %71 {offsets = [5, 0, 0], sizes = [1, 240, 48], strides = [1, 1, 1]} : vector<8x240x48xbf16> to vector<1x240x48xbf16>
    %89 = vector.shape_cast %88 : vector<1x240x48xbf16> to vector<240x48xbf16>
    %cst_30 = arith.constant dense<0.000000e+00> : vector<32x48xf32>
    %90 = tpu.matmul %72, %89, %cst_30 {dimension_numbers = #tpu.dot_dimension_numbers<[1], [0], [0], [1], [0, 0, 1, 1], [], []>} : vector<32x240xbf16>, vector<240x48xbf16>, vector<32x48xf32> -> vector<32x48xf32>
    %91 = vector.extract_strided_slice %71 {offsets = [6, 0, 0], sizes = [1, 240, 48], strides = [1, 1, 1]} : vector<8x240x48xbf16> to vector<1x240x48xbf16>
    %92 = vector.shape_cast %91 : vector<1x240x48xbf16> to vector<240x48xbf16>
    %cst_31 = arith.constant dense<0.000000e+00> : vector<32x48xf32>
    %93 = tpu.matmul %72, %92, %cst_31 {dimension_numbers = #tpu.dot_dimension_numbers<[1], [0], [0], [1], [0, 0, 1, 1], [], []>} : vector<32x240xbf16>, vector<240x48xbf16>, vector<32x48xf32> -> vector<32x48xf32>
    %94 = vector.extract_strided_slice %71 {offsets = [7, 0, 0], sizes = [1, 240, 48], strides = [1, 1, 1]} : vector<8x240x48xbf16> to vector<1x240x48xbf16>
    %95 = vector.shape_cast %94 : vector<1x240x48xbf16> to vector<240x48xbf16>
    %cst_32 = arith.constant dense<0.000000e+00> : vector<32x48xf32>
    %96 = tpu.matmul %72, %95, %cst_32 {dimension_numbers = #tpu.dot_dimension_numbers<[1], [0], [0], [1], [0, 0, 1, 1], [], []>} : vector<32x240xbf16>, vector<240x48xbf16>, vector<32x48xf32> -> vector<32x48xf32>
    %97 = tpu.concatenate %75, %78, %81, %84, %87, %90, %93, %96 in 0 : vector<32x48xf32>, vector<32x48xf32>, vector<32x48xf32>, vector<32x48xf32>, vector<32x48xf32>, vector<32x48xf32>, vector<32x48xf32>, vector<32x48xf32> -> vector<256x48xf32>
    %98 = arith.truncf %97 : vector<256x48xf32> to vector<256x48xbf16>
    %cst_33 = arith.constant dense<0.000000e+00> : vector<256x128xf32>
    %99 = tpu.matmul %98, %7, %cst_33 {dimension_numbers = #tpu.dot_dimension_numbers<[1], [0], [0], [1], [0, 0, 1, 1], [], []>} : vector<256x48xbf16>, vector<48x128xbf16>, vector<256x128xf32> -> vector<256x128xf32>
    %cst_34 = arith.constant 0.000000e+00 : f32
    %100 = vector.broadcast %cst_34 : f32 to vector<256x128xf32>
    %101 = arith.cmpf ogt, %99, %100 : vector<256x128xf32>
    %cst_35 = arith.constant 1.000000e-01 : f32
    %102 = vector.broadcast %cst_35 : f32 to vector<256x128xf32>
    %103 = arith.mulf %102, %99 : vector<256x128xf32>
    %104 = arith.select %101, %99, %103 : vector<256x128xi1>, vector<256x128xf32>
    %105 = arith.truncf %104 : vector<256x128xf32> to vector<256x128xbf16>
    %cst_36 = arith.constant dense<0.000000e+00> : vector<256x48xf32>
    %106 = tpu.matmul %105, %8, %cst_36 {dimension_numbers = #tpu.dot_dimension_numbers<[1], [0], [0], [1], [0, 0, 1, 1], [], []>} : vector<256x128xbf16>, vector<128x48xbf16>, vector<256x48xf32> -> vector<256x48xf32>
    %107 = arith.truncf %106 : vector<256x48xf32> to vector<256x48xbf16>
    %108 = vector.shape_cast %107 : vector<256x48xbf16> to vector<8x32x48xbf16>
    %109 = vector.extract_strided_slice %3 {offsets = [0, 0], sizes = [1, 48], strides = [1, 1]} : vector<5x48xbf16> to vector<1x48xbf16>
    %110 = vector.shape_cast %109 : vector<1x48xbf16> to vector<1x1x48xbf16>
    %111 = vector.broadcast %110 : vector<1x1x48xbf16> to vector<8x32x48xbf16>
    %112 = arith.mulf %108, %111 : vector<8x32x48xbf16>
    %113 = vector.extract_strided_slice %3 {offsets = [1, 0], sizes = [1, 48], strides = [1, 1]} : vector<5x48xbf16> to vector<1x48xbf16>
    %114 = vector.shape_cast %113 : vector<1x48xbf16> to vector<1x1x48xbf16>
    %115 = vector.broadcast %114 : vector<1x1x48xbf16> to vector<8x32x48xbf16>
    %116 = arith.mulf %108, %115 : vector<8x32x48xbf16>
    %117 = vector.extract_strided_slice %3 {offsets = [2, 0], sizes = [1, 48], strides = [1, 1]} : vector<5x48xbf16> to vector<1x48xbf16>
    %118 = vector.shape_cast %117 : vector<1x48xbf16> to vector<1x1x48xbf16>
    %119 = vector.broadcast %118 : vector<1x1x48xbf16> to vector<8x32x48xbf16>
    %120 = arith.mulf %108, %119 : vector<8x32x48xbf16>
    %121 = vector.extract_strided_slice %3 {offsets = [3, 0], sizes = [1, 48], strides = [1, 1]} : vector<5x48xbf16> to vector<1x48xbf16>
    %122 = vector.shape_cast %121 : vector<1x48xbf16> to vector<1x1x48xbf16>
    %123 = vector.broadcast %122 : vector<1x1x48xbf16> to vector<8x32x48xbf16>
    %124 = arith.mulf %108, %123 : vector<8x32x48xbf16>
    %125 = vector.extract_strided_slice %3 {offsets = [4, 0], sizes = [1, 48], strides = [1, 1]} : vector<5x48xbf16> to vector<1x48xbf16>
    %126 = vector.shape_cast %125 : vector<1x48xbf16> to vector<1x1x48xbf16>
    %127 = vector.broadcast %126 : vector<1x1x48xbf16> to vector<8x32x48xbf16>
    %128 = arith.mulf %108, %127 : vector<8x32x48xbf16>
    %129 = tpu.concatenate %112, %116, %120, %124, %128 in 1 : vector<8x32x48xbf16>, vector<8x32x48xbf16>, vector<8x32x48xbf16>, vector<8x32x48xbf16>, vector<8x32x48xbf16> -> vector<8x160x48xbf16>
    %c0_37 = arith.constant 0 : index
    %c0_38 = arith.constant 0 : index
    %130 = vector.load %arg9[%c0_37, %c0_38] : memref<64x160xbf16, #tpu.memory_space<vmem>>, vector<64x160xbf16>
    %131 = vector.extract_strided_slice %129 {offsets = [0, 0, 0], sizes = [1, 160, 48], strides = [1, 1, 1]} : vector<8x160x48xbf16> to vector<1x160x48xbf16>
    %132 = vector.shape_cast %131 : vector<1x160x48xbf16> to vector<160x48xbf16>
    %cst_39 = arith.constant dense<0.000000e+00> : vector<64x48xf32>
    %133 = tpu.matmul %130, %132, %cst_39 {dimension_numbers = #tpu.dot_dimension_numbers<[1], [0], [0], [1], [0, 0, 1, 1], [], []>} : vector<64x160xbf16>, vector<160x48xbf16>, vector<64x48xf32> -> vector<64x48xf32>
    %134 = vector.extract_strided_slice %129 {offsets = [1, 0, 0], sizes = [1, 160, 48], strides = [1, 1, 1]} : vector<8x160x48xbf16> to vector<1x160x48xbf16>
    %135 = vector.shape_cast %134 : vector<1x160x48xbf16> to vector<160x48xbf16>
    %cst_40 = arith.constant dense<0.000000e+00> : vector<64x48xf32>
    %136 = tpu.matmul %130, %135, %cst_40 {dimension_numbers = #tpu.dot_dimension_numbers<[1], [0], [0], [1], [0, 0, 1, 1], [], []>} : vector<64x160xbf16>, vector<160x48xbf16>, vector<64x48xf32> -> vector<64x48xf32>
    %137 = vector.extract_strided_slice %129 {offsets = [2, 0, 0], sizes = [1, 160, 48], strides = [1, 1, 1]} : vector<8x160x48xbf16> to vector<1x160x48xbf16>
    %138 = vector.shape_cast %137 : vector<1x160x48xbf16> to vector<160x48xbf16>
    %cst_41 = arith.constant dense<0.000000e+00> : vector<64x48xf32>
    %139 = tpu.matmul %130, %138, %cst_41 {dimension_numbers = #tpu.dot_dimension_numbers<[1], [0], [0], [1], [0, 0, 1, 1], [], []>} : vector<64x160xbf16>, vector<160x48xbf16>, vector<64x48xf32> -> vector<64x48xf32>
    %140 = vector.extract_strided_slice %129 {offsets = [3, 0, 0], sizes = [1, 160, 48], strides = [1, 1, 1]} : vector<8x160x48xbf16> to vector<1x160x48xbf16>
    %141 = vector.shape_cast %140 : vector<1x160x48xbf16> to vector<160x48xbf16>
    %cst_42 = arith.constant dense<0.000000e+00> : vector<64x48xf32>
    %142 = tpu.matmul %130, %141, %cst_42 {dimension_numbers = #tpu.dot_dimension_numbers<[1], [0], [0], [1], [0, 0, 1, 1], [], []>} : vector<64x160xbf16>, vector<160x48xbf16>, vector<64x48xf32> -> vector<64x48xf32>
    %143 = vector.extract_strided_slice %129 {offsets = [4, 0, 0], sizes = [1, 160, 48], strides = [1, 1, 1]} : vector<8x160x48xbf16> to vector<1x160x48xbf16>
    %144 = vector.shape_cast %143 : vector<1x160x48xbf16> to vector<160x48xbf16>
    %cst_43 = arith.constant dense<0.000000e+00> : vector<64x48xf32>
    %145 = tpu.matmul %130, %144, %cst_43 {dimension_numbers = #tpu.dot_dimension_numbers<[1], [0], [0], [1], [0, 0, 1, 1], [], []>} : vector<64x160xbf16>, vector<160x48xbf16>, vector<64x48xf32> -> vector<64x48xf32>
    %146 = vector.extract_strided_slice %129 {offsets = [5, 0, 0], sizes = [1, 160, 48], strides = [1, 1, 1]} : vector<8x160x48xbf16> to vector<1x160x48xbf16>
    %147 = vector.shape_cast %146 : vector<1x160x48xbf16> to vector<160x48xbf16>
    %cst_44 = arith.constant dense<0.000000e+00> : vector<64x48xf32>
    %148 = tpu.matmul %130, %147, %cst_44 {dimension_numbers = #tpu.dot_dimension_numbers<[1], [0], [0], [1], [0, 0, 1, 1], [], []>} : vector<64x160xbf16>, vector<160x48xbf16>, vector<64x48xf32> -> vector<64x48xf32>
    %149 = vector.extract_strided_slice %129 {offsets = [6, 0, 0], sizes = [1, 160, 48], strides = [1, 1, 1]} : vector<8x160x48xbf16> to vector<1x160x48xbf16>
    %150 = vector.shape_cast %149 : vector<1x160x48xbf16> to vector<160x48xbf16>
    %cst_45 = arith.constant dense<0.000000e+00> : vector<64x48xf32>
    %151 = tpu.matmul %130, %150, %cst_45 {dimension_numbers = #tpu.dot_dimension_numbers<[1], [0], [0], [1], [0, 0, 1, 1], [], []>} : vector<64x160xbf16>, vector<160x48xbf16>, vector<64x48xf32> -> vector<64x48xf32>
    %152 = vector.extract_strided_slice %129 {offsets = [7, 0, 0], sizes = [1, 160, 48], strides = [1, 1, 1]} : vector<8x160x48xbf16> to vector<1x160x48xbf16>
    %153 = vector.shape_cast %152 : vector<1x160x48xbf16> to vector<160x48xbf16>
    %cst_46 = arith.constant dense<0.000000e+00> : vector<64x48xf32>
    %154 = tpu.matmul %130, %153, %cst_46 {dimension_numbers = #tpu.dot_dimension_numbers<[1], [0], [0], [1], [0, 0, 1, 1], [], []>} : vector<64x160xbf16>, vector<160x48xbf16>, vector<64x48xf32> -> vector<64x48xf32>
    %155 = tpu.concatenate %133, %136, %139, %142, %145, %148, %151, %154 in 0 : vector<64x48xf32>, vector<64x48xf32>, vector<64x48xf32>, vector<64x48xf32>, vector<64x48xf32>, vector<64x48xf32>, vector<64x48xf32>, vector<64x48xf32> -> vector<512x48xf32>
    %156 = arith.truncf %155 : vector<512x48xf32> to vector<512x48xbf16>
    %157 = vector.shape_cast %156 : vector<512x48xbf16> to vector<8x64x48xbf16>
    %158 = vector.extract_strided_slice %3 {offsets = [0, 0], sizes = [1, 48], strides = [1, 1]} : vector<5x48xbf16> to vector<1x48xbf16>
    %159 = vector.shape_cast %158 : vector<1x48xbf16> to vector<1x1x48xbf16>
    %160 = vector.broadcast %159 : vector<1x1x48xbf16> to vector<8x64x48xbf16>
    %161 = arith.mulf %157, %160 : vector<8x64x48xbf16>
    %162 = vector.extract_strided_slice %3 {offsets = [1, 0], sizes = [1, 48], strides = [1, 1]} : vector<5x48xbf16> to vector<1x48xbf16>
    %163 = vector.shape_cast %162 : vector<1x48xbf16> to vector<1x1x48xbf16>
    %164 = vector.broadcast %163 : vector<1x1x48xbf16> to vector<8x64x48xbf16>
    %165 = arith.mulf %157, %164 : vector<8x64x48xbf16>
    %166 = vector.extract_strided_slice %3 {offsets = [2, 0], sizes = [1, 48], strides = [1, 1]} : vector<5x48xbf16> to vector<1x48xbf16>
    %167 = vector.shape_cast %166 : vector<1x48xbf16> to vector<1x1x48xbf16>
    %168 = vector.broadcast %167 : vector<1x1x48xbf16> to vector<8x64x48xbf16>
    %169 = arith.mulf %157, %168 : vector<8x64x48xbf16>
    %170 = vector.extract_strided_slice %3 {offsets = [3, 0], sizes = [1, 48], strides = [1, 1]} : vector<5x48xbf16> to vector<1x48xbf16>
    %171 = vector.shape_cast %170 : vector<1x48xbf16> to vector<1x1x48xbf16>
    %172 = vector.broadcast %171 : vector<1x1x48xbf16> to vector<8x64x48xbf16>
    %173 = arith.mulf %157, %172 : vector<8x64x48xbf16>
    %174 = vector.extract_strided_slice %3 {offsets = [4, 0], sizes = [1, 48], strides = [1, 1]} : vector<5x48xbf16> to vector<1x48xbf16>
    %175 = vector.shape_cast %174 : vector<1x48xbf16> to vector<1x1x48xbf16>
    %176 = vector.broadcast %175 : vector<1x1x48xbf16> to vector<8x64x48xbf16>
    %177 = arith.mulf %157, %176 : vector<8x64x48xbf16>
    %178 = tpu.concatenate %161, %165, %169, %173, %177 in 1 : vector<8x64x48xbf16>, vector<8x64x48xbf16>, vector<8x64x48xbf16>, vector<8x64x48xbf16>, vector<8x64x48xbf16> -> vector<8x320x48xbf16>
    %c0_47 = arith.constant 0 : index
    %c0_48 = arith.constant 0 : index
    %179 = vector.load %arg10[%c0_47, %c0_48] : memref<64x320xbf16, #tpu.memory_space<vmem>>, vector<64x320xbf16>
    %180 = vector.extract_strided_slice %178 {offsets = [0, 0, 0], sizes = [1, 320, 48], strides = [1, 1, 1]} : vector<8x320x48xbf16> to vector<1x320x48xbf16>
    %181 = vector.shape_cast %180 : vector<1x320x48xbf16> to vector<320x48xbf16>
    %cst_49 = arith.constant dense<0.000000e+00> : vector<64x48xf32>
    %182 = tpu.matmul %179, %181, %cst_49 {dimension_numbers = #tpu.dot_dimension_numbers<[1], [0], [0], [1], [0, 0, 1, 1], [], []>} : vector<64x320xbf16>, vector<320x48xbf16>, vector<64x48xf32> -> vector<64x48xf32>
    %183 = vector.extract_strided_slice %178 {offsets = [1, 0, 0], sizes = [1, 320, 48], strides = [1, 1, 1]} : vector<8x320x48xbf16> to vector<1x320x48xbf16>
    %184 = vector.shape_cast %183 : vector<1x320x48xbf16> to vector<320x48xbf16>
    %cst_50 = arith.constant dense<0.000000e+00> : vector<64x48xf32>
    %185 = tpu.matmul %179, %184, %cst_50 {dimension_numbers = #tpu.dot_dimension_numbers<[1], [0], [0], [1], [0, 0, 1, 1], [], []>} : vector<64x320xbf16>, vector<320x48xbf16>, vector<64x48xf32> -> vector<64x48xf32>
    %186 = vector.extract_strided_slice %178 {offsets = [2, 0, 0], sizes = [1, 320, 48], strides = [1, 1, 1]} : vector<8x320x48xbf16> to vector<1x320x48xbf16>
    %187 = vector.shape_cast %186 : vector<1x320x48xbf16> to vector<320x48xbf16>
    %cst_51 = arith.constant dense<0.000000e+00> : vector<64x48xf32>
    %188 = tpu.matmul %179, %187, %cst_51 {dimension_numbers = #tpu.dot_dimension_numbers<[1], [0], [0], [1], [0, 0, 1, 1], [], []>} : vector<64x320xbf16>, vector<320x48xbf16>, vector<64x48xf32> -> vector<64x48xf32>
    %189 = vector.extract_strided_slice %178 {offsets = [3, 0, 0], sizes = [1, 320, 48], strides = [1, 1, 1]} : vector<8x320x48xbf16> to vector<1x320x48xbf16>
    %190 = vector.shape_cast %189 : vector<1x320x48xbf16> to vector<320x48xbf16>
    %cst_52 = arith.constant dense<0.000000e+00> : vector<64x48xf32>
    %191 = tpu.matmul %179, %190, %cst_52 {dimension_numbers = #tpu.dot_dimension_numbers<[1], [0], [0], [1], [0, 0, 1, 1], [], []>} : vector<64x320xbf16>, vector<320x48xbf16>, vector<64x48xf32> -> vector<64x48xf32>
    %192 = vector.extract_strided_slice %178 {offsets = [4, 0, 0], sizes = [1, 320, 48], strides = [1, 1, 1]} : vector<8x320x48xbf16> to vector<1x320x48xbf16>
    %193 = vector.shape_cast %192 : vector<1x320x48xbf16> to vector<320x48xbf16>
    %cst_53 = arith.constant dense<0.000000e+00> : vector<64x48xf32>
    %194 = tpu.matmul %179, %193, %cst_53 {dimension_numbers = #tpu.dot_dimension_numbers<[1], [0], [0], [1], [0, 0, 1, 1], [], []>} : vector<64x320xbf16>, vector<320x48xbf16>, vector<64x48xf32> -> vector<64x48xf32>
    %195 = vector.extract_strided_slice %178 {offsets = [5, 0, 0], sizes = [1, 320, 48], strides = [1, 1, 1]} : vector<8x320x48xbf16> to vector<1x320x48xbf16>
    %196 = vector.shape_cast %195 : vector<1x320x48xbf16> to vector<320x48xbf16>
    %cst_54 = arith.constant dense<0.000000e+00> : vector<64x48xf32>
    %197 = tpu.matmul %179, %196, %cst_54 {dimension_numbers = #tpu.dot_dimension_numbers<[1], [0], [0], [1], [0, 0, 1, 1], [], []>} : vector<64x320xbf16>, vector<320x48xbf16>, vector<64x48xf32> -> vector<64x48xf32>
    %198 = vector.extract_strided_slice %178 {offsets = [6, 0, 0], sizes = [1, 320, 48], strides = [1, 1, 1]} : vector<8x320x48xbf16> to vector<1x320x48xbf16>
    %199 = vector.shape_cast %198 : vector<1x320x48xbf16> to vector<320x48xbf16>
    %cst_55 = arith.constant dense<0.000000e+00> : vector<64x48xf32>
    %200 = tpu.matmul %179, %199, %cst_55 {dimension_numbers = #tpu.dot_dimension_numbers<[1], [0], [0], [1], [0, 0, 1, 1], [], []>} : vector<64x320xbf16>, vector<320x48xbf16>, vector<64x48xf32> -> vector<64x48xf32>
    %201 = vector.extract_strided_slice %178 {offsets = [7, 0, 0], sizes = [1, 320, 48], strides = [1, 1, 1]} : vector<8x320x48xbf16> to vector<1x320x48xbf16>
    %202 = vector.shape_cast %201 : vector<1x320x48xbf16> to vector<320x48xbf16>
    %cst_56 = arith.constant dense<0.000000e+00> : vector<64x48xf32>
    %203 = tpu.matmul %179, %202, %cst_56 {dimension_numbers = #tpu.dot_dimension_numbers<[1], [0], [0], [1], [0, 0, 1, 1], [], []>} : vector<64x320xbf16>, vector<320x48xbf16>, vector<64x48xf32> -> vector<64x48xf32>
    %204 = tpu.concatenate %182, %185, %188, %191, %194, %197, %200, %203 in 0 : vector<64x48xf32>, vector<64x48xf32>, vector<64x48xf32>, vector<64x48xf32>, vector<64x48xf32>, vector<64x48xf32>, vector<64x48xf32>, vector<64x48xf32> -> vector<512x48xf32>
    %205 = arith.truncf %204 : vector<512x48xf32> to vector<512x48xbf16>
    %cst_57 = arith.constant dense<0.000000e+00> : vector<512x128xf32>
    %206 = tpu.matmul %205, %7, %cst_57 {dimension_numbers = #tpu.dot_dimension_numbers<[1], [0], [0], [1], [0, 0, 1, 1], [], []>} : vector<512x48xbf16>, vector<48x128xbf16>, vector<512x128xf32> -> vector<512x128xf32>
    %cst_58 = arith.constant 0.000000e+00 : f32
    %207 = vector.broadcast %cst_58 : f32 to vector<512x128xf32>
    %208 = arith.cmpf ogt, %206, %207 : vector<512x128xf32>
    %cst_59 = arith.constant 1.000000e-01 : f32
    %209 = vector.broadcast %cst_59 : f32 to vector<512x128xf32>
    %210 = arith.mulf %209, %206 : vector<512x128xf32>
    %211 = arith.select %208, %206, %210 : vector<512x128xi1>, vector<512x128xf32>
    %212 = arith.truncf %211 : vector<512x128xf32> to vector<512x128xbf16>
    %cst_60 = arith.constant dense<0.000000e+00> : vector<512x48xf32>
    %213 = tpu.matmul %212, %8, %cst_60 {dimension_numbers = #tpu.dot_dimension_numbers<[1], [0], [0], [1], [0, 0, 1, 1], [], []>} : vector<512x128xbf16>, vector<128x48xbf16>, vector<512x48xf32> -> vector<512x48xf32>
    %214 = arith.truncf %213 : vector<512x48xf32> to vector<512x48xbf16>
    %215 = vector.shape_cast %214 : vector<512x48xbf16> to vector<8x64x48xbf16>
    %216 = vector.extract_strided_slice %3 {offsets = [0, 0], sizes = [1, 48], strides = [1, 1]} : vector<5x48xbf16> to vector<1x48xbf16>
    %217 = vector.shape_cast %216 : vector<1x48xbf16> to vector<1x1x48xbf16>
    %218 = vector.broadcast %217 : vector<1x1x48xbf16> to vector<8x64x48xbf16>
    %219 = arith.mulf %215, %218 : vector<8x64x48xbf16>
    %220 = vector.extract_strided_slice %3 {offsets = [1, 0], sizes = [1, 48], strides = [1, 1]} : vector<5x48xbf16> to vector<1x48xbf16>
    %221 = vector.shape_cast %220 : vector<1x48xbf16> to vector<1x1x48xbf16>
    %222 = vector.broadcast %221 : vector<1x1x48xbf16> to vector<8x64x48xbf16>
    %223 = arith.mulf %215, %222 : vector<8x64x48xbf16>
    %224 = vector.extract_strided_slice %3 {offsets = [2, 0], sizes = [1, 48], strides = [1, 1]} : vector<5x48xbf16> to vector<1x48xbf16>
    %225 = vector.shape_cast %224 : vector<1x48xbf16> to vector<1x1x48xbf16>
    %226 = vector.broadcast %225 : vector<1x1x48xbf16> to vector<8x64x48xbf16>
    %227 = arith.mulf %215, %226 : vector<8x64x48xbf16>
    %228 = vector.extract_strided_slice %3 {offsets = [3, 0], sizes = [1, 48], strides = [1, 1]} : vector<5x48xbf16> to vector<1x48xbf16>
    %229 = vector.shape_cast %228 : vector<1x48xbf16> to vector<1x1x48xbf16>
    %230 = vector.broadcast %229 : vector<1x1x48xbf16> to vector<8x64x48xbf16>
    %231 = arith.mulf %215, %230 : vector<8x64x48xbf16>
    %232 = vector.extract_strided_slice %3 {offsets = [4, 0], sizes = [1, 48], strides = [1, 1]} : vector<5x48xbf16> to vector<1x48xbf16>
    %233 = vector.shape_cast %232 : vector<1x48xbf16> to vector<1x1x48xbf16>
    %234 = vector.broadcast %233 : vector<1x1x48xbf16> to vector<8x64x48xbf16>
    %235 = arith.mulf %215, %234 : vector<8x64x48xbf16>
    %236 = tpu.concatenate %219, %223, %227, %231, %235 in 1 : vector<8x64x48xbf16>, vector<8x64x48xbf16>, vector<8x64x48xbf16>, vector<8x64x48xbf16>, vector<8x64x48xbf16> -> vector<8x320x48xbf16>
    %c0_61 = arith.constant 0 : index
    %c0_62 = arith.constant 0 : index
    %237 = vector.load %arg11[%c0_61, %c0_62] : memref<32x320xbf16, #tpu.memory_space<vmem>>, vector<32x320xbf16>
    %238 = vector.extract_strided_slice %236 {offsets = [0, 0, 0], sizes = [1, 320, 48], strides = [1, 1, 1]} : vector<8x320x48xbf16> to vector<1x320x48xbf16>
    %239 = vector.shape_cast %238 : vector<1x320x48xbf16> to vector<320x48xbf16>
    %cst_63 = arith.constant dense<0.000000e+00> : vector<32x48xf32>
    %240 = tpu.matmul %237, %239, %cst_63 {dimension_numbers = #tpu.dot_dimension_numbers<[1], [0], [0], [1], [0, 0, 1, 1], [], []>} : vector<32x320xbf16>, vector<320x48xbf16>, vector<32x48xf32> -> vector<32x48xf32>
    %241 = vector.extract_strided_slice %236 {offsets = [1, 0, 0], sizes = [1, 320, 48], strides = [1, 1, 1]} : vector<8x320x48xbf16> to vector<1x320x48xbf16>
    %242 = vector.shape_cast %241 : vector<1x320x48xbf16> to vector<320x48xbf16>
    %cst_64 = arith.constant dense<0.000000e+00> : vector<32x48xf32>
    %243 = tpu.matmul %237, %242, %cst_64 {dimension_numbers = #tpu.dot_dimension_numbers<[1], [0], [0], [1], [0, 0, 1, 1], [], []>} : vector<32x320xbf16>, vector<320x48xbf16>, vector<32x48xf32> -> vector<32x48xf32>
    %244 = vector.extract_strided_slice %236 {offsets = [2, 0, 0], sizes = [1, 320, 48], strides = [1, 1, 1]} : vector<8x320x48xbf16> to vector<1x320x48xbf16>
    %245 = vector.shape_cast %244 : vector<1x320x48xbf16> to vector<320x48xbf16>
    %cst_65 = arith.constant dense<0.000000e+00> : vector<32x48xf32>
    %246 = tpu.matmul %237, %245, %cst_65 {dimension_numbers = #tpu.dot_dimension_numbers<[1], [0], [0], [1], [0, 0, 1, 1], [], []>} : vector<32x320xbf16>, vector<320x48xbf16>, vector<32x48xf32> -> vector<32x48xf32>
    %247 = vector.extract_strided_slice %236 {offsets = [3, 0, 0], sizes = [1, 320, 48], strides = [1, 1, 1]} : vector<8x320x48xbf16> to vector<1x320x48xbf16>
    %248 = vector.shape_cast %247 : vector<1x320x48xbf16> to vector<320x48xbf16>
    %cst_66 = arith.constant dense<0.000000e+00> : vector<32x48xf32>
    %249 = tpu.matmul %237, %248, %cst_66 {dimension_numbers = #tpu.dot_dimension_numbers<[1], [0], [0], [1], [0, 0, 1, 1], [], []>} : vector<32x320xbf16>, vector<320x48xbf16>, vector<32x48xf32> -> vector<32x48xf32>
    %250 = vector.extract_strided_slice %236 {offsets = [4, 0, 0], sizes = [1, 320, 48], strides = [1, 1, 1]} : vector<8x320x48xbf16> to vector<1x320x48xbf16>
    %251 = vector.shape_cast %250 : vector<1x320x48xbf16> to vector<320x48xbf16>
    %cst_67 = arith.constant dense<0.000000e+00> : vector<32x48xf32>
    %252 = tpu.matmul %237, %251, %cst_67 {dimension_numbers = #tpu.dot_dimension_numbers<[1], [0], [0], [1], [0, 0, 1, 1], [], []>} : vector<32x320xbf16>, vector<320x48xbf16>, vector<32x48xf32> -> vector<32x48xf32>
    %253 = vector.extract_strided_slice %236 {offsets = [5, 0, 0], sizes = [1, 320, 48], strides = [1, 1, 1]} : vector<8x320x48xbf16> to vector<1x320x48xbf16>
    %254 = vector.shape_cast %253 : vector<1x320x48xbf16> to vector<320x48xbf16>
    %cst_68 = arith.constant dense<0.000000e+00> : vector<32x48xf32>
    %255 = tpu.matmul %237, %254, %cst_68 {dimension_numbers = #tpu.dot_dimension_numbers<[1], [0], [0], [1], [0, 0, 1, 1], [], []>} : vector<32x320xbf16>, vector<320x48xbf16>, vector<32x48xf32> -> vector<32x48xf32>
    %256 = vector.extract_strided_slice %236 {offsets = [6, 0, 0], sizes = [1, 320, 48], strides = [1, 1, 1]} : vector<8x320x48xbf16> to vector<1x320x48xbf16>
    %257 = vector.shape_cast %256 : vector<1x320x48xbf16> to vector<320x48xbf16>
    %cst_69 = arith.constant dense<0.000000e+00> : vector<32x48xf32>
    %258 = tpu.matmul %237, %257, %cst_69 {dimension_numbers = #tpu.dot_dimension_numbers<[1], [0], [0], [1], [0, 0, 1, 1], [], []>} : vector<32x320xbf16>, vector<320x48xbf16>, vector<32x48xf32> -> vector<32x48xf32>
    %259 = vector.extract_strided_slice %236 {offsets = [7, 0, 0], sizes = [1, 320, 48], strides = [1, 1, 1]} : vector<8x320x48xbf16> to vector<1x320x48xbf16>
    %260 = vector.shape_cast %259 : vector<1x320x48xbf16> to vector<320x48xbf16>
    %cst_70 = arith.constant dense<0.000000e+00> : vector<32x48xf32>
    %261 = tpu.matmul %237, %260, %cst_70 {dimension_numbers = #tpu.dot_dimension_numbers<[1], [0], [0], [1], [0, 0, 1, 1], [], []>} : vector<32x320xbf16>, vector<320x48xbf16>, vector<32x48xf32> -> vector<32x48xf32>
    %262 = tpu.concatenate %240, %243, %246, %249, %252, %255, %258, %261 in 0 : vector<32x48xf32>, vector<32x48xf32>, vector<32x48xf32>, vector<32x48xf32>, vector<32x48xf32>, vector<32x48xf32>, vector<32x48xf32>, vector<32x48xf32> -> vector<256x48xf32>
    %263 = arith.truncf %262 : vector<256x48xf32> to vector<256x48xbf16>
    %264 = vector.shape_cast %263 : vector<256x48xbf16> to vector<8x32x48xbf16>
    %265 = vector.extract_strided_slice %3 {offsets = [0, 0], sizes = [1, 48], strides = [1, 1]} : vector<5x48xbf16> to vector<1x48xbf16>
    %266 = vector.shape_cast %265 : vector<1x48xbf16> to vector<1x1x48xbf16>
    %267 = vector.broadcast %266 : vector<1x1x48xbf16> to vector<8x32x48xbf16>
    %268 = arith.mulf %264, %267 : vector<8x32x48xbf16>
    %269 = vector.extract_strided_slice %3 {offsets = [1, 0], sizes = [1, 48], strides = [1, 1]} : vector<5x48xbf16> to vector<1x48xbf16>
    %270 = vector.shape_cast %269 : vector<1x48xbf16> to vector<1x1x48xbf16>
    %271 = vector.broadcast %270 : vector<1x1x48xbf16> to vector<8x32x48xbf16>
    %272 = arith.mulf %264, %271 : vector<8x32x48xbf16>
    %273 = vector.extract_strided_slice %3 {offsets = [2, 0], sizes = [1, 48], strides = [1, 1]} : vector<5x48xbf16> to vector<1x48xbf16>
    %274 = vector.shape_cast %273 : vector<1x48xbf16> to vector<1x1x48xbf16>
    %275 = vector.broadcast %274 : vector<1x1x48xbf16> to vector<8x32x48xbf16>
    %276 = arith.mulf %264, %275 : vector<8x32x48xbf16>
    %277 = vector.extract_strided_slice %3 {offsets = [3, 0], sizes = [1, 48], strides = [1, 1]} : vector<5x48xbf16> to vector<1x48xbf16>
    %278 = vector.shape_cast %277 : vector<1x48xbf16> to vector<1x1x48xbf16>
    %279 = vector.broadcast %278 : vector<1x1x48xbf16> to vector<8x32x48xbf16>
    %280 = arith.mulf %264, %279 : vector<8x32x48xbf16>
    %281 = vector.extract_strided_slice %3 {offsets = [4, 0], sizes = [1, 48], strides = [1, 1]} : vector<5x48xbf16> to vector<1x48xbf16>
    %282 = vector.shape_cast %281 : vector<1x48xbf16> to vector<1x1x48xbf16>
    %283 = vector.broadcast %282 : vector<1x1x48xbf16> to vector<8x32x48xbf16>
    %284 = arith.mulf %264, %283 : vector<8x32x48xbf16>
    %285 = tpu.concatenate %268, %272, %276, %280, %284 in 1 : vector<8x32x48xbf16>, vector<8x32x48xbf16>, vector<8x32x48xbf16>, vector<8x32x48xbf16>, vector<8x32x48xbf16> -> vector<8x160x48xbf16>
    %c0_71 = arith.constant 0 : index
    %c0_72 = arith.constant 0 : index
    %286 = vector.load %arg12[%c0_71, %c0_72] : memref<32x160xbf16, #tpu.memory_space<vmem>>, vector<32x160xbf16>
    %287 = vector.extract_strided_slice %285 {offsets = [0, 0, 0], sizes = [1, 160, 48], strides = [1, 1, 1]} : vector<8x160x48xbf16> to vector<1x160x48xbf16>
    %288 = vector.shape_cast %287 : vector<1x160x48xbf16> to vector<160x48xbf16>
    %cst_73 = arith.constant dense<0.000000e+00> : vector<32x48xf32>
    %289 = tpu.matmul %286, %288, %cst_73 {dimension_numbers = #tpu.dot_dimension_numbers<[1], [0], [0], [1], [0, 0, 1, 1], [], []>} : vector<32x160xbf16>, vector<160x48xbf16>, vector<32x48xf32> -> vector<32x48xf32>
    %290 = vector.extract_strided_slice %285 {offsets = [1, 0, 0], sizes = [1, 160, 48], strides = [1, 1, 1]} : vector<8x160x48xbf16> to vector<1x160x48xbf16>
    %291 = vector.shape_cast %290 : vector<1x160x48xbf16> to vector<160x48xbf16>
    %cst_74 = arith.constant dense<0.000000e+00> : vector<32x48xf32>
    %292 = tpu.matmul %286, %291, %cst_74 {dimension_numbers = #tpu.dot_dimension_numbers<[1], [0], [0], [1], [0, 0, 1, 1], [], []>} : vector<32x160xbf16>, vector<160x48xbf16>, vector<32x48xf32> -> vector<32x48xf32>
    %293 = vector.extract_strided_slice %285 {offsets = [2, 0, 0], sizes = [1, 160, 48], strides = [1, 1, 1]} : vector<8x160x48xbf16> to vector<1x160x48xbf16>
    %294 = vector.shape_cast %293 : vector<1x160x48xbf16> to vector<160x48xbf16>
    %cst_75 = arith.constant dense<0.000000e+00> : vector<32x48xf32>
    %295 = tpu.matmul %286, %294, %cst_75 {dimension_numbers = #tpu.dot_dimension_numbers<[1], [0], [0], [1], [0, 0, 1, 1], [], []>} : vector<32x160xbf16>, vector<160x48xbf16>, vector<32x48xf32> -> vector<32x48xf32>
    %296 = vector.extract_strided_slice %285 {offsets = [3, 0, 0], sizes = [1, 160, 48], strides = [1, 1, 1]} : vector<8x160x48xbf16> to vector<1x160x48xbf16>
    %297 = vector.shape_cast %296 : vector<1x160x48xbf16> to vector<160x48xbf16>
    %cst_76 = arith.constant dense<0.000000e+00> : vector<32x48xf32>
    %298 = tpu.matmul %286, %297, %cst_76 {dimension_numbers = #tpu.dot_dimension_numbers<[1], [0], [0], [1], [0, 0, 1, 1], [], []>} : vector<32x160xbf16>, vector<160x48xbf16>, vector<32x48xf32> -> vector<32x48xf32>
    %299 = vector.extract_strided_slice %285 {offsets = [4, 0, 0], sizes = [1, 160, 48], strides = [1, 1, 1]} : vector<8x160x48xbf16> to vector<1x160x48xbf16>
    %300 = vector.shape_cast %299 : vector<1x160x48xbf16> to vector<160x48xbf16>
    %cst_77 = arith.constant dense<0.000000e+00> : vector<32x48xf32>
    %301 = tpu.matmul %286, %300, %cst_77 {dimension_numbers = #tpu.dot_dimension_numbers<[1], [0], [0], [1], [0, 0, 1, 1], [], []>} : vector<32x160xbf16>, vector<160x48xbf16>, vector<32x48xf32> -> vector<32x48xf32>
    %302 = vector.extract_strided_slice %285 {offsets = [5, 0, 0], sizes = [1, 160, 48], strides = [1, 1, 1]} : vector<8x160x48xbf16> to vector<1x160x48xbf16>
    %303 = vector.shape_cast %302 : vector<1x160x48xbf16> to vector<160x48xbf16>
    %cst_78 = arith.constant dense<0.000000e+00> : vector<32x48xf32>
    %304 = tpu.matmul %286, %303, %cst_78 {dimension_numbers = #tpu.dot_dimension_numbers<[1], [0], [0], [1], [0, 0, 1, 1], [], []>} : vector<32x160xbf16>, vector<160x48xbf16>, vector<32x48xf32> -> vector<32x48xf32>
    %305 = vector.extract_strided_slice %285 {offsets = [6, 0, 0], sizes = [1, 160, 48], strides = [1, 1, 1]} : vector<8x160x48xbf16> to vector<1x160x48xbf16>
    %306 = vector.shape_cast %305 : vector<1x160x48xbf16> to vector<160x48xbf16>
    %cst_79 = arith.constant dense<0.000000e+00> : vector<32x48xf32>
    %307 = tpu.matmul %286, %306, %cst_79 {dimension_numbers = #tpu.dot_dimension_numbers<[1], [0], [0], [1], [0, 0, 1, 1], [], []>} : vector<32x160xbf16>, vector<160x48xbf16>, vector<32x48xf32> -> vector<32x48xf32>
    %308 = vector.extract_strided_slice %285 {offsets = [7, 0, 0], sizes = [1, 160, 48], strides = [1, 1, 1]} : vector<8x160x48xbf16> to vector<1x160x48xbf16>
    %309 = vector.shape_cast %308 : vector<1x160x48xbf16> to vector<160x48xbf16>
    %cst_80 = arith.constant dense<0.000000e+00> : vector<32x48xf32>
    %310 = tpu.matmul %286, %309, %cst_80 {dimension_numbers = #tpu.dot_dimension_numbers<[1], [0], [0], [1], [0, 0, 1, 1], [], []>} : vector<32x160xbf16>, vector<160x48xbf16>, vector<32x48xf32> -> vector<32x48xf32>
    %311 = tpu.concatenate %289, %292, %295, %298, %301, %304, %307, %310 in 0 : vector<32x48xf32>, vector<32x48xf32>, vector<32x48xf32>, vector<32x48xf32>, vector<32x48xf32>, vector<32x48xf32>, vector<32x48xf32>, vector<32x48xf32> -> vector<256x48xf32>
    %312 = arith.truncf %311 : vector<256x48xf32> to vector<256x48xbf16>
    %cst_81 = arith.constant dense<0.000000e+00> : vector<256x128xf32>
    %313 = tpu.matmul %312, %7, %cst_81 {dimension_numbers = #tpu.dot_dimension_numbers<[1], [0], [0], [1], [0, 0, 1, 1], [], []>} : vector<256x48xbf16>, vector<48x128xbf16>, vector<256x128xf32> -> vector<256x128xf32>
    %cst_82 = arith.constant 0.000000e+00 : f32
    %314 = vector.broadcast %cst_82 : f32 to vector<256x128xf32>
    %315 = arith.cmpf ogt, %313, %314 : vector<256x128xf32>
    %cst_83 = arith.constant 1.000000e-01 : f32
    %316 = vector.broadcast %cst_83 : f32 to vector<256x128xf32>
    %317 = arith.mulf %316, %313 : vector<256x128xf32>
    %318 = arith.select %315, %313, %317 : vector<256x128xi1>, vector<256x128xf32>
    %319 = arith.truncf %318 : vector<256x128xf32> to vector<256x128xbf16>
    %cst_84 = arith.constant dense<0.000000e+00> : vector<256x48xf32>
    %320 = tpu.matmul %319, %8, %cst_84 {dimension_numbers = #tpu.dot_dimension_numbers<[1], [0], [0], [1], [0, 0, 1, 1], [], []>} : vector<256x128xbf16>, vector<128x48xbf16>, vector<256x48xf32> -> vector<256x48xf32>
    %321 = arith.truncf %320 : vector<256x48xf32> to vector<256x48xbf16>
    %322 = vector.shape_cast %321 : vector<256x48xbf16> to vector<8x32x48xbf16>
    %323 = vector.extract_strided_slice %3 {offsets = [0, 0], sizes = [1, 48], strides = [1, 1]} : vector<5x48xbf16> to vector<1x48xbf16>
    %324 = vector.shape_cast %323 : vector<1x48xbf16> to vector<1x1x48xbf16>
    %325 = vector.broadcast %324 : vector<1x1x48xbf16> to vector<8x32x48xbf16>
    %326 = arith.mulf %322, %325 : vector<8x32x48xbf16>
    %327 = vector.extract_strided_slice %3 {offsets = [1, 0], sizes = [1, 48], strides = [1, 1]} : vector<5x48xbf16> to vector<1x48xbf16>
    %328 = vector.shape_cast %327 : vector<1x48xbf16> to vector<1x1x48xbf16>
    %329 = vector.broadcast %328 : vector<1x1x48xbf16> to vector<8x32x48xbf16>
    %330 = arith.mulf %322, %329 : vector<8x32x48xbf16>
    %331 = vector.extract_strided_slice %3 {offsets = [2, 0], sizes = [1, 48], strides = [1, 1]} : vector<5x48xbf16> to vector<1x48xbf16>
    %332 = vector.shape_cast %331 : vector<1x48xbf16> to vector<1x1x48xbf16>
    %333 = vector.broadcast %332 : vector<1x1x48xbf16> to vector<8x32x48xbf16>
    %334 = arith.mulf %322, %333 : vector<8x32x48xbf16>
    %335 = vector.extract_strided_slice %3 {offsets = [3, 0], sizes = [1, 48], strides = [1, 1]} : vector<5x48xbf16> to vector<1x48xbf16>
    %336 = vector.shape_cast %335 : vector<1x48xbf16> to vector<1x1x48xbf16>
    %337 = vector.broadcast %336 : vector<1x1x48xbf16> to vector<8x32x48xbf16>
    %338 = arith.mulf %322, %337 : vector<8x32x48xbf16>
    %339 = vector.extract_strided_slice %3 {offsets = [4, 0], sizes = [1, 48], strides = [1, 1]} : vector<5x48xbf16> to vector<1x48xbf16>
    %340 = vector.shape_cast %339 : vector<1x48xbf16> to vector<1x1x48xbf16>
    %341 = vector.broadcast %340 : vector<1x1x48xbf16> to vector<8x32x48xbf16>
    %342 = arith.mulf %322, %341 : vector<8x32x48xbf16>
    %343 = tpu.concatenate %326, %330, %334, %338, %342 in 1 : vector<8x32x48xbf16>, vector<8x32x48xbf16>, vector<8x32x48xbf16>, vector<8x32x48xbf16>, vector<8x32x48xbf16> -> vector<8x160x48xbf16>
    %c0_85 = arith.constant 0 : index
    %c0_86 = arith.constant 0 : index
    %344 = vector.load %arg13[%c0_85, %c0_86] : memref<16x160xbf16, #tpu.memory_space<vmem>>, vector<16x160xbf16>
    %345 = vector.extract_strided_slice %343 {offsets = [0, 0, 0], sizes = [1, 160, 48], strides = [1, 1, 1]} : vector<8x160x48xbf16> to vector<1x160x48xbf16>
    %346 = vector.shape_cast %345 : vector<1x160x48xbf16> to vector<160x48xbf16>
    %cst_87 = arith.constant dense<0.000000e+00> : vector<16x48xf32>
    %347 = tpu.matmul %344, %346, %cst_87 {dimension_numbers = #tpu.dot_dimension_numbers<[1], [0], [0], [1], [0, 0, 1, 1], [], []>} : vector<16x160xbf16>, vector<160x48xbf16>, vector<16x48xf32> -> vector<16x48xf32>
    %348 = vector.extract_strided_slice %343 {offsets = [1, 0, 0], sizes = [1, 160, 48], strides = [1, 1, 1]} : vector<8x160x48xbf16> to vector<1x160x48xbf16>
    %349 = vector.shape_cast %348 : vector<1x160x48xbf16> to vector<160x48xbf16>
    %cst_88 = arith.constant dense<0.000000e+00> : vector<16x48xf32>
    %350 = tpu.matmul %344, %349, %cst_88 {dimension_numbers = #tpu.dot_dimension_numbers<[1], [0], [0], [1], [0, 0, 1, 1], [], []>} : vector<16x160xbf16>, vector<160x48xbf16>, vector<16x48xf32> -> vector<16x48xf32>
    %351 = vector.extract_strided_slice %343 {offsets = [2, 0, 0], sizes = [1, 160, 48], strides = [1, 1, 1]} : vector<8x160x48xbf16> to vector<1x160x48xbf16>
    %352 = vector.shape_cast %351 : vector<1x160x48xbf16> to vector<160x48xbf16>
    %cst_89 = arith.constant dense<0.000000e+00> : vector<16x48xf32>
    %353 = tpu.matmul %344, %352, %cst_89 {dimension_numbers = #tpu.dot_dimension_numbers<[1], [0], [0], [1], [0, 0, 1, 1], [], []>} : vector<16x160xbf16>, vector<160x48xbf16>, vector<16x48xf32> -> vector<16x48xf32>
    %354 = vector.extract_strided_slice %343 {offsets = [3, 0, 0], sizes = [1, 160, 48], strides = [1, 1, 1]} : vector<8x160x48xbf16> to vector<1x160x48xbf16>
    %355 = vector.shape_cast %354 : vector<1x160x48xbf16> to vector<160x48xbf16>
    %cst_90 = arith.constant dense<0.000000e+00> : vector<16x48xf32>
    %356 = tpu.matmul %344, %355, %cst_90 {dimension_numbers = #tpu.dot_dimension_numbers<[1], [0], [0], [1], [0, 0, 1, 1], [], []>} : vector<16x160xbf16>, vector<160x48xbf16>, vector<16x48xf32> -> vector<16x48xf32>
    %357 = vector.extract_strided_slice %343 {offsets = [4, 0, 0], sizes = [1, 160, 48], strides = [1, 1, 1]} : vector<8x160x48xbf16> to vector<1x160x48xbf16>
    %358 = vector.shape_cast %357 : vector<1x160x48xbf16> to vector<160x48xbf16>
    %cst_91 = arith.constant dense<0.000000e+00> : vector<16x48xf32>
    %359 = tpu.matmul %344, %358, %cst_91 {dimension_numbers = #tpu.dot_dimension_numbers<[1], [0], [0], [1], [0, 0, 1, 1], [], []>} : vector<16x160xbf16>, vector<160x48xbf16>, vector<16x48xf32> -> vector<16x48xf32>
    %360 = vector.extract_strided_slice %343 {offsets = [5, 0, 0], sizes = [1, 160, 48], strides = [1, 1, 1]} : vector<8x160x48xbf16> to vector<1x160x48xbf16>
    %361 = vector.shape_cast %360 : vector<1x160x48xbf16> to vector<160x48xbf16>
    %cst_92 = arith.constant dense<0.000000e+00> : vector<16x48xf32>
    %362 = tpu.matmul %344, %361, %cst_92 {dimension_numbers = #tpu.dot_dimension_numbers<[1], [0], [0], [1], [0, 0, 1, 1], [], []>} : vector<16x160xbf16>, vector<160x48xbf16>, vector<16x48xf32> -> vector<16x48xf32>
    %363 = vector.extract_strided_slice %343 {offsets = [6, 0, 0], sizes = [1, 160, 48], strides = [1, 1, 1]} : vector<8x160x48xbf16> to vector<1x160x48xbf16>
    %364 = vector.shape_cast %363 : vector<1x160x48xbf16> to vector<160x48xbf16>
    %cst_93 = arith.constant dense<0.000000e+00> : vector<16x48xf32>
    %365 = tpu.matmul %344, %364, %cst_93 {dimension_numbers = #tpu.dot_dimension_numbers<[1], [0], [0], [1], [0, 0, 1, 1], [], []>} : vector<16x160xbf16>, vector<160x48xbf16>, vector<16x48xf32> -> vector<16x48xf32>
    %366 = vector.extract_strided_slice %343 {offsets = [7, 0, 0], sizes = [1, 160, 48], strides = [1, 1, 1]} : vector<8x160x48xbf16> to vector<1x160x48xbf16>
    %367 = vector.shape_cast %366 : vector<1x160x48xbf16> to vector<160x48xbf16>
    %cst_94 = arith.constant dense<0.000000e+00> : vector<16x48xf32>
    %368 = tpu.matmul %344, %367, %cst_94 {dimension_numbers = #tpu.dot_dimension_numbers<[1], [0], [0], [1], [0, 0, 1, 1], [], []>} : vector<16x160xbf16>, vector<160x48xbf16>, vector<16x48xf32> -> vector<16x48xf32>
    %369 = tpu.concatenate %347, %350, %353, %356, %359, %362, %365, %368 in 0 : vector<16x48xf32>, vector<16x48xf32>, vector<16x48xf32>, vector<16x48xf32>, vector<16x48xf32>, vector<16x48xf32>, vector<16x48xf32>, vector<16x48xf32> -> vector<128x48xf32>
    %370 = arith.truncf %369 : vector<128x48xf32> to vector<128x48xbf16>
    %cst_95 = arith.constant dense<0.000000e+00> : vector<128x128xf32>
    %371 = tpu.matmul %370, %7, %cst_95 {dimension_numbers = #tpu.dot_dimension_numbers<[1], [0], [0], [1], [0, 0, 1, 1], [], []>} : vector<128x48xbf16>, vector<48x128xbf16>, vector<128x128xf32> -> vector<128x128xf32>
    %cst_96 = arith.constant 0.000000e+00 : f32
    %372 = vector.broadcast %cst_96 : f32 to vector<128x128xf32>
    %373 = arith.cmpf ogt, %371, %372 : vector<128x128xf32>
    %cst_97 = arith.constant 1.000000e-01 : f32
    %374 = vector.broadcast %cst_97 : f32 to vector<128x128xf32>
    %375 = arith.mulf %374, %371 : vector<128x128xf32>
    %376 = arith.select %373, %371, %375 : vector<128x128xi1>, vector<128x128xf32>
    %377 = arith.truncf %376 : vector<128x128xf32> to vector<128x128xbf16>
    %cst_98 = arith.constant dense<0.000000e+00> : vector<128x48xf32>
    %378 = tpu.matmul %377, %8, %cst_98 {dimension_numbers = #tpu.dot_dimension_numbers<[1], [0], [0], [1], [0, 0, 1, 1], [], []>} : vector<128x128xbf16>, vector<128x48xbf16>, vector<128x48xf32> -> vector<128x48xf32>
    %379 = tpu.concatenate %5, %5, %5, %5, %5, %5, %5, %5 in 0 : vector<16x48xf32>, vector<16x48xf32>, vector<16x48xf32>, vector<16x48xf32>, vector<16x48xf32>, vector<16x48xf32>, vector<16x48xf32>, vector<16x48xf32> -> vector<128x48xf32>
    %c0_99 = arith.constant 0 : index
    %c0_100 = arith.constant 0 : index
    %380 = vector.load %arg5[%c0_99, %c0_100] : memref<8x128xf32, #tpu.memory_space<vmem>>, vector<8x128xf32>
    %381 = arith.mulf %378, %379 : vector<128x48xf32>
    %cst_101 = arith.constant dense<0.000000e+00> : vector<8x48xf32>
    %382 = tpu.matmul %380, %381, %cst_101 {dimension_numbers = #tpu.dot_dimension_numbers<[1], [0], [0], [1], [0, 0, 1, 1], [], []>} : vector<8x128xf32>, vector<128x48xf32>, vector<8x48xf32> -> vector<8x48xf32>
    %383 = vector.shape_cast %106 : vector<256x48xf32> to vector<8x32x48xf32>
    %384 = vector.shape_cast %4 : vector<1x48xf32> to vector<1x1x48xf32>
    %385 = vector.broadcast %384 : vector<1x1x48xf32> to vector<8x32x48xf32>
    %386 = arith.mulf %383, %385 : vector<8x32x48xf32>
    %cst_102 = arith.constant dense<0.000000e+00> : vector<8x32xf32>
    %387 = vector.multi_reduction <add>, %386, %cst_102 [2] : vector<8x32x48xf32> to vector<8x32xf32>
    %388 = vector.shape_cast %213 : vector<512x48xf32> to vector<8x64x48xf32>
    %389 = vector.shape_cast %4 : vector<1x48xf32> to vector<1x1x48xf32>
    %390 = vector.broadcast %389 : vector<1x1x48xf32> to vector<8x64x48xf32>
    %391 = arith.mulf %388, %390 : vector<8x64x48xf32>
    %cst_103 = arith.constant dense<0.000000e+00> : vector<8x64xf32>
    %392 = vector.multi_reduction <add>, %391, %cst_103 [2] : vector<8x64x48xf32> to vector<8x64xf32>
    %393 = vector.shape_cast %320 : vector<256x48xf32> to vector<8x32x48xf32>
    %394 = vector.shape_cast %4 : vector<1x48xf32> to vector<1x1x48xf32>
    %395 = vector.broadcast %394 : vector<1x1x48xf32> to vector<8x32x48xf32>
    %396 = arith.mulf %393, %395 : vector<8x32x48xf32>
    %cst_104 = arith.constant dense<0.000000e+00> : vector<8x32xf32>
    %397 = vector.multi_reduction <add>, %396, %cst_104 [2] : vector<8x32x48xf32> to vector<8x32xf32>
    %398 = tpu.concatenate %387, %392, %397 in 1 : vector<8x32xf32>, vector<8x64xf32>, vector<8x32xf32> -> vector<8x128xf32>
    %c0_105 = arith.constant 0 : index
    %c0_106 = arith.constant 0 : index
    %399 = vector.load %arg16[%c0_105, %c0_106] : memref<129x128xf32, #tpu.memory_space<vmem>>, vector<129x128xf32>
    %c0_107 = arith.constant 0 : index
    %c0_108 = arith.constant 0 : index
    %400 = vector.load %arg17[%c0_107, %c0_108] : memref<129x128xf32, #tpu.memory_space<vmem>>, vector<129x128xf32>
    %c0_109 = arith.constant 0 : index
    %c0_110 = arith.constant 0 : index
    %401 = vector.load %arg18[%c0_109, %c0_110] : memref<129x48xf32, #tpu.memory_space<vmem>>, vector<129x48xf32>
    %402 = vector.extract_strided_slice %399 {offsets = [0, 0], sizes = [128, 128], strides = [1, 1]} : vector<129x128xf32> to vector<128x128xf32>
    %cst_111 = arith.constant dense<0.000000e+00> : vector<8x128xf32>
    %403 = tpu.matmul %398, %402, %cst_111 {dimension_numbers = #tpu.dot_dimension_numbers<[1], [0], [0], [1], [0, 0, 1, 1], [], []>} : vector<8x128xf32>, vector<128x128xf32>, vector<8x128xf32> -> vector<8x128xf32>
    %404 = vector.extract_strided_slice %399 {offsets = [128, 0], sizes = [1, 128], strides = [1, 1]} : vector<129x128xf32> to vector<1x128xf32>
    %405 = vector.broadcast %404 : vector<1x128xf32> to vector<8x128xf32>
    %406 = arith.addf %403, %405 : vector<8x128xf32>
    %cst_112 = arith.constant 0.000000e+00 : f32
    %407 = vector.broadcast %cst_112 : f32 to vector<8x128xf32>
    %408 = arith.maximumf %406, %407 : vector<8x128xf32>
    %409 = vector.extract_strided_slice %400 {offsets = [0, 0], sizes = [128, 128], strides = [1, 1]} : vector<129x128xf32> to vector<128x128xf32>
    %cst_113 = arith.constant dense<0.000000e+00> : vector<8x128xf32>
    %410 = tpu.matmul %408, %409, %cst_113 {dimension_numbers = #tpu.dot_dimension_numbers<[1], [0], [0], [1], [0, 0, 1, 1], [], []>} : vector<8x128xf32>, vector<128x128xf32>, vector<8x128xf32> -> vector<8x128xf32>
    %411 = vector.extract_strided_slice %400 {offsets = [128, 0], sizes = [1, 128], strides = [1, 1]} : vector<129x128xf32> to vector<1x128xf32>
    %412 = vector.broadcast %411 : vector<1x128xf32> to vector<8x128xf32>
    %413 = arith.addf %410, %412 : vector<8x128xf32>
    %cst_114 = arith.constant 0.000000e+00 : f32
    %414 = vector.broadcast %cst_114 : f32 to vector<8x128xf32>
    %415 = arith.maximumf %413, %414 : vector<8x128xf32>
    %416 = vector.extract_strided_slice %401 {offsets = [0, 0], sizes = [128, 48], strides = [1, 1]} : vector<129x48xf32> to vector<128x48xf32>
    %cst_115 = arith.constant dense<0.000000e+00> : vector<8x48xf32>
    %417 = tpu.matmul %415, %416, %cst_115 {dimension_numbers = #tpu.dot_dimension_numbers<[1], [0], [0], [1], [0, 0, 1, 1], [], []>} : vector<8x128xf32>, vector<128x48xf32>, vector<8x48xf32> -> vector<8x48xf32>
    %418 = vector.extract_strided_slice %401 {offsets = [128, 0], sizes = [1, 48], strides = [1, 1]} : vector<129x48xf32> to vector<1x48xf32>
    %419 = vector.broadcast %418 : vector<1x48xf32> to vector<8x48xf32>
    %420 = arith.addf %417, %419 : vector<8x48xf32>
    %421 = arith.addf %382, %420 : vector<8x48xf32>
    %c0_116 = arith.constant 0 : index
    %c0_117 = arith.constant 0 : index
    %422 = vector.load %arg19[%c0_116, %c0_117] : memref<8x48xf32, #tpu.memory_space<vmem>>, vector<8x48xf32>
    tpu.vector_store %arg19[%c0_116, %c0_117], %421 {strides = array<i32>} : memref<8x48xf32, #tpu.memory_space<vmem>>, vector<8x48xf32>,
    return
  }
  func.func @transform_0(%arg0: i32) -> (i32, i32) {
    %c0_i32 = arith.constant 0 : i32
    %c0_i32_0 = arith.constant 0 : i32
    return %arg0, %c0_i32 : i32, i32
  }
  func.func @transform_1(%arg0: i32) -> (i32, i32) {
    %c0_i32 = arith.constant 0 : i32
    %c0_i32_0 = arith.constant 0 : i32
    return %arg0, %c0_i32 : i32, i32
  }
  func.func @transform_2(%arg0: i32) -> (i32, i32) {
    %c0_i32 = arith.constant 0 : i32
    %c0_i32_0 = arith.constant 0 : i32
    %c0_i32_1 = arith.constant 0 : i32
    return %c0_i32, %c0_i32_0 : i32, i32
  }
  func.func @transform_3(%arg0: i32) -> (i32, i32) {
    %c0_i32 = arith.constant 0 : i32
    %c0_i32_0 = arith.constant 0 : i32
    %c0_i32_1 = arith.constant 0 : i32
    return %c0_i32, %c0_i32_0 : i32, i32
  }
  func.func @transform_4(%arg0: i32) -> (i32, i32) {
    %c0_i32 = arith.constant 0 : i32
    %c0_i32_0 = arith.constant 0 : i32
    %c0_i32_1 = arith.constant 0 : i32
    return %c0_i32, %c0_i32_0 : i32, i32
  }
  func.func @transform_5(%arg0: i32) -> (i32, i32) {
    %c0_i32 = arith.constant 0 : i32
    %c0_i32_0 = arith.constant 0 : i32
    %c0_i32_1 = arith.constant 0 : i32
    return %c0_i32, %c0_i32_0 : i32, i32
  }
  func.func @transform_6(%arg0: i32) -> (i32, i32) {
    %c0_i32 = arith.constant 0 : i32
    %c0_i32_0 = arith.constant 0 : i32
    %c0_i32_1 = arith.constant 0 : i32
    return %c0_i32, %c0_i32_0 : i32, i32
  }
  func.func @transform_7(%arg0: i32) -> (i32, i32) {
    %c0_i32 = arith.constant 0 : i32
    %c0_i32_0 = arith.constant 0 : i32
    %c0_i32_1 = arith.constant 0 : i32
    return %c0_i32, %c0_i32_0 : i32, i32
  }
  func.func @transform_8(%arg0: i32) -> (i32, i32) {
    %c0_i32 = arith.constant 0 : i32
    %c0_i32_0 = arith.constant 0 : i32
    %c0_i32_1 = arith.constant 0 : i32
    return %c0_i32, %c0_i32_0 : i32, i32
  }
  func.func @transform_9(%arg0: i32) -> (i32, i32) {
    %c0_i32 = arith.constant 0 : i32
    %c0_i32_0 = arith.constant 0 : i32
    %c0_i32_1 = arith.constant 0 : i32
    return %c0_i32, %c0_i32_0 : i32, i32
  }
  func.func @transform_10(%arg0: i32) -> (i32, i32) {
    %c0_i32 = arith.constant 0 : i32
    %c0_i32_0 = arith.constant 0 : i32
    %c0_i32_1 = arith.constant 0 : i32
    return %c0_i32, %c0_i32_0 : i32, i32
  }
  func.func @transform_11(%arg0: i32) -> (i32, i32) {
    %c0_i32 = arith.constant 0 : i32
    %c0_i32_0 = arith.constant 0 : i32
    %c0_i32_1 = arith.constant 0 : i32
    return %c0_i32, %c0_i32_0 : i32, i32
  }
  func.func @transform_12(%arg0: i32) -> (i32, i32) {
    %c0_i32 = arith.constant 0 : i32
    %c0_i32_0 = arith.constant 0 : i32
    %c0_i32_1 = arith.constant 0 : i32
    return %c0_i32, %c0_i32_0 : i32, i32
  }
  func.func @transform_13(%arg0: i32) -> (i32, i32) {
    %c0_i32 = arith.constant 0 : i32
    %c0_i32_0 = arith.constant 0 : i32
    %c0_i32_1 = arith.constant 0 : i32
    return %c0_i32, %c0_i32_0 : i32, i32
  }
  func.func @transform_14(%arg0: i32) -> (i32, i32) {
    %c0_i32 = arith.constant 0 : i32
    %c0_i32_0 = arith.constant 0 : i32
    %c0_i32_1 = arith.constant 0 : i32
    return %c0_i32, %c0_i32_0 : i32, i32
  }
  func.func @transform_15(%arg0: i32) -> (i32, i32) {
    %c0_i32 = arith.constant 0 : i32
    %c0_i32_0 = arith.constant 0 : i32
    %c0_i32_1 = arith.constant 0 : i32
    return %c0_i32, %c0_i32_0 : i32, i32
  }
  func.func @transform_16(%arg0: i32) -> (i32, i32) {
    %c0_i32 = arith.constant 0 : i32
    %c0_i32_0 = arith.constant 0 : i32
    %c0_i32_1 = arith.constant 0 : i32
    return %c0_i32, %c0_i32_0 : i32, i32
  }
  func.func @transform_17(%arg0: i32) -> (i32, i32) {
    %c0_i32 = arith.constant 0 : i32
    %c0_i32_0 = arith.constant 0 : i32
    %c0_i32_1 = arith.constant 0 : i32
    return %c0_i32, %c0_i32_0 : i32, i32
  }
  func.func @transform_18(%arg0: i32) -> (i32, i32) {
    %c0_i32 = arith.constant 0 : i32
    %c0_i32_0 = arith.constant 0 : i32
    return %arg0, %c0_i32 : i32, i32
  }
}

</mosaic_0001>

<bundles_post_ra>
// kernel: tpu_custom_call.1
= control target key start
LH: loop header
LB: loop body
LE: loop exit
PB: predicated region body
PF: predicated region fallthrough
CT: control target
= control target key end

     0   :  { %s17818_s0 = inlined_call_operand.vmem [shape: f32[768,48], index: 0, kind: input, shape index: {}]   ;;  %s17819_s1 = inlined_call_operand.vmem [shape: f32[16,144], index: 1, kind: input, shape index: {}]   ;;  %s17820_s2 = inlined_call_operand.vmem [shape: f32[224,48], index: 2, kind: input, shape index: {}]   ;;  %s17821_s3 = inlined_call_operand.vmem [shape: f32[384,11], index: 3, kind: input, shape index: {}]   ;;  %s17822_s4 = inlined_call_operand.vmem [shape: f32[8,128], index: 4, kind: input, shape index: {}]   ;;  %s17823_s5 = inlined_call_operand.vmem [shape: bf16[48,128], index: 5, kind: input, shape index: {}]   ;;  %s17824_s6 = inlined_call_operand.vmem [shape: bf16[128,48], index: 6, kind: input, shape index: {}]   ;;  %s17825_s7 = inlined_call_operand.vmem [shape: bf16[32,240], index: 7, kind: input, shape index: {}]   ;;  %s17826_s8 = inlined_call_operand.vmem [shape: bf16[64,160], index: 8, kind: input, shape index: {}]   ;;  %s17827_s9 = inlined_call_operand.vmem [shape: bf16[64,320], index: 9, kind: input, shape index: {}]   ;;  %s17828_s10 = inlined_call_operand.vmem [shape: bf16[32,320], index: 10, kind: input, shape index: {}]   ;;  %s17829_s11 = inlined_call_operand.vmem [shape: bf16[32,160], index: 11, kind: input, shape index: {}]   ;;  %s17830_s12 = inlined_call_operand.vmem [shape: bf16[16,160], index: 12, kind: input, shape index: {}]   ;;  %s17831_s13 = inlined_call_operand.vmem [shape: f32[49,24], index: 13, kind: input, shape index: {}]   ;;  %s17832_s14 = inlined_call_operand.vmem [shape: f32[25,3], index: 14, kind: input, shape index: {}]   ;;  %s17833_s15 = inlined_call_operand.vmem [shape: f32[129,128], index: 15, kind: input, shape index: {}]   ;;  %s17834_s16 = inlined_call_operand.vmem [shape: f32[129,128], index: 16, kind: input, shape index: {}]   ;;  %s17835_s17 = inlined_call_operand.vmem [shape: f32[129,48], index: 17, kind: input, shape index: {}]   ;;  %s17836_s18 = inlined_call_operand.hbm [shape: f32[16,48], index: 18, kind: output, shape index: {}]  }
   0x1   :  { %17852 = sst [smem:[#allocation25_spill]] %s17818_s0 }
   0x2   :  { %17853 = sst [smem:[#allocation26_spill]] %s17819_s1 }
   0x3   :  { %17854 = sst [smem:[#allocation27_spill]] %s17820_s2 }
   0x4   :  { %17855 = sst [smem:[#allocation28_spill]] %s17821_s3 }
   0x5   :  { %17856 = sst [smem:[#allocation29_spill]] %s17836_s18 }
   0x6   :  { %23 = vsyncpa [#allocation3], 0 }
   0x7   :  { %25 = vsyncpa [#allocation3 + $0x1], 0  ;;  %s13076_s27 = smov 0   ;;  %s13078_s28 = smov 0  }
   0x8   :  { %s13080_s29 = smov 0   ;;  %s13082_s30 = smov 0  }
   0x9 LB: > { %17857 = sst [smem:[#allocation5_spill]] %s12961_s27  ;;  %s13097_s0 = sadd.s32 4294967295, %s12973_s30   ;;  %s12973_s30 = sphi %s13082_s30, %s17904_s30   ;;  %s12969_s29 = sphi %s13080_s29, %s17906_s29   ;;  %s12965_s28 = sphi %s13078_s28, %s17908_s28   ;;  %s12961_s27 = sphi %s13076_s27, %s17907_s27  }
   0xa   : > { %17858 = sst [smem:[#allocation6_spill]] %s12969_s29  ;;  %s10489_s19 = sadd.s32 4294967294, %s12973_s30  }
   0xb   : > { %17859 = sst [smem:[#allocation7_spill]] %s12973_s30  ;;  %s13101_s1 = sadd.s32 1, %s12973_s30  }
   0xc   : > { %17860 = sst [smem:[#allocation8_spill]] %s13101_s1  ;;  %s426_s20 = sadd.s32 1, %s12969_s29 }
   0xd   : > { %s423_s21 = ssub.s32 %s12973_s30, %s13101_s1  ;;  %p436_p0 = scmp.ne.s32.totalorder %s12969_s29, %s12965_s28 }
   0xe   : > { %p424_p1 = scmp.eq.s32.totalorder %s423_s21, 0  ;;  %p437_p2 = scmp.eq.s32.totalorder %s13097_s0, 1 }
   0xf   : > { %p442_p3 = scmp.ne.s32.totalorder %s12965_s28, %s12961_s27  ;;  %p443_p4 = scmp.eq.s32.totalorder %s10489_s19, 1 }
  0x10   : > { %s13112_s22 = scalar_select %p424_p1, %s12969_s29, %s426_s20  }
  0x11   : > { %p13114_p5 = por %p437_p2, %p436_p0  ;;  %p13118_p6 = por %p443_p4, %p442_p3 }
  0x12   : > { %17861 = sst [smem:[#allocation9_spill]] %s13112_s22  ;;  %p10492_p7 = scmp.ge.s32.totalorder %s12973_s30, 1 }
  0x13   : > { %s17863_s23 = scalar_select %p13118_p6, 1, 0 }
  0x14   : > { %p526_p8 = scmp.lt.s32.totalorder %s12973_s30, 3 }
  0x15   : > { %17864 = sst [smem:[#allocation10_spill]] %s17863_s23 }
  0x16   : > { %p527_p9 = pnand %p10492_p7, %p526_p8 }
  0x18   : > { %530 = sbr.rel (%p527_p9) target bundleno = 5275 (0x149b), region = 92 }
  0x1f   : > { %s17865_s26 = sld [smem:[#allocation27_spill]]  ;;  %p591_p10 = scmp.lt.s32.totalorder %s13097_s0, 1  ;;  %v17847_v3 = vmov 0.0|0.0   ;;  %vm746_vm0 = vcmask 130048   ;;  %v820_v10 = vld [vmem:[%s17831_s13] sm:$0xff]  ;;  %v821_v12 = vld [vmem:[%s17831_s13 + $0x8] sm:$0xff] }
  0x20   : > { %12607 = vmatprep.subr.bf16.mxu0 %v17847_v3  ;;  %12634 = vmatprep.subr.bf16.mxu1 %v17847_v3  ;;  %s17866_s1 = sld [smem:[#allocation26_spill]]  ;;  %v822_v13 = vld [vmem:[%s17831_s13 + $0x10] sm:$0xff]  ;;  %v823_v14 = vld [vmem:[%s17831_s13 + $0x18] sm:$0xff]  ;;  %v12635_v17 = vpack.c.bf16 %v821_v12, %v820_v10  ;;  %v824_v18 = vld [vmem:[%s17831_s13 + $0x20] sm:$0xff]  ;;  %vm12976_vm1 = vmmov 0   ;;  %v17845_v39 = vmov 0.0  }
  0x21   : > { %s592_s24 = scalar_select %p591_p10, %s13097_s0, 1  ;;  %v825_v19 = vld [vmem:[%s17831_s13 + $0x28] sm:$0xff]  ;;  %v12638_v22 = vpack.c.bf16 %v823_v14, %v822_v13  ;;  %11781 = vmatprep.mubr.msk.f32.mxu1 %vm12976_vm1, %v17845_v39  ;;  %vm835_vm2 = vcmask 392192   ;;  %v827_v42 = vld [vmem:[%s17832_s14] sm:$0xff]  ;;  %v829_v45 = vld [vmem:[%s17832_s14 + $0x10] sm:$0xff]  ;;  %vm916_vm4 = vcmask 195584  }
  0x22   : > { %12636 = vmatpush3.bf16.msra.mxu1 %v12635_v17  ;;  %v12641_v26 = vpack.c.bf16 %v825_v19, %v824_v18  ;;  %v828_v43 = vld [vmem:[%s17832_s14 + $0x8] sm:$0xff]  ;;  %v10498_v46 = vld [vmem:[%s17831_s13 + $0x30] ss:$0 sm:$0xff]  ;;  %v10500_v52 = vld [vmem:[%s17832_s14 + $0x18] ss:$0 sm:$0xff]  ;;  %vm990_vm5 = vcmask 23552  }
  0x23   : > { %s10796_s21 = sshll.u32 %s592_s24, 4  ;;  %12637 = vmatprep.subr.bf16.mxu1 %v17847_v3  ;;  %v12644_v44 = vpack.c.bf16 %v828_v43, %v827_v42  ;;  %s17867_s3 = sld [smem:[#allocation28_spill]]  ;;  %vm1050_vm6 = vcmask 64512   ;;  %vm2076_vm7 = vcmask 916480  }
  0x24   : > { %s12978_s23 = smov 120   ;;  %s585_s29 = smul.u32 48, %s13097_s0 }
  0x25   : > { %v607_v0 = vld [vmem:[%s17865_s26 + $0x50] sm:$0xff]  ;;  %v608_v1 = vld [vmem:[%s17865_s26 + $0x58] sm:$0xff]  ;;  %v609_v2 = vld [vmem:[%s17865_s26 + $0x60] sm:$0xff]  ;;  %s17868_s24 = sld [smem:[#allocation25_spill]]  ;;  %s582_s20 = sand.u32 1, %s12965_s28  }
  0x26   : > { %v12608_v4 = vpack.c.bf16 %v608_v1, %v607_v0  ;;  %v610_v5 = vld [vmem:[%s17865_s26 + $0x68] sm:$0xff]  ;;  %v611_v7 = vld [vmem:[%s17865_s26 + $0x70] sm:$0xff]  ;;  %v612_v8 = vld [vmem:[%s17865_s26 + $0x78] sm:$0xff]  ;;  %s13150_s27 = scalar_lea.vmem %s17866_s1, %s10796_s21  ;;  %12639 = vmatpush3.bf16.msra.mxu1 %v12638_v22  ;;  %p586_p11 = scmp.lt.s32.totalorder %s585_s29, 95 }
  0x27   : > { %v12611_v6 = vpack.c.bf16 %v610_v5, %v609_v2  ;;  %v745_v9 = vld [vmem:[%s13150_s27 + $0x8] sm:$0xff]  ;;  %v12614_v11 = vpack.c.bf16 %v612_v8, %v611_v7  ;;  %v613_v15 = vld [vmem:[%s17865_s26 + $0x80] sm:$0xff]  ;;  %v615_v20 = vld [vmem:[%s17865_s26 + $0x90] sm:$0xff]  ;;  %12640 = vmatprep.subr.bf16.mxu1 %v17847_v3  ;;  %s10493_s21 = sshll.u32 %s582_s20, 3  ;;  %s17900_s19 = sld [smem:[#allocation29_spill]] }
  0x28   : > { %12609 = vmatpush1.bf16.msra.mxu0 %v12608_v4  ;;  %10497 = vmatprep.mubr.msk.f32.mxu0 %vm746_vm0, %v745_v9  ;;  %v614_v16 = vld [vmem:[%s17865_s26 + $0x88] sm:$0xff]  ;;  %v616_v21 = vld [vmem:[%s17865_s26 + $0x98] sm:$0xff]  ;;  %v617_v24 = vld [vmem:[%s17865_s26 + $0xa0] sm:$0xff]  ;;  %s17910_s29 = smov (!%p586_p11, %s585_s29), 95 }
  0x29   : > { %12610 = vmatprep.subr.bf16.mxu0 %v17847_v3  ;;  %v12617_v23 = vpack.c.bf16 %v614_v16, %v613_v15  ;;  %v618_v25 = vld [vmem:[%s17865_s26 + $0xa8] sm:$0xff]  ;;  %v12620_v27 = vpack.c.bf16 %v616_v21, %v615_v20  ;;  %v619_v28 = vld [vmem:[%s17865_s26 + $0xb0] sm:$0xff]  ;;  %v620_v29 = vld [vmem:[%s17865_s26 + $0xb8] sm:$0xff]  ;;  %s10494_s1 = sshll.u32 %s17910_s29, 3  ;;  %s10793_s29 = sshll.u32 %s13097_s0, 7 }
  0x2a   : > { %12642 = vmatpush3.bf16.msra.mxu1 %v12641_v26  ;;  %v12623_v30 = vpack.c.bf16 %v618_v25, %v617_v24  ;;  %v621_v31 = vld [vmem:[%s17865_s26 + $0xc0] sm:$0xff]  ;;  %v622_v32 = vld [vmem:[%s17865_s26 + $0xc8] sm:$0xff]  ;;  %v12626_v33 = vpack.c.bf16 %v620_v29, %v619_v28  ;;  %v623_v34 = vld [vmem:[%s17865_s26 + $0xd0] sm:$0xff]  ;;  %s12980_s0 = smov [#allocation2]  }
  0x2b   : > { %12643 = vmatprep.subr.bf16.mxu1 %v17847_v3  ;;  %v624_v35 = vld [vmem:[%s17865_s26 + $0xd8] sm:$0xff]  ;;  %v12629_v36 = vpack.c.bf16 %v622_v32, %v621_v31  ;;  %v744_v38 = vld [vmem:[%s13150_s27] sm:$0xff]  ;;  %v1020_v63 = vld [vmem:[%s17867_s3 + $0x90] sm:$0xff]  ;;  %s13757_s22 = scalar_lea.vmem %s17868_s24, %s10494_s1  ;;  %s10405_s24 = scalar_lea.sflag [#allocation3], %s582_s20 }
  0x2c   : > { %12612 = vmatpush1.bf16.msra.mxu0 %v12611_v6  ;;  %v12632_v37 = vpack.c.bf16 %v624_v35, %v623_v34  ;;  %v1002_v62 = vld [vmem:[%s17867_s3] sm:$0xff]  ;;  %v13255_v0 = vld [vmem:[%s17867_s3 + $0x10] sm:$0xff]  ;;  %v13263_v1 = vld [vmem:[%s17867_s3 + $0x8] sm:$0xff] }
  0x2d   : > { %12613 = vmatprep.subr.bf16.mxu0 %v17847_v3  ;;  %1500 = vrot.lane.b32.xlu1 %v1002_v62, %s12978_s23  ;;  %v13268_v2 = vld [vmem:[%s17867_s3 + $0x48] sm:$0xff]  ;;  %v13277_v4 = vld [vmem:[%s17867_s3 + $0x18] sm:$0xff]  ;;  %v13291_v6 = vld [vmem:[%s17867_s3 + $0x20] sm:$0xff] }
  0x2e   : > { %v13282_v5 = vld [vmem:[%s17867_s3 + $0x58] sm:$0xff]  ;;  %v13296_v7 = vld [vmem:[%s17867_s3 + $0x60] sm:$0xff]  ;;  %v13305_v8 = vld [vmem:[%s17867_s3 + $0x28] sm:$0xff] }
  0x2f   : > { %v13310_v9 = vld [vmem:[%s17867_s3 + $0x70] sm:$0xff]  ;;  %v13333_v12 = vld [vmem:[%s17867_s3 + $0x38] sm:$0xff]  ;;  %v13347_v14 = vld [vmem:[%s17867_s3 + $0x40] sm:$0xff] }
  0x30   : > { %12615 = vmatpush1.bf16.msra.mxu0 %v12614_v11  ;;  %v13319_v10 = vld [vmem:[%s17867_s3 + $0x30] sm:$0xff]  ;;  %v13324_v11 = vld [vmem:[%s17867_s3 + $0x88] sm:$0xff]  ;;  %v13338_v13 = vld [vmem:[%s17867_s3 + $0x98] sm:$0xff] }
  0x31   : > { %12616 = vmatprep.subr.bf16.mxu0 %v17847_v3  ;;  %1502 = vrot.lane.b32.xlu1 %v13263_v1, %s12978_s23  ;;  %v13352_v15 = vld [vmem:[%s17867_s3 + $0xa0] sm:$0xff]  ;;  %v13361_v16 = vld [vmem:[%s17867_s3 + $0x50] sm:$0xff]  ;;  %v13375_v18 = vld [vmem:[%s17867_s3 + $0x68] sm:$0xff] }
  0x32   : > { %v13366_v17 = vld [vmem:[%s17867_s3 + $0xb0] sm:$0xff]  ;;  %v13380_v19 = vld [vmem:[%s17867_s3 + $0xc0] sm:$0xff]  ;;  %v13389_v20 = vld [vmem:[%s17867_s3 + $0x78] sm:$0xff] }
  0x33   : > { %v13394_v21 = vld [vmem:[%s17867_s3 + $0xd0] sm:$0xff]  ;;  %v13403_v22 = vld [vmem:[%s17867_s3 + $0x80] sm:$0xff]  ;;  %v1023_v25 = vld [vmem:[%s17867_s3 + $0xa8] sm:$0xff] }
  0x34   : > { %12618 = vmatpush1.bf16.msra.mxu0 %v12617_v23  ;;  %v13408_v23 = vld [vmem:[%s17867_s3 + $0xe0] sm:$0xff]  ;;  %v13417_v24 = vld [vmem:[%s17867_s3 + $0xf0] sm:$0xff]  ;;  %v1027_v29 = vld [vmem:[%s17867_s3 + $0xc8] sm:$0xff] }
  0x35   : > { %12619 = vmatprep.subr.bf16.mxu0 %v17847_v3  ;;  %1506 = vrot.lane.b32.xlu1 %v13277_v4, %s12978_s23  ;;  %v13428_v26 = vld [vmem:[%s17867_s3 + $0x100] sm:$0xff]  ;;  %v13439_v28 = vld [vmem:[%s17867_s3 + $0x110] sm:$0xff]  ;;  %v1029_v31 = vld [vmem:[%s17867_s3 + $0xd8] sm:$0xff] }
  0x36   : > { %v13461_v32 = vld [vmem:[%s17867_s3 + $0x130] sm:$0xff]  ;;  %v13472_v34 = vld [vmem:[%s17867_s3 + $0x140] sm:$0xff]  ;;  %v1033_v35 = vld [vmem:[%s17867_s3 + $0xf8] sm:$0xff] }
  0x37   : > { %v1041_v42 = vld [vmem:[%s17867_s3 + $0x138] sm:$0xff] }
  0x38   : > { %12621 = vmatpush1.bf16.msra.mxu0 %v12620_v27  ;;  %v1025_v27 = vld [vmem:[%s17867_s3 + $0xb8] sm:$0xff] }
  0x39   : > { %12622 = vmatprep.subr.bf16.mxu0 %v17847_v3  ;;  %1508 = vrot.lane.b32.xlu1 %v13291_v6, %s12978_s23 }
  0x3c   : > { %12624 = vmatpush1.bf16.msra.mxu0 %v12623_v30  ;;  %v13450_v30 = vld [vmem:[%s17867_s3 + $0x120] sm:$0xff] }
  0x3d   : > { %12625 = vmatprep.subr.bf16.mxu0 %v17847_v3  ;;  %1510 = vrot.lane.b32.xlu1 %v13305_v8, %s12978_s23 }
  0x40   : > { %12627 = vmatpush1.bf16.msra.mxu0 %v12626_v33  ;;  %v1031_v33 = vld [vmem:[%s17867_s3 + $0xe8] sm:$0xff] }
  0x41   : > { %12628 = vmatprep.subr.bf16.mxu0 %v17847_v3  ;;  %1512 = vrot.lane.b32.xlu1 %v13319_v10, %s12978_s23 }
  0x44   : > { %12630 = vmatpush1.bf16.msra.mxu0 %v12629_v36  ;;  %v13483_v36 = vld [vmem:[%s17867_s3 + $0x158] sm:$0xff] }
  0x45   : > { %12631 = vmatprep.subr.bf16.mxu0 %v17847_v3  ;;  %1514 = vrot.lane.b32.xlu1 %v13333_v12, %s12978_s23 }
  0x48   : > { %12633 = vmatpush1.bf16.msra.mxu0 %v12632_v37  ;;  %v1035_v37 = vld [vmem:[%s17867_s3 + $0x108] sm:$0xff] }
  0x49   : > { %1516 = vrot.lane.b32.xlu1 %v13347_v14, %s12978_s23 }
  0x4b   : > { %815 = vmatmul.mubr.f32.vlgmr.msra.gmra.mrb[0].mxu0 %v744_v38 }
  0x4c   : > { %11795 = vmatprep.mubr.msk.f32.mxu0 %vm1050_vm6, %v1002_v62 }
  0x4d   : > { %1520 = vrot.lane.b32.xlu1 %v13361_v16, %s12978_s23 }
  0x51   : > { %1526 = vrot.lane.b32.xlu1 %v13375_v18, %s12978_s23 }
  0x55   : > { %1530 = vrot.lane.b32.xlu1 %v13389_v20, %s12978_s23 }
  0x59   : > { %1532 = vrot.lane.b32.xlu1 %v13403_v22, %s12978_s23 }
  0x5d   : > { %1536 = vrot.lane.b32.xlu1 %v1020_v63, %s12978_s23 }
  0x61   : > { %1542 = vrot.lane.b32.xlu1 %v1023_v25, %s12978_s23 }
  0x65   : > { %1546 = vrot.lane.b32.xlu1 %v1025_v27, %s12978_s23 }
  0x69   : > { %1550 = vrot.lane.b32.xlu1 %v1027_v29, %s12978_s23 }
  0x6d   : > { %1554 = vrot.lane.b32.xlu1 %v1029_v31, %s12978_s23 }
  0x71   : > { %1558 = vrot.lane.b32.xlu1 %v1031_v33, %s12978_s23 }
  0x75   : > { %1562 = vrot.lane.b32.xlu1 %v1033_v35, %s12978_s23 }
  0x79   : > { %1566 = vrot.lane.b32.xlu1 %v1035_v37, %s12978_s23 }
 0x11e   : > { %v816_v40 = vpop.f32.mrb[0].mxu0 }
 0x11f   : > { %v818_v41 = vpop.f32.mrb[1].mxu0  ;;  %11782 = vmatmul.mubr.msk.f32.vlgmr.msra.gmra.mrb[0].mxu1 %vm835_vm2, %v816_v40  ;;  %v1037_v40 = vld [vmem:[%s17867_s3 + $0x118] sm:$0xff] }
 0x120   : > { %11790 = vmatprep.mubr.msk.f32.mxu1 %vm12976_vm1, %v17845_v39  ;;  %12645 = vmatpush3.bf16.msra.mxu1 %v12644_v44  ;;  %v1039_v41 = vld [vmem:[%s17867_s3 + $0x128] sm:$0xff] }
 0x121   : > { %11788 = vmatprep.subr.mxu1 %v17845_v39  ;;  %1570 = vrot.lane.b32.xlu1 %v1037_v40, %s12978_s23 }
 0x124   : > { %11789 = vmatpush3.msra.mxu1 %v829_v45  ;;  %v1043_v45 = vld [vmem:[%s17867_s3 + $0x148] sm:$0xff] }
 0x125   : > { %1574 = vrot.lane.b32.xlu1 %v1039_v41, %s12978_s23 }
 0x129   : > { %1578 = vrot.lane.b32.xlu1 %v1041_v42, %s12978_s23 }
 0x12d   : > { %1582 = vrot.lane.b32.xlu1 %v1043_v45, %s12978_s23 }
 0x1f2   : > { %v905_v47 = vpop.f32.mrb[0].mxu1 }
 0x1f3   : > { %v906_v48 = vadd.f32 %v10498_v46, %v905_v47  ;;  %v11783_v49 = vpop.f32.mrb[1].mxu1  ;;  %v1044_v46 = vld [vmem:[%s17867_s3 + $0x150] sm:$0xff]  ;;  %v13586_v47 = vld [vmem:[%s17867_s3 + $0x160] sm:$0xff] }
 0x1f4   : > { %1584 = vrot.lane.b32.xlu1 %v1044_v46, %s12978_s23  ;;  %v13602_v49 = vld [vmem:[%s17867_s3 + $0x170] sm:$0xff] }
 0x1f5   : > { %v910_v50 = vmul.f32 0.1, %v906_v48  ;;  %vm909_vm3 = vcmp.gt.f32.partialorder %v906_v48, 0.0 }
 0x1f7   : > { %v911_v51 = vsel %vm909_vm3, %v906_v48, %v910_v50  ;;  %v13595_v48 = vld [vmem:[%s17867_s3 + $0x168] sm:$0xff]  ;;  %v13609_v50 = vld [vmem:[%s17867_s3 + $0x178] sm:$0xff]  ;;  %s17775_s3 = scalar_lea.hbm %s17900_s19, %s10793_s29 }
 0x1f8   : > { %11791 = vmatmul.mubr.msk.f32.vlgmr.msra.gmra.mrb[2].mxu1 %vm916_vm4, %v911_v51  ;;  %v1501_v51 = vpop.permute.xlu1 %1500 }
 0x1f9   : > { %11822 = vmatprep.mubr.msk.f32.mxu1 %vm1050_vm6, %v1020_v63 }
 0x2cb   : > { %v986_v53 = vpop.f32.mrb[2].mxu1 }
 0x2cc   : > { %v11792_v54 = vpop.f32.mrb[3].mxu1  ;;  %v987_v55 = vadd.f32 %v10500_v52, %v986_v53  ;;  %v1503_v52 = vpop.permute.xlu1 %1502 }
 0x2ce   : > { %v991_v56 = vsel %vm990_vm5, %v987_v55, -inf }
 0x2cf   : > { %992 = vmax.xlane.f32.xlu0 %v991_v56 }
 0x2d0   : > { %v1507_v53 = vpop.permute.xlu1 %1506 }
 0x2d4   : > { %v1509_v54 = vpop.permute.xlu1 %1508 }
 0x35c   : > { %v993_v57 = vpop.xlane.xlu0 %992 }
 0x35d   : > { %v994_v58 = vsub.f32 %v987_v55, %v993_v57  ;;  %v1511_v55 = vpop.permute.xlu1 %1510 }
 0x35f   : > { %v995_v59 = vmul.f32 1.442695, %v994_v58 }
 0x361   : > { %12853 = vpow2.f32 %v995_v59  ;;  %v13613_v56 = vpop.permute.xlu1 %1512 }
 0x365   : > { %v13615_v57 = vpop.permute.xlu1 %1514 }
 0x369   : > { %v13617_v59 = vpop.permute.xlu1 %1516 }
 0x36b   : > { %v13240_v60 = vpop.eup %12853 }
 0x36c   : > { %v997_v61 = vsel %vm990_vm5, %v13240_v60, 0.0 }
 0x36d   : > { %998 = vadd.xlane.f32.xlu0 %v997_v61  ;;  %v13621_v61 = vpop.permute.xlu1 %1520 }
 0x371   : > { %v13625_v63 = vpop.permute.xlu1 %1526 }
 0x383   : > { %1504 = vrot.lane.b32.xlu0 %v13255_v0, %s12978_s23 }
 0x387   : > { %1518 = vrot.lane.b32.xlu0 %v13268_v2, %s12978_s23 }
 0x38b   : > { %1522 = vrot.lane.b32.xlu0 %v13282_v5, %s12978_s23 }
 0x38f   : > { %1524 = vrot.lane.b32.xlu0 %v13296_v7, %s12978_s23 }
 0x393   : > { %1528 = vrot.lane.b32.xlu0 %v13310_v9, %s12978_s23 }
 0x397   : > { %1534 = vrot.lane.b32.xlu0 %v13324_v11, %s12978_s23 }
 0x39b   : > { %1538 = vrot.lane.b32.xlu0 %v13338_v13, %s12978_s23 }
 0x39f   : > { %1540 = vrot.lane.b32.xlu0 %v13352_v15, %s12978_s23 }
 0x3a3   : > { %1544 = vrot.lane.b32.xlu0 %v13366_v17, %s12978_s23 }
 0x3a7   : > { %1548 = vrot.lane.b32.xlu0 %v13380_v19, %s12978_s23 }
 0x3ab   : > { %1552 = vrot.lane.b32.xlu0 %v13394_v21, %s12978_s23 }
 0x3af   : > { %1556 = vrot.lane.b32.xlu0 %v13408_v23, %s12978_s23 }
 0x3b3   : > { %1560 = vrot.lane.b32.xlu0 %v13417_v24, %s12978_s23 }
 0x3b7   : > { %1564 = vrot.lane.b32.xlu0 %v13428_v26, %s12978_s23 }
 0x3bb   : > { %1568 = vrot.lane.b32.xlu0 %v13439_v28, %s12978_s23 }
 0x3bf   : > { %1572 = vrot.lane.b32.xlu0 %v13450_v30, %s12978_s23 }
 0x3c3   : > { %1576 = vrot.lane.b32.xlu0 %v13461_v32, %s12978_s23 }
 0x3c7   : > { %1580 = vrot.lane.b32.xlu0 %v13472_v34, %s12978_s23 }
 0x3cb   : > { %1586 = vrot.lane.b32.xlu0 %v13483_v36, %s12978_s23 }
 0x3fa   : > { %v999_v38 = vpop.xlane.xlu0 %998 }
 0x3fb   : > { %12855 = vrcp.f32 %v999_v38 }
 0x3fe   : > { %v1505_v58 = vpop.permute.xlu0 %1504 }
 0x405   : > { %v12856_v43 = vpop.eup %12855 }
 0x406   : > { %v1001_v44 = vmul.f32 %v12856_v43, %v13240_v60  ;;  %v13619_v60 = vpop.permute.xlu0 %1518 }
 0x408   : > { %11793 = vmatprep.subr.mxu0 %v1001_v44  ;;  %12742 = vmatprep.subr.mxu1 %v1001_v44 }
 0x409   : > { %11794 = vmatpush3.msra.mxu0 %v1001_v44  ;;  %12743 = vmatpush3.msra.mxu1 %v1001_v44 }
 0x40a   : > { %11796 = vmatmul.mubr.msk.f32.vlgmr.msra.gmra.mrb[2].mxu0 %vm1050_vm6, %v13263_v1  ;;  %11823 = vmatmul.mubr.msk.f32.vlgmr.msra.gmra.mrb[4].mxu1 %vm1050_vm6, %v13338_v13  ;;  %v13623_v62 = vpop.permute.xlu0 %1522  ;;  %v13629_v1 = vpop.permute.xlu1 %1530 }
 0x40b   : > { %11798 = vmatprep.mubr.msk.f32.mxu0 %vm1050_vm6, %v13255_v0  ;;  %11825 = vmatprep.mubr.msk.f32.mxu1 %vm1050_vm6, %v13352_v15 }
 0x40e   : > { %11799 = vmatmul.mubr.msk.f32.gmra.mrb[4].mxu0 %vm1050_vm6, %v13277_v4  ;;  %11826 = vmatmul.mubr.msk.f32.gmra.mrb[6].mxu1 %vm1050_vm6, %v1023_v25  ;;  %v13627_v0 = vpop.permute.xlu0 %1524  ;;  %v13633_v4 = vpop.permute.xlu1 %1532 }
 0x40f   : > { %11801 = vmatprep.mubr.msk.f32.mxu0 %vm1050_vm6, %v13291_v6  ;;  %11828 = vmatprep.mubr.msk.f32.mxu1 %vm1050_vm6, %v13366_v17 }
 0x412   : > { %11802 = vmatmul.mubr.msk.f32.gmra.mrb[6].mxu0 %vm1050_vm6, %v13305_v8  ;;  %11829 = vmatmul.mubr.msk.f32.gmra.mrb[8].mxu1 %vm1050_vm6, %v1025_v27  ;;  %v1537_v6 = vpop.permute.xlu1 %1536 }
 0x413   : > { %11804 = vmatprep.mubr.msk.f32.mxu0 %vm1050_vm6, %v13319_v10  ;;  %11831 = vmatprep.mubr.msk.f32.mxu1 %vm1050_vm6, %v13380_v19 }
 0x416   : > { %11805 = vmatmul.mubr.msk.f32.gmra.mrb[8].mxu0 %vm1050_vm6, %v13333_v12  ;;  %11832 = vmatmul.mubr.msk.f32.gmra.mrb[10].mxu1 %vm1050_vm6, %v1027_v29  ;;  %v1543_v15 = vpop.permute.xlu1 %1542 }
 0x417   : > { %11807 = vmatprep.mubr.msk.f32.mxu0 %vm1050_vm6, %v13347_v14  ;;  %11834 = vmatprep.mubr.msk.f32.mxu1 %vm1050_vm6, %v13394_v21 }
 0x41a   : > { %11808 = vmatmul.mubr.msk.f32.gmra.mrb[10].mxu0 %vm1050_vm6, %v13268_v2  ;;  %11835 = vmatmul.mubr.msk.f32.gmra.mrb[12].mxu1 %vm1050_vm6, %v1029_v31  ;;  %v13631_v2 = vpop.permute.xlu0 %1528 }
 0x41b   : > { %11810 = vmatprep.mubr.msk.f32.mxu0 %vm1050_vm6, %v13361_v16  ;;  %11837 = vmatprep.mubr.msk.f32.mxu1 %vm1050_vm6, %v13408_v23 }
 0x41e   : > { %11811 = vmatmul.mubr.msk.f32.gmra.mrb[12].mxu0 %vm1050_vm6, %v13282_v5  ;;  %11838 = vmatmul.mubr.msk.f32.gmra.mrb[14].mxu1 %vm1050_vm6, %v1031_v33  ;;  %v13635_v5 = vpop.permute.xlu0 %1534 }
 0x41f   : > { %11813 = vmatprep.mubr.msk.f32.mxu0 %vm1050_vm6, %v13296_v7  ;;  %11840 = vmatprep.mubr.msk.f32.mxu1 %vm1050_vm6, %v13417_v24 }
 0x422   : > { %11814 = vmatmul.mubr.msk.f32.gmra.mrb[14].mxu0 %vm1050_vm6, %v13375_v18  ;;  %11841 = vmatmul.mubr.msk.f32.gmra.mrb[16].mxu1 %vm1050_vm6, %v1033_v35  ;;  %v1539_v7 = vpop.permute.xlu0 %1538 }
 0x423   : > { %11816 = vmatprep.mubr.msk.f32.mxu0 %vm1050_vm6, %v13310_v9  ;;  %11843 = vmatprep.mubr.msk.f32.mxu1 %vm1050_vm6, %v13428_v26 }
 0x426   : > { %11817 = vmatmul.mubr.msk.f32.gmra.mrb[16].mxu0 %vm1050_vm6, %v13389_v20  ;;  %11844 = vmatmul.mubr.msk.f32.gmra.mrb[18].mxu1 %vm1050_vm6, %v1035_v37  ;;  %v1541_v26 = vpop.permute.xlu0 %1540 }
 0x427   : > { %11819 = vmatprep.mubr.msk.f32.mxu0 %vm1050_vm6, %v13403_v22  ;;  %11846 = vmatprep.mubr.msk.f32.mxu1 %vm1050_vm6, %v13439_v28 }
 0x42a   : > { %11820 = vmatmul.mubr.msk.f32.gmra.mrb[18].mxu0 %vm1050_vm6, %v13324_v11  ;;  %11847 = vmatmul.mubr.msk.f32.gmra.mrb[20].mxu1 %vm1050_vm6, %v1037_v40  ;;  %v1545_v44 = vpop.permute.xlu0 %1544 }
 0x42b   : > { %11849 = vmatprep.mubr.msk.f32.mxu1 %vm1050_vm6, %v13450_v30 }
 0x42e   : > { %11850 = vmatmul.mubr.msk.f32.gmra.mrb[22].mxu1 %vm1050_vm6, %v1039_v41 }
 0x42f   : > { %11852 = vmatprep.mubr.msk.f32.mxu1 %vm1050_vm6, %v13461_v32 }
 0x432   : > { %11853 = vmatmul.mubr.msk.f32.gmra.mrb[24].mxu1 %vm1050_vm6, %v1041_v42 }
 0x433   : > { %11855 = vmatprep.mubr.msk.f32.mxu1 %vm1050_vm6, %v13472_v34  ;;  %v1547_v34 = vpop.permute.xlu1 %1546 }
 0x436   : > { %11856 = vmatmul.mubr.msk.f32.gmra.mrb[26].mxu1 %vm1050_vm6, %v1043_v45 }
 0x437   : > { %11858 = vmatprep.mubr.msk.f32.mxu1 %vm1050_vm6, %v1044_v46 }
 0x43a   : > { %11859 = vmatmul.mubr.msk.f32.gmra.mrb[28].mxu1 %vm1050_vm6, %v13483_v36 }
 0x43b   : > { %11861 = vmatprep.mubr.msk.f32.mxu1 %vm1050_vm6, %v13586_v47 }
 0x43e   : > { %11862 = vmatmul.mubr.msk.f32.gmra.mrb[30].mxu1 %vm1050_vm6, %v13595_v48 }
 0x43f   : > { %11864 = vmatprep.mubr.msk.f32.mxu1 %vm1050_vm6, %v13602_v49 }
 0x442   : > { %11865 = vmatmul.mubr.msk.f32.gmra.mrb[32].mxu1 %vm1050_vm6, %v13609_v50 }
 0x4dd   : > { %v11797_v8 = vpop.f32.mrb[2].mxu0  ;;  %v11824_v9 = vpop.f32.mrb[4].mxu1 }
 0x4de   : > { %v1261_v10 = vpop.f32.mrb[3].mxu0  ;;  %v1663_v11 = vmul.f32 %v11824_v9, %v1539_v7  ;;  %v1351_v12 = vpop.f32.mrb[5].mxu1  ;;  %v1645_v13 = vmul.f32 %v11797_v8, %v1503_v52 }
 0x4df   : > { %v1644_v14 = vmul.f32 %v1501_v51, %v1261_v10  ;;  %v1662_v16 = vmul.f32 %v1537_v6, %v1351_v12  ;;  %v1551_v9 = vpop.permute.xlu1 %1550 }
 0x4e0   : > { %v1695_v17 = vsel %vm990_vm5, %v1645_v13, 0.0  ;;  %v1749_v22 = vsel %vm990_vm5, %v1663_v11, 0.0 }
 0x4e1   : > { %1696 = vadd.xlane.f32.xlu0 %v1695_v17  ;;  %v11800_v18 = vpop.f32.mrb[4].mxu0  ;;  %v1692_v19 = vsel %vm990_vm5, %v1644_v14, 0.0  ;;  %v11827_v20 = vpop.f32.mrb[6].mxu1  ;;  %v1746_v25 = vsel %vm990_vm5, %v1662_v16, 0.0 }
 0x4e2   : > { %1693 = vadd.xlane.f32.xlu1 %v1692_v19  ;;  %v1271_v21 = vpop.f32.mrb[5].mxu0  ;;  %v1361_v23 = vpop.f32.mrb[7].mxu1  ;;  %v1665_v24 = vmul.f32 %v11827_v20, %v1543_v15  ;;  %v1647_v28 = vmul.f32 %v11800_v18, %v1507_v53  ;;  %v17849_v20 = vmov 0  }
 0x4e3   : > { %v1646_v33 = vmul.f32 %v1505_v58, %v1271_v21  ;;  %v1664_v37 = vmul.f32 %v1541_v26, %v1361_v23  ;;  %v1549_v16 = vpop.permute.xlu0 %1548  ;;  %2083 = vmatprep.subr.bf16.mxu0 %v17849_v20  ;;  %2132 = vmatprep.subr.bf16.mxu1 %v17849_v20 }
 0x4e4   : > { %v1755_v31 = vsel %vm990_vm5, %v1665_v24, 0.0  ;;  %v1701_v36 = vsel %vm990_vm5, %v1647_v28, 0.0 }
 0x4e5   : > { %1750 = vadd.xlane.f32.xlu0 %v1749_v22  ;;  %v11803_v27 = vpop.f32.mrb[6].mxu0  ;;  %v11830_v29 = vpop.f32.mrb[8].mxu1  ;;  %v1698_v42 = vsel %vm990_vm5, %v1646_v33, 0.0  ;;  %v1752_v46 = vsel %vm990_vm5, %v1664_v37, 0.0 }
 0x4e6   : > { %1747 = vadd.xlane.f32.xlu1 %v1746_v25  ;;  %v1281_v30 = vpop.f32.mrb[7].mxu0  ;;  %v1371_v32 = vpop.f32.mrb[9].mxu1  ;;  %v1649_v43 = vmul.f32 %v11803_v27, %v1511_v55  ;;  %v1667_v58 = vmul.f32 %v11830_v29, %v1547_v34 }
 0x4e7   : > { %v1648_v51 = vmul.f32 %v1509_v54, %v1281_v30  ;;  %v1666_v7 = vmul.f32 %v1545_v44, %v1371_v32  ;;  %v1555_v30 = vpop.permute.xlu1 %1554  ;;  %v1553_v33 = vpop.permute.xlu0 %1552 }
 0x4e8   : > { %v1707_v8 = vsel %vm990_vm5, %v1649_v43, 0.0  ;;  %v1761_v13 = vsel %vm990_vm5, %v1667_v58, 0.0 }
 0x4e9   : > { %1756 = vadd.xlane.f32.xlu0 %v1755_v31  ;;  %v11806_v35 = vpop.f32.mrb[8].mxu0  ;;  %v11833_v38 = vpop.f32.mrb[10].mxu1  ;;  %v1704_v11 = vsel %vm990_vm5, %v1648_v51, 0.0  ;;  %v1758_v54 = vsel %vm990_vm5, %v1666_v7, 0.0 }
 0x4ea   : > { %1702 = vadd.xlane.f32.xlu1 %v1701_v36  ;;  %v1291_v40 = vpop.f32.mrb[9].mxu0  ;;  %v1381_v41 = vpop.f32.mrb[11].mxu1  ;;  %v1669_v15 = vmul.f32 %v11833_v38, %v1551_v9  ;;  %v1651_v17 = vmul.f32 %v11806_v35, %v13615_v57 }
 0x4eb   : > { %v1668_v25 = vmul.f32 %v1549_v16, %v1381_v41  ;;  %v1650_v57 = vmul.f32 %v13613_v56, %v1291_v40 }
 0x4ec   : > { %v1767_v23 = vsel %vm990_vm5, %v1669_v15, 0.0  ;;  %v1713_v24 = vsel %vm990_vm5, %v1651_v17, 0.0 }
 0x4ed   : > { %1699 = vadd.xlane.f32.xlu0 %v1698_v42  ;;  %v11809_v45 = vpop.f32.mrb[10].mxu0  ;;  %v11836_v52 = vpop.f32.mrb[12].mxu1  ;;  %v1764_v31 = vsel %vm990_vm5, %v1668_v25, 0.0  ;;  %v1710_v35 = vsel %vm990_vm5, %v1650_v57, 0.0 }
 0x4ee   : > { %1753 = vadd.xlane.f32.xlu1 %v1752_v46  ;;  %v1301_v53 = vpop.f32.mrb[11].mxu0  ;;  %v1391_v6 = vpop.f32.mrb[13].mxu1  ;;  %v1653_v32 = vmul.f32 %v11809_v45, %v13619_v60  ;;  %v1671_v38 = vmul.f32 %v11836_v52, %v1555_v30 }
 0x4ef   : > { %v1652_v36 = vmul.f32 %v13617_v59, %v1301_v53  ;;  %v1670_v41 = vmul.f32 %v1553_v33, %v1391_v6  ;;  %v1559_v46 = vpop.permute.xlu1 %1558  ;;  %v1557_v52 = vpop.permute.xlu0 %1556 }
 0x4f0   : > { %v1719_v42 = vsel %vm990_vm5, %v1653_v32, 0.0  ;;  %v1773_v44 = vsel %vm990_vm5, %v1671_v38, 0.0 }
 0x4f1   : > { %1708 = vadd.xlane.f32.xlu0 %v1707_v8  ;;  %v11812_v10 = vpop.f32.mrb[12].mxu0  ;;  %v11839_v55 = vpop.f32.mrb[14].mxu1  ;;  %v1716_v60 = vsel %vm990_vm5, %v1652_v36, 0.0  ;;  %v1770_v59 = vsel %vm990_vm5, %v1670_v41, 0.0 }
 0x4f2   : > { %1705 = vadd.xlane.f32.xlu1 %v1704_v11  ;;  %v1311_v12 = vpop.f32.mrb[13].mxu0  ;;  %v1401_v14 = vpop.f32.mrb[15].mxu1  ;;  %v1655_v51 = vmul.f32 %v11812_v10, %v13623_v62  ;;  %v1673_v6 = vmul.f32 %v11839_v55, %v1559_v46  ;;  %v649_v46 = vld [vmem:[%s13757_s22 + $0x8] sm:$0xff] }
 0x4f3   : > { %v1654_v53 = vmul.f32 %v13621_v61, %v1311_v12  ;;  %v1672_v8 = vmul.f32 %v1557_v52, %v1401_v14  ;;  %v1563_v12 = vpop.permute.xlu1 %1562  ;;  %v13776_v52 = vld [vmem:[%s17865_s26] sm:$0xff] }
 0x4f4   : > { %v1725_v9 = vsel %vm990_vm5, %v1655_v51, 0.0  ;;  %v1779_v62 = vsel %vm990_vm5, %v1673_v6, 0.0 }
 0x4f5   : > { %1762 = vadd.xlane.f32.xlu0 %v1761_v13  ;;  %v11815_v18 = vpop.f32.mrb[14].mxu0  ;;  %v13650_v19 = vpop.f32.mrb[16].mxu1  ;;  %v1722_v11 = vsel %vm990_vm5, %v1654_v53, 0.0  ;;  %v1776_v61 = vsel %vm990_vm5, %v1672_v8, 0.0  ;;  %v648_v53 = vld [vmem:[%s13757_s22] sm:$0xff] }
 0x4f6   : > { %1759 = vadd.xlane.f32.xlu1 %v1758_v54  ;;  %v1321_v21 = vpop.f32.mrb[15].mxu0  ;;  %v1411_v22 = vpop.f32.mrb[17].mxu1  ;;  %v1657_v55 = vmul.f32 %v11815_v18, %v13625_v63  ;;  %v1675_v16 = vmul.f32 %v13650_v19, %v1563_v12 }
 0x4f7   : > { %v1561_v54 = vpop.permute.xlu0 %1560  ;;  %v1656_v14 = vmul.f32 %v13627_v0, %v1321_v21 }
 0x4f8   : > { %v1785_v63 = vsel %vm990_vm5, %v1675_v16, 0.0 }
 0x4f9   : > { %1714 = vadd.xlane.f32.xlu0 %v1713_v24  ;;  %v11818_v26 = vpop.f32.mrb[16].mxu0  ;;  %v13657_v27 = vpop.f32.mrb[18].mxu1  ;;  %v1731_v24 = vsel %vm990_vm5, %v1657_v55, 0.0  ;;  %v1728_v25 = vsel %vm990_vm5, %v1656_v14, 0.0 }
 0x4fa   : > { %1768 = vadd.xlane.f32.xlu1 %v1767_v23  ;;  %v1331_v28 = vpop.f32.mrb[17].mxu0  ;;  %v13659_v29 = vpop.f32.mrb[19].mxu1  ;;  %v1674_v23 = vmul.f32 %v1561_v54, %v1411_v22  ;;  %v1659_v0 = vmul.f32 %v11818_v26, %v13629_v1 }
 0x4fb   : > { %v1658_v21 = vmul.f32 %v13631_v2, %v1331_v28 }
 0x4fc   : > { %v1782_v18 = vsel %vm990_vm5, %v1674_v23, 0.0  ;;  %v1737_v19 = vsel %vm990_vm5, %v1659_v0, 0.0  ;;  %v651_v0 = vld [vmem:[%s13757_s22 + $0x18] sm:$0xff] }
 0x4fd   : > { %1765 = vadd.xlane.f32.xlu0 %v1764_v31  ;;  %v11821_v34 = vpop.f32.mrb[18].mxu0  ;;  %v13665_v37 = vpop.f32.mrb[20].mxu1  ;;  %v1734_v57 = vsel %vm990_vm5, %v1658_v21, 0.0  ;;  %v13811_v21 = vld [vmem:[%s17865_s26 + $0x10] sm:$0xff] }
 0x4fe   : > { %1711 = vadd.xlane.f32.xlu1 %v1710_v35  ;;  %v1341_v56 = vpop.f32.mrb[19].mxu0  ;;  %v13667_v40 = vpop.f32.mrb[21].mxu1  ;;  %v1661_v22 = vmul.f32 %v11821_v34, %v13635_v5 }
 0x4ff   : > { %v1660_v30 = vmul.f32 %v13633_v4, %v1341_v56  ;;  %v13721_v4 = vld [vmem:[%s17825_s7 + $0x4] ss:$8 sps:$4 sm:$0xff]   ;;  %v1567_v5 = vpop.permute.xlu1 %1566 }
 0x500   : > { %v1743_v31 = vsel %vm990_vm5, %v1661_v22, 0.0  ;;  %10554 = vmatprep.mubr.msk.bf16.mxu0 %vm2076_vm7, %v13721_v4  ;;  %10556 = vmatprep.mubr.msk.bf16.mxu1 %vm2076_vm7, %v13721_v4  ;;  %v1677_v26 = vmul.f32 %v13657_v27, %v1567_v5  ;;  %v653_v5 = vld [vmem:[%s13757_s22 + $0x28] sm:$0xff] }
 0x501   : > { %1720 = vadd.xlane.f32.xlu0 %v1719_v42  ;;  %v13671_v43 = vpop.f32.mrb[22].mxu1  ;;  %v1740_v32 = vsel %vm990_vm5, %v1660_v30, 0.0  ;;  %v1911_v42 = vlaneseq }
 0x502   : > { %1717 = vadd.xlane.f32.xlu1 %v1716_v60  ;;  %v13674_v45 = vpop.f32.mrb[23].mxu1 }
 0x503   : > { %v13733_v35 = vpop.permute.xlu1 %1570  ;;  %v13771_v51 = vshrl.u32 %v1911_v42, 7 }
 0x505   : > { %1774 = vadd.xlane.f32.xlu0 %v1773_v44  ;;  %v13679_v58 = vpop.f32.mrb[24].mxu1 }
 0x506   : > { %1771 = vadd.xlane.f32.xlu1 %v1770_v59  ;;  %v13681_v7 = vpop.f32.mrb[25].mxu1  ;;  %v603_v59 = vld [vmem:[%s17865_s26 + $0x30] sm:$0xff] }
 0x507   : > { %v13738_v56 = vpop.permute.xlu1 %1574  ;;  %v625_v8 = vpack.c.bf16 %v603_v59, %v603_v59 }
 0x509   : > { %1726 = vadd.xlane.f32.xlu0 %v1725_v9  ;;  %v13685_v13 = vpop.f32.mrb[26].mxu1 }
 0x50a   : > { %1723 = vadd.xlane.f32.xlu1 %v1722_v11  ;;  %v13688_v10 = vpop.f32.mrb[27].mxu1  ;;  %v696_v11 = vmul.f32 %v648_v53, %v13776_v52 }
 0x50b   : > { %v13742_v27 = vpop.permute.xlu1 %1578 }
 0x50d   : > { %1780 = vadd.xlane.f32.xlu0 %v1779_v62  ;;  %v13693_v15 = vpop.f32.mrb[28].mxu1  ;;  %v13785_v62 = vpack.i.b16 %v625_v8, %v625_v8 }
 0x50e   : > { %1777 = vadd.xlane.f32.xlu1 %v1776_v61  ;;  %v13696_v17 = vpop.f32.mrb[29].mxu1  ;;  %v13788_v61 = vsub.s32 0, %v13771_v51 }
 0x50f   : > { %v13752_v44 = vpop.permute.xlu1 %1582 }
 0x510   : > { %v13792_v16 = vrot.slane %v13785_v62, %v13788_v61 }
 0x511   : > { %1732 = vadd.xlane.f32.xlu0 %v1731_v24  ;;  %v13710_v1 = vpop.f32.mrb[30].mxu1 }
 0x512   : > { %1729 = vadd.xlane.f32.xlu1 %v1728_v25  ;;  %v13714_v2 = vpop.f32.mrb[31].mxu1 }
 0x515   : > { %1786 = vadd.xlane.f32.xlu0 %v1785_v63  ;;  %v13803_v63 = vld [vmem:[%s17865_s26 + $0x18] sm:$0xff] }
 0x516   : > { %1783 = vadd.xlane.f32.xlu1 %v1782_v18  ;;  %v699_v30 = vmul.f32 %v651_v0, %v13803_v63 }
 0x519   : > { %1738 = vadd.xlane.f32.xlu0 %v1737_v19  ;;  %v650_v19 = vld [vmem:[%s13757_s22 + $0x10] sm:$0xff] }
 0x51a   : > { %1735 = vadd.xlane.f32.xlu1 %v1734_v57 }
 0x51d   : > { %1744 = vadd.xlane.f32.xlu0 %v1743_v31  ;;  %v698_v31 = vmul.f32 %v650_v19, %v13811_v21 }
 0x51e   : > { %1741 = vadd.xlane.f32.xlu1 %v1740_v32  ;;  %v13822_v32 = vld [vmem:[%s17865_s26 + $0x28] sm:$0xff] }
 0x52f   : > { %1590 = vrot.lane.b32.xlu1 %v13595_v48, %s12978_s23  ;;  %v1565_v48 = vpop.permute.xlu0 %1564 }
 0x530   : > { %v1676_v28 = vmul.f32 %v1565_v48, %v13659_v29  ;;  %v13744_v29 = vpop.f32.mrb[32].mxu1  ;;  %v13828_v48 = vld [vmem:[%s17865_s26 + $0x20] sm:$0xff] }
 0x531   : > { %v13750_v60 = vpop.f32.mrb[33].mxu1 }
 0x532   : > { %v1788_v34 = vsel %vm990_vm5, %v1676_v28, 0.0 }
 0x533   : > { %1588 = vrot.lane.b32.xlu0 %v13586_v47, %s12978_s23  ;;  %v1791_v47 = vsel %vm990_vm5, %v1677_v26, 0.0  ;;  %v13730_v33 = vpop.permute.xlu0 %1568  ;;  %v652_v26 = vld [vmem:[%s13757_s22 + $0x20] sm:$0xff] }
 0x534   : > { %v700_v53 = vmul.f32 %v652_v26, %v13828_v48 }
 0x537   : > { %v13736_v36 = vpop.permute.xlu0 %1572 }
 0x53b   : > { %v13740_v38 = vpop.permute.xlu0 %1576 }
 0x53f   : > { %v13746_v41 = vpop.permute.xlu0 %1580 }
 0x543   : > { %v13779_v6 = vpop.permute.xlu0 %1586 }
 0x552   : > { %1792 = vadd.xlane.f32.xlu0 %v1791_v47 }
 0x553   : > { %1789 = vadd.xlane.f32.xlu1 %v1788_v34 }
 0x564   : > { %1594 = vrot.lane.b32.xlu1 %v13609_v50, %s12978_s23  ;;  %v13767_v50 = vld [vmem:[%s17865_s26 + $0x8] sm:$0xff] }
 0x565   : > { %v697_v9 = vmul.f32 %v649_v46, %v13767_v50  ;;  %v701_v46 = vmul.f32 %v653_v5, %v13822_v32 }
 0x568   : > { %1592 = vrot.lane.b32.xlu0 %v13602_v49, %s12978_s23  ;;  %v13781_v49 = vpop.permute.xlu1 %1584  ;;  %s584_s23 = scalar_lea.vmem [#allocation2], %s10493_s21  ;;  %s12915_s21 = sshll.u32 %s12980_s0, 4  ;;  %s12916_s21 = int_to_ptr.vmem [resolvable:$false] %s12915_s21 }
 0x569   : > { %s12917_s18 = scalar_lea.vmem %s12916_s21, 256 }
 0x56e   : > { %v1697_v12 = vpop.xlane.xlu0 %1696 }
 0x56f   : > { %v1837_v55 = vmul.f32 %v1697_v12, %v697_v9  ;;  %v1694_v54 = vpop.xlane.xlu1 %1693  ;;  %v1939_v9 = vshrl.u32 %v625_v8, 16  ;;  %v1679_v8 = vmul.f32 %v13665_v37, %v13733_v35 }
 0x570   : > { %v1836_v14 = vmul.f32 %v1694_v54, %v696_v11 }
 0x571   : > { %v13839_v0 = vpack.i.b16 %v1939_v9, %v1939_v9  ;;  %v657_v9 = vld [vmem:[%s13757_s22 + $0x48] sm:$0xff] }
 0x572   : > { %v13794_v23 = vpack.c.bf16 %v1837_v55, %v1836_v14  ;;  %v13796_v24 = vpop.xlane.xlu0 %1750 }
 0x573   : > { %v13798_v25 = vpop.xlane.xlu1 %1747  ;;  %v13856_v26 = vrot.slane %v13839_v0, %v13788_v61 }
 0x574   : > { %v1915_v18 = vmul.bf16 %v13792_v16, %v13794_v23 }
 0x576   : > { %v13814_v22 = vpop.xlane.xlu0 %1756  ;;  %2084 = vmatpush1.bf16.msra.mxu0 %v1915_v18 }
 0x577   : > { %v1703_v57 = vpop.xlane.xlu1 %1702  ;;  %2085 = vmatprep.subr.bf16.mxu0 %v17849_v20 }
 0x578   : > { %v1839_v47 = vmul.f32 %v1703_v57, %v699_v30  ;;  %v1678_v30 = vmul.f32 %v13730_v33, %v13667_v40  ;;  %v1797_v40 = vsel %vm990_vm5, %v1679_v8, 0.0  ;;  %v1683_v8 = vmul.f32 %v13679_v58, %v13742_v27 }
 0x57a   : > { %v1700_v28 = vpop.xlane.xlu0 %1699  ;;  %v1794_v35 = vsel %vm990_vm5, %v1678_v30, 0.0  ;;  %v1972_v30 = vsub.s32 1, %v13771_v51 }
 0x57b   : > { %v1838_v34 = vmul.f32 %v1700_v28, %v698_v31  ;;  %v13831_v59 = vpop.xlane.xlu1 %1753  ;;  %v655_v28 = vld [vmem:[%s13757_s22 + $0x38] sm:$0xff] }
 0x57d   : > { %v13835_v11 = vpack.c.bf16 %v1839_v47, %v1838_v34  ;;  %v654_v47 = vld [vmem:[%s13757_s22 + $0x30] sm:$0xff]  ;;  %v1680_v34 = vmul.f32 %v13736_v36, %v13674_v45  ;;  %v1946_v45 = vmul.bf16 %v13856_v26, %v13794_v23 }
 0x57e   : > { %v1709_v12 = vpop.xlane.xlu0 %1708  ;;  %v702_v36 = vmul.f32 %v654_v47, %v13776_v52  ;;  %v1684_v47 = vmul.f32 %v13746_v41, %v13688_v10 }
 0x57f   : > { %v1841_v55 = vmul.f32 %v1709_v12, %v701_v46  ;;  %v1706_v54 = vpop.xlane.xlu1 %1705  ;;  %v1916_v14 = vmul.bf16 %v13792_v16, %v13835_v11  ;;  %v1681_v46 = vmul.f32 %v13671_v43, %v13738_v56  ;;  %v656_v12 = vld [vmem:[%s13757_s22 + $0x40] sm:$0xff]  ;;  %v705_v56 = vmul.f32 %v657_v9, %v13803_v63  ;;  %v658_v9 = vld [vmem:[%s13757_s22 + $0x50] sm:$0xff] }
 0x580   : > { %v1840_v18 = vmul.f32 %v1706_v54, %v700_v53  ;;  %v703_v53 = vmul.f32 %v655_v28, %v13767_v50  ;;  %v704_v28 = vmul.f32 %v656_v12, %v13811_v21 }
 0x581   : > { %2086 = vmatpush1.bf16.msra.mxu0 %v1916_v14  ;;  %v1800_v14 = vsel %vm990_vm5, %v1680_v34, 0.0  ;;  %v1803_v43 = vsel %vm990_vm5, %v1681_v46, 0.0  ;;  %v1685_v46 = vmul.f32 %v13685_v13, %v13752_v44  ;;  %v1812_v13 = vsel %vm990_vm5, %v1684_v47, 0.0 }
 0x582   : > { %v13841_v19 = vpack.c.bf16 %v1841_v55, %v1840_v18  ;;  %v13843_v57 = vpop.xlane.xlu0 %1762  ;;  %2087 = vmatprep.subr.bf16.mxu0 %v17849_v20  ;;  %v1682_v55 = vmul.f32 %v13740_v38, %v13681_v7  ;;  %v1947_v38 = vmul.bf16 %v13856_v26, %v13835_v11  ;;  %v1686_v44 = vmul.f32 %v13781_v49, %v13696_v17 }
 0x583   : > { %v13850_v31 = vpop.xlane.xlu1 %1759 }
 0x584   : > { %v1917_v5 = vmul.bf16 %v13792_v16, %v13841_v19  ;;  %v1806_v58 = vsel %vm990_vm5, %v1682_v55, 0.0  ;;  %v1948_v10 = vmul.bf16 %v13856_v26, %v13841_v19  ;;  %v1818_v49 = vsel %vm990_vm5, %v1686_v44, 0.0 }
 0x585   : > { %v2028_v44 = vsub.s32 2, %v13771_v51 }
 0x586   : > { %v1715_v37 = vpop.xlane.xlu0 %1714  ;;  %2088 = vmatpush1.bf16.msra.mxu0 %v1917_v5 }
 0x587   : > { %v13863_v33 = vpop.xlane.xlu1 %1768  ;;  %1798 = vadd.xlane.f32.xlu0 %v1797_v40  ;;  %2089 = vmatprep.subr.bf16.mxu0 %v17849_v20  ;;  %v1843_v5 = vmul.f32 %v1715_v37, %v703_v53 }
 0x588   : > { %1795 = vadd.xlane.f32.xlu1 %v1794_v35  ;;  %v1809_v35 = vsel %vm990_vm5, %v1683_v8, 0.0 }
 0x58a   : > { %v13877_v54 = vpop.xlane.xlu0 %1765  ;;  %2090 = vmatpush1.bf16.msra.mxu0 %v1946_v45  ;;  %v659_v45 = vld [vmem:[%s13757_s22 + $0x58] sm:$0xff] }
 0x58b   : > { %v1712_v18 = vpop.xlane.xlu1 %1711  ;;  %1801 = vadd.xlane.f32.xlu0 %v1800_v14  ;;  %2091 = vmatprep.subr.bf16.mxu0 %v17849_v20  ;;  %v1687_v14 = vmul.f32 %v13693_v15, %v13779_v6  ;;  %v706_v15 = vmul.f32 %v658_v9, %v13828_v48 }
 0x58c   : > { %v1842_v7 = vmul.f32 %v1712_v18, %v702_v36  ;;  %1804 = vadd.xlane.f32.xlu1 %v1803_v43  ;;  %v13904_v36 = vrot.slane %v13785_v62, %v1972_v30  ;;  %v1815_v43 = vsel %vm990_vm5, %v1685_v46, 0.0  ;;  %v13945_v46 = vrot.slane %v13839_v0, %v1972_v30 }
 0x58e   : > { %v13891_v34 = vpack.c.bf16 %v1843_v5, %v1842_v7  ;;  %v1721_v40 = vpop.xlane.xlu0 %1720  ;;  %2092 = vmatpush1.bf16.msra.mxu0 %v1947_v38  ;;  %v1974_v8 = vmul.bf16 %v13904_v36, %v13794_v23  ;;  %v1821_v38 = vsel %vm990_vm5, %v1687_v14, 0.0  ;;  %v1975_v47 = vmul.bf16 %v13904_v36, %v13835_v11 }
 0x58f   : > { %v1845_v27 = vmul.f32 %v1721_v40, %v705_v56  ;;  %v1718_v37 = vpop.xlane.xlu1 %1717  ;;  %1807 = vadd.xlane.f32.xlu0 %v1806_v58  ;;  %2093 = vmatprep.subr.bf16.mxu0 %v17849_v20  ;;  %v707_v56 = vmul.f32 %v659_v45, %v13822_v32  ;;  %v2003_v30 = vmul.bf16 %v13945_v46, %v13835_v11 }
 0x590   : > { %v1844_v53 = vmul.f32 %v1718_v37, %v704_v28  ;;  %1810 = vadd.xlane.f32.xlu1 %v1809_v35  ;;  %v1918_v41 = vmul.bf16 %v13792_v16, %v13891_v34  ;;  %v1976_v37 = vmul.bf16 %v13904_v36, %v13841_v19  ;;  %v1949_v45 = vmul.bf16 %v13856_v26, %v13891_v34 }
 0x592   : > { %v13907_v12 = vpack.c.bf16 %v1845_v27, %v1844_v53  ;;  %v13909_v55 = vpop.xlane.xlu0 %1774  ;;  %2094 = vmatpush1.bf16.msra.mxu0 %v1948_v10  ;;  %2133 = vmatpush1.bf16.msra.mxu1 %v1918_v41  ;;  %v2002_v41 = vmul.bf16 %v13945_v46, %v13794_v23 }
 0x593   : > { %v13916_v18 = vpop.xlane.xlu1 %1771  ;;  %1813 = vadd.xlane.f32.xlu0 %v1812_v13  ;;  %2095 = vmatprep.subr.bf16.mxu0 %v17849_v20 }
 0x594   : > { %1816 = vadd.xlane.f32.xlu1 %v1815_v43  ;;  %2134 = vmatprep.subr.bf16.mxu1 %v17849_v20  ;;  %v1919_v17 = vmul.bf16 %v13792_v16, %v13907_v12  ;;  %v1950_v13 = vmul.bf16 %v13856_v26, %v13907_v12 }
 0x596   : > { %v1727_v6 = vpop.xlane.xlu0 %1726  ;;  %2096 = vmatpush1.bf16.msra.mxu0 %v1974_v8  ;;  %2135 = vmatpush1.bf16.msra.mxu1 %v1919_v17  ;;  %v13971_v17 = vrot.slane %v13785_v62, %v2028_v44 }
 0x597   : > { %v1847_v5 = vmul.f32 %v1727_v6, %v707_v56  ;;  %v1724_v7 = vpop.xlane.xlu1 %1723  ;;  %1819 = vadd.xlane.f32.xlu0 %v1818_v49  ;;  %2097 = vmatprep.subr.bf16.mxu0 %v17849_v20  ;;  %v2004_v56 = vmul.bf16 %v13945_v46, %v13841_v19  ;;  %v660_v6 = vld [vmem:[%s13757_s22 + $0x60] sm:$0xff] }
 0x598   : > { %v1846_v28 = vmul.f32 %v1724_v7, %v706_v15  ;;  %1822 = vadd.xlane.f32.xlu1 %v1821_v38  ;;  %2136 = vmatprep.subr.bf16.mxu1 %v17849_v20  ;;  %v661_v15 = vld [vmem:[%s13757_s22 + $0x68] sm:$0xff]  ;;  %v708_v38 = vmul.f32 %v660_v6, %v13776_v52  ;;  %v2030_v62 = vmul.bf16 %v13971_v17, %v13794_v23 }
 0x599   : > { %v709_v7 = vmul.f32 %v661_v15, %v13767_v50  ;;  %v665_v23 = vld [vmem:[%s13757_s22 + $0x88] sm:$0xff]  ;;  %v2031_v6 = vmul.bf16 %v13971_v17, %v13835_v11 }
 0x59a   : > { %v13933_v40 = vpack.c.bf16 %v1847_v5, %v1846_v28  ;;  %v13935_v58 = vpop.xlane.xlu0 %1780  ;;  %2098 = vmatpush1.bf16.msra.mxu0 %v1975_v47  ;;  %v663_v28 = vld [vmem:[%s13757_s22 + $0x78] sm:$0xff]  ;;  %v662_v47 = vld [vmem:[%s13757_s22 + $0x70] sm:$0xff] }
 0x59b   : > { %v13937_v27 = vpop.xlane.xlu1 %1777  ;;  %2099 = vmatprep.subr.bf16.mxu0 %v17849_v20 }
 0x59c   : > { %v1920_v35 = vmul.bf16 %v13792_v16, %v13933_v40  ;;  %v1951_v8 = vmul.bf16 %v13856_v26, %v13933_v40 }
 0x59e   : > { %v1733_v53 = vpop.xlane.xlu0 %1732  ;;  %2100 = vmatpush1.bf16.msra.mxu0 %v1976_v37  ;;  %2137 = vmatpush1.bf16.msra.mxu1 %v1920_v35  ;;  %v1977_v37 = vmul.bf16 %v13904_v36, %v13891_v34 }
 0x59f   : > { %v1730_v10 = vpop.xlane.xlu1 %1729  ;;  %2101 = vmatprep.subr.bf16.mxu0 %v17849_v20  ;;  %2138 = vmatprep.subr.bf16.mxu1 %v17849_v20  ;;  %v1849_v44 = vmul.f32 %v1733_v53, %v709_v7 }
 0x5a2   : > { %v13953_v9 = vpop.xlane.xlu0 %1786  ;;  %2102 = vmatpush1.bf16.msra.mxu0 %v2002_v41  ;;  %2139 = vmatpush1.bf16.msra.mxu1 %v1949_v45  ;;  %v711_v41 = vmul.f32 %v663_v28, %v13803_v63  ;;  %v710_v45 = vmul.f32 %v662_v47, %v13811_v21  ;;  %v1978_v47 = vmul.bf16 %v13904_v36, %v13907_v12 }
 0x5a3   : > { %v13955_v0 = vpop.xlane.xlu1 %1783  ;;  %2103 = vmatprep.subr.bf16.mxu0 %v17849_v20  ;;  %2140 = vmatprep.subr.bf16.mxu1 %v17849_v20 }
 0x5a6   : > { %v1739_v14 = vpop.xlane.xlu0 %1738  ;;  %2104 = vmatpush1.bf16.msra.mxu0 %v2003_v30  ;;  %2141 = vmatpush1.bf16.msra.mxu1 %v1950_v13 }
 0x5a7   : > { %v1736_v43 = vpop.xlane.xlu1 %1735  ;;  %2105 = vmatprep.subr.bf16.mxu0 %v17849_v20  ;;  %2142 = vmatprep.subr.bf16.mxu1 %v17849_v20  ;;  %v1851_v11 = vmul.f32 %v1739_v14, %v711_v41 }
 0x5a8   : > { %v1850_v7 = vmul.f32 %v1736_v43, %v710_v45  ;;  %v2005_v45 = vmul.bf16 %v13945_v46, %v13891_v34 }
 0x5aa   : > { %v1745_v49 = vpop.xlane.xlu0 %1744  ;;  %2106 = vmatpush1.bf16.msra.mxu0 %v2004_v56  ;;  %2143 = vmatpush1.bf16.msra.mxu1 %v1951_v8  ;;  %v1848_v56 = vmul.f32 %v1730_v10, %v708_v38  ;;  %v664_v8 = vld [vmem:[%s13757_s22 + $0x80] sm:$0xff]  ;;  %v1979_v38 = vmul.bf16 %v13904_v36, %v13933_v40  ;;  %v14020_v14 = vpack.c.bf16 %v1851_v11, %v1850_v7 }
 0x5ab   : > { %v1742_v5 = vpop.xlane.xlu1 %1741  ;;  %2107 = vmatprep.subr.bf16.mxu0 %v17849_v20  ;;  %2144 = vmatprep.subr.bf16.mxu1 %v17849_v20  ;;  %v712_v53 = vmul.f32 %v664_v8, %v13828_v48  ;;  %v666_v8 = vld [vmem:[%s13757_s22 + $0x90] sm:$0xff] }
 0x5ac   : > { %v14003_v10 = vpack.c.bf16 %v1849_v44, %v1848_v56  ;;  %v2007_v56 = vmul.bf16 %v13945_v46, %v13933_v40 }
 0x5ae   : > { %v1589_v35 = vpop.permute.xlu0 %1588  ;;  %2108 = vmatpush1.bf16.msra.mxu0 %v2030_v62  ;;  %2145 = vmatpush1.bf16.msra.mxu1 %v1977_v37  ;;  %v713_v62 = vmul.f32 %v665_v23, %v13822_v32  ;;  %v14012_v37 = vld [vmem:[%s17825_s7] ss:$8 sps:$4 sm:$0xff]   ;;  %v1921_v41 = vmul.bf16 %v13792_v16, %v14003_v10  ;;  %v667_v23 = vld [vmem:[%s13757_s22 + $0x98] sm:$0xff] }
 0x5af   : > { %v1688_v30 = vmul.f32 %v1589_v35, %v13714_v2  ;;  %v1591_v13 = vpop.permute.xlu1 %1590  ;;  %2109 = vmatprep.subr.bf16.mxu0 %v17849_v20  ;;  %2146 = vmatprep.subr.bf16.mxu1 %v17849_v20  ;;  %v1852_v35 = vmul.f32 %v1742_v5, %v712_v53  ;;  %v1922_v5 = vmul.bf16 %v13792_v16, %v14020_v14 }
 0x5b0   : > { %v1689_v15 = vmul.f32 %v13710_v1, %v1591_v13  ;;  %v2032_v1 = vmul.bf16 %v13971_v17, %v13841_v19  ;;  %v14017_v19 = vld [vmem:[%s17825_s7 + $0x14] ss:$8 sps:$4 sm:$0xff]   ;;  %v1853_v43 = vmul.f32 %v1745_v49, %v713_v62  ;;  %v14041_v13 = vld [vmem:[%s17825_s7 + $0x10] ss:$8 sps:$4 sm:$0xff]   ;;  %v669_v62 = vld [vmem:[%s13757_s22 + $0xa8] sm:$0xff]  ;;  %v1953_v53 = vmul.bf16 %v13856_v26, %v14020_v14 }
 0x5b1   : > { %v1824_v28 = vsel %vm990_vm5, %v1688_v30, 0.0  ;;  %v2006_v30 = vmul.bf16 %v13945_v46, %v13907_v12 }
 0x5b2   : > { %1825 = vadd.xlane.f32.xlu0 %v1824_v28  ;;  %2110 = vmatpush1.bf16.msra.mxu0 %v2031_v6  ;;  %v1827_v2 = vsel %vm990_vm5, %v1689_v15, 0.0  ;;  %v14031_v49 = vpack.c.bf16 %v1853_v43, %v1852_v35  ;;  %v1952_v15 = vmul.bf16 %v13856_v26, %v14003_v10  ;;  %v715_v6 = vmul.f32 %v667_v23, %v13767_v50  ;;  %v670_v43 = vld [vmem:[%s13757_s22 + $0xb0] sm:$0xff] }
 0x5b3   : > { %2147 = vmatpush1.bf16.msra.mxu1 %v1978_v47  ;;  %1828 = vadd.xlane.f32.xlu1 %v1827_v2  ;;  %v714_v28 = vmul.f32 %v666_v8, %v13776_v52  ;;  %v2033_v47 = vmul.bf16 %v13971_v17, %v13891_v34  ;;  %v668_v2 = vld [vmem:[%s13757_s22 + $0xa0] sm:$0xff]  ;;  %v2034_v34 = vmul.bf16 %v13971_v17, %v13907_v12 }
 0x5b4   : > { %2111 = vmatprep.subr.bf16.mxu0 %v17849_v20  ;;  %2148 = vmatprep.subr.bf16.mxu1 %v17849_v20  ;;  %v1923_v44 = vmul.bf16 %v13792_v16, %v14031_v49  ;;  %v716_v7 = vmul.f32 %v668_v2, %v13811_v21  ;;  %v717_v35 = vmul.f32 %v669_v62, %v13803_v63 }
 0x5b5   : > { %v1854_v11 = vmul.f32 %v13798_v25, %v714_v28  ;;  %v718_v12 = vmul.f32 %v670_v43, %v13828_v48  ;;  %v1982_v8 = vmul.bf16 %v13904_v36, %v14031_v49  ;;  %v2009_v62 = vmul.bf16 %v13945_v46, %v14020_v14 }
 0x5b6   : > { %2112 = vmatpush1.bf16.msra.mxu0 %v2032_v1  ;;  %v1855_v1 = vmul.f32 %v13796_v24, %v715_v6  ;;  %v1954_v24 = vmul.bf16 %v13856_v26, %v14031_v49  ;;  %v2008_v6 = vmul.bf16 %v13945_v46, %v14003_v10 }
 0x5b7   : > { %2149 = vmatpush1.bf16.msra.mxu1 %v1979_v38  ;;  %2181 = vmatprep.subr.bf16.mxu0 %v17849_v20  ;;  %v671_v38 = vld [vmem:[%s13757_s22 + $0xb8] sm:$0xff]  ;;  %v1858_v23 = vmul.f32 %v13850_v31, %v718_v12 }
 0x5b8   : > { %2150 = vmatprep.subr.bf16.mxu1 %v17849_v20  ;;  %v14081_v25 = vpack.c.bf16 %v1855_v1, %v1854_v11  ;;  %v675_v12 = vld [vmem:[%s13757_s22 + $0xd8] sm:$0xff] }
 0x5b9   : > { %2116 = vmatmul.mubr.bf16.vlgmr.msra.gmra.mrb[20].mxu0 %v14012_v37 }
 0x5ba   : > { %2182 = vmatpush1.bf16.msra.mxu0 %v1921_v41  ;;  %10555 = vmatprep.mubr.msk.bf16.mxu0 %vm2076_vm7, %v14017_v19  ;;  %v719_v41 = vmul.f32 %v671_v38, %v13822_v32  ;;  %v1955_v28 = vmul.bf16 %v13856_v26, %v14081_v25  ;;  %v2010_v38 = vmul.bf16 %v13945_v46, %v14031_v49 }
 0x5bb   : > { %2151 = vmatpush1.bf16.msra.mxu1 %v2005_v45  ;;  %2183 = vmatprep.subr.bf16.mxu0 %v17849_v20  ;;  %v1856_v45 = vmul.f32 %v13831_v59, %v716_v7 }
 0x5bc   : > { %2152 = vmatprep.subr.bf16.mxu1 %v17849_v20  ;;  %v1859_v59 = vmul.f32 %v13843_v57, %v719_v41 }
 0x5be   : > { %2184 = vmatpush1.bf16.msra.mxu0 %v1922_v5  ;;  %v2035_v5 = vmul.bf16 %v13971_v17, %v13933_v40  ;;  %v1924_v40 = vmul.bf16 %v13792_v16, %v14081_v25  ;;  %v14105_v57 = vpack.c.bf16 %v1859_v59, %v1858_v23  ;;  %v723_v23 = vmul.f32 %v675_v12, %v13803_v63  ;;  %v680_v12 = vld [vmem:[%s13757_s22 + $0x100] sm:$0xff] }
 0x5bf   : > { %2153 = vmatpush1.bf16.msra.mxu1 %v2006_v30  ;;  %2185 = vmatprep.subr.bf16.mxu0 %v17849_v20  ;;  %v1857_v30 = vmul.f32 %v13814_v22, %v717_v35  ;;  %v1981_v22 = vmul.bf16 %v13904_v36, %v14020_v14 }
 0x5c0   : > { %2154 = vmatprep.subr.bf16.mxu1 %v17849_v20  ;;  %v1957_v35 = vmul.bf16 %v13856_v26, %v14105_v57 }
 0x5c1   : > { %2124 = vmatmul.mubr.bf16.gmra.mrb[24].mxu0 %v14041_v13 }
 0x5c2   : > { %2186 = vmatpush1.bf16.msra.mxu0 %v1923_v44  ;;  %10558 = vmatprep.mubr.msk.bf16.mxu0 %vm2076_vm7, %v13721_v4  ;;  %v1980_v44 = vmul.bf16 %v13904_v36, %v14003_v10 }
 0x5c3   : > { %2155 = vmatpush1.bf16.msra.mxu1 %v2007_v56  ;;  %2187 = vmatprep.subr.bf16.mxu0 %v17849_v20  ;;  %v14092_v56 = vpack.c.bf16 %v1857_v30, %v1856_v45  ;;  %v1983_v30 = vmul.bf16 %v13904_v36, %v14081_v25 }
 0x5c4   : > { %2156 = vmatprep.subr.bf16.mxu1 %v17849_v20 }
 0x5c5   : > { %v1925_v31 = vmul.bf16 %v13792_v16, %v14092_v56 }
 0x5c6   : > { %2188 = vmatpush1.bf16.msra.mxu0 %v1952_v15  ;;  %v1926_v15 = vmul.bf16 %v13792_v16, %v14105_v57 }
 0x5c7   : > { %2157 = vmatpush1.bf16.msra.mxu1 %v2033_v47  ;;  %2189 = vmatprep.subr.bf16.mxu0 %v17849_v20 }
 0x5c8   : > { %2158 = vmatprep.subr.bf16.mxu1 %v17849_v20 }
 0x5ca   : > { %2190 = vmatpush1.bf16.msra.mxu0 %v1953_v53  ;;  %v1956_v53 = vmul.bf16 %v13856_v26, %v14092_v56 }
 0x5cb   : > { %2159 = vmatpush1.bf16.msra.mxu1 %v2034_v34  ;;  %2191 = vmatprep.subr.bf16.mxu0 %v17849_v20  ;;  %v672_v34 = vld [vmem:[%s13757_s22 + $0xc0] sm:$0xff] }
 0x5cc   : > { %2160 = vmatprep.subr.bf16.mxu1 %v17849_v20  ;;  %v720_v45 = vmul.f32 %v672_v34, %v13776_v52  ;;  %v2013_v34 = vmul.bf16 %v13945_v46, %v14105_v57 }
 0x5ce   : > { %2192 = vmatpush1.bf16.msra.mxu0 %v1954_v24  ;;  %v673_v24 = vld [vmem:[%s13757_s22 + $0xc8] sm:$0xff]  ;;  %v1860_v59 = vmul.f32 %v13877_v54, %v720_v45 }
 0x5cf   : > { %2161 = vmatpush1.bf16.msra.mxu1 %v2035_v5  ;;  %2193 = vmatprep.subr.bf16.mxu0 %v17849_v20  ;;  %v674_v5 = vld [vmem:[%s13757_s22 + $0xd0] sm:$0xff]  ;;  %v681_v45 = vld [vmem:[%s13757_s22 + $0x108] sm:$0xff] }
 0x5d0   : > { %2230 = vmatprep.subr.bf16.mxu1 %v17849_v20 }
 0x5d2   : > { %2165 = vmatmul.mubr.bf16.vlgmr.msra.gmra.mrb[36].mxu1 %v14012_v37  ;;  %2194 = vmatpush1.bf16.msra.mxu0 %v1980_v44  ;;  %v721_v44 = vmul.f32 %v673_v24, %v13767_v50 }
 0x5d3   : > { %2231 = vmatpush1.bf16.msra.mxu1 %v1924_v40  ;;  %2195 = vmatprep.subr.bf16.mxu0 %v17849_v20  ;;  %v722_v40 = vmul.f32 %v674_v5, %v13811_v21  ;;  %v729_v5 = vmul.f32 %v681_v45, %v13803_v63 }
 0x5d4   : > { %2232 = vmatprep.subr.bf16.mxu1 %v17849_v20  ;;  %10557 = vmatprep.mubr.msk.bf16.mxu1 %vm2076_vm7, %v14017_v19 }
 0x5d6   : > { %2196 = vmatpush1.bf16.msra.mxu0 %v1981_v22  ;;  %v676_v22 = vld [vmem:[%s13757_s22 + $0xe0] sm:$0xff] }
 0x5d7   : > { %2233 = vmatpush1.bf16.msra.mxu1 %v1925_v31  ;;  %2197 = vmatprep.subr.bf16.mxu0 %v17849_v20  ;;  %v2037_v31 = vmul.bf16 %v13971_v17, %v14020_v14  ;;  %v724_v54 = vmul.f32 %v676_v22, %v13828_v48  ;;  %v2038_v14 = vmul.bf16 %v13971_v17, %v14031_v49 }
 0x5d8   : > { %2234 = vmatprep.subr.bf16.mxu1 %v17849_v20  ;;  %v2011_v49 = vmul.bf16 %v13945_v46, %v14081_v25 }
 0x5da   : > { %2173 = vmatmul.mubr.bf16.gmra.mrb[40].mxu1 %v14041_v13  ;;  %2198 = vmatpush1.bf16.msra.mxu0 %v1982_v8  ;;  %v1984_v8 = vmul.bf16 %v13904_v36, %v14092_v56 }
 0x5db   : > { %2235 = vmatpush1.bf16.msra.mxu1 %v1926_v15  ;;  %2199 = vmatprep.subr.bf16.mxu0 %v17849_v20  ;;  %v1861_v15 = vmul.f32 %v13863_v33, %v721_v44  ;;  %v1985_v33 = vmul.bf16 %v13904_v36, %v14105_v57 }
 0x5dc   : > { %2236 = vmatprep.subr.bf16.mxu1 %v17849_v20  ;;  %10560 = vmatprep.mubr.msk.bf16.mxu1 %vm2076_vm7, %v13721_v4 }
 0x5de   : > { %2200 = vmatpush1.bf16.msra.mxu0 %v2008_v6 }
 0x5df   : > { %2237 = vmatpush1.bf16.msra.mxu1 %v1955_v28  ;;  %v14124_v47 = vpop.xlane.xlu0 %1792  ;;  %2201 = vmatprep.subr.bf16.mxu0 %v17849_v20  ;;  %v14171_v28 = vpack.c.bf16 %v1861_v15, %v1860_v59 }
 0x5e0   : > { %v14127_v2 = vpop.xlane.xlu1 %1789  ;;  %2238 = vmatprep.subr.bf16.mxu1 %v17849_v20 }
 0x5e1   : > { %v1986_v22 = vmul.bf16 %v13904_v36, %v14171_v28  ;;  %v2042_v45 = vmul.bf16 %v13971_v17, %v14171_v28 }
 0x5e2   : > { %2202 = vmatpush1.bf16.msra.mxu0 %v2009_v62  ;;  %v1863_v62 = vmul.f32 %v13909_v55, %v723_v23  ;;  %v1864_v55 = vmul.f32 %v13937_v27, %v724_v54  ;;  %v728_v23 = vmul.f32 %v680_v12, %v13811_v21  ;;  %v687_v12 = vld [vmem:[%s13757_s22 + $0x138] sm:$0xff] }
 0x5e3   : > { %2239 = vmatpush1.bf16.msra.mxu1 %v1956_v53  ;;  %v1593_v1 = vpop.permute.xlu0 %1592  ;;  %2203 = vmatprep.subr.bf16.mxu0 %v17849_v20  ;;  %v1862_v53 = vmul.f32 %v13916_v18, %v722_v40  ;;  %v1927_v18 = vmul.bf16 %v13792_v16, %v14171_v28 }
 0x5e4   : > { %v1690_v11 = vmul.f32 %v1593_v1, %v13750_v60  ;;  %v1595_v7 = vpop.permute.xlu1 %1594  ;;  %2240 = vmatprep.subr.bf16.mxu1 %v17849_v20 }
 0x5e5   : > { %v1691_v43 = vmul.f32 %v13744_v29, %v1595_v7  ;;  %v2036_v29 = vmul.bf16 %v13971_v17, %v14003_v10  ;;  %v677_v10 = vld [vmem:[%s13757_s22 + $0xe8] sm:$0xff]  ;;  %v14181_v1 = vpack.c.bf16 %v1863_v62, %v1862_v53  ;;  %v2012_v7 = vmul.bf16 %v13945_v46, %v14092_v56 }
 0x5e6   : > { %2204 = vmatpush1.bf16.msra.mxu0 %v2010_v38  ;;  %v1830_v41 = vsel %vm990_vm5, %v1690_v11, 0.0  ;;  %v725_v6 = vmul.f32 %v677_v10, %v13822_v32 }
 0x5e7   : > { %2241 = vmatpush1.bf16.msra.mxu1 %v1957_v35  ;;  %1831 = vadd.xlane.f32.xlu0 %v1830_v41  ;;  %v1833_v60 = vsel %vm990_vm5, %v1691_v43, 0.0  ;;  %v1928_v27 = vmul.bf16 %v13792_v16, %v14181_v1  ;;  %v679_v43 = vld [vmem:[%s13757_s22 + $0xf8] sm:$0xff]  ;;  %v678_v35 = vld [vmem:[%s13757_s22 + $0xf0] sm:$0xff]  ;;  %v1958_v41 = vmul.bf16 %v13856_v26, %v14171_v28 }
 0x5e8   : > { %1834 = vadd.xlane.f32.xlu1 %v1833_v60  ;;  %2205 = vmatprep.subr.bf16.mxu0 %v17849_v20  ;;  %v1865_v11 = vmul.f32 %v13935_v58, %v725_v6  ;;  %v727_v24 = vmul.f32 %v679_v43, %v13767_v50  ;;  %v726_v60 = vmul.f32 %v678_v35, %v13776_v52  ;;  %v685_v35 = vld [vmem:[%s13757_s22 + $0x128] sm:$0xff] }
 0x5e9   : > { %2242 = vmatprep.subr.bf16.mxu1 %v17849_v20 }
 0x5ea   : > { %2206 = vmatpush1.bf16.msra.mxu0 %v2036_v29  ;;  %v14194_v58 = vpack.c.bf16 %v1865_v11, %v1864_v55  ;;  %v2039_v29 = vmul.bf16 %v13971_v17, %v14081_v25  ;;  %v1867_v44 = vmul.f32 %v13953_v9, %v727_v24  ;;  %v1866_v59 = vmul.f32 %v13955_v0, %v726_v60 }
 0x5eb   : > { %2243 = vmatpush1.bf16.msra.mxu1 %v1983_v30  ;;  %2207 = vmatprep.subr.bf16.mxu0 %v17849_v20  ;;  %v1959_v30 = vmul.bf16 %v13856_v26, %v14181_v1  ;;  %v2040_v25 = vmul.bf16 %v13971_v17, %v14092_v56  ;;  %v1869_v9 = vmul.f32 %v14124_v47, %v729_v5  ;;  %v683_v47 = vld [vmem:[%s13757_s22 + $0x118] sm:$0xff] }
 0x5ec   : > { %2244 = vmatprep.subr.bf16.mxu1 %v17849_v20  ;;  %v1929_v38 = vmul.bf16 %v13792_v16, %v14194_v58  ;;  %v1960_v40 = vmul.bf16 %v13856_v26, %v14194_v58  ;;  %v14236_v10 = vpack.c.bf16 %v1867_v44, %v1866_v59  ;;  %v1868_v0 = vmul.f32 %v14127_v2, %v728_v23 }
 0x5ed   : > { %v2041_v56 = vmul.bf16 %v13971_v17, %v14105_v57  ;;  %v682_v57 = vld [vmem:[%s13757_s22 + $0x110] sm:$0xff]  ;;  %v1987_v2 = vmul.bf16 %v13904_v36, %v14181_v1  ;;  %v731_v6 = vmul.f32 %v683_v47, %v13822_v32  ;;  %v1988_v53 = vmul.bf16 %v13904_v36, %v14194_v58 }
 0x5ee   : > { %2208 = vmatpush1.bf16.msra.mxu0 %v2037_v31  ;;  %v14246_v31 = vpack.c.bf16 %v1869_v9, %v1868_v0  ;;  %v730_v54 = vmul.f32 %v682_v57, %v13828_v48  ;;  %v733_v60 = vmul.f32 %v685_v35, %v13767_v50  ;;  %v2043_v50 = vmul.bf16 %v13971_v17, %v14181_v1  ;;  %v692_v35 = vld [vmem:[%s13757_s22 + $0x160] sm:$0xff] }
 0x5ef   : > { %2245 = vmatpush1.bf16.msra.mxu1 %v1984_v8  ;;  %2209 = vmatprep.subr.bf16.mxu0 %v17849_v20  ;;  %v1930_v8 = vmul.bf16 %v13792_v16, %v14236_v10  ;;  %v735_v23 = vmul.f32 %v687_v12, %v13803_v63  ;;  %v1989_v9 = vmul.bf16 %v13904_v36, %v14236_v10  ;;  %v12860_v12 = vld [vmem:[%s17865_s26 + $0x10] sm:$0xff] }
 0x5f0   : > { %2246 = vmatprep.subr.bf16.mxu1 %v17849_v20  ;;  %v1931_v15 = vmul.bf16 %v13792_v16, %v14246_v31 }
 0x5f2   : > { %2210 = vmatpush1.bf16.msra.mxu0 %v2038_v14 }
 0x5f3   : > { %2247 = vmatpush1.bf16.msra.mxu1 %v1985_v33  ;;  %2279 = vmatprep.subr.bf16.mxu0 %v17849_v20 }
 0x5f4   : > { %2248 = vmatprep.subr.bf16.mxu1 %v17849_v20 }
 0x5f5   : > { %2214 = vmatmul.mubr.bf16.vlgmr.msra.gmra.mrb[28].mxu0 %v14012_v37 }
 0x5f6   : > { %2280 = vmatpush1.bf16.msra.mxu0 %v1927_v18  ;;  %10559 = vmatprep.mubr.msk.bf16.mxu0 %vm2076_vm7, %v14017_v19  ;;  %v2014_v18 = vmul.bf16 %v13945_v46, %v14171_v28 }
 0x5f7   : > { %2249 = vmatpush1.bf16.msra.mxu1 %v2011_v49  ;;  %2281 = vmatprep.subr.bf16.mxu0 %v17849_v20 }
 0x5f8   : > { %2250 = vmatprep.subr.bf16.mxu1 %v17849_v20 }
 0x5fa   : > { %2282 = vmatpush1.bf16.msra.mxu0 %v1928_v27  ;;  %v2015_v27 = vmul.bf16 %v13945_v46, %v14181_v1  ;;  %v2044_v1 = vmul.bf16 %v13971_v17, %v14194_v58 }
 0x5fb   : > { %2251 = vmatpush1.bf16.msra.mxu1 %v2012_v7  ;;  %2283 = vmatprep.subr.bf16.mxu0 %v17849_v20  ;;  %v2016_v7 = vmul.bf16 %v13945_v46, %v14194_v58 }
 0x5fc   : > { %2252 = vmatprep.subr.bf16.mxu1 %v17849_v20 }
 0x5fd   : > { %2222 = vmatmul.mubr.bf16.gmra.mrb[32].mxu0 %v14041_v13 }
 0x5fe   : > { %2284 = vmatpush1.bf16.msra.mxu0 %v1929_v38  ;;  %10562 = vmatprep.mubr.msk.bf16.mxu0 %vm2076_vm7, %v13721_v4 }
 0x5ff   : > { %2253 = vmatpush1.bf16.msra.mxu1 %v2013_v34  ;;  %2285 = vmatprep.subr.bf16.mxu0 %v17849_v20  ;;  %v684_v34 = vld [vmem:[%s13757_s22 + $0x120] sm:$0xff] }
 0x600   : > { %2254 = vmatprep.subr.bf16.mxu1 %v17849_v20  ;;  %v732_v24 = vmul.f32 %v684_v34, %v13776_v52  ;;  %v12859_v34 = vld [vmem:[%s17865_s26 + $0x8] sm:$0xff] }
 0x602   : > { %2286 = vmatpush1.bf16.msra.mxu0 %v1958_v41  ;;  %v1962_v41 = vmul.bf16 %v13856_v26, %v14246_v31 }
 0x603   : > { %2255 = vmatpush1.bf16.msra.mxu1 %v2039_v29  ;;  %2287 = vmatprep.subr.bf16.mxu0 %v17849_v20  ;;  %v686_v29 = vld [vmem:[%s13757_s22 + $0x130] sm:$0xff] }
 0x604   : > { %2256 = vmatprep.subr.bf16.mxu1 %v17849_v20  ;;  %v734_v28 = vmul.f32 %v686_v29, %v13811_v21 }
 0x606   : > { %2288 = vmatpush1.bf16.msra.mxu0 %v1959_v30 }
 0x607   : > { %2257 = vmatpush1.bf16.msra.mxu1 %v2040_v25  ;;  %2289 = vmatprep.subr.bf16.mxu0 %v17849_v20  ;;  %v688_v25 = vld [vmem:[%s13757_s22 + $0x140] sm:$0xff] }
 0x608   : > { %2258 = vmatprep.subr.bf16.mxu1 %v17849_v20  ;;  %v736_v0 = vmul.f32 %v688_v25, %v13828_v48  ;;  %v1990_v48 = vmul.bf16 %v13904_v36, %v14246_v31 }
 0x60a   : > { %2290 = vmatpush1.bf16.msra.mxu0 %v1960_v40  ;;  %v689_v40 = vld [vmem:[%s13757_s22 + $0x148] sm:$0xff] }
 0x60b   : > { %2259 = vmatpush1.bf16.msra.mxu1 %v2041_v56  ;;  %2291 = vmatprep.subr.bf16.mxu0 %v17849_v20 }
 0x60c   : > { %2328 = vmatprep.subr.bf16.mxu1 %v17849_v20 }
 0x60e   : > { %2263 = vmatmul.mubr.bf16.vlgmr.msra.gmra.mrb[44].mxu1 %v14012_v37  ;;  %2292 = vmatpush1.bf16.msra.mxu0 %v1986_v22  ;;  %v737_v22 = vmul.f32 %v689_v40, %v13822_v32 }
 0x60f   : > { %2329 = vmatpush1.bf16.msra.mxu1 %v1930_v8  ;;  %2293 = vmatprep.subr.bf16.mxu0 %v17849_v20 }
 0x610   : > { %2330 = vmatprep.subr.bf16.mxu1 %v17849_v20  ;;  %10561 = vmatprep.mubr.msk.bf16.mxu1 %vm2076_vm7, %v14017_v19 }
 0x612   : > { %2294 = vmatpush1.bf16.msra.mxu0 %v1987_v2 }
 0x613   : > { %2331 = vmatpush1.bf16.msra.mxu1 %v1931_v15  ;;  %2295 = vmatprep.subr.bf16.mxu0 %v17849_v20 }
 0x614   : > { %v1799_v62 = vpop.xlane.xlu0 %1798  ;;  %2332 = vmatprep.subr.bf16.mxu1 %v17849_v20 }
 0x615   : > { %v1871_v14 = vmul.f32 %v1799_v62, %v731_v6  ;;  %v1796_v33 = vpop.xlane.xlu1 %1795  ;;  %v2017_v62 = vmul.bf16 %v13945_v46, %v14236_v10 }
 0x616   : > { %v1870_v11 = vmul.f32 %v1796_v33, %v730_v54  ;;  %2271 = vmatmul.mubr.bf16.gmra.mrb[48].mxu1 %v14041_v13  ;;  %2296 = vmatpush1.bf16.msra.mxu0 %v1988_v53  ;;  %v14350_v33 = vld [vmem:[%s17825_s7 + $0x4] ss:$8 sps:$4 sm:$0xff]  }
 0x617   : > { %2297 = vmatprep.subr.bf16.mxu0 %v17849_v20  ;;  %10564 = vmatprep.mubr.msk.bf16.mxu1 %vm2076_vm7, %v13721_v4  ;;  %v1961_v4 = vmul.bf16 %v13856_v26, %v14236_v10 }
 0x618   : > { %v14271_v55 = vpack.c.bf16 %v1871_v14, %v1870_v11  ;;  %v1802_v38 = vpop.xlane.xlu0 %1801  ;;  %v2018_v14 = vmul.bf16 %v13945_v46, %v14246_v31 }
 0x619   : > { %v1805_v43 = vpop.xlane.xlu1 %1804  ;;  %v1872_v52 = vmul.f32 %v1802_v38, %v732_v24 }
 0x61a   : > { %2298 = vmatpush1.bf16.msra.mxu0 %v2014_v18  ;;  %v1932_v49 = vmul.bf16 %v13792_v16, %v14271_v55  ;;  %v1963_v5 = vmul.bf16 %v13856_v26, %v14271_v55  ;;  %v1873_v59 = vmul.f32 %v1805_v43, %v733_v60  ;;  %v1991_v32 = vmul.bf16 %v13904_v36, %v14271_v55 }
 0x61b   : > { %2299 = vmatprep.subr.bf16.mxu0 %v17849_v20  ;;  %v2019_v18 = vmul.bf16 %v13945_v46, %v14271_v55 }
 0x61c   : > { %2333 = vmatpush1.bf16.msra.mxu1 %v1932_v49  ;;  %v1808_v30 = vpop.xlane.xlu0 %1807  ;;  %v14315_v56 = vpack.c.bf16 %v1873_v59, %v1872_v52  ;;  %v690_v49 = vld [vmem:[%s13757_s22 + $0x150] sm:$0xff]  ;;  %v2046_v52 = vmul.bf16 %v13971_v17, %v14246_v31 }
 0x61d   : > { %2334 = vmatprep.subr.bf16.mxu1 %v17849_v20  ;;  %v1811_v44 = vpop.xlane.xlu1 %1810  ;;  %v1874_v21 = vmul.f32 %v1808_v30, %v734_v28 }
 0x61e   : > { %2300 = vmatpush1.bf16.msra.mxu0 %v2015_v27  ;;  %v1875_v63 = vmul.f32 %v1811_v44, %v735_v23  ;;  %v1933_v15 = vmul.bf16 %v13792_v16, %v14315_v56  ;;  %v1964_v11 = vmul.bf16 %v13856_v26, %v14315_v56  ;;  %v691_v27 = vld [vmem:[%s13757_s22 + $0x158] sm:$0xff]  ;;  %v1992_v23 = vmul.bf16 %v13904_v36, %v14315_v56 }
 0x61f   : > { %2301 = vmatprep.subr.bf16.mxu0 %v17849_v20  ;;  %v739_v43 = vmul.f32 %v12859_v34, %v691_v27 }
 0x620   : > { %2335 = vmatpush1.bf16.msra.mxu1 %v1961_v4  ;;  %v1814_v8 = vpop.xlane.xlu0 %1813  ;;  %v14322_v57 = vpack.c.bf16 %v1875_v63, %v1874_v21 }
 0x621   : > { %2336 = vmatprep.subr.bf16.mxu1 %v17849_v20  ;;  %v1817_v47 = vpop.xlane.xlu1 %1816  ;;  %v1876_v58 = vmul.f32 %v1814_v8, %v736_v0  ;;  %v2047_v0 = vmul.bf16 %v13971_v17, %v14271_v55 }
 0x622   : > { %2302 = vmatpush1.bf16.msra.mxu0 %v2016_v7  ;;  %v1877_v2 = vmul.f32 %v1817_v47, %v737_v22  ;;  %v1934_v54 = vmul.bf16 %v13792_v16, %v14322_v57  ;;  %v1965_v4 = vmul.bf16 %v13856_v26, %v14322_v57  ;;  %v12858_v7 = vld [vmem:[%s17865_s26] sm:$0xff]  ;;  %v1993_v31 = vmul.bf16 %v13904_v36, %v14322_v57 }
 0x623   : > { %2303 = vmatprep.subr.bf16.mxu0 %v17849_v20  ;;  %v738_v38 = vmul.f32 %v12858_v7, %v690_v49  ;;  %v2020_v22 = vmul.bf16 %v13945_v46, %v14315_v56  ;;  %v2021_v8 = vmul.bf16 %v13945_v46, %v14322_v57 }
 0x624   : > { %2337 = vmatpush1.bf16.msra.mxu1 %v1962_v41  ;;  %v14333_v6 = vpack.c.bf16 %v1877_v2, %v1876_v58  ;;  %v2045_v41 = vmul.bf16 %v13971_v17, %v14236_v10  ;;  %v1820_v24 = vpop.xlane.xlu0 %1819  ;;  %v12861_v10 = vld [vmem:[%s17865_s26 + $0x18] sm:$0xff]  ;;  %v2049_v58 = vmul.bf16 %v13971_v17, %v14322_v57  ;;  %v12797_v2 = vld [vmem:[%s17823_s5] sm:$0xff]   ;;  %v694_v57 = vld [vmem:[%s13757_s22 + $0x170] sm:$0xff] }
 0x625   : > { %2338 = vmatprep.subr.bf16.mxu1 %v17849_v20  ;;  %v1823_v60 = vpop.xlane.xlu1 %1822  ;;  %v1878_v30 = vmul.f32 %v1820_v24, %v738_v38 }
 0x626   : > { %2304 = vmatpush1.bf16.msra.mxu0 %v2042_v45  ;;  %v1935_v53 = vmul.bf16 %v13792_v16, %v14333_v6  ;;  %v693_v45 = vld [vmem:[%s13757_s22 + $0x168] sm:$0xff]  ;;  %v1966_v29 = vmul.bf16 %v13856_v26, %v14333_v6  ;;  %v1879_v44 = vmul.f32 %v1823_v60, %v739_v43  ;;  %v1994_v55 = vmul.bf16 %v13904_v36, %v14333_v6 }
 0x627   : > { %2305 = vmatprep.subr.bf16.mxu0 %v17849_v20  ;;  %v2022_v47 = vmul.bf16 %v13945_v46, %v14333_v6 }
 0x628   : > { %2339 = vmatpush1.bf16.msra.mxu1 %v1963_v5  ;;  %v740_v5 = vmul.f32 %v12860_v12, %v692_v35  ;;  %v14392_v25 = vpack.c.bf16 %v1879_v44, %v1878_v30 }
 0x629   : > { %2340 = vmatprep.subr.bf16.mxu1 %v17849_v20 }
 0x62a   : > { %2306 = vmatpush1.bf16.msra.mxu0 %v2043_v50  ;;  %v741_v50 = vmul.f32 %v12861_v10, %v693_v45  ;;  %v1936_v21 = vmul.bf16 %v13792_v16, %v14392_v25  ;;  %v1967_v7 = vmul.bf16 %v13856_v26, %v14392_v25  ;;  %v1995_v43 = vmul.bf16 %v13904_v36, %v14392_v25 }
 0x62b   : > { %2307 = vmatprep.subr.bf16.mxu0 %v17849_v20  ;;  %v2023_v10 = vmul.bf16 %v13945_v46, %v14392_v25 }
 0x62c   : > { %2341 = vmatpush1.bf16.msra.mxu1 %v1989_v9 }
 0x62d   : > { %2342 = vmatprep.subr.bf16.mxu1 %v17849_v20 }
 0x62e   : > { %2308 = vmatpush1.bf16.msra.mxu0 %v2044_v1 }
 0x62f   : > { %2377 = vmatprep.subr.bf16.mxu0 %v17849_v20 }
 0x630   : > { %2343 = vmatpush1.bf16.msra.mxu1 %v1990_v48  ;;  %v2048_v48 = vmul.bf16 %v13971_v17, %v14315_v56  ;;  %v12798_v56 = vld [vmem:[%s17823_s5 + $0x8] sm:$0xff]  }
 0x631   : > { %2312 = vmatmul.mubr.bf16.vlgmr.msra.gmra.mrb[36].mxu0 %v14012_v37  ;;  %2344 = vmatprep.subr.bf16.mxu1 %v17849_v20 }
 0x632   : > { %2378 = vmatpush1.bf16.msra.mxu0 %v1933_v15  ;;  %10563 = vmatprep.mubr.msk.bf16.mxu0 %vm2076_vm7, %v14017_v19  ;;  %v2050_v15 = vmul.bf16 %v13971_v17, %v14333_v6  ;;  %v12862_v6 = vld [vmem:[%s17865_s26 + $0x20] sm:$0xff] }
 0x633   : > { %2379 = vmatprep.subr.bf16.mxu0 %v17849_v20 }
 0x634   : > { %2345 = vmatpush1.bf16.msra.mxu1 %v1991_v32  ;;  %v695_v32 = vld [vmem:[%s13757_s22 + $0x178] sm:$0xff]  ;;  %s10418_s22 = sshll.u32 %s584_s23, 4  ;;  %s17777_s22 = int_to_ptr.vmem [resolvable:$true] %s10418_s22 }
 0x635   : > { %2346 = vmatprep.subr.bf16.mxu1 %v17849_v20  ;;  %s12911_s27 = scalar_lea.vmem %s17777_s22, 128  ;;  %p12918_p1 = scmp.lt.s32.totalorder %s17777_s22, %s12916_s21 }
 0x636   : > { %2380 = vmatpush1.bf16.msra.mxu0 %v1934_v54  ;;  %v12799_v54 = vld [vmem:[%s17823_s5 + $0x10] sm:$0xff]   ;;  %p12912_p12 = scmp.ne.s32.totalorder %s17777_s22, %s12911_s27  ;;  %p12919_p2 = scmp.lt.s32.totalorder %s12917_s18, %s12911_s27 }
 0x637   : > { %2381 = vmatprep.subr.bf16.mxu0 %v17849_v20 }
 0x638   : > { %2347 = vmatpush1.bf16.msra.mxu1 %v2017_v62  ;;  %v742_v62 = vmul.f32 %v12862_v6, %v694_v57  ;;  %p12913_p13 = pnand %p12912_p12, %p13114_p5  ;;  %p12920_p3 = por %p12919_p2, %p12918_p1 }
 0x639   : > { %2320 = vmatmul.mubr.bf16.gmra.mrb[40].mxu0 %v14041_v13  ;;  %2348 = vmatprep.subr.bf16.mxu1 %v17849_v20 }
 0x63a   : > { %2382 = vmatpush1.bf16.msra.mxu0 %v1935_v53  ;;  %10566 = vmatprep.mubr.msk.bf16.mxu0 %vm2076_vm7, %v14350_v33  ;;  %v12863_v53 = vld [vmem:[%s17865_s26 + $0x28] sm:$0xff]  ;;  %p12914_p0 = pneg %p12913_p13 }
 0x63b   : > { %2383 = vmatprep.subr.bf16.mxu0 %v17849_v20 }
 0x63c   : > { %2349 = vmatpush1.bf16.msra.mxu1 %v2018_v14  ;;  %v743_v14 = vmul.f32 %v12863_v53, %v695_v32  ;;  %v12803_v53 = vld [vmem:[%s17824_s6 + $0x18] sm:$0xff]   ;;  %p12921_p4 = pnand %p12920_p3, %p12914_p0 }
 0x63d   : > { %2350 = vmatprep.subr.bf16.mxu1 %v17849_v20 }
 0x63e   : > { %2384 = vmatpush1.bf16.msra.mxu0 %v1964_v11 }
 0x63f   : > { %2385 = vmatprep.subr.bf16.mxu0 %v17849_v20  ;;  %v1826_v59 = vpop.xlane.xlu0 %1825 }
 0x640   : > { %2351 = vmatpush1.bf16.msra.mxu1 %v2019_v18  ;;  %v1829_v28 = vpop.xlane.xlu1 %1828  ;;  %v1880_v40 = vmul.f32 %v1826_v59, %v740_v5 }
 0x641   : > { %2352 = vmatprep.subr.bf16.mxu1 %v17849_v20  ;;  %v1881_v9 = vmul.f32 %v1829_v28, %v741_v50 }
 0x642   : > { %2386 = vmatpush1.bf16.msra.mxu0 %v1965_v4 }
 0x643   : > { %2387 = vmatprep.subr.bf16.mxu0 %v17849_v20  ;;  %v14400_v1 = vpack.c.bf16 %v1881_v9, %v1880_v40 }
 0x644   : > { %2353 = vmatpush1.bf16.msra.mxu1 %v2045_v41 }
 0x645   : > { %2354 = vmatprep.subr.bf16.mxu1 %v17849_v20  ;;  %v1937_v63 = vmul.bf16 %v13792_v16, %v14400_v1  ;;  %v1968_v38 = vmul.bf16 %v13856_v26, %v14400_v1  ;;  %v1996_v60 = vmul.bf16 %v13904_v36, %v14400_v1  ;;  %v2024_v59 = vmul.bf16 %v13945_v46, %v14400_v1 }
 0x646   : > { %2388 = vmatpush1.bf16.msra.mxu0 %v1966_v29  ;;  %v2052_v9 = vmul.bf16 %v13971_v17, %v14400_v1 }
 0x647   : > { %2389 = vmatprep.subr.bf16.mxu0 %v17849_v20 }
 0x648   : > { %2355 = vmatpush1.bf16.msra.mxu1 %v2046_v52 }
 0x649   : > { %2356 = vmatprep.subr.bf16.mxu1 %v17849_v20 }
 0x64a   : > { %2390 = vmatpush1.bf16.msra.mxu0 %v1992_v23  ;;  %v2051_v23 = vmul.bf16 %v13971_v17, %v14392_v25 }
 0x64b   : > { %2391 = vmatprep.subr.bf16.mxu0 %v17849_v20 }
 0x64c   : > { %2357 = vmatpush1.bf16.msra.mxu1 %v2047_v0 }
 0x64d   : > { %2426 = vmatprep.subr.bf16.mxu1 %v17849_v20 }
 0x64e   : > { %2392 = vmatpush1.bf16.msra.mxu0 %v1993_v31 }
 0x64f   : > { %2361 = vmatmul.mubr.bf16.vlgmr.msra.gmra.mrb[52].mxu1 %v14012_v37  ;;  %2393 = vmatprep.subr.bf16.mxu0 %v17849_v20 }
 0x650   : > { %2427 = vmatpush1.bf16.msra.mxu1 %v1936_v21  ;;  %10565 = vmatprep.mubr.msk.bf16.mxu1 %vm2076_vm7, %v14017_v19 }
 0x651   : > { %2428 = vmatprep.subr.bf16.mxu1 %v17849_v20 }
 0x652   : > { %2394 = vmatpush1.bf16.msra.mxu0 %v1994_v55 }
 0x653   : > { %2395 = vmatprep.subr.bf16.mxu0 %v17849_v20 }
 0x654   : > { %2429 = vmatpush1.bf16.msra.mxu1 %v1937_v63 }
 0x655   : > { %2430 = vmatprep.subr.bf16.mxu1 %v17849_v20 }
 0x656   : > { %2396 = vmatpush1.bf16.msra.mxu0 %v2020_v22 }
 0x657   : > { %2369 = vmatmul.mubr.bf16.gmra.mrb[56].mxu1 %v14041_v13  ;;  %2397 = vmatprep.subr.bf16.mxu0 %v17849_v20 }
 0x658   : > { %10568 = vmatprep.mubr.msk.bf16.mxu1 %vm2076_vm7, %v14350_v33 }
 0x65a   : > { %2398 = vmatpush1.bf16.msra.mxu0 %v2021_v8 }
 0x65b   : > { %2399 = vmatprep.subr.bf16.mxu0 %v17849_v20 }
 0x65e   : > { %2400 = vmatpush1.bf16.msra.mxu0 %v2022_v47 }
 0x65f   : > { %2401 = vmatprep.subr.bf16.mxu0 %v17849_v20 }
 0x662   : > { %2402 = vmatpush1.bf16.msra.mxu0 %v2048_v48 }
 0x663   : > { %2403 = vmatprep.subr.bf16.mxu0 %v17849_v20 }
 0x666   : > { %2404 = vmatpush1.bf16.msra.mxu0 %v2049_v58 }
 0x667   : > { %2405 = vmatprep.subr.bf16.mxu0 %v17849_v20 }
 0x66a   : > { %2406 = vmatpush1.bf16.msra.mxu0 %v2050_v15 }
 0x66b   : > { %11867 = vmatprep.subr.bf16.mxu0 %v12797_v2 }
 0x66d   : > { %2410 = vmatmul.mubr.bf16.vlgmr.msra.gmra.mrb[44].mxu0 %v14012_v37 }
 0x66e   : > { %10567 = vmatprep.mubr.msk.bf16.mxu0 %vm2076_vm7, %v14017_v19  ;;  %11868 = vmatpush3.bf16.msra.mxu0 %v12797_v2 }
 0x66f   : > { %11869 = vmatprep.subr.bf16.mxu0 %v12798_v56 }
 0x672   : > { %11870 = vmatpush3.bf16.msra.mxu0 %v12798_v56 }
 0x673   : > { %11871 = vmatprep.subr.bf16.mxu0 %v12799_v54 }
 0x674   : > { %v1832_v33 = vpop.xlane.xlu0 %1831 }
 0x675   : > { %v1882_v11 = vmul.f32 %v1832_v33, %v742_v62  ;;  %v1835_v18 = vpop.xlane.xlu1 %1834  ;;  %2418 = vmatmul.mubr.bf16.gmra.mrb[48].mxu0 %v14041_v13  ;;  %v12805_v33 = vld [vmem:[%s17824_s6 + $0x28] sm:$0xff]  }
 0x676   : > { %v1883_v49 = vmul.f32 %v1835_v18, %v743_v14  ;;  %11872 = vmatpush3.bf16.msra.mxu0 %v12799_v54  ;;  %v12804_v14 = vld [vmem:[%s17824_s6 + $0x20] sm:$0xff]  }
 0x677   : > { %3192 = vmatprep.subr.bf16.mxu0 %v17849_v20 }
 0x678   : > { %v1907_v27 = vpack.c.bf16 %v1883_v49, %v1882_v11 }
 0x67a   : > { %v1938_v4 = vmul.bf16 %v13792_v16, %v1907_v27  ;;  %v1969_v34 = vmul.bf16 %v13856_v26, %v1907_v27  ;;  %v1997_v12 = vmul.bf16 %v13904_v36, %v1907_v27  ;;  %v2025_v28 = vmul.bf16 %v13945_v46, %v1907_v27 }
 0x67b   : > { %v2053_v63 = vmul.bf16 %v13971_v17, %v1907_v27 }
 0x67c   : > { %2431 = vmatpush1.bf16.msra.mxu1 %v1938_v4 }
 0x67d   : > { %2432 = vmatprep.subr.bf16.mxu1 %v17849_v20 }
 0x680   : > { %2433 = vmatpush1.bf16.msra.mxu1 %v1967_v7 }
 0x681   : > { %2434 = vmatprep.subr.bf16.mxu1 %v17849_v20 }
 0x684   : > { %2435 = vmatpush1.bf16.msra.mxu1 %v1968_v38 }
 0x685   : > { %2436 = vmatprep.subr.bf16.mxu1 %v17849_v20 }
 0x688   : > { %2437 = vmatpush1.bf16.msra.mxu1 %v1969_v34 }
 0x689   : > { %2438 = vmatprep.subr.bf16.mxu1 %v17849_v20 }
 0x68c   : > { %v2117_v35 = vpop.f32.mrb[20].mxu0  ;;  %2439 = vmatpush1.bf16.msra.mxu1 %v1995_v43 }
 0x68d   : > { %v2119_v41 = vpop.f32.mrb[21].mxu0  ;;  %2440 = vmatprep.subr.bf16.mxu1 %v17849_v20 }
 0x68e   : > { %v2120_v24 = vpop.f32.mrb[22].mxu0  ;;  %v12806_v41 = vld [vmem:[%s17824_s6 + $0x30] sm:$0xff]  }
 0x68f   : > { %v2475_v45 = vpack.c.bf16 %v2120_v24, %v2117_v35  ;;  %v2122_v29 = vpop.f32.mrb[23].mxu0  ;;  %v12807_v24 = vld [vmem:[%s17824_s6 + $0x38] sm:$0xff]  }
 0x690   : > { %2441 = vmatpush1.bf16.msra.mxu1 %v1996_v60 }
 0x691   : > { %11873 = vmatprep.mubr.msk.bf16.mxu0 %vm835_vm2, %v2475_v45  ;;  %2442 = vmatprep.subr.bf16.mxu1 %v17849_v20 }
 0x694   : > { %v2125_v5 = vpop.f32.mrb[24].mxu0  ;;  %2443 = vmatpush1.bf16.msra.mxu1 %v1997_v12 }
 0x695   : > { %v2127_v30 = vpop.f32.mrb[25].mxu0  ;;  %2444 = vmatprep.subr.bf16.mxu1 %v17849_v20 }
 0x696   : > { %v2128_v44 = vpop.f32.mrb[26].mxu0 }
 0x697   : > { %v2476_v50 = vpack.c.bf16 %v2128_v44, %v2125_v5  ;;  %v2130_v52 = vpop.f32.mrb[27].mxu0 }
 0x698   : > { %2445 = vmatpush1.bf16.msra.mxu1 %v2023_v10 }
 0x699   : > { %11874 = vmatmul.mubr.msk.bf16.vlgmr.msra.gmra.mrb[52].mxu0 %vm835_vm2, %v2476_v50  ;;  %2446 = vmatprep.subr.bf16.mxu1 %v17849_v20 }
 0x69c   : > { %2447 = vmatpush1.bf16.msra.mxu1 %v2024_v59 }
 0x69d   : > { %2448 = vmatprep.subr.bf16.mxu1 %v17849_v20 }
 0x6a0   : > { %2449 = vmatpush1.bf16.msra.mxu1 %v2025_v28 }
 0x6a1   : > { %2450 = vmatprep.subr.bf16.mxu1 %v17849_v20 }
 0x6a4   : > { %2451 = vmatpush1.bf16.msra.mxu1 %v2051_v23 }
 0x6a5   : > { %2452 = vmatprep.subr.bf16.mxu1 %v17849_v20  ;;  %v2166_v40 = vpop.f32.mrb[36].mxu1 }
 0x6a6   : > { %v2168_v0 = vpop.f32.mrb[37].mxu1 }
 0x6a7   : > { %v2169_v31 = vpop.f32.mrb[38].mxu1 }
 0x6a8   : > { %2453 = vmatpush1.bf16.msra.mxu1 %v2052_v9  ;;  %v2477_v21 = vpack.c.bf16 %v2169_v31, %v2166_v40  ;;  %v2171_v55 = vpop.f32.mrb[39].mxu1 }
 0x6a9   : > { %2454 = vmatprep.subr.bf16.mxu1 %v17849_v20 }
 0x6aa   : > { %11877 = vmatprep.mubr.msk.bf16.mxu0 %vm835_vm2, %v2477_v21 }
 0x6ac   : > { %2455 = vmatpush1.bf16.msra.mxu1 %v2053_v63 }
 0x6ad   : > { %v2174_v25 = vpop.f32.mrb[40].mxu1 }
 0x6ae   : > { %v2176_v22 = vpop.f32.mrb[41].mxu1 }
 0x6af   : > { %v2177_v8 = vpop.f32.mrb[42].mxu1  ;;  %2459 = vmatmul.mubr.bf16.vlgmr.msra.gmra.mrb[60].mxu1 %v14012_v37  ;;  %v12800_v37 = vld [vmem:[%s17824_s6] sm:$0xff]  }
 0x6b0   : > { %v2478_v47 = vpack.c.bf16 %v2177_v8, %v2174_v25  ;;  %10569 = vmatprep.mubr.msk.bf16.mxu1 %vm2076_vm7, %v14017_v19  ;;  %v2179_v1 = vpop.f32.mrb[43].mxu1  ;;  %v12801_v19 = vld [vmem:[%s17824_s6 + $0x8] sm:$0xff]   ;;  %11905 = vmatprep.subr.bf16.mxu1 %v12800_v37 }
 0x6b1   : > { %11906 = vmatpush3.bf16.msra.mxu1 %v12800_v37 }
 0x6b2   : > { %11878 = vmatmul.mubr.msk.bf16.gmra.mrb[56].mxu0 %vm835_vm2, %v2478_v47  ;;  %11907 = vmatprep.subr.bf16.mxu1 %v12801_v19 }
 0x6b5   : > { %11908 = vmatpush3.bf16.msra.mxu1 %v12801_v19 }
 0x6b7   : > { %2467 = vmatmul.mubr.bf16.gmra.mrb[64].mxu1 %v14041_v13  ;;  %v12802_v13 = vld [vmem:[%s17824_s6 + $0x10] sm:$0xff]  }
 0x6b8   : > { %11909 = vmatprep.subr.bf16.mxu1 %v12802_v13 }
 0x6b9   : > { %11910 = vmatpush3.bf16.msra.mxu1 %v12802_v13 }
 0x6ba   : > { %11911 = vmatprep.subr.bf16.mxu1 %v12803_v53 }
 0x6bd   : > { %11912 = vmatpush3.bf16.msra.mxu1 %v12803_v53 }
 0x6be   : > { %11913 = vmatprep.subr.bf16.mxu1 %v12804_v14 }
 0x6c1   : > { %11914 = vmatpush3.bf16.msra.mxu1 %v12804_v14 }
 0x6c2   : > { %11915 = vmatprep.subr.bf16.mxu1 %v12805_v33 }
 0x6c5   : > { %11916 = vmatpush3.bf16.msra.mxu1 %v12805_v33 }
 0x6c6   : > { %11917 = vmatprep.subr.bf16.mxu1 %v12806_v41 }
 0x6c8   : > { %v2215_v48 = vpop.f32.mrb[28].mxu0 }
 0x6c9   : > { %v2217_v58 = vpop.f32.mrb[29].mxu0  ;;  %11918 = vmatpush3.bf16.msra.mxu1 %v12806_v41 }
 0x6ca   : > { %v2218_v2 = vpop.f32.mrb[30].mxu0  ;;  %11919 = vmatprep.subr.bf16.mxu1 %v12807_v24 }
 0x6cb   : > { %v2479_v15 = vpack.c.bf16 %v2218_v2, %v2215_v48  ;;  %v2220_v56 = vpop.f32.mrb[31].mxu0 }
 0x6cd   : > { %11881 = vmatprep.mubr.msk.bf16.mxu0 %vm835_vm2, %v2479_v15  ;;  %11920 = vmatpush3.bf16.msra.mxu1 %v12807_v24 }
 0x6ce   : > { %3257 = vmatprep.subr.bf16.mxu1 %v17849_v20 }
 0x6d0   : > { %v2223_v57 = vpop.f32.mrb[32].mxu0 }
 0x6d1   : > { %v2225_v32 = vpop.f32.mrb[33].mxu0 }
 0x6d2   : > { %v2226_v54 = vpop.f32.mrb[34].mxu0 }
 0x6d3   : > { %v2480_v6 = vpack.c.bf16 %v2226_v54, %v2223_v57  ;;  %v2228_v62 = vpop.f32.mrb[35].mxu0 }
 0x6d5   : > { %11882 = vmatmul.mubr.msk.bf16.gmra.mrb[60].mxu0 %vm835_vm2, %v2480_v6 }
 0x6e1   : > { %v2264_v11 = vpop.f32.mrb[44].mxu1 }
 0x6e2   : > { %v2266_v18 = vpop.f32.mrb[45].mxu1 }
 0x6e3   : > { %v2267_v49 = vpop.f32.mrb[46].mxu1 }
 0x6e4   : > { %v2481_v27 = vpack.c.bf16 %v2267_v49, %v2264_v11  ;;  %v2269_v4 = vpop.f32.mrb[47].mxu1 }
 0x6e6   : > { %11885 = vmatprep.mubr.msk.bf16.mxu0 %vm835_vm2, %v2481_v27 }
 0x6e9   : > { %v2272_v7 = vpop.f32.mrb[48].mxu1 }
 0x6ea   : > { %v2274_v38 = vpop.f32.mrb[49].mxu1 }
 0x6eb   : > { %v2275_v34 = vpop.f32.mrb[50].mxu1 }
 0x6ec   : > { %v2482_v43 = vpack.c.bf16 %v2275_v34, %v2272_v7  ;;  %v2277_v35 = vpop.f32.mrb[51].mxu1 }
 0x6ee   : > { %11886 = vmatmul.mubr.msk.bf16.gmra.mrb[64].mxu0 %vm835_vm2, %v2482_v43 }
 0x704   : > { %v2313_v60 = vpop.f32.mrb[36].mxu0 }
 0x705   : > { %v2315_v45 = vpop.f32.mrb[37].mxu0 }
 0x706   : > { %v2316_v29 = vpop.f32.mrb[38].mxu0 }
 0x707   : > { %v2483_v12 = vpack.c.bf16 %v2316_v29, %v2313_v60  ;;  %v2318_v5 = vpop.f32.mrb[39].mxu0 }
 0x709   : > { %11889 = vmatprep.mubr.msk.bf16.mxu0 %vm835_vm2, %v2483_v12 }
 0x70c   : > { %v2321_v30 = vpop.f32.mrb[40].mxu0 }
 0x70d   : > { %v2323_v44 = vpop.f32.mrb[41].mxu0 }
 0x70e   : > { %v2324_v10 = vpop.f32.mrb[42].mxu0 }
 0x70f   : > { %v2484_v50 = vpack.c.bf16 %v2324_v10, %v2321_v30  ;;  %v2326_v52 = vpop.f32.mrb[43].mxu0 }
 0x711   : > { %11890 = vmatmul.mubr.msk.bf16.gmra.mrb[68].mxu0 %vm835_vm2, %v2484_v50 }
 0x722   : > { %v2362_v59 = vpop.f32.mrb[52].mxu1 }
 0x723   : > { %v2364_v28 = vpop.f32.mrb[53].mxu1 }
 0x724   : > { %v2365_v23 = vpop.f32.mrb[54].mxu1 }
 0x725   : > { %v2485_v40 = vpack.c.bf16 %v2365_v23, %v2362_v59  ;;  %v2367_v9 = vpop.f32.mrb[55].mxu1 }
 0x727   : > { %11893 = vmatprep.mubr.msk.bf16.mxu0 %vm835_vm2, %v2485_v40 }
 0x72a   : > { %v2370_v0 = vpop.f32.mrb[56].mxu1 }
 0x72b   : > { %v2372_v31 = vpop.f32.mrb[57].mxu1 }
 0x72c   : > { %v2373_v21 = vpop.f32.mrb[58].mxu1 }
 0x72d   : > { %v2486_v55 = vpack.c.bf16 %v2373_v21, %v2370_v0  ;;  %v2375_v63 = vpop.f32.mrb[59].mxu1 }
 0x72f   : > { %11894 = vmatmul.mubr.msk.bf16.gmra.mrb[72].mxu0 %vm835_vm2, %v2486_v55 }
 0x740   : > { %v2411_v25 = vpop.f32.mrb[44].mxu0 }
 0x741   : > { %v2413_v22 = vpop.f32.mrb[45].mxu0 }
 0x742   : > { %v2414_v8 = vpop.f32.mrb[46].mxu0 }
 0x743   : > { %v2487_v47 = vpack.c.bf16 %v2414_v8, %v2411_v25  ;;  %v2416_v1 = vpop.f32.mrb[47].mxu0 }
 0x745   : > { %11897 = vmatprep.mubr.msk.bf16.mxu0 %vm835_vm2, %v2487_v47 }
 0x748   : > { %v2419_v48 = vpop.f32.mrb[48].mxu0 }
 0x749   : > { %v2421_v58 = vpop.f32.mrb[49].mxu0 }
 0x74a   : > { %v2422_v2 = vpop.f32.mrb[50].mxu0 }
 0x74b   : > { %v2488_v15 = vpack.c.bf16 %v2422_v2, %v2419_v48  ;;  %v2424_v56 = vpop.f32.mrb[51].mxu0 }
 0x74d   : > { %11898 = vmatmul.mubr.msk.bf16.gmra.mrb[76].mxu0 %vm835_vm2, %v2488_v15 }
 0x76c   : > { %v11875_v37 = vpop.f32.mrb[52].mxu0 }
 0x76d   : > { %vm2720_vm8 = vcmp.gt.f32.partialorder %v11875_v37, 0.0  ;;  %v2752_v19 = vmul.f32 0.1, %v11875_v37  ;;  %v2591_v57 = vpop.f32.mrb[53].mxu0 }
 0x76e   : > { %v2750_v32 = vmul.f32 0.1, %v2591_v57  ;;  %v11876_v13 = vpop.f32.mrb[54].mxu0  ;;  %vm2718_vm9 = vcmp.gt.f32.partialorder %v2591_v57, 0.0 }
 0x76f   : > { %v2784_v54 = vsel %vm2720_vm8, %v11875_v37, %v2752_v19  ;;  %vm2721_vm10 = vcmp.gt.f32.partialorder %v11876_v13, 0.0  ;;  %v2753_v6 = vmul.f32 0.1, %v11876_v13  ;;  %v2594_v62 = vpop.f32.mrb[55].mxu0 }
 0x770   : > { %v2751_v53 = vmul.f32 0.1, %v2594_v62  ;;  %vm2719_vm11 = vcmp.gt.f32.partialorder %v2594_v62, 0.0  ;;  %v2782_v14 = vsel %vm2718_vm9, %v2591_v57, %v2750_v32 }
 0x771   : > { %v2785_v33 = vsel %vm2721_vm10, %v11876_v13, %v2753_v6 }
 0x772   : > { %v2815_v11 = vpack.c.bf16 %v2785_v33, %v2784_v54  ;;  %v2783_v18 = vsel %vm2719_vm11, %v2594_v62, %v2751_v53 }
 0x773   : > { %v2814_v49 = vpack.c.bf16 %v2783_v18, %v2782_v14 }
 0x775   : > { %11921 = vmatprep.mubr.bf16.mxu1 %v2814_v49 }
 0x776   : > { %11922 = vmatmul.mubr.bf16.vlgmr.msra.gmra.mrb[68].mxu1 %v2815_v11 }
 0x782   : > { %v2460_v27 = vpop.f32.mrb[60].mxu1 }
 0x783   : > { %v2462_v4 = vpop.f32.mrb[61].mxu1 }
 0x784   : > { %v2463_v7 = vpop.f32.mrb[62].mxu1 }
 0x785   : > { %v11879_v38 = vpop.f32.mrb[56].mxu0  ;;  %v2489_v34 = vpack.c.bf16 %v2463_v7, %v2460_v27  ;;  %v2465_v43 = vpop.f32.mrb[63].mxu1 }
 0x786   : > { %v2756_v35 = vmul.f32 0.1, %v11879_v38  ;;  %v2607_v41 = vpop.f32.mrb[57].mxu0  ;;  %vm2724_vm12 = vcmp.gt.f32.partialorder %v11879_v38, 0.0 }
 0x787   : > { %v2754_v24 = vmul.f32 0.1, %v2607_v41  ;;  %v11880_v60 = vpop.f32.mrb[58].mxu0  ;;  %11901 = vmatprep.mubr.msk.bf16.mxu0 %vm835_vm2, %v2489_v34  ;;  %vm2722_vm13 = vcmp.gt.f32.partialorder %v2607_v41, 0.0 }
 0x788   : > { %v2757_v45 = vmul.f32 0.1, %v11880_v60  ;;  %v2610_v29 = vpop.f32.mrb[59].mxu0  ;;  %vm2725_vm14 = vcmp.gt.f32.partialorder %v11880_v60, 0.0  ;;  %v2788_v12 = vsel %vm2724_vm12, %v11879_v38, %v2756_v35 }
 0x789   : > { %v2755_v5 = vmul.f32 0.1, %v2610_v29  ;;  %vm2723_vm15 = vcmp.gt.f32.partialorder %v2610_v29, 0.0  ;;  %v2786_v30 = vsel %vm2722_vm13, %v2607_v41, %v2754_v24 }
 0x78a   : > { %v2468_v44 = vpop.f32.mrb[64].mxu1  ;;  %v2789_v10 = vsel %vm2725_vm14, %v11880_v60, %v2757_v45  ;;  %vm3179_vm14 = vcmask 261120  }
 0x78b   : > { %v2470_v50 = vpop.f32.mrb[65].mxu1  ;;  %v2787_v52 = vsel %vm2723_vm15, %v2610_v29, %v2755_v5  ;;  %v2817_v59 = vpack.c.bf16 %v2789_v10, %v2788_v12  ;;  %v14538_v5 = vld [vmem:[%s17826_s8 + $0x4] ss:$8 sps:$4 sm:$0xff]  }
 0x78c   : > { %v2471_v28 = vpop.f32.mrb[66].mxu1  ;;  %v2816_v23 = vpack.c.bf16 %v2787_v52, %v2786_v30 }
 0x78d   : > { %v2490_v40 = vpack.c.bf16 %v2471_v28, %v2468_v44  ;;  %v2473_v9 = vpop.f32.mrb[67].mxu1 }
 0x78e   : > { %11925 = vmatprep.mubr.bf16.mxu1 %v2816_v23 }
 0x78f   : > { %11926 = vmatmul.mubr.bf16.gmra.mrb[72].mxu1 %v2817_v59  ;;  %11902 = vmatmul.mubr.msk.bf16.gmra.mrb[80].mxu0 %vm835_vm2, %v2490_v40 }
 0x790   : > { %10605 = vmatprep.mubr.msk.bf16.mxu0 %vm3179_vm14, %v14538_v5 }
 0x7a8   : > { %v11883_v0 = vpop.f32.mrb[60].mxu0 }
 0x7a9   : > { %v2760_v31 = vmul.f32 0.1, %v11883_v0  ;;  %v2623_v21 = vpop.f32.mrb[61].mxu0  ;;  %vm2728_vm0 = vcmp.gt.f32.partialorder %v11883_v0, 0.0 }
 0x7aa   : > { %v2758_v55 = vmul.f32 0.1, %v2623_v21  ;;  %v11884_v63 = vpop.f32.mrb[62].mxu0  ;;  %vm2726_vm3 = vcmp.gt.f32.partialorder %v2623_v21, 0.0 }
 0x7ab   : > { %v2761_v25 = vmul.f32 0.1, %v11884_v63  ;;  %v2626_v22 = vpop.f32.mrb[63].mxu0  ;;  %vm2729_vm4 = vcmp.gt.f32.partialorder %v11884_v63, 0.0  ;;  %v2792_v8 = vsel %vm2728_vm0, %v11883_v0, %v2760_v31 }
 0x7ac   : > { %v2759_v47 = vmul.f32 0.1, %v2626_v22  ;;  %vm2727_vm5 = vcmp.gt.f32.partialorder %v2626_v22, 0.0  ;;  %v2790_v1 = vsel %vm2726_vm3, %v2623_v21, %v2758_v55 }
 0x7ad   : > { %v2793_v48 = vsel %vm2729_vm4, %v11884_v63, %v2761_v25 }
 0x7ae   : > { %v2791_v58 = vsel %vm2727_vm5, %v2626_v22, %v2759_v47  ;;  %v2819_v2 = vpack.c.bf16 %v2793_v48, %v2792_v8 }
 0x7af   : > { %v2818_v15 = vpack.c.bf16 %v2791_v58, %v2790_v1 }
 0x7b1   : > { %11929 = vmatprep.mubr.bf16.mxu1 %v2818_v15 }
 0x7b2   : > { %11930 = vmatmul.mubr.bf16.gmra.mrb[76].mxu1 %v2819_v2 }
 0x7c1   : > { %v11887_v56 = vpop.f32.mrb[64].mxu0 }
 0x7c2   : > { %v2764_v37 = vmul.f32 0.1, %v11887_v56  ;;  %v2639_v19 = vpop.f32.mrb[65].mxu0  ;;  %vm2732_vm6 = vcmp.gt.f32.partialorder %v11887_v56, 0.0 }
 0x7c3   : > { %v2762_v57 = vmul.f32 0.1, %v2639_v19  ;;  %v11888_v32 = vpop.f32.mrb[66].mxu0  ;;  %vm2730_vm7 = vcmp.gt.f32.partialorder %v2639_v19, 0.0 }
 0x7c4   : > { %v2765_v13 = vmul.f32 0.1, %v11888_v32  ;;  %v2642_v54 = vpop.f32.mrb[67].mxu0  ;;  %vm2733_vm8 = vcmp.gt.f32.partialorder %v11888_v32, 0.0  ;;  %v2796_v6 = vsel %vm2732_vm6, %v11887_v56, %v2764_v37 }
 0x7c5   : > { %v2763_v62 = vmul.f32 0.1, %v2642_v54  ;;  %vm2731_vm9 = vcmp.gt.f32.partialorder %v2642_v54, 0.0  ;;  %v2794_v53 = vsel %vm2730_vm7, %v2639_v19, %v2762_v57 }
 0x7c6   : > { %v2797_v14 = vsel %vm2733_vm8, %v11888_v32, %v2765_v13  ;;  %v604_v32 = vld [vmem:[%s17865_s26 + $0x38] sm:$0xff] }
 0x7c7   : > { %v2795_v33 = vsel %vm2731_vm9, %v2642_v54, %v2763_v62  ;;  %v2821_v11 = vpack.c.bf16 %v2797_v14, %v2796_v6  ;;  %v14546_v13 = vrot.slane %v604_v32, %v13788_v61 }
 0x7c8   : > { %v2820_v18 = vpack.c.bf16 %v2795_v33, %v2794_v53 }
 0x7ca   : > { %11933 = vmatprep.mubr.bf16.mxu1 %v2820_v18 }
 0x7cb   : > { %11934 = vmatmul.mubr.bf16.gmra.mrb[80].mxu1 %v2821_v11 }
 0x7e4   : > { %v11891_v49 = vpop.f32.mrb[68].mxu0 }
 0x7e5   : > { %v2768_v27 = vmul.f32 0.1, %v11891_v49  ;;  %v2655_v4 = vpop.f32.mrb[69].mxu0  ;;  %vm2736_vm10 = vcmp.gt.f32.partialorder %v11891_v49, 0.0 }
 0x7e6   : > { %v2766_v7 = vmul.f32 0.1, %v2655_v4  ;;  %v11892_v38 = vpop.f32.mrb[70].mxu0  ;;  %vm2734_vm11 = vcmp.gt.f32.partialorder %v2655_v4, 0.0 }
 0x7e7   : > { %v2769_v34 = vmul.f32 0.1, %v11892_v38  ;;  %v2658_v43 = vpop.f32.mrb[71].mxu0  ;;  %vm2737_vm12 = vcmp.gt.f32.partialorder %v11892_v38, 0.0  ;;  %v2800_v35 = vsel %vm2736_vm10, %v11891_v49, %v2768_v27 }
 0x7e8   : > { %v2767_v41 = vmul.f32 0.1, %v2658_v43  ;;  %vm2735_vm13 = vcmp.gt.f32.partialorder %v2658_v43, 0.0  ;;  %v2798_v24 = vsel %vm2734_vm11, %v2655_v4, %v2766_v7 }
 0x7e9   : > { %v2801_v60 = vsel %vm2737_vm12, %v11892_v38, %v2769_v34 }
 0x7ea   : > { %v2799_v45 = vsel %vm2735_vm13, %v2658_v43, %v2767_v41  ;;  %v2823_v29 = vpack.c.bf16 %v2801_v60, %v2800_v35  ;;  %vm3980_vm13 = vcmask 523264  }
 0x7eb   : > { %v2822_v12 = vpack.c.bf16 %v2799_v45, %v2798_v24 }
 0x7ed   : > { %11937 = vmatprep.mubr.bf16.mxu1 %v2822_v12 }
 0x7ee   : > { %11938 = vmatmul.mubr.bf16.gmra.mrb[84].mxu1 %v2823_v29 }
 0x802   : > { %v11895_v30 = vpop.f32.mrb[72].mxu0 }
 0x803   : > { %v2772_v44 = vmul.f32 0.1, %v11895_v30  ;;  %v2671_v10 = vpop.f32.mrb[73].mxu0  ;;  %vm2740_vm15 = vcmp.gt.f32.partialorder %v11895_v30, 0.0 }
 0x804   : > { %v2770_v50 = vmul.f32 0.1, %v2671_v10  ;;  %v11896_v52 = vpop.f32.mrb[74].mxu0  ;;  %vm2738_vm0 = vcmp.gt.f32.partialorder %v2671_v10, 0.0 }
 0x805   : > { %v2773_v59 = vmul.f32 0.1, %v11896_v52  ;;  %v2674_v28 = vpop.f32.mrb[75].mxu0  ;;  %vm2741_vm3 = vcmp.gt.f32.partialorder %v11896_v52, 0.0  ;;  %v2804_v23 = vsel %vm2740_vm15, %v11895_v30, %v2772_v44 }
 0x806   : > { %v2771_v40 = vmul.f32 0.1, %v2674_v28  ;;  %vm2739_vm4 = vcmp.gt.f32.partialorder %v2674_v28, 0.0  ;;  %v2802_v9 = vsel %vm2738_vm0, %v2671_v10, %v2770_v50 }
 0x807   : > { %v2805_v0 = vsel %vm2741_vm3, %v11896_v52, %v2773_v59 }
 0x808   : > { %v2803_v31 = vsel %vm2739_vm4, %v2674_v28, %v2771_v40  ;;  %v2825_v21 = vpack.c.bf16 %v2805_v0, %v2804_v23 }
 0x809   : > { %v2824_v55 = vpack.c.bf16 %v2803_v31, %v2802_v9 }
 0x80b   : > { %11941 = vmatprep.mubr.bf16.mxu1 %v2824_v55 }
 0x80c   : > { %11942 = vmatmul.mubr.bf16.gmra.mrb[88].mxu1 %v2825_v21 }
 0x820   : > { %v11899_v63 = vpop.f32.mrb[76].mxu0 }
 0x821   : > { %v2776_v25 = vmul.f32 0.1, %v11899_v63  ;;  %v2687_v22 = vpop.f32.mrb[77].mxu0  ;;  %vm2744_vm5 = vcmp.gt.f32.partialorder %v11899_v63, 0.0 }
 0x822   : > { %v2774_v8 = vmul.f32 0.1, %v2687_v22  ;;  %v11900_v47 = vpop.f32.mrb[78].mxu0  ;;  %vm2742_vm6 = vcmp.gt.f32.partialorder %v2687_v22, 0.0 }
 0x823   : > { %v2777_v1 = vmul.f32 0.1, %v11900_v47  ;;  %v2690_v48 = vpop.f32.mrb[79].mxu0  ;;  %vm2745_vm7 = vcmp.gt.f32.partialorder %v11900_v47, 0.0  ;;  %v2808_v58 = vsel %vm2744_vm5, %v11899_v63, %v2776_v25 }
 0x824   : > { %v2775_v2 = vmul.f32 0.1, %v2690_v48  ;;  %vm2743_vm8 = vcmp.gt.f32.partialorder %v2690_v48, 0.0  ;;  %v2806_v15 = vsel %vm2742_vm6, %v2687_v22, %v2774_v8 }
 0x825   : > { %v2809_v56 = vsel %vm2745_vm7, %v11900_v47, %v2777_v1 }
 0x826   : > { %v2807_v37 = vsel %vm2743_vm8, %v2690_v48, %v2775_v2  ;;  %v2827_v19 = vpack.c.bf16 %v2809_v56, %v2808_v58 }
 0x827   : > { %v2826_v57 = vpack.c.bf16 %v2807_v37, %v2806_v15 }
 0x829   : > { %11945 = vmatprep.mubr.bf16.mxu1 %v2826_v57 }
 0x82a   : > { %11946 = vmatmul.mubr.bf16.gmra.mrb[92].mxu1 %v2827_v19 }
 0x849   : > { %v11923_v54 = vpop.f32.mrb[68].mxu1 }
 0x84a   : > { %v2912_v6 = vpop.f32.mrb[69].mxu1  ;;  %v8740_v62 = vmul.f32 %v11923_v54, %v14546_v13 }
 0x84b   : > { %v11924_v53 = vpop.f32.mrb[70].mxu1  ;;  %v8738_v14 = vmul.f32 %v14546_v13, %v2912_v6 }
 0x84c   : > { %v14550_v33 = vpack.c.bf16 %v11924_v53, %v11923_v54  ;;  %v2915_v11 = vpop.f32.mrb[71].mxu1  ;;  %v8776_v18 = vsel %vm835_vm2, %v8740_v62, 0.0  ;;  %v8741_v49 = vmul.f32 %v11924_v53, %v14546_v13 }
 0x84d   : > { %v14554_v27 = vpack.c.bf16 %v2915_v11, %v2912_v6  ;;  %8777 = vadd.xlane.f32.xlu0 %v8776_v18  ;;  %v8770_v61 = vsel %vm835_vm2, %v8738_v14, 0.0  ;;  %v8739_v7 = vmul.f32 %v14546_v13, %v2915_v11  ;;  %v14619_v14 = vld [vmem:[%s17826_s8] ss:$8 sps:$4 sm:$0xff]   ;;  %v14624_v11 = vld [vmem:[%s17826_s8 + $0x14] ss:$8 sps:$4 sm:$0xff]  }
 0x84e   : > { %8771 = vadd.xlane.f32.xlu1 %v8770_v61  ;;  %v8779_v4 = vsel %vm835_vm2, %v8741_v49, 0.0  ;;  %v3056_v34 = vmul.bf16 %v14550_v33, %v13792_v16  ;;  %v3072_v41 = vmul.bf16 %v14550_v33, %v13856_v26  ;;  %v3088_v60 = vmul.bf16 %v14550_v33, %v13904_v36  ;;  %v14639_v49 = vld [vmem:[%s17826_s8 + $0x10] ss:$8 sps:$4 sm:$0xff]  }
 0x84f   : > { %v3055_v38 = vmul.bf16 %v14554_v27, %v13792_v16  ;;  %v8773_v43 = vsel %vm835_vm2, %v8739_v7, 0.0  ;;  %v3071_v35 = vmul.bf16 %v14554_v27, %v13856_v26  ;;  %v3087_v24 = vmul.bf16 %v14554_v27, %v13904_v36  ;;  %v14658_v7 = vld [vmem:[%s17826_s8 + $0x20] ss:$8 sps:$4 sm:$0xff]  }
 0x850   : > { %v3103_v50 = vmul.bf16 %v14554_v27, %v13945_v46  ;;  %v3104_v37 = vmul.bf16 %v14550_v33, %v13945_v46  ;;  %v3119_v6 = vmul.bf16 %v14554_v27, %v13971_v17  ;;  %v3120_v53 = vmul.bf16 %v14550_v33, %v13971_v17  ;;  %v14644_v27 = vld [vmem:[%s17826_s8 + $0x24] ss:$8 sps:$4 sm:$0xff]  }
 0x851   : > { %8780 = vadd.xlane.f32.xlu0 %v8779_v4  ;;  %3193 = vmatpush1.bf16.msra.mxu0 %v3055_v38 }
 0x852   : > { %3194 = vmatprep.subr.bf16.mxu0 %v17849_v20 }
 0x855   : > { %8774 = vadd.xlane.f32.xlu0 %v8773_v43  ;;  %3195 = vmatpush1.bf16.msra.mxu0 %v3056_v34  ;;  %v14663_v34 = vld [vmem:[%s17826_s8 + $0x34] ss:$8 sps:$4 sm:$0xff]  }
 0x856   : > { %3196 = vmatprep.subr.bf16.mxu0 %v17849_v20 }
 0x859   : > { %3197 = vmatpush1.bf16.msra.mxu0 %v3071_v35 }
 0x85a   : > { %3198 = vmatprep.subr.bf16.mxu0 %v17849_v20 }
 0x85d   : > { %3199 = vmatpush1.bf16.msra.mxu0 %v3072_v41 }
 0x85e   : > { %3200 = vmatprep.subr.bf16.mxu0 %v17849_v20 }
 0x861   : > { %3201 = vmatpush1.bf16.msra.mxu0 %v3087_v24 }
 0x862   : > { %v11927_v45 = vpop.f32.mrb[72].mxu1  ;;  %v11903_v29 = vpop.f32.mrb[80].mxu0  ;;  %3202 = vmatprep.subr.bf16.mxu0 %v17849_v20 }
 0x863   : > { %v2780_v12 = vmul.f32 0.1, %v11903_v29  ;;  %v2928_v30 = vpop.f32.mrb[73].mxu1  ;;  %v2703_v44 = vpop.f32.mrb[81].mxu0  ;;  %v8744_v10 = vmul.f32 %v11927_v45, %v14546_v13  ;;  %vm2748_vm10 = vcmp.gt.f32.partialorder %v11903_v29, 0.0 }
 0x864   : > { %v2778_v52 = vmul.f32 0.1, %v2703_v44  ;;  %v11928_v59 = vpop.f32.mrb[74].mxu1  ;;  %v11904_v28 = vpop.f32.mrb[82].mxu0  ;;  %v8742_v23 = vmul.f32 %v14546_v13, %v2928_v30  ;;  %vm2746_vm9 = vcmp.gt.f32.partialorder %v2703_v44, 0.0 }
 0x865   : > { %v14581_v40 = vpack.c.bf16 %v11928_v59, %v11927_v45  ;;  %v2781_v9 = vmul.f32 0.1, %v11904_v28  ;;  %v2931_v0 = vpop.f32.mrb[75].mxu1  ;;  %3203 = vmatpush1.bf16.msra.mxu0 %v3088_v60  ;;  %v8788_v31 = vsel %vm835_vm2, %v8744_v10, 0.0  ;;  %v2706_v21 = vpop.f32.mrb[83].mxu0  ;;  %vm2749_vm11 = vcmp.gt.f32.partialorder %v11904_v28, 0.0 }
 0x866   : > { %v14584_v55 = vpack.c.bf16 %v2931_v0, %v2928_v30  ;;  %8789 = vadd.xlane.f32.xlu1 %v8788_v31  ;;  %v2779_v63 = vmul.f32 0.1, %v2706_v21  ;;  %3204 = vmatprep.subr.bf16.mxu0 %v17849_v20  ;;  %v8782_v25 = vsel %vm835_vm2, %v8742_v23, 0.0  ;;  %v8743_v22 = vmul.f32 %v14546_v13, %v2931_v0  ;;  %v14690_v23 = vld [vmem:[%s17826_s8 + $0x30] ss:$8 sps:$4 sm:$0xff]  }
 0x867   : > { %vm2747_vm12 = vcmp.gt.f32.partialorder %v2706_v21, 0.0  ;;  %v2810_v8 = vsel %vm2746_vm9, %v2703_v44, %v2778_v52  ;;  %v2812_v47 = vsel %vm2748_vm10, %v11903_v29, %v2780_v12  ;;  %v2813_v1 = vsel %vm2749_vm11, %v11904_v28, %v2781_v9 }
 0x868   : > { %v3057_v48 = vmul.bf16 %v14584_v55, %v13792_v16  ;;  %v8785_v58 = vsel %vm835_vm2, %v8743_v22, 0.0  ;;  %v2811_v2 = vsel %vm2747_vm12, %v2706_v21, %v2779_v63  ;;  %v2829_v15 = vpack.c.bf16 %v2813_v1, %v2812_v47 }
 0x869   : > { %3205 = vmatpush1.bf16.msra.mxu0 %v3103_v50  ;;  %8786 = vadd.xlane.f32.xlu0 %v8785_v58  ;;  %v2828_v56 = vpack.c.bf16 %v2811_v2, %v2810_v8  ;;  %v8745_v19 = vmul.f32 %v11928_v59, %v14546_v13  ;;  %v3058_v57 = vmul.bf16 %v14581_v40, %v13792_v16 }
 0x86a   : > { %8783 = vadd.xlane.f32.xlu1 %v8782_v25  ;;  %3258 = vmatpush1.bf16.msra.mxu1 %v3057_v48  ;;  %v3073_v54 = vmul.bf16 %v14584_v55, %v13856_v26  ;;  %v3074_v62 = vmul.bf16 %v14581_v40, %v13856_v26  ;;  %v3089_v18 = vmul.bf16 %v14584_v55, %v13904_v36 }
 0x86b   : > { %11949 = vmatprep.mubr.bf16.mxu1 %v2828_v56  ;;  %3206 = vmatprep.subr.bf16.mxu0 %v17849_v20  ;;  %v8791_v32 = vsel %vm835_vm2, %v8745_v19, 0.0  ;;  %v3090_v33 = vmul.bf16 %v14581_v40, %v13904_v36  ;;  %v3105_v61 = vmul.bf16 %v14584_v55, %v13945_v46  ;;  %v3106_v4 = vmul.bf16 %v14581_v40, %v13945_v46 }
 0x86c   : > { %11950 = vmatmul.mubr.bf16.gmra.mrb[96].mxu1 %v2829_v15  ;;  %3259 = vmatprep.subr.bf16.mxu1 %v17849_v20  ;;  %v3121_v35 = vmul.bf16 %v14584_v55, %v13971_v17  ;;  %v3122_v10 = vmul.bf16 %v14581_v40, %v13971_v17 }
 0x86d   : > { %3207 = vmatpush1.bf16.msra.mxu0 %v3104_v37  ;;  %10609 = vmatprep.mubr.msk.bf16.mxu1 %vm3179_vm14, %v14538_v5 }
 0x86e   : > { %8792 = vadd.xlane.f32.xlu1 %v8791_v32  ;;  %3260 = vmatpush1.bf16.msra.mxu1 %v3058_v57 }
 0x86f   : > { %3208 = vmatprep.subr.bf16.mxu0 %v17849_v20  ;;  %3261 = vmatprep.subr.bf16.mxu1 %v17849_v20 }
 0x871   : > { %3209 = vmatpush1.bf16.msra.mxu0 %v3119_v6 }
 0x872   : > { %3262 = vmatpush1.bf16.msra.mxu1 %v3073_v54  ;;  %3210 = vmatprep.subr.bf16.mxu0 %v17849_v20 }
 0x873   : > { %3263 = vmatprep.subr.bf16.mxu1 %v17849_v20 }
 0x875   : > { %3211 = vmatpush1.bf16.msra.mxu0 %v3120_v53 }
 0x876   : > { %3264 = vmatpush1.bf16.msra.mxu1 %v3074_v62  ;;  %3322 = vmatprep.subr.bf16.mxu0 %v17849_v20 }
 0x877   : > { %3265 = vmatprep.subr.bf16.mxu1 %v17849_v20 }
 0x878   : > { %3225 = vmatmul.mubr.bf16.vlgmr.msra.gmra.mrb[84].mxu0 %v14619_v14 }
 0x879   : > { %10606 = vmatprep.mubr.msk.bf16.mxu0 %vm3179_vm14, %v14624_v11 }
 0x87a   : > { %3266 = vmatpush1.bf16.msra.mxu1 %v3089_v18 }
 0x87b   : > { %3267 = vmatprep.subr.bf16.mxu1 %v17849_v20 }
 0x87e   : > { %3268 = vmatpush1.bf16.msra.mxu1 %v3090_v33 }
 0x87f   : > { %3269 = vmatprep.subr.bf16.mxu1 %v17849_v20 }
 0x880   : > { %3233 = vmatmul.mubr.bf16.gmra.mrb[88].mxu0 %v14639_v49 }
 0x881   : > { %10607 = vmatprep.mubr.msk.bf16.mxu0 %vm3179_vm14, %v14644_v27 }
 0x882   : > { %3270 = vmatpush1.bf16.msra.mxu1 %v3105_v61 }
 0x883   : > { %3271 = vmatprep.subr.bf16.mxu1 %v17849_v20 }
 0x885   : > { %v11931_v38 = vpop.f32.mrb[76].mxu1 }
 0x886   : > { %3272 = vmatpush1.bf16.msra.mxu1 %v3106_v4  ;;  %v2944_v43 = vpop.f32.mrb[77].mxu1  ;;  %v8748_v41 = vmul.f32 %v11931_v38, %v14546_v13 }
 0x887   : > { %v11932_v24 = vpop.f32.mrb[78].mxu1  ;;  %3273 = vmatprep.subr.bf16.mxu1 %v17849_v20  ;;  %v8746_v60 = vmul.f32 %v14546_v13, %v2944_v43 }
 0x888   : > { %v14670_v45 = vpack.c.bf16 %v11932_v24, %v11931_v38  ;;  %v2947_v29 = vpop.f32.mrb[79].mxu1  ;;  %3241 = vmatmul.mubr.bf16.gmra.mrb[92].mxu0 %v14658_v7  ;;  %v8800_v12 = vsel %vm835_vm2, %v8748_v41, 0.0  ;;  %v8749_v52 = vmul.f32 %v11932_v24, %v14546_v13 }
 0x889   : > { %v14674_v30 = vpack.c.bf16 %v2947_v29, %v2944_v43  ;;  %8801 = vadd.xlane.f32.xlu0 %v8800_v12  ;;  %10608 = vmatprep.mubr.msk.bf16.mxu0 %vm3179_vm14, %v14663_v34  ;;  %v8747_v44 = vmul.f32 %v14546_v13, %v2947_v29  ;;  %v8794_v50 = vsel %vm835_vm2, %v8746_v60, 0.0 }
 0x88a   : > { %3274 = vmatpush1.bf16.msra.mxu1 %v3121_v35  ;;  %v3060_v40 = vmul.bf16 %v14670_v45, %v13792_v16  ;;  %v8803_v9 = vsel %vm835_vm2, %v8749_v52, 0.0  ;;  %v3076_v31 = vmul.bf16 %v14670_v45, %v13856_v26  ;;  %v3092_v55 = vmul.bf16 %v14670_v45, %v13904_v36 }
 0x88b   : > { %3275 = vmatprep.subr.bf16.mxu1 %v17849_v20  ;;  %v3059_v59 = vmul.bf16 %v14674_v30, %v13792_v16  ;;  %v8797_v28 = vsel %vm835_vm2, %v8747_v44, 0.0  ;;  %v3075_v0 = vmul.bf16 %v14674_v30, %v13856_v26  ;;  %v3091_v21 = vmul.bf16 %v14674_v30, %v13904_v36 }
 0x88c   : > { %8798 = vadd.xlane.f32.xlu1 %v8797_v28  ;;  %v3107_v2 = vmul.bf16 %v14674_v30, %v13945_v46  ;;  %v3108_v54 = vmul.bf16 %v14670_v45, %v13945_v46  ;;  %v3123_v53 = vmul.bf16 %v14674_v30, %v13971_v17  ;;  %v3124_v33 = vmul.bf16 %v14670_v45, %v13971_v17 }
 0x88d   : > { %8795 = vadd.xlane.f32.xlu0 %v8794_v50  ;;  %3323 = vmatpush1.bf16.msra.mxu0 %v3059_v59 }
 0x88e   : > { %3276 = vmatpush1.bf16.msra.mxu1 %v3122_v10  ;;  %3324 = vmatprep.subr.bf16.mxu0 %v17849_v20 }
 0x88f   : > { %3387 = vmatprep.subr.bf16.mxu1 %v17849_v20 }
 0x890   : > { %3249 = vmatmul.mubr.bf16.gmra.mrb[96].mxu0 %v14690_v23 }
 0x891   : > { %8804 = vadd.xlane.f32.xlu0 %v8803_v9  ;;  %3325 = vmatpush1.bf16.msra.mxu0 %v3060_v40 }
 0x892   : > { %3290 = vmatmul.mubr.bf16.vlgmr.msra.gmra.mrb[100].mxu1 %v14619_v14  ;;  %3326 = vmatprep.subr.bf16.mxu0 %v17849_v20 }
 0x893   : > { %10610 = vmatprep.mubr.msk.bf16.mxu1 %vm3179_vm14, %v14624_v11  ;;  %10613 = vmatprep.mubr.msk.bf16.mxu0 %vm3179_vm14, %v14538_v5 }
 0x895   : > { %3327 = vmatpush1.bf16.msra.mxu0 %v3075_v0 }
 0x896   : > { %3328 = vmatprep.subr.bf16.mxu0 %v17849_v20 }
 0x899   : > { %3329 = vmatpush1.bf16.msra.mxu0 %v3076_v31 }
 0x89a   : > { %3298 = vmatmul.mubr.bf16.gmra.mrb[104].mxu1 %v14639_v49  ;;  %3330 = vmatprep.subr.bf16.mxu0 %v17849_v20 }
 0x89b   : > { %10611 = vmatprep.mubr.msk.bf16.mxu1 %vm3179_vm14, %v14644_v27 }
 0x89d   : > { %3331 = vmatpush1.bf16.msra.mxu0 %v3091_v21 }
 0x89e   : > { %v11935_v63 = vpop.f32.mrb[80].mxu1  ;;  %3332 = vmatprep.subr.bf16.mxu0 %v17849_v20 }
 0x89f   : > { %v2960_v25 = vpop.f32.mrb[81].mxu1  ;;  %v8752_v22 = vmul.f32 %v11935_v63, %v14546_v13 }
 0x8a0   : > { %v11936_v8 = vpop.f32.mrb[82].mxu1  ;;  %v8750_v47 = vmul.f32 %v14546_v13, %v2960_v25 }
 0x8a1   : > { %v14720_v1 = vpack.c.bf16 %v11936_v8, %v11935_v63  ;;  %3333 = vmatpush1.bf16.msra.mxu0 %v3092_v55  ;;  %v8812_v48 = vsel %vm835_vm2, %v8752_v22, 0.0  ;;  %v2963_v58 = vpop.f32.mrb[83].mxu1  ;;  %v8753_v19 = vmul.f32 %v11936_v8, %v14546_v13 }
 0x8a2   : > { %8813 = vadd.xlane.f32.xlu1 %v8812_v48  ;;  %v14725_v15 = vpack.c.bf16 %v2963_v58, %v2960_v25  ;;  %3306 = vmatmul.mubr.bf16.gmra.mrb[108].mxu1 %v14658_v7  ;;  %v8751_v56 = vmul.f32 %v14546_v13, %v2963_v58  ;;  %v8806_v37 = vsel %vm835_vm2, %v8750_v47, 0.0 }
 0x8a3   : > { %3334 = vmatprep.subr.bf16.mxu0 %v17849_v20  ;;  %10612 = vmatprep.mubr.msk.bf16.mxu1 %vm3179_vm14, %v14663_v34  ;;  %v3062_v6 = vmul.bf16 %v14720_v1, %v13792_v16  ;;  %v8815_v62 = vsel %vm835_vm2, %v8753_v19, 0.0  ;;  %v3078_v61 = vmul.bf16 %v14720_v1, %v13856_v26  ;;  %v3094_v38 = vmul.bf16 %v14720_v1, %v13904_v36 }
 0x8a4   : > { %v3061_v57 = vmul.bf16 %v14725_v15, %v13792_v16  ;;  %v8809_v32 = vsel %vm835_vm2, %v8751_v56, 0.0  ;;  %v3077_v18 = vmul.bf16 %v14725_v15, %v13856_v26  ;;  %v3093_v4 = vmul.bf16 %v14725_v15, %v13904_v36 }
 0x8a5   : > { %3335 = vmatpush1.bf16.msra.mxu0 %v3107_v2  ;;  %8810 = vadd.xlane.f32.xlu0 %v8809_v32  ;;  %v3109_v43 = vmul.bf16 %v14725_v15, %v13945_v46  ;;  %v3110_v35 = vmul.bf16 %v14720_v1, %v13945_v46  ;;  %v3125_v45 = vmul.bf16 %v14725_v15, %v13971_v17 }
 0x8a6   : > { %8807 = vadd.xlane.f32.xlu1 %v8806_v37  ;;  %3388 = vmatpush1.bf16.msra.mxu1 %v3061_v57  ;;  %v3126_v28 = vmul.bf16 %v14720_v1, %v13971_v17 }
 0x8a7   : > { %3336 = vmatprep.subr.bf16.mxu0 %v17849_v20  ;;  %3389 = vmatprep.subr.bf16.mxu1 %v17849_v20 }
 0x8a9   : > { %3337 = vmatpush1.bf16.msra.mxu0 %v3108_v54 }
 0x8aa   : > { %8816 = vadd.xlane.f32.xlu1 %v8815_v62  ;;  %3390 = vmatpush1.bf16.msra.mxu1 %v3062_v6 }
 0x8ab   : > { %3314 = vmatmul.mubr.bf16.gmra.mrb[112].mxu1 %v14690_v23  ;;  %3338 = vmatprep.subr.bf16.mxu0 %v17849_v20 }
 0x8ac   : > { %3391 = vmatprep.subr.bf16.mxu1 %v17849_v20  ;;  %10617 = vmatprep.mubr.msk.bf16.mxu1 %vm3179_vm14, %v14538_v5 }
 0x8ad   : > { %3339 = vmatpush1.bf16.msra.mxu0 %v3123_v53 }
 0x8ae   : > { %3392 = vmatpush1.bf16.msra.mxu1 %v3077_v18  ;;  %3340 = vmatprep.subr.bf16.mxu0 %v17849_v20 }
 0x8af   : > { %3393 = vmatprep.subr.bf16.mxu1 %v17849_v20 }
 0x8b1   : > { %3341 = vmatpush1.bf16.msra.mxu0 %v3124_v33 }
 0x8b2   : > { %3394 = vmatpush1.bf16.msra.mxu1 %v3078_v61  ;;  %3452 = vmatprep.subr.bf16.mxu0 %v17849_v20 }
 0x8b3   : > { %3395 = vmatprep.subr.bf16.mxu1 %v17849_v20 }
 0x8b4   : > { %3355 = vmatmul.mubr.bf16.vlgmr.msra.gmra.mrb[100].mxu0 %v14619_v14 }
 0x8b5   : > { %10614 = vmatprep.mubr.msk.bf16.mxu0 %vm3179_vm14, %v14624_v11 }
 0x8b6   : > { %3396 = vmatpush1.bf16.msra.mxu1 %v3093_v4 }
 0x8b7   : > { %3397 = vmatprep.subr.bf16.mxu1 %v17849_v20 }
 0x8ba   : > { %3398 = vmatpush1.bf16.msra.mxu1 %v3094_v38 }
 0x8bb   : > { %3399 = vmatprep.subr.bf16.mxu1 %v17849_v20 }
 0x8bc   : > { %3363 = vmatmul.mubr.bf16.gmra.mrb[104].mxu0 %v14639_v49 }
 0x8bd   : > { %10615 = vmatprep.mubr.msk.bf16.mxu0 %vm3179_vm14, %v14644_v27 }
 0x8be   : > { %3400 = vmatpush1.bf16.msra.mxu1 %v3109_v43 }
 0x8bf   : > { %3401 = vmatprep.subr.bf16.mxu1 %v17849_v20 }
 0x8c1   : > { %v11939_v41 = vpop.f32.mrb[84].mxu1 }
 0x8c2   : > { %v2976_v24 = vpop.f32.mrb[85].mxu1  ;;  %3402 = vmatpush1.bf16.msra.mxu1 %v3110_v35  ;;  %v8756_v60 = vmul.f32 %v11939_v41, %v14546_v13 }
 0x8c3   : > { %v11940_v29 = vpop.f32.mrb[86].mxu1  ;;  %3403 = vmatprep.subr.bf16.mxu1 %v17849_v20  ;;  %v8754_v12 = vmul.f32 %v14546_v13, %v2976_v24 }
 0x8c4   : > { %v14783_v30 = vpack.c.bf16 %v11940_v29, %v11939_v41  ;;  %v2979_v44 = vpop.f32.mrb[87].mxu1  ;;  %3371 = vmatmul.mubr.bf16.gmra.mrb[108].mxu0 %v14658_v7  ;;  %v8824_v10 = vsel %vm835_vm2, %v8756_v60, 0.0  ;;  %v8757_v40 = vmul.f32 %v11940_v29, %v14546_v13 }
 0x8c5   : > { %v14787_v50 = vpack.c.bf16 %v2979_v44, %v2976_v24  ;;  %8825 = vadd.xlane.f32.xlu0 %v8824_v10  ;;  %10616 = vmatprep.mubr.msk.bf16.mxu0 %vm3179_vm14, %v14663_v34  ;;  %v8755_v52 = vmul.f32 %v14546_v13, %v2979_v44  ;;  %v8818_v59 = vsel %vm835_vm2, %v8754_v12, 0.0 }
 0x8c6   : > { %3404 = vmatpush1.bf16.msra.mxu1 %v3125_v45  ;;  %v3064_v31 = vmul.bf16 %v14783_v30, %v13792_v16  ;;  %v8827_v21 = vsel %vm835_vm2, %v8757_v40, 0.0  ;;  %v3080_v63 = vmul.bf16 %v14783_v30, %v13856_v26  ;;  %v3096_v22 = vmul.bf16 %v14783_v30, %v13904_v36 }
 0x8c7   : > { %3405 = vmatprep.subr.bf16.mxu1 %v17849_v20  ;;  %v3063_v9 = vmul.bf16 %v14787_v50, %v13792_v16  ;;  %v8821_v0 = vsel %vm835_vm2, %v8755_v52, 0.0  ;;  %v3079_v55 = vmul.bf16 %v14787_v50, %v13856_v26  ;;  %v3095_v25 = vmul.bf16 %v14787_v50, %v13904_v36 }
 0x8c8   : > { %8822 = vadd.xlane.f32.xlu1 %v8821_v0  ;;  %v3111_v8 = vmul.bf16 %v14787_v50, %v13945_v46  ;;  %v3112_v2 = vmul.bf16 %v14783_v30, %v13945_v46  ;;  %v3127_v18 = vmul.bf16 %v14787_v50, %v13971_v17  ;;  %v3128_v4 = vmul.bf16 %v14783_v30, %v13971_v17 }
 0x8c9   : > { %8819 = vadd.xlane.f32.xlu0 %v8818_v59  ;;  %3453 = vmatpush1.bf16.msra.mxu0 %v3063_v9 }
 0x8ca   : > { %3406 = vmatpush1.bf16.msra.mxu1 %v3126_v28  ;;  %3454 = vmatprep.subr.bf16.mxu0 %v17849_v20 }
 0x8cb   : > { %3517 = vmatprep.subr.bf16.mxu1 %v17849_v20 }
 0x8cc   : > { %3379 = vmatmul.mubr.bf16.gmra.mrb[112].mxu0 %v14690_v23 }
 0x8cd   : > { %8828 = vadd.xlane.f32.xlu0 %v8827_v21  ;;  %3455 = vmatpush1.bf16.msra.mxu0 %v3064_v31 }
 0x8ce   : > { %3456 = vmatprep.subr.bf16.mxu0 %v17849_v20  ;;  %3420 = vmatmul.mubr.bf16.vlgmr.msra.gmra.mrb[116].mxu1 %v14619_v14 }
 0x8cf   : > { %10618 = vmatprep.mubr.msk.bf16.mxu1 %vm3179_vm14, %v14624_v11  ;;  %10621 = vmatprep.mubr.msk.bf16.mxu0 %vm3179_vm14, %v14538_v5 }
 0x8d1   : > { %3457 = vmatpush1.bf16.msra.mxu0 %v3079_v55 }
 0x8d2   : > { %3458 = vmatprep.subr.bf16.mxu0 %v17849_v20 }
 0x8d5   : > { %3459 = vmatpush1.bf16.msra.mxu0 %v3080_v63 }
 0x8d6   : > { %3460 = vmatprep.subr.bf16.mxu0 %v17849_v20  ;;  %3428 = vmatmul.mubr.bf16.gmra.mrb[120].mxu1 %v14639_v49 }
 0x8d7   : > { %10619 = vmatprep.mubr.msk.bf16.mxu1 %vm3179_vm14, %v14644_v27 }
 0x8d9   : > { %3461 = vmatpush1.bf16.msra.mxu0 %v3095_v25 }
 0x8da   : > { %3462 = vmatprep.subr.bf16.mxu0 %v17849_v20 }
 0x8dd   : > { %3463 = vmatpush1.bf16.msra.mxu0 %v3096_v22 }
 0x8de   : > { %3464 = vmatprep.subr.bf16.mxu0 %v17849_v20  ;;  %3436 = vmatmul.mubr.bf16.gmra.mrb[124].mxu1 %v14658_v7 }
 0x8df   : > { %v11943_v47 = vpop.f32.mrb[88].mxu1  ;;  %10620 = vmatprep.mubr.msk.bf16.mxu1 %vm3179_vm14, %v14663_v34 }
 0x8e0   : > { %v2992_v1 = vpop.f32.mrb[89].mxu1  ;;  %v8760_v48 = vmul.f32 %v11943_v47, %v14546_v13 }
 0x8e1   : > { %v11944_v58 = vpop.f32.mrb[90].mxu1  ;;  %3465 = vmatpush1.bf16.msra.mxu0 %v3111_v8  ;;  %v8758_v15 = vmul.f32 %v14546_v13, %v2992_v1 }
 0x8e2   : > { %v14836_v56 = vpack.c.bf16 %v11944_v58, %v11943_v47  ;;  %v2995_v37 = vpop.f32.mrb[91].mxu1  ;;  %3466 = vmatprep.subr.bf16.mxu0 %v17849_v20  ;;  %v8836_v19 = vsel %vm835_vm2, %v8760_v48, 0.0  ;;  %v8761_v57 = vmul.f32 %v11944_v58, %v14546_v13 }
 0x8e3   : > { %v14841_v32 = vpack.c.bf16 %v2995_v37, %v2992_v1  ;;  %8837 = vadd.xlane.f32.xlu1 %v8836_v19  ;;  %v8759_v54 = vmul.f32 %v14546_v13, %v2995_v37  ;;  %v8830_v62 = vsel %vm835_vm2, %v8758_v15, 0.0 }
 0x8e4   : > { %v8839_v6 = vsel %vm835_vm2, %v8761_v57, 0.0  ;;  %v3066_v61 = vmul.bf16 %v14836_v56, %v13792_v16  ;;  %v3082_v43 = vmul.bf16 %v14836_v56, %v13856_v26  ;;  %v3098_v41 = vmul.bf16 %v14836_v56, %v13904_v36  ;;  %v14951_v57 = vld [vmem:[%s17827_s9 + $0x4] ss:$12 sps:$4 sm:$0xff]  }
 0x8e5   : > { %3467 = vmatpush1.bf16.msra.mxu0 %v3112_v2  ;;  %8840 = vadd.xlane.f32.xlu0 %v8839_v6  ;;  %v3065_v53 = vmul.bf16 %v14841_v32, %v13792_v16  ;;  %v8833_v33 = vsel %vm835_vm2, %v8759_v54, 0.0  ;;  %v3081_v38 = vmul.bf16 %v14841_v32, %v13856_v26  ;;  %v3097_v35 = vmul.bf16 %v14841_v32, %v13904_v36 }
 0x8e6   : > { %3468 = vmatprep.subr.bf16.mxu0 %v17849_v20  ;;  %3444 = vmatmul.mubr.bf16.gmra.mrb[128].mxu1 %v14690_v23  ;;  %v3113_v24 = vmul.bf16 %v14841_v32, %v13945_v46  ;;  %v3114_v30 = vmul.bf16 %v14836_v56, %v13945_v46  ;;  %v3129_v21 = vmul.bf16 %v14841_v32, %v13971_v17 }
 0x8e7   : > { %3518 = vmatpush1.bf16.msra.mxu1 %v3065_v53  ;;  %8831 = vadd.xlane.f32.xlu1 %v8830_v62  ;;  %v3130_v25 = vmul.bf16 %v14836_v56, %v13971_v17 }
 0x8e8   : > { %3519 = vmatprep.subr.bf16.mxu1 %v17849_v20  ;;  %10625 = vmatprep.mubr.msk.bf16.mxu1 %vm3179_vm14, %v14538_v5 }
 0x8e9   : > { %3469 = vmatpush1.bf16.msra.mxu0 %v3127_v18  ;;  %8834 = vadd.xlane.f32.xlu0 %v8833_v33 }
 0x8ea   : > { %3470 = vmatprep.subr.bf16.mxu0 %v17849_v20 }
 0x8eb   : > { %3520 = vmatpush1.bf16.msra.mxu1 %v3066_v61 }
 0x8ec   : > { %3521 = vmatprep.subr.bf16.mxu1 %v17849_v20 }
 0x8ed   : > { %3471 = vmatpush1.bf16.msra.mxu0 %v3128_v4 }
 0x8ee   : > { %3582 = vmatprep.subr.bf16.mxu0 %v17849_v20 }
 0x8ef   : > { %3522 = vmatpush1.bf16.msra.mxu1 %v3081_v38 }
 0x8f0   : > { %3523 = vmatprep.subr.bf16.mxu1 %v17849_v20  ;;  %3485 = vmatmul.mubr.bf16.vlgmr.msra.gmra.mrb[116].mxu0 %v14619_v14 }
 0x8f1   : > { %10622 = vmatprep.mubr.msk.bf16.mxu0 %vm3179_vm14, %v14624_v11 }
 0x8f3   : > { %3524 = vmatpush1.bf16.msra.mxu1 %v3082_v43 }
 0x8f4   : > { %3525 = vmatprep.subr.bf16.mxu1 %v17849_v20 }
 0x8f7   : > { %3526 = vmatpush1.bf16.msra.mxu1 %v3097_v35 }
 0x8f8   : > { %3527 = vmatprep.subr.bf16.mxu1 %v17849_v20  ;;  %3493 = vmatmul.mubr.bf16.gmra.mrb[120].mxu0 %v14639_v49 }
 0x8f9   : > { %10623 = vmatprep.mubr.msk.bf16.mxu0 %vm3179_vm14, %v14644_v27 }
 0x8fb   : > { %3528 = vmatpush1.bf16.msra.mxu1 %v3098_v41 }
 0x8fc   : > { %3529 = vmatprep.subr.bf16.mxu1 %v17849_v20 }
 0x8fd   : > { %v11947_v60 = vpop.f32.mrb[92].mxu1 }
 0x8fe   : > { %v3008_v45 = vpop.f32.mrb[93].mxu1  ;;  %v8764_v29 = vmul.f32 %v11947_v60, %v14546_v13 }
 0x8ff   : > { %v11948_v12 = vpop.f32.mrb[94].mxu1  ;;  %3530 = vmatpush1.bf16.msra.mxu1 %v3113_v24  ;;  %v8762_v44 = vmul.f32 %v14546_v13, %v3008_v45 }
 0x900   : > { %v3052_v10 = vpack.c.bf16 %v11948_v12, %v11947_v60  ;;  %v3011_v50 = vpop.f32.mrb[95].mxu1  ;;  %v8848_v52 = vsel %vm835_vm2, %v8764_v29, 0.0  ;;  %3531 = vmatprep.subr.bf16.mxu1 %v17849_v20  ;;  %v8765_v59 = vmul.f32 %v11948_v12, %v14546_v13  ;;  %3501 = vmatmul.mubr.bf16.gmra.mrb[124].mxu0 %v14658_v7 }
 0x901   : > { %v3051_v28 = vpack.c.bf16 %v3011_v50, %v3008_v45  ;;  %8849 = vadd.xlane.f32.xlu1 %v8848_v52  ;;  %v8842_v40 = vsel %vm835_vm2, %v8762_v44, 0.0  ;;  %10624 = vmatprep.mubr.msk.bf16.mxu0 %vm3179_vm14, %v14663_v34  ;;  %v8763_v0 = vmul.f32 %v14546_v13, %v3011_v50 }
 0x902   : > { %v8851_v9 = vsel %vm835_vm2, %v8765_v59, 0.0  ;;  %8843 = vadd.xlane.f32.xlu0 %v8842_v40  ;;  %v3068_v55 = vmul.bf16 %v3052_v10, %v13792_v16  ;;  %v3084_v8 = vmul.bf16 %v3052_v10, %v13856_v26  ;;  %v3100_v1 = vmul.bf16 %v3052_v10, %v13904_v36 }
 0x903   : > { %3532 = vmatpush1.bf16.msra.mxu1 %v3114_v30  ;;  %v3067_v31 = vmul.bf16 %v3051_v28, %v13792_v16  ;;  %v8845_v63 = vsel %vm835_vm2, %v8763_v0, 0.0  ;;  %v3083_v22 = vmul.bf16 %v3051_v28, %v13856_v26  ;;  %v3099_v47 = vmul.bf16 %v3051_v28, %v13904_v36 }
 0x904   : > { %3533 = vmatprep.subr.bf16.mxu1 %v17849_v20  ;;  %v3115_v48 = vmul.bf16 %v3051_v28, %v13945_v46  ;;  %v3116_v58 = vmul.bf16 %v3052_v10, %v13945_v46  ;;  %v3131_v2 = vmul.bf16 %v3051_v28, %v13971_v17  ;;  %v3132_v15 = vmul.bf16 %v3052_v10, %v13971_v17 }
 0x905   : > { %8852 = vadd.xlane.f32.xlu1 %v8851_v9  ;;  %3583 = vmatpush1.bf16.msra.mxu0 %v3067_v31 }
 0x906   : > { %3584 = vmatprep.subr.bf16.mxu0 %v17849_v20 }
 0x907   : > { %3534 = vmatpush1.bf16.msra.mxu1 %v3129_v21 }
 0x908   : > { %3535 = vmatprep.subr.bf16.mxu1 %v17849_v20  ;;  %3509 = vmatmul.mubr.bf16.gmra.mrb[128].mxu0 %v14690_v23 }
 0x909   : > { %8846 = vadd.xlane.f32.xlu1 %v8845_v63  ;;  %3585 = vmatpush1.bf16.msra.mxu0 %v3068_v55 }
 0x90a   : > { %3586 = vmatprep.subr.bf16.mxu0 %v17849_v20  ;;  %10629 = vmatprep.mubr.msk.bf16.mxu0 %vm3179_vm14, %v14538_v5 }
 0x90b   : > { %3536 = vmatpush1.bf16.msra.mxu1 %v3130_v25 }
 0x90c   : > { %3647 = vmatprep.subr.bf16.mxu1 %v17849_v20 }
 0x90d   : > { %3587 = vmatpush1.bf16.msra.mxu0 %v3083_v22 }
 0x90e   : > { %3550 = vmatmul.mubr.bf16.vlgmr.msra.gmra.mrb[132].mxu1 %v14619_v14  ;;  %3588 = vmatprep.subr.bf16.mxu0 %v17849_v20 }
 0x90f   : > { %10626 = vmatprep.mubr.msk.bf16.mxu1 %vm3179_vm14, %v14624_v11 }
 0x911   : > { %3589 = vmatpush1.bf16.msra.mxu0 %v3084_v8 }
 0x912   : > { %3590 = vmatprep.subr.bf16.mxu0 %v17849_v20 }
 0x915   : > { %3591 = vmatpush1.bf16.msra.mxu0 %v3099_v47 }
 0x916   : > { %3558 = vmatmul.mubr.bf16.gmra.mrb[136].mxu1 %v14639_v49  ;;  %3592 = vmatprep.subr.bf16.mxu0 %v17849_v20 }
 0x917   : > { %10627 = vmatprep.mubr.msk.bf16.mxu1 %vm3179_vm14, %v14644_v27 }
 0x919   : > { %3593 = vmatpush1.bf16.msra.mxu0 %v3100_v1 }
 0x91a   : > { %3594 = vmatprep.subr.bf16.mxu0 %v17849_v20 }
 0x91d   : > { %3595 = vmatpush1.bf16.msra.mxu0 %v3115_v48 }
 0x91e   : > { %3566 = vmatmul.mubr.bf16.gmra.mrb[140].mxu1 %v14658_v7  ;;  %3596 = vmatprep.subr.bf16.mxu0 %v17849_v20 }
 0x91f   : > { %10628 = vmatprep.mubr.msk.bf16.mxu1 %vm3179_vm14, %v14663_v34 }
 0x921   : > { %3597 = vmatpush1.bf16.msra.mxu0 %v3116_v58 }
 0x922   : > { %3598 = vmatprep.subr.bf16.mxu0 %v17849_v20 }
 0x925   : > { %3599 = vmatpush1.bf16.msra.mxu0 %v3131_v2 }
 0x926   : > { %3574 = vmatmul.mubr.bf16.gmra.mrb[144].mxu1 %v14690_v23  ;;  %3600 = vmatprep.subr.bf16.mxu0 %v17849_v20 }
 0x927   : > { %10633 = vmatprep.mubr.msk.bf16.mxu1 %vm3179_vm14, %v14538_v5 }
 0x929   : > { %3601 = vmatpush1.bf16.msra.mxu0 %v3132_v15 }
 0x92c   : > { %3615 = vmatmul.mubr.bf16.vlgmr.msra.gmra.mrb[132].mxu0 %v14619_v14 }
 0x92d   : > { %10630 = vmatprep.mubr.msk.bf16.mxu0 %vm3179_vm14, %v14624_v11 }
 0x934   : > { %3623 = vmatmul.mubr.bf16.gmra.mrb[136].mxu0 %v14639_v49 }
 0x935   : > { %10631 = vmatprep.mubr.msk.bf16.mxu0 %vm3179_vm14, %v14644_v27 }
 0x93c   : > { %3631 = vmatmul.mubr.bf16.gmra.mrb[140].mxu0 %v14658_v7 }
 0x93d   : > { %10632 = vmatprep.mubr.msk.bf16.mxu0 %vm3179_vm14, %v14663_v34 }
 0x93f   : > { %v11951_v56 = vpop.f32.mrb[96].mxu1 }
 0x940   : > { %v3024_v37 = vpop.f32.mrb[97].mxu1  ;;  %v8768_v5 = vmul.f32 %v11951_v56, %v14546_v13 }
 0x941   : > { %v11952_v19 = vpop.f32.mrb[98].mxu1  ;;  %v8766_v53 = vmul.f32 %v14546_v13, %v3024_v37 }
 0x942   : > { %v14953_v32 = vpack.c.bf16 %v11952_v19, %v11951_v56  ;;  %v3027_v54 = vpop.f32.mrb[99].mxu1  ;;  %v8860_v6 = vsel %vm835_vm2, %v8768_v5, 0.0  ;;  %v8769_v62 = vmul.f32 %v11952_v19, %v14546_v13 }
 0x943   : > { %v14958_v18 = vpack.c.bf16 %v3027_v54, %v3024_v37  ;;  %8861 = vadd.xlane.f32.xlu0 %v8860_v6  ;;  %v8767_v61 = vmul.f32 %v14546_v13, %v3027_v54  ;;  %v8854_v38 = vsel %vm835_vm2, %v8766_v53, 0.0 }
 0x944   : > { %v8863_v33 = vsel %vm835_vm2, %v8769_v62, 0.0  ;;  %3639 = vmatmul.mubr.bf16.gmra.mrb[144].mxu0 %v14690_v23  ;;  %v3070_v35 = vmul.bf16 %v14953_v32, %v13792_v16  ;;  %v3086_v10 = vmul.bf16 %v14953_v32, %v13856_v26  ;;  %v3102_v21 = vmul.bf16 %v14953_v32, %v13904_v36 }
 0x945   : > { %8864 = vadd.xlane.f32.xlu1 %v8863_v33  ;;  %v3069_v4 = vmul.bf16 %v14958_v18, %v13792_v16  ;;  %4025 = vmatprep.mubr.bf16.mxu0 %v14951_v57  ;;  %v8857_v43 = vsel %vm835_vm2, %v8767_v61, 0.0  ;;  %v3085_v45 = vmul.bf16 %v14958_v18, %v13856_v26  ;;  %v3101_v28 = vmul.bf16 %v14958_v18, %v13904_v36 }
 0x946   : > { %v3117_v22 = vmul.bf16 %v14958_v18, %v13945_v46  ;;  %v3118_v58 = vmul.bf16 %v14953_v32, %v13945_v46  ;;  %v3133_v37 = vmul.bf16 %v14958_v18, %v13971_v17 }
 0x947   : > { %8855 = vadd.xlane.f32.xlu0 %v8854_v38  ;;  %3648 = vmatpush1.bf16.msra.mxu1 %v3069_v4  ;;  %v3134_v38 = vmul.bf16 %v14953_v32, %v13971_v17 }
 0x948   : > { %3649 = vmatprep.subr.bf16.mxu1 %v17849_v20 }
 0x949   : > { %8858 = vadd.xlane.f32.xlu1 %v8857_v43 }
 0x94b   : > { %v3226_v41 = vpop.f32.mrb[84].mxu0  ;;  %3650 = vmatpush1.bf16.msra.mxu1 %v3070_v35 }
 0x94c   : > { %v3228_v24 = vpop.f32.mrb[85].mxu0  ;;  %3651 = vmatprep.subr.bf16.mxu1 %v17849_v20 }
 0x94d   : > { %v3229_v60 = vpop.f32.mrb[86].mxu0 }
 0x94e   : > { %v14974_v29 = vpack.c.bf16 %v3229_v60, %v3226_v41  ;;  %v3231_v12 = vpop.f32.mrb[87].mxu0 }
 0x94f   : > { %3652 = vmatpush1.bf16.msra.mxu1 %v3085_v45 }
 0x950   : > { %3653 = vmatprep.subr.bf16.mxu1 %v17849_v20  ;;  %v3808_v30 = vmul.bf16 %v14974_v29, %v13904_v36  ;;  %v3744_v44 = vmul.bf16 %v14974_v29, %v13792_v16  ;;  %v3840_v61 = vmul.bf16 %v14974_v29, %v13945_v46  ;;  %v3776_v35 = vmul.bf16 %v14974_v29, %v13856_v26 }
 0x952   : > { %10900 = vmatprep.subr.bf16.mxu0 %v3808_v30 }
 0x953   : > { %v3234_v50 = vpop.f32.mrb[88].mxu0  ;;  %3654 = vmatpush1.bf16.msra.mxu1 %v3086_v10  ;;  %10901 = vmatpush3.bf16.msra.mxu0 %v3744_v44 }
 0x954   : > { %v3236_v52 = vpop.f32.mrb[89].mxu0  ;;  %3655 = vmatprep.subr.bf16.mxu1 %v17849_v20 }
 0x955   : > { %v3237_v59 = vpop.f32.mrb[90].mxu0 }
 0x956   : > { %v14986_v40 = vpack.c.bf16 %v3237_v59, %v3234_v50  ;;  %v3239_v9 = vpop.f32.mrb[91].mxu0 }
 0x957   : > { %3656 = vmatpush1.bf16.msra.mxu1 %v3101_v28 }
 0x958   : > { %3657 = vmatprep.subr.bf16.mxu1 %v17849_v20  ;;  %v3809_v0 = vmul.bf16 %v14986_v40, %v13904_v36  ;;  %v3745_v31 = vmul.bf16 %v14986_v40, %v13792_v16  ;;  %v3841_v41 = vmul.bf16 %v14986_v40, %v13945_v46  ;;  %v3777_v45 = vmul.bf16 %v14986_v40, %v13856_v26 }
 0x95a   : > { %10902 = vmatprep.subr.bf16.mxu0 %v3809_v0 }
 0x95b   : > { %v3242_v55 = vpop.f32.mrb[92].mxu0  ;;  %3658 = vmatpush1.bf16.msra.mxu1 %v3102_v21  ;;  %10903 = vmatpush3.bf16.msra.mxu0 %v3745_v31 }
 0x95c   : > { %v3244_v63 = vpop.f32.mrb[93].mxu0  ;;  %3659 = vmatprep.subr.bf16.mxu1 %v17849_v20 }
 0x95d   : > { %v3245_v25 = vpop.f32.mrb[94].mxu0 }
 0x95e   : > { %v14998_v8 = vpack.c.bf16 %v3245_v25, %v3242_v55  ;;  %v3247_v47 = vpop.f32.mrb[95].mxu0  ;;  %v3872_v55 = vmul.bf16 %v14974_v29, %v13971_v17  ;;  %v15071_v29 = vld [vmem:[%s17827_s9 + $0x1c] ss:$12 sps:$4 sm:$0xff]  }
 0x95f   : > { %3660 = vmatpush1.bf16.msra.mxu1 %v3117_v22 }
 0x960   : > { %3661 = vmatprep.subr.bf16.mxu1 %v17849_v20  ;;  %v3810_v1 = vmul.bf16 %v14998_v8, %v13904_v36  ;;  %v3746_v48 = vmul.bf16 %v14998_v8, %v13792_v16  ;;  %v3842_v30 = vmul.bf16 %v14998_v8, %v13945_v46  ;;  %v3778_v52 = vmul.bf16 %v14998_v8, %v13856_v26 }
 0x962   : > { %10904 = vmatprep.subr.bf16.mxu0 %v3810_v1 }
 0x963   : > { %v3250_v2 = vpop.f32.mrb[96].mxu0  ;;  %3662 = vmatpush1.bf16.msra.mxu1 %v3118_v58  ;;  %10905 = vmatpush3.bf16.msra.mxu0 %v3746_v48 }
 0x964   : > { %v3252_v15 = vpop.f32.mrb[97].mxu0  ;;  %3663 = vmatprep.subr.bf16.mxu1 %v17849_v20 }
 0x965   : > { %v3253_v56 = vpop.f32.mrb[98].mxu0  ;;  %v3291_v5 = vpop.f32.mrb[100].mxu1 }
 0x966   : > { %v15010_v19 = vpack.c.bf16 %v3253_v56, %v3250_v2  ;;  %v3255_v54 = vpop.f32.mrb[99].mxu0  ;;  %v3293_v6 = vpop.f32.mrb[101].mxu1  ;;  %v15098_v56 = vld [vmem:[%s17827_s9 + $0x34] ss:$12 sps:$4 sm:$0xff]  }
 0x967   : > { %3664 = vmatpush1.bf16.msra.mxu1 %v3133_v37  ;;  %v3294_v62 = vpop.f32.mrb[102].mxu1 }
 0x968   : > { %3665 = vmatprep.subr.bf16.mxu1 %v17849_v20  ;;  %v3811_v53 = vmul.bf16 %v15010_v19, %v13904_v36  ;;  %v3747_v33 = vmul.bf16 %v15010_v19, %v13792_v16  ;;  %v15019_v4 = vpack.c.bf16 %v3294_v62, %v3291_v5  ;;  %v3296_v18 = vpop.f32.mrb[103].mxu1  ;;  %v3779_v9 = vmul.bf16 %v15010_v19, %v13856_v26  ;;  %v15113_v62 = vld [vmem:[%s17827_s9 + $0x30] ss:$12 sps:$4 sm:$0xff]  }
 0x96a   : > { %10906 = vmatprep.subr.bf16.mxu0 %v3811_v53  ;;  %v3812_v43 = vmul.bf16 %v15019_v4, %v13904_v36  ;;  %v3748_v24 = vmul.bf16 %v15019_v4, %v13792_v16  ;;  %v3844_v15 = vmul.bf16 %v15019_v4, %v13945_v46  ;;  %v3780_v37 = vmul.bf16 %v15019_v4, %v13856_v26 }
 0x96b   : > { %3666 = vmatpush1.bf16.msra.mxu1 %v3134_v38  ;;  %10907 = vmatpush3.bf16.msra.mxu0 %v3747_v33 }
 0x96c   : > { %10908 = vmatprep.subr.bf16.mxu0 %v3840_v61  ;;  %10948 = vmatprep.subr.bf16.mxu1 %v3812_v43 }
 0x96d   : > { %v3299_v60 = vpop.f32.mrb[104].mxu1 }
 0x96e   : > { %3680 = vmatmul.mubr.bf16.vlgmr.msra.gmra.mrb[148].mxu1 %v14619_v14  ;;  %v3301_v32 = vpop.f32.mrb[105].mxu1 }
 0x96f   : > { %10909 = vmatpush3.bf16.msra.mxu0 %v3776_v35  ;;  %10634 = vmatprep.mubr.msk.bf16.mxu1 %vm3179_vm14, %v14624_v11  ;;  %v3302_v12 = vpop.f32.mrb[106].mxu1  ;;  %v3843_v11 = vmul.bf16 %v15010_v19, %v13945_v46 }
 0x970   : > { %10910 = vmatprep.subr.bf16.mxu0 %v3841_v41  ;;  %v15038_v44 = vpack.c.bf16 %v3302_v12, %v3299_v60  ;;  %v3304_v10 = vpop.f32.mrb[107].mxu1  ;;  %10949 = vmatpush3.bf16.msra.mxu1 %v3748_v24  ;;  %v15135_v60 = vld [vmem:[%s17827_s9 + $0x48] ss:$12 sps:$4 sm:$0xff]  }
 0x972   : > { %v3813_v14 = vmul.bf16 %v15038_v44, %v13904_v36  ;;  %v3749_v50 = vmul.bf16 %v15038_v44, %v13792_v16  ;;  %v3845_v54 = vmul.bf16 %v15038_v44, %v13945_v46  ;;  %v3781_v61 = vmul.bf16 %v15038_v44, %v13856_v26 }
 0x973   : > { %10911 = vmatpush3.bf16.msra.mxu0 %v3777_v45 }
 0x974   : > { %10912 = vmatprep.subr.bf16.mxu0 %v3842_v30  ;;  %10950 = vmatprep.subr.bf16.mxu1 %v3813_v14  ;;  %v15144_v30 = vld [vmem:[%s17827_s9 + $0x8] ss:$12 sps:$4 sm:$0xff]  }
 0x975   : > { %v3307_v59 = vpop.f32.mrb[108].mxu1  ;;  %10951 = vmatpush3.bf16.msra.mxu1 %v3749_v50 }
 0x976   : > { %3688 = vmatmul.mubr.bf16.gmra.mrb[152].mxu1 %v14639_v49  ;;  %v3309_v28 = vpop.f32.mrb[109].mxu1  ;;  %v15060_v49 = vld [vmem:[%s17827_s9] ss:$12 sps:$4 sm:$0xff]  }
 0x977   : > { %10913 = vmatpush3.bf16.msra.mxu0 %v3778_v52  ;;  %v3310_v0 = vpop.f32.mrb[110].mxu1  ;;  %10635 = vmatprep.mubr.msk.bf16.mxu1 %vm3179_vm14, %v14644_v27  ;;  %v3873_v27 = vmul.bf16 %v14986_v40, %v13971_v17  ;;  %v3874_v40 = vmul.bf16 %v14998_v8, %v13971_v17  ;;  %v3875_v8 = vmul.bf16 %v15010_v19, %v13971_v17 }
 0x978   : > { %10914 = vmatprep.subr.bf16.mxu0 %v3843_v11  ;;  %v15053_v31 = vpack.c.bf16 %v3310_v0, %v3307_v59  ;;  %v3312_v21 = vpop.f32.mrb[111].mxu1  ;;  %v3876_v19 = vmul.bf16 %v15019_v4, %v13971_v17  ;;  %v15122_v4 = vld [vmem:[%s17827_s9 + $0x4c] ss:$12 sps:$4 sm:$0xff]  }
 0x979   : > { %v15161_v0 = vld [vmem:[%s17827_s9 + $0x20] ss:$12 sps:$4 sm:$0xff]  }
 0x97a   : > { %v3814_v63 = vmul.bf16 %v15053_v31, %v13904_v36  ;;  %v3750_v25 = vmul.bf16 %v15053_v31, %v13792_v16  ;;  %v3846_v18 = vmul.bf16 %v15053_v31, %v13945_v46  ;;  %v3782_v38 = vmul.bf16 %v15053_v31, %v13856_v26 }
 0x97b   : > { %10915 = vmatpush3.bf16.msra.mxu0 %v3779_v9 }
 0x97c   : > { %11953 = vmatprep.subr.bf16.mxu0 %v3872_v55  ;;  %10952 = vmatprep.subr.bf16.mxu1 %v3814_v63 }
 0x97d   : > { %10953 = vmatpush3.bf16.msra.mxu1 %v3750_v25  ;;  %v15173_v25 = vld [vmem:[%s17827_s9 + $0x38] ss:$12 sps:$4 sm:$0xff]  }
 0x97e   : > { %3696 = vmatmul.mubr.bf16.gmra.mrb[156].mxu1 %v14658_v7  ;;  %4026 = vmatmul.mubr.bf16.vlgmr.msra.gmra.mrb[148].mxu0 %v15060_v49  ;;  %v3315_v22 = vpop.f32.mrb[112].mxu1  ;;  %v15085_v7 = vld [vmem:[%s17827_s9 + $0x18] ss:$12 sps:$4 sm:$0xff]  }
 0x97f   : > { %11954 = vmatpush3.bf16.msra.mxu0 %v3872_v55  ;;  %v3317_v47 = vpop.f32.mrb[113].mxu1  ;;  %10636 = vmatprep.mubr.msk.bf16.mxu1 %vm3179_vm14, %v14663_v34  ;;  %v3877_v55 = vmul.bf16 %v15038_v44, %v13971_v17  ;;  %v3878_v44 = vmul.bf16 %v15053_v31, %v13971_v17 }
 0x980   : > { %11955 = vmatprep.subr.bf16.mxu0 %v3873_v27  ;;  %v3318_v1 = vpop.f32.mrb[114].mxu1  ;;  %4033 = vmatprep.mubr.bf16.mxu0 %v15071_v29 }
 0x981   : > { %v15080_v48 = vpack.c.bf16 %v3318_v1, %v3315_v22  ;;  %v3320_v58 = vpop.f32.mrb[115].mxu1 }
 0x983   : > { %11956 = vmatpush3.bf16.msra.mxu0 %v3873_v27  ;;  %v3815_v2 = vmul.bf16 %v15080_v48, %v13904_v36  ;;  %v3751_v34 = vmul.bf16 %v15080_v48, %v13792_v16  ;;  %v3847_v35 = vmul.bf16 %v15080_v48, %v13945_v46  ;;  %v3783_v12 = vmul.bf16 %v15080_v48, %v13856_v26 }
 0x984   : > { %11957 = vmatprep.subr.bf16.mxu0 %v3874_v40  ;;  %v3879_v31 = vmul.bf16 %v15080_v48, %v13971_v17 }
 0x985   : > { %10954 = vmatprep.subr.bf16.mxu1 %v3815_v2  ;;  %v15189_v2 = vld [vmem:[%s17827_s9 + $0x50] ss:$12 sps:$4 sm:$0xff]  }
 0x986   : > { %3704 = vmatmul.mubr.bf16.gmra.mrb[160].mxu1 %v14690_v23  ;;  %4034 = vmatmul.mubr.bf16.gmra.mrb[152].mxu0 %v15085_v7 }
 0x987   : > { %11958 = vmatpush3.bf16.msra.mxu0 %v3874_v40  ;;  %10955 = vmatpush3.bf16.msra.mxu1 %v3751_v34  ;;  %v3356_v5 = vpop.f32.mrb[100].mxu0 }
 0x988   : > { %11959 = vmatprep.subr.bf16.mxu0 %v3875_v8  ;;  %10956 = vmatprep.subr.bf16.mxu1 %v3844_v15  ;;  %v3358_v6 = vpop.f32.mrb[101].mxu0 }
 0x989   : > { %4041 = vmatprep.mubr.bf16.mxu0 %v15098_v56  ;;  %v3359_v23 = vpop.f32.mrb[102].mxu0  ;;  %4155 = vmatprep.mubr.bf16.mxu1 %v14951_v57 }
 0x98a   : > { %v15115_v53 = vpack.c.bf16 %v3359_v23, %v3356_v5  ;;  %v3361_v33 = vpop.f32.mrb[103].mxu0 }
 0x98b   : > { %11960 = vmatpush3.bf16.msra.mxu0 %v3875_v8  ;;  %10957 = vmatpush3.bf16.msra.mxu1 %v3780_v37 }
 0x98c   : > { %11969 = vmatprep.subr.bf16.mxu0 %v3876_v19  ;;  %10958 = vmatprep.subr.bf16.mxu1 %v3845_v54  ;;  %v3816_v10 = vmul.bf16 %v15115_v53, %v13904_v36  ;;  %v3752_v50 = vmul.bf16 %v15115_v53, %v13792_v16  ;;  %v3784_v48 = vmul.bf16 %v15115_v53, %v13856_v26 }
 0x98d   : > { %v3880_v23 = vmul.bf16 %v15115_v53, %v13971_v17 }
 0x98e   : > { %4042 = vmatmul.mubr.bf16.gmra.mrb[156].mxu0 %v15113_v62 }
 0x98f   : > { %10959 = vmatpush3.bf16.msra.mxu1 %v3781_v61  ;;  %4049 = vmatprep.mubr.bf16.mxu0 %v15122_v4  ;;  %v3364_v43 = vpop.f32.mrb[104].mxu0 }
 0x990   : > { %10960 = vmatprep.subr.bf16.mxu1 %v3846_v18  ;;  %v3366_v41 = vpop.f32.mrb[105].mxu0 }
 0x991   : > { %v3367_v24 = vpop.f32.mrb[106].mxu0 }
 0x992   : > { %v15137_v32 = vpack.c.bf16 %v3367_v24, %v3364_v43  ;;  %v3369_v45 = vpop.f32.mrb[107].mxu0 }
 0x993   : > { %10961 = vmatpush3.bf16.msra.mxu1 %v3782_v38 }
 0x994   : > { %10962 = vmatprep.subr.bf16.mxu1 %v3847_v35  ;;  %v3817_v11 = vmul.bf16 %v15137_v32, %v13904_v36  ;;  %v3753_v21 = vmul.bf16 %v15137_v32, %v13792_v16  ;;  %v3849_v33 = vmul.bf16 %v15137_v32, %v13945_v46  ;;  %v3785_v38 = vmul.bf16 %v15137_v32, %v13856_v26 }
 0x996   : > { %4050 = vmatmul.mubr.bf16.gmra.mrb[160].mxu0 %v15135_v60 }
 0x997   : > { %10963 = vmatpush3.bf16.msra.mxu1 %v3783_v12  ;;  %v3372_v14 = vpop.f32.mrb[108].mxu0  ;;  %11961 = vmatprep.mubr.msk.bf16.mxu0 %vm3980_vm13, %v15144_v30 }
 0x998   : > { %10996 = vmatprep.subr.bf16.mxu1 %v3816_v10  ;;  %v3374_v52 = vpop.f32.mrb[109].mxu0 }
 0x999   : > { %v3375_v59 = vpop.f32.mrb[110].mxu0 }
 0x99a   : > { %4156 = vmatmul.mubr.bf16.vlgmr.msra.gmra.mrb[164].mxu1 %v15060_v49  ;;  %v15156_v28 = vpack.c.bf16 %v3375_v59, %v3372_v14  ;;  %v3377_v9 = vpop.f32.mrb[111].mxu0 }
 0x99b   : > { %10997 = vmatpush3.bf16.msra.mxu1 %v3752_v50  ;;  %4163 = vmatprep.mubr.bf16.mxu1 %v15071_v29 }
 0x99c   : > { %10998 = vmatprep.subr.bf16.mxu1 %v3817_v11  ;;  %v3818_v63 = vmul.bf16 %v15156_v28, %v13904_v36  ;;  %v3754_v22 = vmul.bf16 %v15156_v28, %v13792_v16  ;;  %v3850_v35 = vmul.bf16 %v15156_v28, %v13945_v46  ;;  %v3786_v45 = vmul.bf16 %v15156_v28, %v13856_v26 }
 0x99e   : > { %11962 = vmatmul.mubr.msk.bf16.vlgmr.msra.gmra.mrb[164].mxu0 %vm3980_vm13, %v15161_v0 }
 0x99f   : > { %11970 = vmatpush3.bf16.msra.mxu0 %v3876_v19  ;;  %v3380_v27 = vpop.f32.mrb[112].mxu0  ;;  %10999 = vmatpush3.bf16.msra.mxu1 %v3753_v21  ;;  %v3848_v19 = vmul.bf16 %v15115_v53, %v13945_v46  ;;  %v3881_v53 = vmul.bf16 %v15137_v32, %v13971_v17  ;;  %v3882_v32 = vmul.bf16 %v15156_v28, %v13971_v17 }
 0x9a0   : > { %11971 = vmatprep.subr.bf16.mxu0 %v3877_v55  ;;  %v3382_v47 = vpop.f32.mrb[113].mxu0  ;;  %11000 = vmatprep.subr.bf16.mxu1 %v3818_v63 }
 0x9a1   : > { %v3383_v1 = vpop.f32.mrb[114].mxu0  ;;  %11965 = vmatprep.mubr.msk.bf16.mxu0 %vm3980_vm13, %v15173_v25  ;;  %v3421_v40 = vpop.f32.mrb[116].mxu1 }
 0x9a2   : > { %v15183_v58 = vpack.c.bf16 %v3383_v1, %v3380_v27  ;;  %4164 = vmatmul.mubr.bf16.gmra.mrb[168].mxu1 %v15085_v7  ;;  %v3423_v34 = vpop.f32.mrb[117].mxu1  ;;  %v3385_v8 = vpop.f32.mrb[115].mxu0 }
 0x9a3   : > { %11972 = vmatpush3.bf16.msra.mxu0 %v3877_v55  ;;  %11001 = vmatpush3.bf16.msra.mxu1 %v3754_v22  ;;  %v3424_v15 = vpop.f32.mrb[118].mxu1 }
 0x9a4   : > { %11973 = vmatprep.subr.bf16.mxu0 %v3878_v44  ;;  %v3819_v37 = vmul.bf16 %v15183_v58, %v13904_v36  ;;  %v3755_v5 = vmul.bf16 %v15183_v58, %v13792_v16  ;;  %4171 = vmatprep.mubr.bf16.mxu1 %v15098_v56  ;;  %v3426_v54 = vpop.f32.mrb[119].mxu1  ;;  %v15200_v6 = vpack.c.bf16 %v3424_v15, %v3421_v40 }
 0x9a5   : > { %v3851_v12 = vmul.bf16 %v15183_v58, %v13945_v46  ;;  %v3787_v50 = vmul.bf16 %v15183_v58, %v13856_v26  ;;  %v3883_v11 = vmul.bf16 %v15183_v58, %v13971_v17 }
 0x9a6   : > { %11966 = vmatmul.mubr.msk.bf16.gmra.mrb[168].mxu0 %vm3980_vm13, %v15189_v2  ;;  %11002 = vmatprep.subr.bf16.mxu1 %v3819_v37  ;;  %v3884_v9 = vmul.bf16 %v15200_v6, %v13971_v17  ;;  %v3820_v21 = vmul.bf16 %v15200_v6, %v13904_v36  ;;  %v3756_v22 = vmul.bf16 %v15200_v6, %v13792_v16 }
 0x9a7   : > { %11974 = vmatpush3.bf16.msra.mxu0 %v3878_v44  ;;  %11003 = vmatpush3.bf16.msra.mxu1 %v3755_v5 }
 0x9a8   : > { %11975 = vmatprep.subr.bf16.mxu0 %v3879_v31  ;;  %11004 = vmatprep.subr.bf16.mxu1 %v3848_v19 }
 0x9a9   : > { %11977 = vmatprep.mubr.msk.bf16.mxu0 %vm3980_vm13, %v15144_v30  ;;  %v3429_v61 = vpop.f32.mrb[120].mxu1 }
 0x9aa   : > { %4172 = vmatmul.mubr.bf16.gmra.mrb[172].mxu1 %v15113_v62  ;;  %v3431_v18 = vpop.f32.mrb[121].mxu1 }
 0x9ab   : > { %11976 = vmatpush3.bf16.msra.mxu0 %v3879_v31  ;;  %11005 = vmatpush3.bf16.msra.mxu1 %v3784_v48  ;;  %v3432_v43 = vpop.f32.mrb[122].mxu1 }
 0x9ac   : > { %11985 = vmatprep.subr.bf16.mxu0 %v3880_v23  ;;  %11006 = vmatprep.subr.bf16.mxu1 %v3849_v33  ;;  %v15219_v41 = vpack.c.bf16 %v3432_v43, %v3429_v61  ;;  %v3434_v24 = vpop.f32.mrb[123].mxu1  ;;  %v3852_v61 = vmul.bf16 %v15200_v6, %v13945_v46 }
 0x9ad   : > { %4179 = vmatprep.mubr.bf16.mxu1 %v15122_v4 }
 0x9ae   : > { %11978 = vmatmul.mubr.msk.bf16.vlgmr.msra.gmra.mrb[172].mxu0 %vm3980_vm13, %v15161_v0  ;;  %v3885_v63 = vmul.bf16 %v15219_v41, %v13971_v17  ;;  %v3821_v44 = vmul.bf16 %v15219_v41, %v13904_v36  ;;  %v3757_v34 = vmul.bf16 %v15219_v41, %v13792_v16 }
 0x9af   : > { %11986 = vmatpush3.bf16.msra.mxu0 %v3880_v23  ;;  %11007 = vmatpush3.bf16.msra.mxu1 %v3785_v38  ;;  %v3788_v38 = vmul.bf16 %v15200_v6, %v13856_v26 }
 0x9b0   : > { %11987 = vmatprep.subr.bf16.mxu0 %v3881_v53  ;;  %11008 = vmatprep.subr.bf16.mxu1 %v3850_v35 }
 0x9b1   : > { %11981 = vmatprep.mubr.msk.bf16.mxu0 %vm3980_vm13, %v15173_v25  ;;  %v3437_v10 = vpop.f32.mrb[124].mxu1 }
 0x9b2   : > { %4180 = vmatmul.mubr.bf16.gmra.mrb[176].mxu1 %v15135_v60  ;;  %v3439_v14 = vpop.f32.mrb[125].mxu1 }
 0x9b3   : > { %11988 = vmatpush3.bf16.msra.mxu0 %v3881_v53  ;;  %11009 = vmatpush3.bf16.msra.mxu1 %v3786_v45  ;;  %v3440_v52 = vpop.f32.mrb[126].mxu1  ;;  %v3853_v53 = vmul.bf16 %v15219_v41, %v13945_v46 }
 0x9b4   : > { %11989 = vmatprep.subr.bf16.mxu0 %v3882_v32  ;;  %11010 = vmatprep.subr.bf16.mxu1 %v3851_v12  ;;  %v15237_v59 = vpack.c.bf16 %v3440_v52, %v3437_v10  ;;  %v3442_v28 = vpop.f32.mrb[127].mxu1  ;;  %v3789_v12 = vmul.bf16 %v15219_v41, %v13856_v26 }
 0x9b5   : > { %4285 = vmatprep.mubr.bf16.mxu1 %v14951_v57 }
 0x9b6   : > { %11982 = vmatmul.mubr.msk.bf16.gmra.mrb[176].mxu0 %vm3980_vm13, %v15189_v2  ;;  %v3886_v58 = vmul.bf16 %v15237_v59, %v13971_v17  ;;  %v3822_v8 = vmul.bf16 %v15237_v59, %v13904_v36  ;;  %v3758_v15 = vmul.bf16 %v15237_v59, %v13792_v16  ;;  %v3854_v6 = vmul.bf16 %v15237_v59, %v13945_v46 }
 0x9b7   : > { %11990 = vmatpush3.bf16.msra.mxu0 %v3882_v32  ;;  %11011 = vmatpush3.bf16.msra.mxu1 %v3787_v50  ;;  %v3790_v10 = vmul.bf16 %v15237_v59, %v13856_v26 }
 0x9b8   : > { %11991 = vmatprep.subr.bf16.mxu0 %v3883_v11  ;;  %11993 = vmatprep.mubr.msk.bf16.mxu0 %vm3980_vm13, %v15144_v30 }
 0x9b9   : > { %v3445_v55 = vpop.f32.mrb[128].mxu1  ;;  %12001 = vmatprep.subr.bf16.mxu1 %v3884_v9 }
 0x9ba   : > { %4286 = vmatmul.mubr.bf16.vlgmr.msra.gmra.mrb[180].mxu1 %v15060_v49  ;;  %v3447_v27 = vpop.f32.mrb[129].mxu1 }
 0x9bb   : > { %11992 = vmatpush3.bf16.msra.mxu0 %v3883_v11  ;;  %4293 = vmatprep.mubr.bf16.mxu1 %v15071_v29  ;;  %v3448_v47 = vpop.f32.mrb[130].mxu1 }
 0x9bc   : > { %11044 = vmatprep.subr.bf16.mxu0 %v3820_v21  ;;  %v15256_v1 = vpack.c.bf16 %v3448_v47, %v3445_v55  ;;  %12002 = vmatpush3.bf16.msra.mxu1 %v3884_v9  ;;  %v3450_v40 = vpop.f32.mrb[131].mxu1 }
 0x9bd   : > { %12003 = vmatprep.subr.bf16.mxu1 %v3885_v63 }
 0x9be   : > { %11994 = vmatmul.mubr.msk.bf16.vlgmr.msra.gmra.mrb[180].mxu0 %vm3980_vm13, %v15161_v0  ;;  %v3887_v31 = vmul.bf16 %v15256_v1, %v13971_v17  ;;  %v3823_v5 = vmul.bf16 %v15256_v1, %v13904_v36  ;;  %v3759_v33 = vmul.bf16 %v15256_v1, %v13792_v16  ;;  %v3855_v50 = vmul.bf16 %v15256_v1, %v13945_v46 }
 0x9bf   : > { %11045 = vmatpush3.bf16.msra.mxu0 %v3756_v22  ;;  %11997 = vmatprep.mubr.msk.bf16.mxu0 %vm3980_vm13, %v15173_v25  ;;  %v3791_v9 = vmul.bf16 %v15256_v1, %v13856_v26 }
 0x9c0   : > { %11046 = vmatprep.subr.bf16.mxu0 %v3821_v44  ;;  %12004 = vmatpush3.bf16.msra.mxu1 %v3885_v63 }
 0x9c1   : > { %12005 = vmatprep.subr.bf16.mxu1 %v3886_v58 }
 0x9c2   : > { %4294 = vmatmul.mubr.bf16.gmra.mrb[184].mxu1 %v15085_v7 }
 0x9c3   : > { %11047 = vmatpush3.bf16.msra.mxu0 %v3757_v34  ;;  %4301 = vmatprep.mubr.bf16.mxu1 %v15098_v56  ;;  %v3486_v37 = vpop.f32.mrb[116].mxu0 }
 0x9c4   : > { %11048 = vmatprep.subr.bf16.mxu0 %v3822_v8  ;;  %v3488_v19 = vpop.f32.mrb[117].mxu0  ;;  %12006 = vmatpush3.bf16.msra.mxu1 %v3886_v58 }
 0x9c5   : > { %v3489_v54 = vpop.f32.mrb[118].mxu0  ;;  %12007 = vmatprep.subr.bf16.mxu1 %v3887_v31 }
 0x9c6   : > { %11998 = vmatmul.mubr.msk.bf16.gmra.mrb[184].mxu0 %vm3980_vm13, %v15189_v2  ;;  %v15278_v48 = vpack.c.bf16 %v3489_v54, %v3486_v37  ;;  %v3491_v23 = vpop.f32.mrb[119].mxu0 }
 0x9c7   : > { %11049 = vmatpush3.bf16.msra.mxu0 %v3758_v15  ;;  %4415 = vmatprep.mubr.bf16.mxu0 %v14951_v57 }
 0x9c8   : > { %11050 = vmatprep.subr.bf16.mxu0 %v3823_v5  ;;  %12008 = vmatpush3.bf16.msra.mxu1 %v3887_v31  ;;  %v3888_v18 = vmul.bf16 %v15278_v48, %v13971_v17  ;;  %v3824_v59 = vmul.bf16 %v15278_v48, %v13904_v36  ;;  %v3760_v55 = vmul.bf16 %v15278_v48, %v13792_v16 }
 0x9ca   : > { %4302 = vmatmul.mubr.bf16.gmra.mrb[188].mxu1 %v15113_v62  ;;  %12017 = vmatprep.subr.bf16.mxu1 %v3888_v18 }
 0x9cb   : > { %11051 = vmatpush3.bf16.msra.mxu0 %v3759_v33  ;;  %4309 = vmatprep.mubr.bf16.mxu1 %v15122_v4  ;;  %v3494_v43 = vpop.f32.mrb[120].mxu0 }
 0x9cc   : > { %11052 = vmatprep.subr.bf16.mxu0 %v3852_v61  ;;  %v3496_v35 = vpop.f32.mrb[121].mxu0 }
 0x9cd   : > { %v3497_v24 = vpop.f32.mrb[122].mxu0  ;;  %v3792_v35 = vmul.bf16 %v15278_v48, %v13856_v26 }
 0x9ce   : > { %v15293_v45 = vpack.c.bf16 %v3497_v24, %v3494_v43  ;;  %v3499_v32 = vpop.f32.mrb[123].mxu0 }
 0x9cf   : > { %11053 = vmatpush3.bf16.msra.mxu0 %v3788_v38 }
 0x9d0   : > { %11054 = vmatprep.subr.bf16.mxu0 %v3853_v53  ;;  %v3889_v21 = vmul.bf16 %v15293_v45, %v13971_v17  ;;  %v3825_v27 = vmul.bf16 %v15293_v45, %v13904_v36  ;;  %v3761_v58 = vmul.bf16 %v15293_v45, %v13792_v16  ;;  %v3857_v32 = vmul.bf16 %v15293_v45, %v13945_v46 }
 0x9d2   : > { %4310 = vmatmul.mubr.bf16.gmra.mrb[192].mxu1 %v15135_v60 }
 0x9d3   : > { %11055 = vmatpush3.bf16.msra.mxu0 %v3789_v12  ;;  %v3502_v14 = vpop.f32.mrb[124].mxu0  ;;  %12009 = vmatprep.mubr.msk.bf16.mxu1 %vm3980_vm13, %v15144_v30 }
 0x9d4   : > { %11056 = vmatprep.subr.bf16.mxu0 %v3854_v6  ;;  %v3504_v52 = vpop.f32.mrb[125].mxu0 }
 0x9d5   : > { %v3505_v41 = vpop.f32.mrb[126].mxu0 }
 0x9d6   : > { %v15306_v11 = vpack.c.bf16 %v3505_v41, %v3502_v14  ;;  %v3507_v28 = vpop.f32.mrb[127].mxu0  ;;  %v3793_v14 = vmul.bf16 %v15293_v45, %v13856_v26 }
 0x9d7   : > { %11057 = vmatpush3.bf16.msra.mxu0 %v3790_v10 }
 0x9d8   : > { %11058 = vmatprep.subr.bf16.mxu0 %v3855_v50  ;;  %v3890_v44 = vmul.bf16 %v15306_v11, %v13971_v17  ;;  %v3826_v34 = vmul.bf16 %v15306_v11, %v13904_v36  ;;  %v3762_v37 = vmul.bf16 %v15306_v11, %v13792_v16  ;;  %v3858_v50 = vmul.bf16 %v15306_v11, %v13945_v46 }
 0x9d9   : > { %v3794_v28 = vmul.bf16 %v15306_v11, %v13856_v26 }
 0x9da   : > { %12010 = vmatmul.mubr.msk.bf16.vlgmr.msra.gmra.mrb[196].mxu1 %vm3980_vm13, %v15161_v0 }
 0x9db   : > { %11059 = vmatpush3.bf16.msra.mxu0 %v3791_v9  ;;  %v3510_v63 = vpop.f32.mrb[128].mxu0  ;;  %12018 = vmatpush3.bf16.msra.mxu1 %v3888_v18  ;;  %v3856_v18 = vmul.bf16 %v15278_v48, %v13945_v46 }
 0x9dc   : > { %11092 = vmatprep.subr.bf16.mxu0 %v3824_v59  ;;  %v3512_v22 = vpop.f32.mrb[129].mxu0  ;;  %12019 = vmatprep.subr.bf16.mxu1 %v3889_v21 }
 0x9dd   : > { %v3513_v47 = vpop.f32.mrb[130].mxu0  ;;  %12013 = vmatprep.mubr.msk.bf16.mxu1 %vm3980_vm13, %v15173_v25 }
 0x9de   : > { %4416 = vmatmul.mubr.bf16.vlgmr.msra.gmra.mrb[188].mxu0 %v15060_v49  ;;  %v15325_v1 = vpack.c.bf16 %v3513_v47, %v3510_v63  ;;  %v3515_v40 = vpop.f32.mrb[131].mxu0 }
 0x9df   : > { %11093 = vmatpush3.bf16.msra.mxu0 %v3760_v55  ;;  %4423 = vmatprep.mubr.bf16.mxu0 %v15071_v29 }
 0x9e0   : > { %11094 = vmatprep.subr.bf16.mxu0 %v3825_v27  ;;  %12020 = vmatpush3.bf16.msra.mxu1 %v3889_v21  ;;  %v3891_v31 = vmul.bf16 %v15325_v1, %v13971_v17  ;;  %v3827_v19 = vmul.bf16 %v15325_v1, %v13904_v36  ;;  %v3763_v61 = vmul.bf16 %v15325_v1, %v13792_v16 }
 0x9e1   : > { %12021 = vmatprep.subr.bf16.mxu1 %v3890_v44  ;;  %v3551_v8 = vpop.f32.mrb[132].mxu1  ;;  %v3859_v21 = vmul.bf16 %v15325_v1, %v13945_v46  ;;  %v3795_v63 = vmul.bf16 %v15325_v1, %v13856_v26 }
 0x9e2   : > { %12014 = vmatmul.mubr.msk.bf16.gmra.mrb[200].mxu1 %vm3980_vm13, %v15189_v2  ;;  %v3553_v15 = vpop.f32.mrb[133].mxu1 }
 0x9e3   : > { %11095 = vmatpush3.bf16.msra.mxu0 %v3761_v58  ;;  %v3554_v5 = vpop.f32.mrb[134].mxu1  ;;  %12025 = vmatprep.mubr.msk.bf16.mxu1 %vm3980_vm13, %v15144_v30 }
 0x9e4   : > { %11096 = vmatprep.subr.bf16.mxu0 %v3826_v34  ;;  %12022 = vmatpush3.bf16.msra.mxu1 %v3890_v44  ;;  %v15342_v54 = vpack.c.bf16 %v3554_v5, %v3551_v8  ;;  %v3556_v23 = vpop.f32.mrb[135].mxu1 }
 0x9e5   : > { %12023 = vmatprep.subr.bf16.mxu1 %v3891_v31 }
 0x9e6   : > { %4424 = vmatmul.mubr.bf16.gmra.mrb[192].mxu0 %v15085_v7  ;;  %v3828_v33 = vmul.bf16 %v15342_v54, %v13904_v36  ;;  %v3764_v38 = vmul.bf16 %v15342_v54, %v13792_v16  ;;  %v3892_v27 = vmul.bf16 %v15342_v54, %v13971_v17  ;;  %v3860_v8 = vmul.bf16 %v15342_v54, %v13945_v46 }
 0x9e7   : > { %11097 = vmatpush3.bf16.msra.mxu0 %v3762_v37  ;;  %4431 = vmatprep.mubr.bf16.mxu0 %v15098_v56  ;;  %v3796_v5 = vmul.bf16 %v15342_v54, %v13856_v26 }
 0x9e8   : > { %11098 = vmatprep.subr.bf16.mxu0 %v3827_v19  ;;  %12024 = vmatpush3.bf16.msra.mxu1 %v3891_v31 }
 0x9e9   : > { %v3559_v43 = vpop.f32.mrb[136].mxu1  ;;  %11140 = vmatprep.subr.bf16.mxu1 %v3828_v33 }
 0x9ea   : > { %v3561_v53 = vpop.f32.mrb[137].mxu1 }
 0x9eb   : > { %11099 = vmatpush3.bf16.msra.mxu0 %v3763_v61  ;;  %v3562_v24 = vpop.f32.mrb[138].mxu1  ;;  %12026 = vmatmul.mubr.msk.bf16.vlgmr.msra.gmra.mrb[204].mxu1 %vm3980_vm13, %v15161_v0 }
 0x9ec   : > { %11100 = vmatprep.subr.bf16.mxu0 %v3856_v18  ;;  %v15360_v12 = vpack.c.bf16 %v3562_v24, %v3559_v43  ;;  %v3564_v6 = vpop.f32.mrb[139].mxu1  ;;  %11141 = vmatpush3.bf16.msra.mxu1 %v3764_v38 }
 0x9ed   : > { %12029 = vmatprep.mubr.msk.bf16.mxu1 %vm3980_vm13, %v15173_v25 }
 0x9ee   : > { %4432 = vmatmul.mubr.bf16.gmra.mrb[196].mxu0 %v15113_v62  ;;  %v3829_v48 = vmul.bf16 %v15360_v12, %v13904_v36  ;;  %v3765_v10 = vmul.bf16 %v15360_v12, %v13792_v16  ;;  %v3893_v58 = vmul.bf16 %v15360_v12, %v13971_v17  ;;  %v3861_v23 = vmul.bf16 %v15360_v12, %v13945_v46 }
 0x9ef   : > { %11101 = vmatpush3.bf16.msra.mxu0 %v3792_v35  ;;  %4439 = vmatprep.mubr.bf16.mxu0 %v15122_v4  ;;  %v3797_v38 = vmul.bf16 %v15360_v12, %v13856_v26 }
 0x9f0   : > { %11102 = vmatprep.subr.bf16.mxu0 %v3857_v32  ;;  %11142 = vmatprep.subr.bf16.mxu1 %v3829_v48 }
 0x9f1   : > { %v3567_v52 = vpop.f32.mrb[140].mxu1  ;;  %11143 = vmatpush3.bf16.msra.mxu1 %v3765_v10 }
 0x9f2   : > { %v3569_v41 = vpop.f32.mrb[141].mxu1 }
 0x9f3   : > { %11103 = vmatpush3.bf16.msra.mxu0 %v3793_v14  ;;  %v3570_v9 = vpop.f32.mrb[142].mxu1  ;;  %12030 = vmatmul.mubr.msk.bf16.gmra.mrb[208].mxu1 %vm3980_vm13, %v15189_v2 }
 0x9f4   : > { %11104 = vmatprep.subr.bf16.mxu0 %v3858_v50  ;;  %v15378_v45 = vpack.c.bf16 %v3570_v9, %v3567_v52  ;;  %v3572_v59 = vpop.f32.mrb[143].mxu1  ;;  %4675 = vmatprep.mubr.bf16.mxu1 %v14951_v57 }
 0x9f6   : > { %4440 = vmatmul.mubr.bf16.gmra.mrb[200].mxu0 %v15135_v60  ;;  %v3830_v55 = vmul.bf16 %v15378_v45, %v13904_v36  ;;  %v3766_v11 = vmul.bf16 %v15378_v45, %v13792_v16  ;;  %v3894_v15 = vmul.bf16 %v15378_v45, %v13971_v17  ;;  %v3862_v54 = vmul.bf16 %v15378_v45, %v13945_v46 }
 0x9f7   : > { %11105 = vmatpush3.bf16.msra.mxu0 %v3794_v28  ;;  %4545 = vmatprep.mubr.bf16.mxu0 %v14951_v57  ;;  %v3798_v24 = vmul.bf16 %v15378_v45, %v13856_v26 }
 0x9f8   : > { %11106 = vmatprep.subr.bf16.mxu0 %v3859_v21  ;;  %11144 = vmatprep.subr.bf16.mxu1 %v3830_v55 }
 0x9f9   : > { %v3575_v22 = vpop.f32.mrb[144].mxu1  ;;  %11145 = vmatpush3.bf16.msra.mxu1 %v3766_v11 }
 0x9fa   : > { %v3577_v47 = vpop.f32.mrb[145].mxu1 }
 0x9fb   : > { %11107 = vmatpush3.bf16.msra.mxu0 %v3795_v63  ;;  %v3578_v44 = vpop.f32.mrb[146].mxu1 }
 0x9fc   : > { %v3735_v40 = vpack.c.bf16 %v3578_v44, %v3575_v22  ;;  %12033 = vmatprep.subr.bf16.mxu0 %v3892_v27  ;;  %v3580_v34 = vpop.f32.mrb[147].mxu1 }
 0x9fe   : > { %4546 = vmatmul.mubr.bf16.vlgmr.msra.gmra.mrb[204].mxu0 %v15060_v49  ;;  %v3831_v57 = vmul.bf16 %v3735_v40, %v13904_v36  ;;  %v3767_v1 = vmul.bf16 %v3735_v40, %v13792_v16  ;;  %v3895_v18 = vmul.bf16 %v3735_v40, %v13971_v17  ;;  %v3863_v12 = vmul.bf16 %v3735_v40, %v13945_v46 }
 0x9ff   : > { %12034 = vmatpush3.bf16.msra.mxu0 %v3892_v27  ;;  %4553 = vmatprep.mubr.bf16.mxu0 %v15071_v29  ;;  %v3616_v31 = vpop.f32.mrb[132].mxu0  ;;  %v3799_v10 = vmul.bf16 %v3735_v40, %v13856_v26 }
 0xa00   : > { %11146 = vmatprep.subr.bf16.mxu1 %v3831_v57  ;;  %12035 = vmatprep.subr.bf16.mxu0 %v3893_v58  ;;  %v3618_v37 = vpop.f32.mrb[133].mxu0 }
 0xa01   : > { %11147 = vmatpush3.bf16.msra.mxu1 %v3767_v1  ;;  %v3619_v19 = vpop.f32.mrb[134].mxu0 }
 0xa02   : > { %11148 = vmatprep.subr.bf16.mxu1 %v3860_v8  ;;  %v15407_v33 = vpack.c.bf16 %v3619_v19, %v3616_v31  ;;  %v3621_v61 = vpop.f32.mrb[135].mxu0 }
 0xa03   : > { %12036 = vmatpush3.bf16.msra.mxu0 %v3893_v58  ;;  %v12864_v61 = vld [vmem:[%s17827_s9 + $0x4] ss:$12 sps:$4 sm:$0xff]  }
 0xa04   : > { %12037 = vmatprep.subr.bf16.mxu0 %v3894_v15  ;;  %v3896_v35 = vmul.bf16 %v15407_v33, %v13971_v17  ;;  %v3832_v14 = vmul.bf16 %v15407_v33, %v13904_v36  ;;  %v3768_v41 = vmul.bf16 %v15407_v33, %v13792_v16  ;;  %v3864_v57 = vmul.bf16 %v15407_v33, %v13945_v46 }
 0xa05   : > { %11149 = vmatpush3.bf16.msra.mxu1 %v3796_v5  ;;  %v3800_v8 = vmul.bf16 %v15407_v33, %v13856_v26 }
 0xa06   : > { %4554 = vmatmul.mubr.bf16.gmra.mrb[208].mxu0 %v15085_v7  ;;  %11150 = vmatprep.subr.bf16.mxu1 %v3861_v23 }
 0xa07   : > { %4561 = vmatprep.mubr.bf16.mxu0 %v15098_v56  ;;  %12038 = vmatpush3.bf16.msra.mxu0 %v3894_v15  ;;  %v3624_v43 = vpop.f32.mrb[136].mxu0 }
 0xa08   : > { %v3626_v53 = vpop.f32.mrb[137].mxu0  ;;  %12039 = vmatprep.subr.bf16.mxu0 %v3895_v18 }
 0xa09   : > { %11151 = vmatpush3.bf16.msra.mxu1 %v3797_v38  ;;  %v3627_v32 = vpop.f32.mrb[138].mxu0 }
 0xa0a   : > { %11152 = vmatprep.subr.bf16.mxu1 %v3862_v54  ;;  %v15421_v6 = vpack.c.bf16 %v3627_v32, %v3624_v43  ;;  %v3629_v48 = vpop.f32.mrb[139].mxu0 }
 0xa0b   : > { %12040 = vmatpush3.bf16.msra.mxu0 %v3895_v18 }
 0xa0c   : > { %12049 = vmatprep.subr.bf16.mxu0 %v3896_v35  ;;  %v3833_v59 = vmul.bf16 %v15421_v6, %v13904_v36  ;;  %v3769_v21 = vmul.bf16 %v15421_v6, %v13792_v16  ;;  %v3897_v58 = vmul.bf16 %v15421_v6, %v13971_v17  ;;  %v3865_v31 = vmul.bf16 %v15421_v6, %v13945_v46 }
 0xa0d   : > { %11153 = vmatpush3.bf16.msra.mxu1 %v3798_v24  ;;  %v3801_v37 = vmul.bf16 %v15421_v6, %v13856_v26 }
 0xa0e   : > { %4562 = vmatmul.mubr.bf16.gmra.mrb[212].mxu0 %v15113_v62  ;;  %11154 = vmatprep.subr.bf16.mxu1 %v3863_v12 }
 0xa0f   : > { %4569 = vmatprep.mubr.bf16.mxu0 %v15122_v4  ;;  %v3632_v50 = vpop.f32.mrb[140].mxu0 }
 0xa10   : > { %v3634_v52 = vpop.f32.mrb[141].mxu0 }
 0xa11   : > { %11155 = vmatpush3.bf16.msra.mxu1 %v3799_v10  ;;  %v3635_v28 = vpop.f32.mrb[142].mxu0 }
 0xa12   : > { %11188 = vmatprep.subr.bf16.mxu1 %v3832_v14  ;;  %v3738_v9 = vpack.c.bf16 %v3635_v28, %v3632_v50  ;;  %v3637_v45 = vpop.f32.mrb[143].mxu0 }
 0xa14   : > { %4676 = vmatmul.mubr.bf16.vlgmr.msra.gmra.mrb[212].mxu1 %v15060_v49  ;;  %v3834_v55 = vmul.bf16 %v3738_v9, %v13904_v36  ;;  %v3770_v22 = vmul.bf16 %v3738_v9, %v13792_v16  ;;  %v3898_v1 = vmul.bf16 %v3738_v9, %v13971_v17  ;;  %v3866_v5 = vmul.bf16 %v3738_v9, %v13945_v46 }
 0xa15   : > { %11189 = vmatpush3.bf16.msra.mxu1 %v3768_v41  ;;  %4683 = vmatprep.mubr.bf16.mxu1 %v15071_v29  ;;  %v3802_v19 = vmul.bf16 %v3738_v9, %v13856_v26 }
 0xa16   : > { %4570 = vmatmul.mubr.bf16.gmra.mrb[216].mxu0 %v15135_v60  ;;  %11190 = vmatprep.subr.bf16.mxu1 %v3833_v59 }
 0xa17   : > { %v3640_v11 = vpop.f32.mrb[144].mxu0  ;;  %12041 = vmatprep.mubr.msk.bf16.mxu0 %vm3980_vm13, %v15144_v30 }
 0xa18   : > { %v3642_v63 = vpop.f32.mrb[145].mxu0 }
 0xa19   : > { %11191 = vmatpush3.bf16.msra.mxu1 %v3769_v21  ;;  %v3643_v27 = vpop.f32.mrb[146].mxu0 }
 0xa1a   : > { %v3739_v47 = vpack.c.bf16 %v3643_v27, %v3640_v11  ;;  %11192 = vmatprep.subr.bf16.mxu1 %v3834_v55  ;;  %v3645_v44 = vpop.f32.mrb[147].mxu0 }
 0xa1c   : > { %4684 = vmatmul.mubr.bf16.gmra.mrb[216].mxu1 %v15085_v7  ;;  %v3835_v40 = vmul.bf16 %v3739_v47, %v13904_v36  ;;  %v3771_v34 = vmul.bf16 %v3739_v47, %v13792_v16  ;;  %v3899_v15 = vmul.bf16 %v3739_v47, %v13971_v17  ;;  %v3867_v23 = vmul.bf16 %v3739_v47, %v13945_v46 }
 0xa1d   : > { %11193 = vmatpush3.bf16.msra.mxu1 %v3770_v22  ;;  %4691 = vmatprep.mubr.bf16.mxu1 %v15098_v56  ;;  %v3803_v33 = vmul.bf16 %v3739_v47, %v13856_v26 }
 0xa1e   : > { %12042 = vmatmul.mubr.msk.bf16.vlgmr.msra.gmra.mrb[220].mxu0 %vm3980_vm13, %v15161_v0  ;;  %11194 = vmatprep.subr.bf16.mxu1 %v3835_v40 }
 0xa1f   : > { %12050 = vmatpush3.bf16.msra.mxu0 %v3896_v35  ;;  %12045 = vmatprep.mubr.msk.bf16.mxu0 %vm3980_vm13, %v15173_v25 }
 0xa20   : > { %12051 = vmatprep.subr.bf16.mxu0 %v3897_v58 }
 0xa21   : > { %11195 = vmatpush3.bf16.msra.mxu1 %v3771_v34 }
 0xa22   : > { %11196 = vmatprep.subr.bf16.mxu1 %v3864_v57 }
 0xa23   : > { %12052 = vmatpush3.bf16.msra.mxu0 %v3897_v58 }
 0xa24   : > { %4692 = vmatmul.mubr.bf16.gmra.mrb[220].mxu1 %v15113_v62  ;;  %12053 = vmatprep.subr.bf16.mxu0 %v3898_v1 }
 0xa25   : > { %11197 = vmatpush3.bf16.msra.mxu1 %v3800_v8  ;;  %4699 = vmatprep.mubr.bf16.mxu1 %v15122_v4 }
 0xa26   : > { %11198 = vmatprep.subr.bf16.mxu1 %v3865_v31  ;;  %12046 = vmatmul.mubr.msk.bf16.gmra.mrb[224].mxu0 %vm3980_vm13, %v15189_v2 }
 0xa27   : > { %12054 = vmatpush3.bf16.msra.mxu0 %v3898_v1  ;;  %12057 = vmatprep.mubr.msk.bf16.mxu0 %vm3980_vm13, %v15144_v30 }
 0xa28   : > { %12055 = vmatprep.subr.bf16.mxu0 %v3899_v15 }
 0xa29   : > { %11199 = vmatpush3.bf16.msra.mxu1 %v3801_v37 }
 0xa2a   : > { %11200 = vmatprep.subr.bf16.mxu1 %v3866_v5 }
 0xa2b   : > { %12056 = vmatpush3.bf16.msra.mxu0 %v3899_v15 }
 0xa2c   : > { %4700 = vmatmul.mubr.bf16.gmra.mrb[224].mxu1 %v15135_v60 }
 0xa2d   : > { %11201 = vmatpush3.bf16.msra.mxu1 %v3802_v19  ;;  %4805 = vmatprep.mubr.bf16.mxu1 %v12864_v61 }
 0xa2e   : > { %11202 = vmatprep.subr.bf16.mxu1 %v3867_v23  ;;  %12058 = vmatmul.mubr.msk.bf16.vlgmr.msra.gmra.mrb[228].mxu0 %vm3980_vm13, %v15161_v0  ;;  %v12865_v23 = vld [vmem:[%s17823_s5] sm:$0xff]  }
 0xa2f   : > { %12061 = vmatprep.mubr.msk.bf16.mxu0 %vm3980_vm13, %v15173_v25 }
 0xa31   : > { %11203 = vmatpush3.bf16.msra.mxu1 %v3803_v33 }
 0xa34   : > { %4806 = vmatmul.mubr.bf16.vlgmr.msra.gmra.mrb[228].mxu1 %v15060_v49 }
 0xa35   : > { %4813 = vmatprep.mubr.bf16.mxu1 %v15071_v29 }
 0xa36   : > { %12062 = vmatmul.mubr.msk.bf16.gmra.mrb[232].mxu0 %vm3980_vm13, %v15189_v2 }
 0xa37   : > { %4935 = vmatprep.mubr.bf16.mxu0 %v12864_v61 }
 0xa3c   : > { %4814 = vmatmul.mubr.bf16.gmra.mrb[232].mxu1 %v15085_v7 }
 0xa3d   : > { %4821 = vmatprep.mubr.bf16.mxu1 %v15098_v56 }
 0xa41   : > { %v3681_v18 = vpop.f32.mrb[148].mxu1 }
 0xa42   : > { %v3683_v38 = vpop.f32.mrb[149].mxu1 }
 0xa43   : > { %v3684_v54 = vpop.f32.mrb[150].mxu1 }
 0xa44   : > { %4822 = vmatmul.mubr.bf16.gmra.mrb[236].mxu1 %v15113_v62  ;;  %v15486_v43 = vpack.c.bf16 %v3684_v54, %v3681_v18  ;;  %v3686_v53 = vpop.f32.mrb[151].mxu1 }
 0xa45   : > { %4829 = vmatprep.mubr.bf16.mxu1 %v15122_v4 }
 0xa46   : > { %v3836_v49 = vmul.bf16 %v15486_v43, %v13904_v36  ;;  %v3900_v29 = vmul.bf16 %v15486_v43, %v13971_v17  ;;  %v3772_v7 = vmul.bf16 %v15486_v43, %v13792_v16  ;;  %v3868_v37 = vmul.bf16 %v15486_v43, %v13945_v46 }
 0xa47   : > { %v3804_v18 = vmul.bf16 %v15486_v43, %v13856_v26  ;;  %v12866_v43 = vld [vmem:[%s17823_s5 + $0x8] sm:$0xff]  }
 0xa48   : > { %11236 = vmatprep.subr.bf16.mxu0 %v3836_v49  ;;  %12065 = vmatprep.subr.bf16.mxu1 %v3900_v29 }
 0xa49   : > { %v3689_v56 = vpop.f32.mrb[152].mxu1  ;;  %11237 = vmatpush3.bf16.msra.mxu0 %v3772_v7  ;;  %12066 = vmatpush3.bf16.msra.mxu1 %v3900_v29 }
 0xa4a   : > { %v3691_v62 = vpop.f32.mrb[153].mxu1 }
 0xa4b   : > { %v3692_v35 = vpop.f32.mrb[154].mxu1 }
 0xa4c   : > { %4830 = vmatmul.mubr.bf16.gmra.mrb[240].mxu1 %v15135_v60  ;;  %v15496_v24 = vpack.c.bf16 %v3692_v35, %v3689_v56  ;;  %v3694_v4 = vpop.f32.mrb[155].mxu1  ;;  %v12867_v35 = vld [vmem:[%s17823_s5 + $0x10] sm:$0xff]  }
 0xa4d   : > { %12073 = vmatprep.mubr.msk.bf16.mxu1 %vm3980_vm13, %v15144_v30 }
 0xa4e   : > { %v3837_v32 = vmul.bf16 %v15496_v24, %v13904_v36  ;;  %v3901_v12 = vmul.bf16 %v15496_v24, %v13971_v17  ;;  %v3773_v6 = vmul.bf16 %v15496_v24, %v13792_v16  ;;  %v3869_v54 = vmul.bf16 %v15496_v24, %v13945_v46 }
 0xa4f   : > { %v3805_v49 = vmul.bf16 %v15496_v24, %v13856_v26 }
 0xa50   : > { %11238 = vmatprep.subr.bf16.mxu0 %v3837_v32  ;;  %12067 = vmatprep.subr.bf16.mxu1 %v3901_v12 }
 0xa51   : > { %v10916_v48 = vpop.f32.mrb[148].mxu0  ;;  %v3697_v10 = vpop.f32.mrb[156].mxu1  ;;  %11239 = vmatpush3.bf16.msra.mxu0 %v3773_v6  ;;  %12068 = vmatpush3.bf16.msra.mxu1 %v3901_v12 }
 0xa52   : > { %v10917_v60 = vpop.f32.mrb[149].mxu0  ;;  %v3699_v14 = vpop.f32.mrb[157].mxu1 }
 0xa53   : > { %v15506_v50 = vadd.f32 %v10917_v60, %v10916_v48  ;;  %v10919_v30 = vpop.f32.mrb[150].mxu0  ;;  %v3700_v52 = vpop.f32.mrb[158].mxu1 }
 0xa54   : > { %v10920_v41 = vpop.f32.mrb[151].mxu0  ;;  %v15508_v28 = vpack.c.bf16 %v3700_v52, %v3697_v10  ;;  %v3702_v9 = vpop.f32.mrb[159].mxu1 }
 0xa55   : > { %v15510_v45 = vadd.f32 %v10920_v41, %v10919_v30 }
 0xa56   : > { %v3838_v59 = vmul.bf16 %v15508_v28, %v13904_v36  ;;  %v3902_v21 = vmul.bf16 %v15508_v28, %v13971_v17  ;;  %v3774_v55 = vmul.bf16 %v15508_v28, %v13792_v16  ;;  %v3870_v29 = vmul.bf16 %v15508_v28, %v13945_v46 }
 0xa57   : > { %v3806_v62 = vmul.bf16 %v15508_v28, %v13856_v26 }
 0xa58   : > { %11240 = vmatprep.subr.bf16.mxu0 %v3838_v59  ;;  %12069 = vmatprep.subr.bf16.mxu1 %v3902_v21 }
 0xa59   : > { %v3705_v11 = vpop.f32.mrb[160].mxu1  ;;  %v10922_v63 = vpop.f32.mrb[152].mxu0  ;;  %11241 = vmatpush3.bf16.msra.mxu0 %v3774_v55  ;;  %12070 = vmatpush3.bf16.msra.mxu1 %v3902_v21 }
 0xa5a   : > { %v3707_v27 = vpop.f32.mrb[161].mxu1  ;;  %v10923_v22 = vpop.f32.mrb[153].mxu0 }
 0xa5b   : > { %v10924_v47 = vadd.f32 %v10923_v22, %v10922_v63  ;;  %v3708_v44 = vpop.f32.mrb[162].mxu1  ;;  %v10925_v40 = vpop.f32.mrb[154].mxu0  ;;  %v12870_v27 = vld [vmem:[%s17827_s9 + $0x1c] ss:$12 sps:$4 sm:$0xff]  }
 0xa5c   : > { %v3743_v58 = vpack.c.bf16 %v3708_v44, %v3705_v11  ;;  %v10926_v34 = vpop.f32.mrb[155].mxu0  ;;  %v3710_v57 = vpop.f32.mrb[163].mxu1  ;;  %v12869_v11 = vld [vmem:[%s17827_s9] ss:$12 sps:$4 sm:$0xff]  }
 0xa5d   : > { %v10927_v1 = vadd.f32 %v10926_v34, %v10925_v40 }
 0xa5e   : > { %v3839_v8 = vmul.bf16 %v3743_v58, %v13904_v36  ;;  %v3775_v31 = vmul.bf16 %v3743_v58, %v13792_v16  ;;  %v3903_v15 = vmul.bf16 %v3743_v58, %v13971_v17  ;;  %v3871_v4 = vmul.bf16 %v3743_v58, %v13945_v46 }
 0xa5f   : > { %v3807_v48 = vmul.bf16 %v3743_v58, %v13856_v26 }
 0xa60   : > { %11242 = vmatprep.subr.bf16.mxu0 %v3839_v8  ;;  %12071 = vmatprep.subr.bf16.mxu1 %v3903_v15 }
 0xa61   : > { %v10928_v5 = vpop.f32.mrb[156].mxu0  ;;  %11243 = vmatpush3.bf16.msra.mxu0 %v3775_v31  ;;  %12072 = vmatpush3.bf16.msra.mxu1 %v3903_v15  ;;  %v12872_v15 = vld [vmem:[%s17824_s6 + $0x10] sm:$0xff]  }
 0xa62   : > { %v10929_v19 = vpop.f32.mrb[157].mxu0  ;;  %11244 = vmatprep.subr.bf16.mxu0 %v3868_v37  ;;  %12081 = vmatprep.subr.bf16.mxu1 %v12865_v23 }
 0xa63   : > { %v15526_v33 = vadd.f32 %v10929_v19, %v10928_v5  ;;  %v10931_v61 = vpop.f32.mrb[158].mxu0 }
 0xa64   : > { %v10932_v38 = vpop.f32.mrb[159].mxu0  ;;  %12074 = vmatmul.mubr.msk.bf16.vlgmr.msra.gmra.mrb[244].mxu1 %vm3980_vm13, %v15161_v0 }
 0xa65   : > { %v15534_v53 = vadd.f32 %v10932_v38, %v10931_v61  ;;  %11245 = vmatpush3.bf16.msra.mxu0 %v3804_v18  ;;  %12077 = vmatprep.mubr.msk.bf16.mxu1 %vm3980_vm13, %v15173_v25  ;;  %v12873_v61 = vld [vmem:[%s17827_s9 + $0x18] ss:$12 sps:$4 sm:$0xff]   ;;  %v12874_v38 = vld [vmem:[%s17827_s9 + $0x34] ss:$12 sps:$4 sm:$0xff]  }
 0xa66   : > { %11246 = vmatprep.subr.bf16.mxu0 %v3869_v54  ;;  %12082 = vmatpush3.bf16.msra.mxu1 %v12865_v23 }
 0xa67   : > { %12083 = vmatprep.subr.bf16.mxu1 %v12866_v43 }
 0xa69   : > { %v10934_v0 = vpop.f32.mrb[160].mxu0  ;;  %11247 = vmatpush3.bf16.msra.mxu0 %v3805_v49 }
 0xa6a   : > { %v10935_v7 = vpop.f32.mrb[161].mxu0  ;;  %11248 = vmatprep.subr.bf16.mxu0 %v3870_v29  ;;  %12084 = vmatpush3.bf16.msra.mxu1 %v12866_v43 }
 0xa6b   : > { %v10936_v56 = vadd.f32 %v10935_v7, %v10934_v0  ;;  %v10937_v25 = vpop.f32.mrb[162].mxu0  ;;  %12085 = vmatprep.subr.bf16.mxu1 %v12867_v35 }
 0xa6c   : > { %v10938_v24 = vpop.f32.mrb[163].mxu0  ;;  %12078 = vmatmul.mubr.msk.bf16.gmra.mrb[248].mxu1 %vm3980_vm13, %v15189_v2  ;;  %v12868_v2 = vld [vmem:[%s17824_s6] sm:$0xff]  }
 0xa6d   : > { %v10939_v32 = vadd.f32 %v10938_v24, %v10937_v25  ;;  %11249 = vmatpush3.bf16.msra.mxu0 %v3806_v62  ;;  %v10964_v12 = vpop.f32.mrb[164].mxu1  ;;  %v12876_v24 = vld [vmem:[%s17824_s6 + $0x20] sm:$0xff]  }
 0xa6e   : > { %11250 = vmatprep.subr.bf16.mxu0 %v3871_v4  ;;  %12086 = vmatpush3.bf16.msra.mxu1 %v12867_v35  ;;  %v10965_v6 = vpop.f32.mrb[165].mxu1 }
 0xa6f   : > { %v15554_v10 = vadd.f32 %v10965_v6, %v10964_v12  ;;  %v10967_v60 = vpop.f32.mrb[166].mxu1 }
 0xa70   : > { %v10968_v14 = vpop.f32.mrb[167].mxu1 }
 0xa71   : > { %v11963_v30 = vpop.f32.mrb[164].mxu0  ;;  %11251 = vmatpush3.bf16.msra.mxu0 %v3807_v48  ;;  %v15556_v52 = vadd.f32 %v10968_v14, %v10967_v60  ;;  %v12877_v48 = vld [vmem:[%s17827_s9 + $0x30] ss:$12 sps:$4 sm:$0xff]  }
 0xa72   : > { %v4101_v41 = vadd.f32 %v11963_v30, %v10924_v47  ;;  %v4092_v28 = vpop.f32.mrb[165].mxu0  ;;  %12151 = vmatprep.subr.bf16.mxu0 %v12868_v2  ;;  %v12878_v30 = vld [vmem:[%s17827_s9 + $0x4c] ss:$12 sps:$4 sm:$0xff]  }
 0xa73   : > { %v4093_v9 = vadd.f32 %v15506_v50, %v4092_v28  ;;  %v11964_v59 = vpop.f32.mrb[166].mxu0  ;;  %v12871_v50 = vld [vmem:[%s17824_s6 + $0x8] sm:$0xff]  }
 0xa74   : > { %v4104_v21 = vadd.f32 %v11964_v59, %v10927_v1  ;;  %v4095_v55 = vpop.f32.mrb[167].mxu0  ;;  %4936 = vmatmul.mubr.bf16.vlgmr.msra.gmra.mrb[236].mxu0 %v12869_v11 }
 0xa75   : > { %v4096_v63 = vadd.f32 %v15510_v45, %v4095_v55  ;;  %4943 = vmatprep.mubr.bf16.mxu0 %v12870_v27  ;;  %v10970_v22 = vpop.f32.mrb[168].mxu1  ;;  %12152 = vmatpush3.bf16.msra.mxu0 %v12868_v2  ;;  %v12880_v27 = vld [vmem:[%s17824_s6 + $0x30] sm:$0xff]  }
 0xa76   : > { %v5034_v47 = vpack.c.bf16 %v4104_v21, %v4101_v41  ;;  %v10971_v44 = vpop.f32.mrb[169].mxu1  ;;  %12153 = vmatprep.subr.bf16.mxu0 %v12871_v50 }
 0xa77   : > { %v5033_v40 = vpack.c.bf16 %v4096_v63, %v4093_v9  ;;  %v10972_v58 = vadd.f32 %v10971_v44, %v10970_v22  ;;  %v10973_v34 = vpop.f32.mrb[170].mxu1 }
 0xa78   : > { %v10974_v57 = vpop.f32.mrb[171].mxu1 }
 0xa79   : > { %v11967_v1 = vpop.f32.mrb[168].mxu0  ;;  %12087 = vmatprep.mubr.msk.bf16.mxu1 %vm835_vm2, %v5033_v40  ;;  %v10975_v45 = vadd.f32 %v10974_v57, %v10973_v34  ;;  %12154 = vmatpush3.bf16.msra.mxu0 %v12871_v50  ;;  %v12881_v40 = vld [vmem:[%s17827_s9 + $0x48] ss:$12 sps:$4 sm:$0xff]  }
 0xa7a   : > { %v4117_v8 = vadd.f32 %v11967_v1, %v10936_v56  ;;  %v4108_v31 = vpop.f32.mrb[169].mxu0  ;;  %12088 = vmatmul.mubr.msk.bf16.vlgmr.msra.gmra.mrb[252].mxu1 %vm835_vm2, %v5034_v47  ;;  %12155 = vmatprep.subr.bf16.mxu0 %v12872_v15 }
 0xa7b   : > { %v4109_v37 = vadd.f32 %v15526_v33, %v4108_v31  ;;  %v11968_v5 = vpop.f32.mrb[170].mxu0  ;;  %v12875_v33 = vld [vmem:[%s17824_s6 + $0x18] sm:$0xff]  }
 0xa7c   : > { %v4120_v19 = vadd.f32 %v11968_v5, %v10939_v32  ;;  %v4111_v23 = vpop.f32.mrb[171].mxu0  ;;  %4944 = vmatmul.mubr.bf16.gmra.mrb[240].mxu0 %v12873_v61 }
 0xa7d   : > { %v4112_v18 = vadd.f32 %v15534_v53, %v4111_v23  ;;  %4951 = vmatprep.mubr.bf16.mxu0 %v12874_v38  ;;  %v10976_v54 = vpop.f32.mrb[172].mxu1  ;;  %12156 = vmatpush3.bf16.msra.mxu0 %v12872_v15 }
 0xa7e   : > { %v5036_v49 = vpack.c.bf16 %v4120_v19, %v4117_v8  ;;  %v10977_v43 = vpop.f32.mrb[173].mxu1  ;;  %12157 = vmatprep.subr.bf16.mxu0 %v12875_v33 }
 0xa7f   : > { %v5035_v29 = vpack.c.bf16 %v4112_v18, %v4109_v37  ;;  %v10978_v0 = vadd.f32 %v10977_v43, %v10976_v54  ;;  %v10979_v7 = vpop.f32.mrb[174].mxu1 }
 0xa80   : > { %v10980_v56 = vpop.f32.mrb[175].mxu1 }
 0xa81   : > { %v11979_v25 = vpop.f32.mrb[172].mxu0  ;;  %12091 = vmatprep.mubr.msk.bf16.mxu1 %vm835_vm2, %v5035_v29  ;;  %v10981_v53 = vadd.f32 %v10980_v56, %v10979_v7  ;;  %12158 = vmatpush3.bf16.msra.mxu0 %v12875_v33 }
 0xa82   : > { %v4231_v62 = vadd.f32 %v11979_v25, %v10972_v58  ;;  %v4222_v35 = vpop.f32.mrb[173].mxu0  ;;  %12092 = vmatmul.mubr.msk.bf16.gmra.mrb[0].mxu1 %vm835_vm2, %v5036_v49  ;;  %12159 = vmatprep.subr.bf16.mxu0 %v12876_v24 }
 0xa83   : > { %v4223_v4 = vadd.f32 %v15554_v10, %v4222_v35  ;;  %v11980_v32 = vpop.f32.mrb[174].mxu0  ;;  %v12879_v10 = vld [vmem:[%s17824_s6 + $0x28] sm:$0xff]  }
 0xa84   : > { %v4234_v12 = vadd.f32 %v11980_v32, %v10975_v45  ;;  %v4225_v6 = vpop.f32.mrb[175].mxu0  ;;  %4952 = vmatmul.mubr.bf16.gmra.mrb[244].mxu0 %v12877_v48  ;;  %v12882_v45 = vld [vmem:[%s17824_s6 + $0x38] sm:$0xff]  }
 0xa85   : > { %v4226_v60 = vadd.f32 %v15556_v52, %v4225_v6  ;;  %v10982_v14 = vpop.f32.mrb[176].mxu1  ;;  %4959 = vmatprep.mubr.bf16.mxu0 %v12878_v30  ;;  %12160 = vmatpush3.bf16.msra.mxu0 %v12876_v24 }
 0xa86   : > { %v5038_v41 = vpack.c.bf16 %v4234_v12, %v4231_v62  ;;  %v10983_v28 = vpop.f32.mrb[177].mxu1  ;;  %12161 = vmatprep.subr.bf16.mxu0 %v12879_v10 }
 0xa87   : > { %v5037_v2 = vpack.c.bf16 %v4226_v60, %v4223_v4  ;;  %v10984_v9 = vadd.f32 %v10983_v28, %v10982_v14  ;;  %v10985_v59 = vpop.f32.mrb[178].mxu1 }
 0xa88   : > { %v10986_v21 = vpop.f32.mrb[179].mxu1 }
 0xa89   : > { %v11983_v55 = vpop.f32.mrb[176].mxu0  ;;  %12095 = vmatprep.mubr.msk.bf16.mxu1 %vm835_vm2, %v5037_v2  ;;  %v10987_v52 = vadd.f32 %v10986_v21, %v10985_v59  ;;  %12162 = vmatpush3.bf16.msra.mxu0 %v12879_v10 }
 0xa8a   : > { %v4247_v11 = vadd.f32 %v11983_v55, %v10984_v9  ;;  %v4238_v63 = vpop.f32.mrb[177].mxu0  ;;  %12096 = vmatmul.mubr.msk.bf16.gmra.mrb[4].mxu1 %vm835_vm2, %v5038_v41  ;;  %12163 = vmatprep.subr.bf16.mxu0 %v12880_v27 }
 0xa8b   : > { %v4239_v22 = vadd.f32 %v10978_v0, %v4238_v63  ;;  %v11984_v47 = vpop.f32.mrb[178].mxu0 }
 0xa8c   : > { %v4250_v44 = vadd.f32 %v11984_v47, %v10987_v52  ;;  %v4241_v50 = vpop.f32.mrb[179].mxu0  ;;  %4960 = vmatmul.mubr.bf16.gmra.mrb[248].mxu0 %v12881_v40 }
 0xa8d   : > { %v4242_v58 = vadd.f32 %v10981_v53, %v4241_v50  ;;  %v11012_v34 = vpop.f32.mrb[180].mxu1  ;;  %12164 = vmatpush3.bf16.msra.mxu0 %v12880_v27 }
 0xa8e   : > { %v5040_v57 = vpack.c.bf16 %v4250_v44, %v4247_v11  ;;  %v11013_v1 = vpop.f32.mrb[181].mxu1  ;;  %12165 = vmatprep.subr.bf16.mxu0 %v12882_v45 }
 0xa8f   : > { %v5039_v8 = vpack.c.bf16 %v4242_v58, %v4239_v22  ;;  %v11014_v31 = vadd.f32 %v11013_v1, %v11012_v34  ;;  %v11015_v15 = vpop.f32.mrb[182].mxu1 }
 0xa90   : > { %v11016_v37 = vpop.f32.mrb[183].mxu1 }
 0xa91   : > { %12099 = vmatprep.mubr.msk.bf16.mxu1 %vm835_vm2, %v5039_v8  ;;  %v11017_v5 = vadd.f32 %v11016_v37, %v11015_v15  ;;  %v11995_v19 = vpop.f32.mrb[180].mxu0  ;;  %12166 = vmatpush3.bf16.msra.mxu0 %v12882_v45 }
 0xa92   : > { %12100 = vmatmul.mubr.msk.bf16.gmra.mrb[8].mxu1 %vm835_vm2, %v5040_v57  ;;  %v4352_v23 = vpop.f32.mrb[181].mxu0 }
 0xa93   : > { %v4353_v61 = vadd.f32 %v11014_v31, %v4352_v23  ;;  %v11996_v18 = vpop.f32.mrb[182].mxu0 }
 0xa94   : > { %v4355_v38 = vpop.f32.mrb[183].mxu0 }
 0xa95   : > { %v11018_v54 = vpop.f32.mrb[184].mxu1  ;;  %v4356_v49 = vadd.f32 %v11017_v5, %v4355_v38 }
 0xa96   : > { %v11019_v43 = vpop.f32.mrb[185].mxu1 }
 0xa97   : > { %v11020_v33 = vadd.f32 %v11019_v43, %v11018_v54  ;;  %v11021_v29 = vpop.f32.mrb[186].mxu1  ;;  %v5041_v0 = vpack.c.bf16 %v4356_v49, %v4353_v61 }
 0xa98   : > { %v11022_v7 = vpop.f32.mrb[187].mxu1 }
 0xa99   : > { %v4361_v56 = vadd.f32 %v11995_v19, %v11020_v33  ;;  %v11023_v25 = vadd.f32 %v11022_v7, %v11021_v29  ;;  %12103 = vmatprep.mubr.msk.bf16.mxu1 %vm835_vm2, %v5041_v0  ;;  %v11999_v53 = vpop.f32.mrb[184].mxu0 }
 0xa9a   : > { %v4368_v62 = vpop.f32.mrb[185].mxu0 }
 0xa9b   : > { %v4364_v35 = vadd.f32 %v11996_v18, %v11023_v25  ;;  %v12000_v24 = vpop.f32.mrb[186].mxu0 }
 0xa9c   : > { %v4371_v4 = vpop.f32.mrb[187].mxu0 }
 0xa9d   : > { %v5042_v32 = vpack.c.bf16 %v4364_v35, %v4361_v56  ;;  %v11024_v12 = vpop.f32.mrb[188].mxu1 }
 0xa9e   : > { %v11025_v6 = vpop.f32.mrb[189].mxu1 }
 0xa9f   : > { %v11026_v48 = vadd.f32 %v11025_v6, %v11024_v12  ;;  %v11027_v60 = vpop.f32.mrb[190].mxu1  ;;  %12104 = vmatmul.mubr.msk.bf16.gmra.mrb[12].mxu1 %vm835_vm2, %v5042_v32 }
 0xaa0   : > { %v11028_v14 = vpop.f32.mrb[191].mxu1 }
 0xaa1   : > { %v11029_v30 = vadd.f32 %v11028_v14, %v11027_v60  ;;  %v4369_v41 = vadd.f32 %v11026_v48, %v4368_v62 }
 0xaa3   : > { %v4372_v28 = vadd.f32 %v11029_v30, %v4371_v4 }
 0xaa5   : > { %v11030_v10 = vpop.f32.mrb[192].mxu1  ;;  %v5043_v2 = vpack.c.bf16 %v4372_v28, %v4369_v41 }
 0xaa6   : > { %v11031_v9 = vpop.f32.mrb[193].mxu1 }
 0xaa7   : > { %v11032_v59 = vadd.f32 %v11031_v9, %v11030_v10  ;;  %v11033_v21 = vpop.f32.mrb[194].mxu1  ;;  %12107 = vmatprep.mubr.msk.bf16.mxu1 %vm835_vm2, %v5043_v2 }
 0xaa8   : > { %v11034_v55 = vpop.f32.mrb[195].mxu1 }
 0xaa9   : > { %v4377_v52 = vadd.f32 %v11999_v53, %v11032_v59  ;;  %v11035_v11 = vadd.f32 %v11034_v55, %v11033_v21 }
 0xaab   : > { %v4380_v63 = vadd.f32 %v12000_v24, %v11035_v11 }
 0xaad   : > { %v5044_v27 = vpack.c.bf16 %v4380_v63, %v4377_v52  ;;  %v12011_v22 = vpop.f32.mrb[196].mxu1 }
 0xaae   : > { %v4482_v47 = vpop.f32.mrb[197].mxu1 }
 0xaaf   : > { %12108 = vmatmul.mubr.msk.bf16.gmra.mrb[16].mxu1 %vm835_vm2, %v5044_v27  ;;  %v12012_v44 = vpop.f32.mrb[198].mxu1 }
 0xab0   : > { %v4485_v50 = vpop.f32.mrb[199].mxu1 }
 0xab1   : > { %v11060_v40 = vpop.f32.mrb[188].mxu0 }
 0xab2   : > { %v11061_v58 = vpop.f32.mrb[189].mxu0 }
 0xab3   : > { %v11063_v34 = vpop.f32.mrb[190].mxu0  ;;  %v11062_v57 = vadd.f32 %v11061_v58, %v11060_v40 }
 0xab4   : > { %v11064_v1 = vpop.f32.mrb[191].mxu0 }
 0xab5   : > { %v4483_v45 = vadd.f32 %v11062_v57, %v4482_v47  ;;  %v11065_v8 = vadd.f32 %v11064_v1, %v11063_v34  ;;  %v12015_v31 = vpop.f32.mrb[200].mxu1 }
 0xab6   : > { %v4498_v15 = vpop.f32.mrb[201].mxu1 }
 0xab7   : > { %v4486_v37 = vadd.f32 %v11065_v8, %v4485_v50  ;;  %v12016_v5 = vpop.f32.mrb[202].mxu1 }
 0xab8   : > { %v4501_v19 = vpop.f32.mrb[203].mxu1 }
 0xab9   : > { %v11066_v23 = vpop.f32.mrb[192].mxu0  ;;  %v5045_v61 = vpack.c.bf16 %v4486_v37, %v4483_v45 }
 0xaba   : > { %v11067_v18 = vpop.f32.mrb[193].mxu0 }
 0xabb   : > { %v11068_v38 = vadd.f32 %v11067_v18, %v11066_v23  ;;  %v11069_v54 = vpop.f32.mrb[194].mxu0  ;;  %12111 = vmatprep.mubr.msk.bf16.mxu1 %vm835_vm2, %v5045_v61 }
 0xabc   : > { %v11070_v49 = vpop.f32.mrb[195].mxu0 }
 0xabd   : > { %v4491_v43 = vadd.f32 %v12011_v22, %v11068_v38  ;;  %v11071_v33 = vadd.f32 %v11070_v49, %v11069_v54 }
 0xabe   : > { %v12027_v29 = vpop.f32.mrb[204].mxu1 }
 0xabf   : > { %v4494_v0 = vadd.f32 %v12012_v44, %v11071_v33  ;;  %v4612_v7 = vpop.f32.mrb[205].mxu1 }
 0xac0   : > { %v12028_v56 = vpop.f32.mrb[206].mxu1 }
 0xac1   : > { %v5046_v25 = vpack.c.bf16 %v4494_v0, %v4491_v43  ;;  %v11072_v53 = vpop.f32.mrb[196].mxu0  ;;  %v4615_v62 = vpop.f32.mrb[207].mxu1 }
 0xac2   : > { %v11073_v35 = vpop.f32.mrb[197].mxu0 }
 0xac3   : > { %12112 = vmatmul.mubr.msk.bf16.gmra.mrb[20].mxu1 %vm835_vm2, %v5046_v25  ;;  %v11075_v24 = vpop.f32.mrb[198].mxu0  ;;  %v11074_v4 = vadd.f32 %v11073_v35, %v11072_v53 }
 0xac4   : > { %v11076_v32 = vpop.f32.mrb[199].mxu0 }
 0xac5   : > { %v4499_v12 = vadd.f32 %v11074_v4, %v4498_v15  ;;  %v11077_v6 = vadd.f32 %v11076_v32, %v11075_v24 }
 0xac6   : > { %v12031_v48 = vpop.f32.mrb[208].mxu1 }
 0xac7   : > { %v4502_v60 = vadd.f32 %v11077_v6, %v4501_v19  ;;  %v4628_v14 = vpop.f32.mrb[209].mxu1 }
 0xac8   : > { %v12032_v30 = vpop.f32.mrb[210].mxu1 }
 0xac9   : > { %v11078_v41 = vpop.f32.mrb[200].mxu0  ;;  %v5047_v28 = vpack.c.bf16 %v4502_v60, %v4499_v12  ;;  %v4631_v10 = vpop.f32.mrb[211].mxu1 }
 0xaca   : > { %v11079_v2 = vpop.f32.mrb[201].mxu0 }
 0xacb   : > { %v11080_v9 = vadd.f32 %v11079_v2, %v11078_v41  ;;  %v11081_v59 = vpop.f32.mrb[202].mxu0  ;;  %12115 = vmatprep.mubr.msk.bf16.mxu1 %vm835_vm2, %v5047_v28 }
 0xacc   : > { %v11082_v21 = vpop.f32.mrb[203].mxu0 }
 0xacd   : > { %v4507_v55 = vadd.f32 %v12015_v31, %v11080_v9  ;;  %v11083_v52 = vadd.f32 %v11082_v21, %v11081_v59 }
 0xacf   : > { %v4510_v11 = vadd.f32 %v12016_v5, %v11083_v52 }
 0xad1   : > { %v5048_v63 = vpack.c.bf16 %v4510_v11, %v4507_v55  ;;  %v11108_v27 = vpop.f32.mrb[204].mxu0 }
 0xad2   : > { %v11109_v22 = vpop.f32.mrb[205].mxu0 }
 0xad3   : > { %12116 = vmatmul.mubr.msk.bf16.gmra.mrb[24].mxu1 %vm835_vm2, %v5048_v63  ;;  %v11111_v47 = vpop.f32.mrb[206].mxu0  ;;  %v11110_v44 = vadd.f32 %v11109_v22, %v11108_v27 }
 0xad4   : > { %v11112_v50 = vpop.f32.mrb[207].mxu0 }
 0xad5   : > { %v4613_v40 = vadd.f32 %v11110_v44, %v4612_v7  ;;  %v11113_v58 = vadd.f32 %v11112_v50, %v11111_v47 }
 0xad7   : > { %v4616_v34 = vadd.f32 %v11113_v58, %v4615_v62 }
 0xad9   : > { %v11114_v57 = vpop.f32.mrb[208].mxu0  ;;  %v5049_v1 = vpack.c.bf16 %v4616_v34, %v4613_v40 }
 0xada   : > { %v11115_v45 = vpop.f32.mrb[209].mxu0 }
 0xadb   : > { %v11116_v8 = vadd.f32 %v11115_v45, %v11114_v57  ;;  %v11117_v15 = vpop.f32.mrb[210].mxu0  ;;  %12119 = vmatprep.mubr.msk.bf16.mxu1 %vm835_vm2, %v5049_v1 }
 0xadc   : > { %v11118_v31 = vpop.f32.mrb[211].mxu0 }
 0xadd   : > { %v4621_v37 = vadd.f32 %v12027_v29, %v11116_v8  ;;  %v11119_v5 = vadd.f32 %v11118_v31, %v11117_v15 }
 0xadf   : > { %v4624_v19 = vadd.f32 %v12028_v56, %v11119_v5 }
 0xae1   : > { %v5050_v23 = vpack.c.bf16 %v4624_v19, %v4621_v37  ;;  %v11120_v61 = vpop.f32.mrb[212].mxu0 }
 0xae2   : > { %v11121_v18 = vpop.f32.mrb[213].mxu0 }
 0xae3   : > { %12120 = vmatmul.mubr.msk.bf16.gmra.mrb[28].mxu1 %vm835_vm2, %v5050_v23  ;;  %v11123_v38 = vpop.f32.mrb[214].mxu0  ;;  %v11122_v54 = vadd.f32 %v11121_v18, %v11120_v61 }
 0xae4   : > { %v11124_v49 = vpop.f32.mrb[215].mxu0 }
 0xae5   : > { %v4629_v43 = vadd.f32 %v11122_v54, %v4628_v14  ;;  %v11125_v33 = vadd.f32 %v11124_v49, %v11123_v38 }
 0xae7   : > { %v4632_v0 = vadd.f32 %v11125_v33, %v4631_v10  ;;  %v11156_v7 = vpop.f32.mrb[212].mxu1 }
 0xae8   : > { %v11157_v25 = vpop.f32.mrb[213].mxu1 }
 0xae9   : > { %v11126_v53 = vpop.f32.mrb[216].mxu0  ;;  %v5051_v62 = vpack.c.bf16 %v4632_v0, %v4629_v43  ;;  %v11158_v35 = vadd.f32 %v11157_v25, %v11156_v7  ;;  %v11159_v24 = vpop.f32.mrb[214].mxu1 }
 0xaea   : > { %v11127_v29 = vpop.f32.mrb[217].mxu0  ;;  %v11160_v4 = vpop.f32.mrb[215].mxu1 }
 0xaeb   : > { %v11128_v56 = vadd.f32 %v11127_v29, %v11126_v53  ;;  %v11129_v32 = vpop.f32.mrb[218].mxu0  ;;  %12123 = vmatprep.mubr.msk.bf16.mxu1 %vm835_vm2, %v5051_v62  ;;  %v11161_v12 = vadd.f32 %v11160_v4, %v11159_v24 }
 0xaec   : > { %v11130_v6 = vpop.f32.mrb[219].mxu0 }
 0xaed   : > { %v4637_v60 = vadd.f32 %v12031_v48, %v11128_v56  ;;  %v11131_v41 = vadd.f32 %v11130_v6, %v11129_v32 }
 0xaef   : > { %v4640_v28 = vadd.f32 %v12032_v30, %v11131_v41  ;;  %v11162_v14 = vpop.f32.mrb[216].mxu1 }
 0xaf0   : > { %v11163_v2 = vpop.f32.mrb[217].mxu1 }
 0xaf1   : > { %v5052_v10 = vpack.c.bf16 %v4640_v28, %v4637_v60  ;;  %v11164_v9 = vadd.f32 %v11163_v2, %v11162_v14  ;;  %v12043_v59 = vpop.f32.mrb[220].mxu0  ;;  %v11165_v21 = vpop.f32.mrb[218].mxu1 }
 0xaf2   : > { %v4742_v55 = vpop.f32.mrb[221].mxu0  ;;  %v11166_v52 = vpop.f32.mrb[219].mxu1 }
 0xaf3   : > { %12124 = vmatmul.mubr.msk.bf16.gmra.mrb[32].mxu1 %vm835_vm2, %v5052_v10  ;;  %v4751_v11 = vadd.f32 %v12043_v59, %v11164_v9  ;;  %v4743_v63 = vadd.f32 %v11158_v35, %v4742_v55  ;;  %v11167_v27 = vadd.f32 %v11166_v52, %v11165_v21  ;;  %v12044_v22 = vpop.f32.mrb[222].mxu0 }
 0xaf4   : > { %v4745_v47 = vpop.f32.mrb[223].mxu0 }
 0xaf5   : > { %v4754_v44 = vadd.f32 %v12044_v22, %v11167_v27  ;;  %v4746_v50 = vadd.f32 %v11161_v12, %v4745_v47 }
 0xaf7   : > { %v5054_v48 = vpack.c.bf16 %v4754_v44, %v4751_v11  ;;  %v5053_v40 = vpack.c.bf16 %v4746_v50, %v4743_v63  ;;  %v11168_v30 = vpop.f32.mrb[220].mxu1 }
 0xaf8   : > { %v11169_v58 = vpop.f32.mrb[221].mxu1 }
 0xaf9   : > { %v11170_v34 = vadd.f32 %v11169_v58, %v11168_v30  ;;  %v11171_v57 = vpop.f32.mrb[222].mxu1  ;;  %12127 = vmatprep.mubr.msk.bf16.mxu1 %vm835_vm2, %v5053_v40  ;;  %v12047_v1 = vpop.f32.mrb[224].mxu0 }
 0xafa   : > { %v11172_v45 = vpop.f32.mrb[223].mxu1  ;;  %v4758_v8 = vpop.f32.mrb[225].mxu0 }
 0xafb   : > { %v11173_v15 = vadd.f32 %v11172_v45, %v11171_v57  ;;  %12128 = vmatmul.mubr.msk.bf16.gmra.mrb[36].mxu1 %vm835_vm2, %v5054_v48  ;;  %v4759_v31 = vadd.f32 %v11170_v34, %v4758_v8  ;;  %v12048_v37 = vpop.f32.mrb[226].mxu0 }
 0xafc   : > { %v4761_v5 = vpop.f32.mrb[227].mxu0 }
 0xafd   : > { %v4762_v19 = vadd.f32 %v11173_v15, %v4761_v5 }
 0xaff   : > { %v11174_v23 = vpop.f32.mrb[224].mxu1  ;;  %v5055_v61 = vpack.c.bf16 %v4762_v19, %v4759_v31 }
 0xb00   : > { %v11175_v18 = vpop.f32.mrb[225].mxu1 }
 0xb01   : > { %v11176_v38 = vadd.f32 %v11175_v18, %v11174_v23  ;;  %v11177_v54 = vpop.f32.mrb[226].mxu1  ;;  %12131 = vmatprep.mubr.msk.bf16.mxu1 %vm835_vm2, %v5055_v61  ;;  %v12059_v49 = vpop.f32.mrb[228].mxu0 }
 0xb02   : > { %v11178_v43 = vpop.f32.mrb[227].mxu1  ;;  %v4872_v33 = vpop.f32.mrb[229].mxu0 }
 0xb03   : > { %v4767_v0 = vadd.f32 %v12047_v1, %v11176_v38  ;;  %v11179_v7 = vadd.f32 %v11178_v43, %v11177_v54  ;;  %v12060_v25 = vpop.f32.mrb[230].mxu0 }
 0xb04   : > { %v4875_v53 = vpop.f32.mrb[231].mxu0 }
 0xb05   : > { %v4770_v62 = vadd.f32 %v12048_v37, %v11179_v7 }
 0xb07   : > { %v5056_v35 = vpack.c.bf16 %v4770_v62, %v4767_v0  ;;  %v11204_v24 = vpop.f32.mrb[228].mxu1 }
 0xb08   : > { %v11205_v29 = vpop.f32.mrb[229].mxu1 }
 0xb09   : > { %12132 = vmatmul.mubr.msk.bf16.gmra.mrb[40].mxu1 %vm835_vm2, %v5056_v35  ;;  %v11206_v4 = vadd.f32 %v11205_v29, %v11204_v24  ;;  %v11207_v56 = vpop.f32.mrb[230].mxu1  ;;  %v12063_v32 = vpop.f32.mrb[232].mxu0 }
 0xb0a   : > { %v11208_v12 = vpop.f32.mrb[231].mxu1  ;;  %v4888_v6 = vpop.f32.mrb[233].mxu0 }
 0xb0b   : > { %v11209_v60 = vadd.f32 %v11208_v12, %v11207_v56  ;;  %v4873_v41 = vadd.f32 %v11206_v4, %v4872_v33  ;;  %v12064_v28 = vpop.f32.mrb[234].mxu0 }
 0xb0c   : > { %v4891_v14 = vpop.f32.mrb[235].mxu0 }
 0xb0d   : > { %v4876_v2 = vadd.f32 %v11209_v60, %v4875_v53 }
 0xb0f   : > { %v11210_v10 = vpop.f32.mrb[232].mxu1  ;;  %v5057_v9 = vpack.c.bf16 %v4876_v2, %v4873_v41 }
 0xb10   : > { %v11211_v59 = vpop.f32.mrb[233].mxu1 }
 0xb11   : > { %v11212_v21 = vadd.f32 %v11211_v59, %v11210_v10  ;;  %v11213_v55 = vpop.f32.mrb[234].mxu1  ;;  %12135 = vmatprep.mubr.msk.bf16.mxu1 %vm835_vm2, %v5057_v9 }
 0xb12   : > { %v11214_v52 = vpop.f32.mrb[235].mxu1 }
 0xb13   : > { %v4881_v11 = vadd.f32 %v12059_v49, %v11212_v21  ;;  %v11215_v63 = vadd.f32 %v11214_v52, %v11213_v55 }
 0xb15   : > { %v4884_v27 = vadd.f32 %v12060_v25, %v11215_v63 }
 0xb17   : > { %v5058_v22 = vpack.c.bf16 %v4884_v27, %v4881_v11  ;;  %v11216_v47 = vpop.f32.mrb[236].mxu1 }
 0xb18   : > { %v11217_v44 = vpop.f32.mrb[237].mxu1 }
 0xb19   : > { %v11218_v50 = vadd.f32 %v11217_v44, %v11216_v47  ;;  %v11219_v48 = vpop.f32.mrb[238].mxu1  ;;  %12136 = vmatmul.mubr.msk.bf16.gmra.mrb[44].mxu1 %vm835_vm2, %v5058_v22 }
 0xb1a   : > { %v11220_v40 = vpop.f32.mrb[239].mxu1 }
 0xb1b   : > { %v11221_v30 = vadd.f32 %v11220_v40, %v11219_v48  ;;  %v4889_v58 = vadd.f32 %v11218_v50, %v4888_v6 }
 0xb1d   : > { %v4892_v34 = vadd.f32 %v11221_v30, %v4891_v14 }
 0xb1f   : > { %v11222_v57 = vpop.f32.mrb[240].mxu1  ;;  %v5059_v1 = vpack.c.bf16 %v4892_v34, %v4889_v58 }
 0xb20   : > { %v11223_v45 = vpop.f32.mrb[241].mxu1 }
 0xb21   : > { %v11224_v8 = vadd.f32 %v11223_v45, %v11222_v57  ;;  %v11225_v15 = vpop.f32.mrb[242].mxu1  ;;  %12139 = vmatprep.mubr.msk.bf16.mxu1 %vm835_vm2, %v5059_v1 }
 0xb22   : > { %v11226_v31 = vpop.f32.mrb[243].mxu1 }
 0xb23   : > { %v4897_v37 = vadd.f32 %v12063_v32, %v11224_v8  ;;  %v11227_v5 = vadd.f32 %v11226_v31, %v11225_v15 }
 0xb25   : > { %v4900_v19 = vadd.f32 %v12064_v28, %v11227_v5 }
 0xb27   : > { %v5060_v23 = vpack.c.bf16 %v4900_v19, %v4897_v37 }
 0xb29   : > { %12140 = vmatmul.mubr.msk.bf16.gmra.mrb[48].mxu1 %vm835_vm2, %v5060_v23 }
 0xb37   : > { %v12075_v61 = vpop.f32.mrb[244].mxu1 }
 0xb38   : > { %v5002_v18 = vpop.f32.mrb[245].mxu1 }
 0xb39   : > { %v12076_v38 = vpop.f32.mrb[246].mxu1 }
 0xb3a   : > { %v5005_v54 = vpop.f32.mrb[247].mxu1 }
 0xb3f   : > { %v15637_v49 = vpop.f32.mrb[248].mxu1 }
 0xb40   : > { %v15639_v43 = vpop.f32.mrb[249].mxu1 }
 0xb41   : > { %v15641_v33 = vpop.f32.mrb[250].mxu1 }
 0xb42   : > { %v15643_v0 = vpop.f32.mrb[251].mxu1 }
 0xb47   : > { %v11252_v7 = vpop.f32.mrb[236].mxu0 }
 0xb48   : > { %v11253_v25 = vpop.f32.mrb[237].mxu0 }
 0xb49   : > { %v11254_v53 = vadd.f32 %v11253_v25, %v11252_v7  ;;  %v11255_v62 = vpop.f32.mrb[238].mxu0 }
 0xb4a   : > { %v11256_v35 = vpop.f32.mrb[239].mxu0 }
 0xb4b   : > { %v5003_v24 = vadd.f32 %v11254_v53, %v5002_v18  ;;  %v11257_v29 = vadd.f32 %v11256_v35, %v11255_v62 }
 0xb4d   : > { %v5006_v4 = vadd.f32 %v11257_v29, %v5005_v54  ;;  %v12089_v56 = vpop.f32.mrb[252].mxu1 }
 0xb4e   : > { %vm5452_vm15 = vcmp.gt.f32.partialorder %v12089_v56, 0.0  ;;  %v5516_v32 = vmul.f32 0.1, %v12089_v56  ;;  %v5195_v12 = vpop.f32.mrb[253].mxu1 }
 0xb4f   : > { %v5061_v6 = vpack.c.bf16 %v5006_v4, %v5003_v24  ;;  %vm5450_vm0 = vcmp.gt.f32.partialorder %v5195_v12, 0.0  ;;  %v5514_v60 = vmul.f32 0.1, %v5195_v12  ;;  %v11258_v41 = vpop.f32.mrb[240].mxu0  ;;  %v12090_v28 = vpop.f32.mrb[254].mxu1 }
 0xb50   : > { %v5580_v14 = vsel %vm5452_vm15, %v12089_v56, %v5516_v32  ;;  %vm5453_vm3 = vcmp.gt.f32.partialorder %v12090_v28, 0.0  ;;  %v5517_v2 = vmul.f32 0.1, %v12090_v28  ;;  %v11259_v10 = vpop.f32.mrb[241].mxu0  ;;  %v5198_v9 = vpop.f32.mrb[255].mxu1 }
 0xb51   : > { %v5578_v59 = vsel %vm5450_vm0, %v5195_v12, %v5514_v60  ;;  %v11260_v21 = vadd.f32 %v11259_v10, %v11258_v41  ;;  %vm5451_vm4 = vcmp.gt.f32.partialorder %v5198_v9, 0.0  ;;  %v5515_v55 = vmul.f32 0.1, %v5198_v9  ;;  %v11261_v52 = vpop.f32.mrb[242].mxu0  ;;  %12143 = vmatprep.mubr.msk.bf16.mxu1 %vm835_vm2, %v5061_v6 }
 0xb52   : > { %v5581_v11 = vsel %vm5453_vm3, %v12090_v28, %v5517_v2  ;;  %v11262_v63 = vpop.f32.mrb[243].mxu0 }
 0xb53   : > { %v5643_v27 = vpack.c.bf16 %v5581_v11, %v5580_v14  ;;  %v5011_v22 = vadd.f32 %v12075_v61, %v11260_v21  ;;  %v5579_v47 = vsel %vm5451_vm4, %v5198_v9, %v5515_v55  ;;  %v11263_v44 = vadd.f32 %v11262_v63, %v11261_v52 }
 0xb54   : > { %v5642_v50 = vpack.c.bf16 %v5579_v47, %v5578_v59 }
 0xb55   : > { %v5014_v48 = vadd.f32 %v12076_v38, %v11263_v44  ;;  %v12093_v40 = vpop.f32.mrb[0].mxu1 }
 0xb56   : > { %vm5456_vm5 = vcmp.gt.f32.partialorder %v12093_v40, 0.0  ;;  %v5520_v30 = vmul.f32 0.1, %v12093_v40  ;;  %v5211_v58 = vpop.f32.mrb[1].mxu1  ;;  %12167 = vmatprep.mubr.bf16.mxu0 %v5642_v50 }
 0xb57   : > { %v5062_v34 = vpack.c.bf16 %v5014_v48, %v5011_v22  ;;  %vm5454_vm6 = vcmp.gt.f32.partialorder %v5211_v58, 0.0  ;;  %v5518_v57 = vmul.f32 0.1, %v5211_v58  ;;  %v11264_v1 = vpop.f32.mrb[244].mxu0  ;;  %v12094_v45 = vpop.f32.mrb[2].mxu1  ;;  %12168 = vmatmul.mubr.bf16.vlgmr.msra.gmra.mrb[252].mxu0 %v5643_v27 }
 0xb58   : > { %v5584_v8 = vsel %vm5456_vm5, %v12093_v40, %v5520_v30  ;;  %vm5457_vm7 = vcmp.gt.f32.partialorder %v12094_v45, 0.0  ;;  %v5521_v15 = vmul.f32 0.1, %v12094_v45  ;;  %v11265_v31 = vpop.f32.mrb[245].mxu0  ;;  %v5214_v37 = vpop.f32.mrb[3].mxu1 }
 0xb59   : > { %v5582_v5 = vsel %vm5454_vm6, %v5211_v58, %v5518_v57  ;;  %v11266_v19 = vadd.f32 %v11265_v31, %v11264_v1  ;;  %vm5455_vm8 = vcmp.gt.f32.partialorder %v5214_v37, 0.0  ;;  %v5519_v23 = vmul.f32 0.1, %v5214_v37  ;;  %v11267_v61 = vpop.f32.mrb[246].mxu0  ;;  %12144 = vmatmul.mubr.msk.bf16.gmra.mrb[52].mxu1 %vm835_vm2, %v5062_v34 }
 0xb5a   : > { %v5585_v18 = vsel %vm5457_vm7, %v12094_v45, %v5521_v15  ;;  %v11268_v38 = vpop.f32.mrb[247].mxu0 }
 0xb5b   : > { %v5645_v54 = vpack.c.bf16 %v5585_v18, %v5584_v8  ;;  %v5019_v7 = vadd.f32 %v11266_v19, %v15639_v43  ;;  %v5583_v25 = vsel %vm5455_vm8, %v5214_v37, %v5519_v23  ;;  %v11269_v53 = vadd.f32 %v11268_v38, %v11267_v61 }
 0xb5c   : > { %v5644_v62 = vpack.c.bf16 %v5583_v25, %v5582_v5 }
 0xb5d   : > { %v5022_v35 = vadd.f32 %v11269_v53, %v15643_v0  ;;  %v12097_v24 = vpop.f32.mrb[4].mxu1 }
 0xb5e   : > { %vm5460_vm9 = vcmp.gt.f32.partialorder %v12097_v24, 0.0  ;;  %v5524_v29 = vmul.f32 0.1, %v12097_v24  ;;  %v5227_v4 = vpop.f32.mrb[5].mxu1  ;;  %12171 = vmatprep.mubr.bf16.mxu0 %v5644_v62 }
 0xb5f   : > { %v5063_v56 = vpack.c.bf16 %v5022_v35, %v5019_v7  ;;  %vm5458_vm10 = vcmp.gt.f32.partialorder %v5227_v4, 0.0  ;;  %v5522_v32 = vmul.f32 0.1, %v5227_v4  ;;  %v11270_v12 = vpop.f32.mrb[248].mxu0  ;;  %v12098_v6 = vpop.f32.mrb[6].mxu1  ;;  %12172 = vmatmul.mubr.bf16.gmra.mrb[0].mxu0 %v5645_v54 }
 0xb60   : > { %v5588_v60 = vsel %vm5460_vm9, %v12097_v24, %v5524_v29  ;;  %vm5461_vm11 = vcmp.gt.f32.partialorder %v12098_v6, 0.0  ;;  %v5525_v41 = vmul.f32 0.1, %v12098_v6  ;;  %v11271_v43 = vpop.f32.mrb[249].mxu0  ;;  %v5230_v28 = vpop.f32.mrb[7].mxu1 }
 0xb61   : > { %v5586_v14 = vsel %vm5458_vm10, %v5227_v4, %v5522_v32  ;;  %v11272_v2 = vadd.f32 %v11271_v43, %v11270_v12  ;;  %vm5459_vm12 = vcmp.gt.f32.partialorder %v5230_v28, 0.0  ;;  %v5523_v0 = vmul.f32 0.1, %v5230_v28  ;;  %v11273_v10 = vpop.f32.mrb[250].mxu0  ;;  %12147 = vmatprep.mubr.msk.bf16.mxu1 %vm835_vm2, %v5063_v56 }
 0xb62   : > { %v5589_v9 = vsel %vm5461_vm11, %v12098_v6, %v5525_v41  ;;  %v11274_v59 = vpop.f32.mrb[251].mxu0 }
 0xb63   : > { %v5647_v21 = vpack.c.bf16 %v5589_v9, %v5588_v60  ;;  %v5027_v55 = vadd.f32 %v15637_v49, %v11272_v2  ;;  %v5587_v52 = vsel %vm5459_vm12, %v5230_v28, %v5523_v0  ;;  %v11275_v11 = vadd.f32 %v11274_v59, %v11273_v10 }
 0xb64   : > { %v5646_v63 = vpack.c.bf16 %v5587_v52, %v5586_v14 }
 0xb65   : > { %v5030_v27 = vadd.f32 %v15641_v33, %v11275_v11  ;;  %v12101_v22 = vpop.f32.mrb[8].mxu1 }
 0xb66   : > { %vm5464_vm15 = vcmp.gt.f32.partialorder %v12101_v22, 0.0  ;;  %v5528_v47 = vmul.f32 0.1, %v12101_v22  ;;  %v5243_v44 = vpop.f32.mrb[9].mxu1  ;;  %12175 = vmatprep.mubr.bf16.mxu0 %v5646_v63 }
 0xb67   : > { %v5064_v50 = vpack.c.bf16 %v5030_v27, %v5027_v55  ;;  %vm5462_vm0 = vcmp.gt.f32.partialorder %v5243_v44, 0.0  ;;  %v5526_v48 = vmul.f32 0.1, %v5243_v44  ;;  %v12102_v40 = vpop.f32.mrb[10].mxu1  ;;  %12176 = vmatmul.mubr.bf16.gmra.mrb[4].mxu0 %v5647_v21 }
 0xb68   : > { %v5592_v30 = vsel %vm5464_vm15, %v12101_v22, %v5528_v47  ;;  %vm5465_vm3 = vcmp.gt.f32.partialorder %v12102_v40, 0.0  ;;  %v5529_v58 = vmul.f32 0.1, %v12102_v40  ;;  %v5246_v34 = vpop.f32.mrb[11].mxu1 }
 0xb69   : > { %v5590_v49 = vsel %vm5462_vm0, %v5243_v44, %v5526_v48  ;;  %vm5463_vm4 = vcmp.gt.f32.partialorder %v5246_v34, 0.0  ;;  %v5527_v57 = vmul.f32 0.1, %v5246_v34  ;;  %12148 = vmatmul.mubr.msk.bf16.gmra.mrb[56].mxu1 %vm835_vm2, %v5064_v50 }
 0xb6a   : > { %v5593_v33 = vsel %vm5465_vm3, %v12102_v40, %v5529_v58 }
 0xb6b   : > { %v5649_v1 = vpack.c.bf16 %v5593_v33, %v5592_v30  ;;  %v5591_v45 = vsel %vm5463_vm4, %v5246_v34, %v5527_v57 }
 0xb6c   : > { %v5648_v8 = vpack.c.bf16 %v5591_v45, %v5590_v49 }
 0xb6e   : > { %12179 = vmatprep.mubr.bf16.mxu0 %v5648_v8 }
 0xb6f   : > { %12180 = vmatmul.mubr.bf16.gmra.mrb[8].mxu0 %v5649_v1 }
 0xb72   : > { %v12105_v15 = vpop.f32.mrb[12].mxu1 }
 0xb73   : > { %vm5468_vm5 = vcmp.gt.f32.partialorder %v12105_v15, 0.0  ;;  %v5532_v31 = vmul.f32 0.1, %v12105_v15  ;;  %v5259_v37 = vpop.f32.mrb[13].mxu1 }
 0xb74   : > { %vm5466_vm6 = vcmp.gt.f32.partialorder %v5259_v37, 0.0  ;;  %v5530_v5 = vmul.f32 0.1, %v5259_v37  ;;  %v12106_v19 = vpop.f32.mrb[14].mxu1 }
 0xb75   : > { %v5596_v23 = vsel %vm5468_vm5, %v12105_v15, %v5532_v31  ;;  %vm5469_vm7 = vcmp.gt.f32.partialorder %v12106_v19, 0.0  ;;  %v5533_v61 = vmul.f32 0.1, %v12106_v19  ;;  %v5262_v18 = vpop.f32.mrb[15].mxu1 }
 0xb76   : > { %v5594_v38 = vsel %vm5466_vm6, %v5259_v37, %v5530_v5  ;;  %vm5467_vm8 = vcmp.gt.f32.partialorder %v5262_v18, 0.0  ;;  %v5531_v54 = vmul.f32 0.1, %v5262_v18 }
 0xb77   : > { %v5597_v7 = vsel %vm5469_vm7, %v12106_v19, %v5533_v61 }
 0xb78   : > { %v5651_v25 = vpack.c.bf16 %v5597_v7, %v5596_v23  ;;  %v5595_v53 = vsel %vm5467_vm8, %v5262_v18, %v5531_v54 }
 0xb79   : > { %v5650_v62 = vpack.c.bf16 %v5595_v53, %v5594_v38 }
 0xb7b   : > { %12183 = vmatprep.mubr.bf16.mxu0 %v5650_v62 }
 0xb7c   : > { %12184 = vmatmul.mubr.bf16.gmra.mrb[12].mxu0 %v5651_v25 }
 0xb82   : > { %v12109_v35 = vpop.f32.mrb[16].mxu1 }
 0xb83   : > { %vm5472_vm9 = vcmp.gt.f32.partialorder %v12109_v35, 0.0  ;;  %v5536_v24 = vmul.f32 0.1, %v12109_v35  ;;  %v5275_v29 = vpop.f32.mrb[17].mxu1 }
 0xb84   : > { %vm5470_vm10 = vcmp.gt.f32.partialorder %v5275_v29, 0.0  ;;  %v5534_v4 = vmul.f32 0.1, %v5275_v29  ;;  %v12110_v56 = vpop.f32.mrb[18].mxu1 }
 0xb85   : > { %v5600_v32 = vsel %vm5472_vm9, %v12109_v35, %v5536_v24  ;;  %vm5473_vm11 = vcmp.gt.f32.partialorder %v12110_v56, 0.0  ;;  %v5537_v12 = vmul.f32 0.1, %v12110_v56  ;;  %v5278_v6 = vpop.f32.mrb[19].mxu1 }
 0xb86   : > { %v5598_v60 = vsel %vm5470_vm10, %v5275_v29, %v5534_v4  ;;  %vm5471_vm12 = vcmp.gt.f32.partialorder %v5278_v6, 0.0  ;;  %v5535_v41 = vmul.f32 0.1, %v5278_v6 }
 0xb87   : > { %v5601_v43 = vsel %vm5473_vm11, %v12110_v56, %v5537_v12 }
 0xb88   : > { %v5653_v28 = vpack.c.bf16 %v5601_v43, %v5600_v32  ;;  %v5599_v14 = vsel %vm5471_vm12, %v5278_v6, %v5535_v41 }
 0xb89   : > { %v5652_v2 = vpack.c.bf16 %v5599_v14, %v5598_v60 }
 0xb8b   : > { %12187 = vmatprep.mubr.bf16.mxu0 %v5652_v2 }
 0xb8c   : > { %12188 = vmatmul.mubr.bf16.gmra.mrb[16].mxu0 %v5653_v28 }
 0xb96   : > { %v12113_v0 = vpop.f32.mrb[20].mxu1 }
 0xb97   : > { %vm5476_vm15 = vcmp.gt.f32.partialorder %v12113_v0, 0.0  ;;  %v5540_v10 = vmul.f32 0.1, %v12113_v0  ;;  %v5291_v9 = vpop.f32.mrb[21].mxu1 }
 0xb98   : > { %vm5474_vm0 = vcmp.gt.f32.partialorder %v5291_v9, 0.0  ;;  %v5538_v59 = vmul.f32 0.1, %v5291_v9  ;;  %v12114_v21 = vpop.f32.mrb[22].mxu1 }
 0xb99   : > { %v5604_v55 = vsel %vm5476_vm15, %v12113_v0, %v5540_v10  ;;  %vm5477_vm3 = vcmp.gt.f32.partialorder %v12114_v21, 0.0  ;;  %v5541_v52 = vmul.f32 0.1, %v12114_v21  ;;  %v5294_v11 = vpop.f32.mrb[23].mxu1 }
 0xb9a   : > { %v5602_v63 = vsel %vm5474_vm0, %v5291_v9, %v5538_v59  ;;  %vm5475_vm4 = vcmp.gt.f32.partialorder %v5294_v11, 0.0  ;;  %v5539_v27 = vmul.f32 0.1, %v5294_v11 }
 0xb9b   : > { %v5605_v22 = vsel %vm5477_vm3, %v12114_v21, %v5541_v52 }
 0xb9c   : > { %v5655_v47 = vpack.c.bf16 %v5605_v22, %v5604_v55  ;;  %v5603_v44 = vsel %vm5475_vm4, %v5294_v11, %v5539_v27 }
 0xb9d   : > { %v5654_v50 = vpack.c.bf16 %v5603_v44, %v5602_v63 }
 0xb9f   : > { %12191 = vmatprep.mubr.bf16.mxu0 %v5654_v50  ;;  %v15656_v50 = vld [vmem:[%s17828_s10 + $0x4] ss:$12 sps:$4 sm:$0xff]  }
 0xba0   : > { %12192 = vmatmul.mubr.bf16.gmra.mrb[20].mxu0 %v5655_v47  ;;  %6231 = vmatprep.mubr.bf16.mxu1 %v15656_v50 }
 0xba6   : > { %v12117_v48 = vpop.f32.mrb[24].mxu1 }
 0xba7   : > { %vm5480_vm5 = vcmp.gt.f32.partialorder %v12117_v48, 0.0  ;;  %v5544_v40 = vmul.f32 0.1, %v12117_v48  ;;  %v5307_v30 = vpop.f32.mrb[25].mxu1 }
 0xba8   : > { %vm5478_vm6 = vcmp.gt.f32.partialorder %v5307_v30, 0.0  ;;  %v5542_v58 = vmul.f32 0.1, %v5307_v30  ;;  %v12118_v34 = vpop.f32.mrb[26].mxu1 }
 0xba9   : > { %v5608_v49 = vsel %vm5480_vm5, %v12117_v48, %v5544_v40  ;;  %vm5481_vm7 = vcmp.gt.f32.partialorder %v12118_v34, 0.0  ;;  %v5545_v57 = vmul.f32 0.1, %v12118_v34  ;;  %v5310_v33 = vpop.f32.mrb[27].mxu1 }
 0xbaa   : > { %v5606_v1 = vsel %vm5478_vm6, %v5307_v30, %v5542_v58  ;;  %vm5479_vm8 = vcmp.gt.f32.partialorder %v5310_v33, 0.0  ;;  %v5543_v45 = vmul.f32 0.1, %v5310_v33 }
 0xbab   : > { %v5609_v8 = vsel %vm5481_vm7, %v12118_v34, %v5545_v57 }
 0xbac   : > { %v5657_v15 = vpack.c.bf16 %v5609_v8, %v5608_v49  ;;  %v5607_v31 = vsel %vm5479_vm8, %v5310_v33, %v5543_v45 }
 0xbad   : > { %v5656_v37 = vpack.c.bf16 %v5607_v31, %v5606_v1 }
 0xbaf   : > { %12195 = vmatprep.mubr.bf16.mxu0 %v5656_v37 }
 0xbb0   : > { %12196 = vmatmul.mubr.bf16.gmra.mrb[24].mxu0 %v5657_v15 }
 0xbb6   : > { %v12121_v5 = vpop.f32.mrb[28].mxu1 }
 0xbb7   : > { %vm5484_vm9 = vcmp.gt.f32.partialorder %v12121_v5, 0.0  ;;  %v5548_v19 = vmul.f32 0.1, %v12121_v5  ;;  %v5323_v23 = vpop.f32.mrb[29].mxu1 }
 0xbb8   : > { %vm5482_vm10 = vcmp.gt.f32.partialorder %v5323_v23, 0.0  ;;  %v5546_v61 = vmul.f32 0.1, %v5323_v23  ;;  %v12122_v18 = vpop.f32.mrb[30].mxu1 }
 0xbb9   : > { %v5612_v38 = vsel %vm5484_vm9, %v12121_v5, %v5548_v19  ;;  %vm5485_vm11 = vcmp.gt.f32.partialorder %v12122_v18, 0.0  ;;  %v5549_v54 = vmul.f32 0.1, %v12122_v18  ;;  %v5326_v7 = vpop.f32.mrb[31].mxu1 }
 0xbba   : > { %v5610_v25 = vsel %vm5482_vm10, %v5323_v23, %v5546_v61  ;;  %vm5483_vm12 = vcmp.gt.f32.partialorder %v5326_v7, 0.0  ;;  %v5547_v53 = vmul.f32 0.1, %v5326_v7 }
 0xbbb   : > { %v5613_v62 = vsel %vm5485_vm11, %v12122_v18, %v5549_v54 }
 0xbbc   : > { %v5659_v35 = vpack.c.bf16 %v5613_v62, %v5612_v38  ;;  %v5611_v24 = vsel %vm5483_vm12, %v5326_v7, %v5547_v53 }
 0xbbd   : > { %v5658_v29 = vpack.c.bf16 %v5611_v24, %v5610_v25 }
 0xbbf   : > { %12199 = vmatprep.mubr.bf16.mxu0 %v5658_v29 }
 0xbc0   : > { %12200 = vmatmul.mubr.bf16.gmra.mrb[28].mxu0 %v5659_v35 }
 0xbc6   : > { %v12125_v4 = vpop.f32.mrb[32].mxu1 }
 0xbc7   : > { %vm5488_vm15 = vcmp.gt.f32.partialorder %v12125_v4, 0.0  ;;  %v5552_v56 = vmul.f32 0.1, %v12125_v4  ;;  %v5339_v32 = vpop.f32.mrb[33].mxu1 }
 0xbc8   : > { %vm5486_vm0 = vcmp.gt.f32.partialorder %v5339_v32, 0.0  ;;  %v5550_v12 = vmul.f32 0.1, %v5339_v32  ;;  %v12126_v6 = vpop.f32.mrb[34].mxu1 }
 0xbc9   : > { %v5616_v60 = vsel %vm5488_vm15, %v12125_v4, %v5552_v56  ;;  %vm5489_vm3 = vcmp.gt.f32.partialorder %v12126_v6, 0.0  ;;  %v5553_v41 = vmul.f32 0.1, %v12126_v6  ;;  %v5342_v43 = vpop.f32.mrb[35].mxu1 }
 0xbca   : > { %v5614_v28 = vsel %vm5486_vm0, %v5339_v32, %v5550_v12  ;;  %vm5487_vm4 = vcmp.gt.f32.partialorder %v5342_v43, 0.0  ;;  %v5551_v14 = vmul.f32 0.1, %v5342_v43 }
 0xbcb   : > { %v5617_v2 = vsel %vm5489_vm3, %v12126_v6, %v5553_v41 }
 0xbcc   : > { %v5661_v0 = vpack.c.bf16 %v5617_v2, %v5616_v60  ;;  %v5615_v10 = vsel %vm5487_vm4, %v5342_v43, %v5551_v14 }
 0xbcd   : > { %v5660_v9 = vpack.c.bf16 %v5615_v10, %v5614_v28 }
 0xbce   : > { %v12129_v59 = vpop.f32.mrb[36].mxu1 }
 0xbcf   : > { %12203 = vmatprep.mubr.bf16.mxu0 %v5660_v9  ;;  %vm5492_vm5 = vcmp.gt.f32.partialorder %v12129_v59, 0.0  ;;  %v5556_v21 = vmul.f32 0.1, %v12129_v59  ;;  %v5355_v55 = vpop.f32.mrb[37].mxu1 }
 0xbd0   : > { %12204 = vmatmul.mubr.bf16.gmra.mrb[32].mxu0 %v5661_v0  ;;  %vm5490_vm6 = vcmp.gt.f32.partialorder %v5355_v55, 0.0  ;;  %v5554_v52 = vmul.f32 0.1, %v5355_v55  ;;  %v12130_v11 = vpop.f32.mrb[38].mxu1 }
 0xbd1   : > { %v5620_v63 = vsel %vm5492_vm5, %v12129_v59, %v5556_v21  ;;  %vm5493_vm7 = vcmp.gt.f32.partialorder %v12130_v11, 0.0  ;;  %v5557_v27 = vmul.f32 0.1, %v12130_v11  ;;  %v5358_v22 = vpop.f32.mrb[39].mxu1 }
 0xbd2   : > { %v5618_v47 = vsel %vm5490_vm6, %v5355_v55, %v5554_v52  ;;  %vm5491_vm8 = vcmp.gt.f32.partialorder %v5358_v22, 0.0  ;;  %v5555_v44 = vmul.f32 0.1, %v5358_v22 }
 0xbd3   : > { %v5621_v48 = vsel %vm5493_vm7, %v12130_v11, %v5557_v27 }
 0xbd4   : > { %v5663_v40 = vpack.c.bf16 %v5621_v48, %v5620_v63  ;;  %v5619_v30 = vsel %vm5491_vm8, %v5358_v22, %v5555_v44 }
 0xbd5   : > { %v5662_v58 = vpack.c.bf16 %v5619_v30, %v5618_v47 }
 0xbd7   : > { %12207 = vmatprep.mubr.bf16.mxu0 %v5662_v58 }
 0xbd8   : > { %12208 = vmatmul.mubr.bf16.gmra.mrb[36].mxu0 %v5663_v40 }
 0xbdc   : > { %v12133_v34 = vpop.f32.mrb[40].mxu1 }
 0xbdd   : > { %vm5496_vm9 = vcmp.gt.f32.partialorder %v12133_v34, 0.0  ;;  %v5560_v49 = vmul.f32 0.1, %v12133_v34  ;;  %v5371_v57 = vpop.f32.mrb[41].mxu1 }
 0xbde   : > { %vm5494_vm10 = vcmp.gt.f32.partialorder %v5371_v57, 0.0  ;;  %v5558_v33 = vmul.f32 0.1, %v5371_v57  ;;  %v12134_v1 = vpop.f32.mrb[42].mxu1 }
 0xbdf   : > { %v5624_v45 = vsel %vm5496_vm9, %v12133_v34, %v5560_v49  ;;  %vm5497_vm11 = vcmp.gt.f32.partialorder %v12134_v1, 0.0  ;;  %v5561_v8 = vmul.f32 0.1, %v12134_v1  ;;  %v5374_v15 = vpop.f32.mrb[43].mxu1 }
 0xbe0   : > { %v5622_v31 = vsel %vm5494_vm10, %v5371_v57, %v5558_v33  ;;  %vm5495_vm12 = vcmp.gt.f32.partialorder %v5374_v15, 0.0  ;;  %v5559_v37 = vmul.f32 0.1, %v5374_v15 }
 0xbe1   : > { %v5625_v5 = vsel %vm5497_vm11, %v12134_v1, %v5561_v8 }
 0xbe2   : > { %v5665_v19 = vpack.c.bf16 %v5625_v5, %v5624_v45  ;;  %v5623_v23 = vsel %vm5495_vm12, %v5374_v15, %v5559_v37 }
 0xbe3   : > { %v5664_v61 = vpack.c.bf16 %v5623_v23, %v5622_v31 }
 0xbe5   : > { %12211 = vmatprep.mubr.bf16.mxu0 %v5664_v61 }
 0xbe6   : > { %12212 = vmatmul.mubr.bf16.gmra.mrb[40].mxu0 %v5665_v19 }
 0xbec   : > { %v12137_v18 = vpop.f32.mrb[44].mxu1 }
 0xbed   : > { %vm5500_vm15 = vcmp.gt.f32.partialorder %v12137_v18, 0.0  ;;  %v5564_v38 = vmul.f32 0.1, %v12137_v18  ;;  %v5387_v54 = vpop.f32.mrb[45].mxu1 }
 0xbee   : > { %vm5498_vm0 = vcmp.gt.f32.partialorder %v5387_v54, 0.0  ;;  %v5562_v7 = vmul.f32 0.1, %v5387_v54  ;;  %v12138_v25 = vpop.f32.mrb[46].mxu1 }
 0xbef   : > { %v5628_v53 = vsel %vm5500_vm15, %v12137_v18, %v5564_v38  ;;  %vm5501_vm3 = vcmp.gt.f32.partialorder %v12138_v25, 0.0  ;;  %v5565_v62 = vmul.f32 0.1, %v12138_v25  ;;  %v5390_v35 = vpop.f32.mrb[47].mxu1 }
 0xbf0   : > { %v5626_v24 = vsel %vm5498_vm0, %v5387_v54, %v5562_v7  ;;  %vm5499_vm4 = vcmp.gt.f32.partialorder %v5390_v35, 0.0  ;;  %v5563_v29 = vmul.f32 0.1, %v5390_v35 }
 0xbf1   : > { %v5629_v4 = vsel %vm5501_vm3, %v12138_v25, %v5565_v62 }
 0xbf2   : > { %v5667_v56 = vpack.c.bf16 %v5629_v4, %v5628_v53  ;;  %v5627_v32 = vsel %vm5499_vm4, %v5390_v35, %v5563_v29 }
 0xbf3   : > { %v5666_v12 = vpack.c.bf16 %v5627_v32, %v5626_v24 }
 0xbf5   : > { %12215 = vmatprep.mubr.bf16.mxu0 %v5666_v12 }
 0xbf6   : > { %12216 = vmatmul.mubr.bf16.gmra.mrb[44].mxu0 %v5667_v56 }
 0xbfc   : > { %v12141_v6 = vpop.f32.mrb[48].mxu1 }
 0xbfd   : > { %vm5504_vm5 = vcmp.gt.f32.partialorder %v12141_v6, 0.0  ;;  %v5568_v60 = vmul.f32 0.1, %v12141_v6  ;;  %v5403_v41 = vpop.f32.mrb[49].mxu1 }
 0xbfe   : > { %vm5502_vm6 = vcmp.gt.f32.partialorder %v5403_v41, 0.0  ;;  %v5566_v43 = vmul.f32 0.1, %v5403_v41  ;;  %v12142_v28 = vpop.f32.mrb[50].mxu1 }
 0xbff   : > { %v5632_v14 = vsel %vm5504_vm5, %v12141_v6, %v5568_v60  ;;  %vm5505_vm7 = vcmp.gt.f32.partialorder %v12142_v28, 0.0  ;;  %v5569_v2 = vmul.f32 0.1, %v12142_v28  ;;  %v5406_v0 = vpop.f32.mrb[51].mxu1  ;;  %vm9531_vm5 = vcmask 392512  }
 0xc00   : > { %v5630_v10 = vsel %vm5502_vm6, %v5403_v41, %v5566_v43  ;;  %vm5503_vm8 = vcmp.gt.f32.partialorder %v5406_v0, 0.0  ;;  %v5567_v9 = vmul.f32 0.1, %v5406_v0  ;;  %vm9538_vm6 = vcmask 458112  }
 0xc01   : > { %v5633_v59 = vsel %vm5505_vm7, %v12142_v28, %v5569_v2  ;;  %vm9545_vm7 = vcmask 523712  }
 0xc02   : > { %v5669_v21 = vpack.c.bf16 %v5633_v59, %v5632_v14  ;;  %v5631_v55 = vsel %vm5503_vm8, %v5406_v0, %v5567_v9  ;;  %vm9552_vm8 = vcmask 589312  }
 0xc03   : > { %v5668_v52 = vpack.c.bf16 %v5631_v55, %v5630_v10 }
 0xc05   : > { %12219 = vmatprep.mubr.bf16.mxu0 %v5668_v52 }
 0xc06   : > { %12220 = vmatmul.mubr.bf16.gmra.mrb[48].mxu0 %v5669_v21 }
 0xc2a   : > { %v12169_v11 = vpop.f32.mrb[252].mxu0 }
 0xc2b   : > { %v8868_v63 = vmul.f32 %v12169_v11, %v14546_v13  ;;  %v5708_v27 = vpop.f32.mrb[253].mxu0 }
 0xc2c   : > { %v8866_v22 = vmul.f32 %v14546_v13, %v5708_v27  ;;  %v12145_v47 = vpop.f32.mrb[52].mxu1  ;;  %v12170_v44 = vpop.f32.mrb[254].mxu0 }
 0xc2d   : > { %vm5508_vm9 = vcmp.gt.f32.partialorder %v12145_v47, 0.0  ;;  %v5572_v48 = vmul.f32 0.1, %v12145_v47  ;;  %v15661_v40 = vpack.c.bf16 %v12170_v44, %v12169_v11  ;;  %v8869_v30 = vmul.f32 %v12170_v44, %v14546_v13  ;;  %v5419_v58 = vpop.f32.mrb[53].mxu1  ;;  %v5711_v34 = vpop.f32.mrb[255].mxu0 }
 0xc2e   : > { %vm5506_vm10 = vcmp.gt.f32.partialorder %v5419_v58, 0.0  ;;  %v5570_v49 = vmul.f32 0.1, %v5419_v58  ;;  %v15664_v57 = vpack.c.bf16 %v5711_v34, %v5708_v27  ;;  %v8867_v33 = vmul.f32 %v14546_v13, %v5711_v34  ;;  %v12146_v1 = vpop.f32.mrb[54].mxu1 }
 0xc2f   : > { %v5636_v45 = vsel %vm5508_vm9, %v12145_v47, %v5572_v48  ;;  %v8936_v8 = vsel %vm835_vm2, %v8868_v63, 0.0  ;;  %vm5509_vm11 = vcmp.gt.f32.partialorder %v12146_v1, 0.0  ;;  %v5573_v15 = vmul.f32 0.1, %v12146_v1  ;;  %v5422_v31 = vpop.f32.mrb[55].mxu1 }
 0xc30   : > { %v5634_v37 = vsel %vm5506_vm10, %v5419_v58, %v5570_v49  ;;  %8937 = vadd.xlane.f32.xlu0 %v8936_v8  ;;  %vm5507_vm12 = vcmp.gt.f32.partialorder %v5422_v31, 0.0  ;;  %v5571_v5 = vmul.f32 0.1, %v5422_v31  ;;  %v8933_v19 = vsel %vm835_vm2, %v8867_v33, 0.0 }
 0xc31   : > { %v5637_v23 = vsel %vm5509_vm11, %v12146_v1, %v5573_v15  ;;  %8934 = vadd.xlane.f32.xlu1 %v8933_v19  ;;  %v8930_v61 = vsel %vm835_vm2, %v8866_v22, 0.0  ;;  %v6059_v18 = vmul.bf16 %v15664_v57, %v13904_v36  ;;  %v6123_v38 = vmul.bf16 %v15664_v57, %v13971_v17 }
 0xc32   : > { %v5671_v54 = vpack.c.bf16 %v5637_v23, %v5636_v45  ;;  %v5635_v7 = vsel %vm5507_vm12, %v5422_v31, %v5571_v5  ;;  %v12173_v25 = vpop.f32.mrb[0].mxu0  ;;  %v5995_v53 = vmul.bf16 %v15664_v57, %v13792_v16  ;;  %v6060_v62 = vmul.bf16 %v15661_v40, %v13904_v36 }
 0xc33   : > { %11359 = vmatprep.subr.bf16.mxu1 %v6059_v18  ;;  %12231 = vmatprep.subr.bf16.mxu0 %v6123_v38  ;;  %v5724_v35 = vpop.f32.mrb[1].mxu0  ;;  %v6124_v24 = vmul.bf16 %v15661_v40, %v13971_v17  ;;  %v5670_v29 = vpack.c.bf16 %v5635_v7, %v5634_v37  ;;  %v5996_v32 = vmul.bf16 %v15661_v40, %v13792_v16  ;;  %v8939_v43 = vsel %vm835_vm2, %v8869_v30, 0.0 }
 0xc34   : > { %8931 = vadd.xlane.f32.xlu0 %v8930_v61  ;;  %v8870_v4 = vmul.f32 %v14546_v13, %v5724_v35  ;;  %11360 = vmatpush3.bf16.msra.mxu1 %v5995_v53  ;;  %v12174_v56 = vpop.f32.mrb[2].mxu0  ;;  %v8872_v12 = vmul.f32 %v12173_v25, %v14546_v13  ;;  %v6091_v8 = vmul.bf16 %v15664_v57, %v13945_v46  ;;  %vm9559_vm9 = vcmask 654912  }
 0xc35   : > { %12232 = vmatpush3.bf16.msra.mxu0 %v6123_v38  ;;  %v15684_v6 = vpack.c.bf16 %v12174_v56, %v12173_v25  ;;  %v8873_v60 = vmul.f32 %v12174_v56, %v14546_v13  ;;  %11361 = vmatprep.subr.bf16.mxu1 %v6060_v62  ;;  %v5727_v41 = vpop.f32.mrb[3].mxu0  ;;  %vm9566_vm10 = vcmask 720512   ;;  %vm9573_vm11 = vcmask 786112  }
 0xc36   : > { %12233 = vmatprep.subr.bf16.mxu0 %v6124_v24  ;;  %v15688_v28 = vpack.c.bf16 %v5727_v41, %v5724_v35  ;;  %12223 = vmatprep.mubr.bf16.mxu0 %v5670_v29  ;;  %v8942_v14 = vsel %vm835_vm2, %v8870_v4, 0.0  ;;  %v8871_v2 = vmul.f32 %v14546_v13, %v5727_v41  ;;  %v8948_v21 = vsel %vm835_vm2, %v8872_v12, 0.0 }
 0xc37   : > { %12224 = vmatmul.mubr.bf16.gmra.mrb[52].mxu0 %v5671_v54  ;;  %8943 = vadd.xlane.f32.xlu1 %v8942_v14  ;;  %v8951_v9 = vsel %vm835_vm2, %v8873_v60, 0.0  ;;  %v6062_v55 = vmul.bf16 %v15684_v6, %v13904_v36  ;;  %v6126_v52 = vmul.bf16 %v15684_v6, %v13971_v17  ;;  %v5998_v48 = vmul.bf16 %v15684_v6, %v13792_v16 }
 0xc38   : > { %8940 = vadd.xlane.f32.xlu0 %v8939_v43  ;;  %11362 = vmatpush3.bf16.msra.mxu1 %v5996_v32  ;;  %v6061_v0 = vmul.bf16 %v15688_v28, %v13904_v36  ;;  %v6125_v10 = vmul.bf16 %v15688_v28, %v13971_v17  ;;  %v5997_v59 = vmul.bf16 %v15688_v28, %v13792_v16  ;;  %v8945_v47 = vsel %vm835_vm2, %v8871_v2, 0.0 }
 0xc39   : > { %12234 = vmatpush3.bf16.msra.mxu0 %v6124_v24  ;;  %v6027_v35 = vmul.bf16 %v15664_v57, %v13856_v26  ;;  %v6092_v29 = vmul.bf16 %v15661_v40, %v13945_v46  ;;  %v15732_v57 = vld [vmem:[%s17828_s10 + $0x8] ss:$12 sps:$4 sm:$0xff]   ;;  %v6093_v14 = vmul.bf16 %v15688_v28, %v13945_v46  ;;  %vm9442_vm12 = vcmask 1041409  }
 0xc3a   : > { %11363 = vmatprep.subr.bf16.mxu1 %v6061_v0  ;;  %12235 = vmatprep.subr.bf16.mxu0 %v6125_v10  ;;  %v12177_v11 = vpop.f32.mrb[4].mxu0  ;;  %v6028_v0 = vmul.bf16 %v15661_v40, %v13856_v26  ;;  %v6029_v40 = vmul.bf16 %v15688_v28, %v13856_v26 }
 0xc3b   : > { %8952 = vadd.xlane.f32.xlu1 %v8951_v9  ;;  %v5740_v63 = vpop.f32.mrb[5].mxu0  ;;  %v8876_v22 = vmul.f32 %v12177_v11, %v14546_v13 }
 0xc3c   : > { %8949 = vadd.xlane.f32.xlu0 %v8948_v21  ;;  %11364 = vmatpush3.bf16.msra.mxu1 %v5997_v59  ;;  %v12149_v27 = vpop.f32.mrb[56].mxu1  ;;  %v8874_v44 = vmul.f32 %v14546_v13, %v5740_v63  ;;  %v12178_v30 = vpop.f32.mrb[6].mxu0 }
 0xc3d   : > { %12236 = vmatpush3.bf16.msra.mxu0 %v6125_v10  ;;  %v5576_v58 = vmul.f32 0.1, %v12149_v27  ;;  %11365 = vmatprep.subr.bf16.mxu1 %v6062_v55  ;;  %v5435_v34 = vpop.f32.mrb[57].mxu1  ;;  %v15709_v49 = vpack.c.bf16 %v12178_v30, %v12177_v11  ;;  %v5743_v33 = vpop.f32.mrb[7].mxu0  ;;  %vm5512_vm15 = vcmp.gt.f32.partialorder %v12149_v27, 0.0  ;;  %v8877_v5 = vmul.f32 %v12178_v30, %v14546_v13 }
 0xc3e   : > { %12237 = vmatprep.subr.bf16.mxu0 %v6126_v52  ;;  %v5574_v1 = vmul.f32 0.1, %v5435_v34  ;;  %v12150_v45 = vpop.f32.mrb[58].mxu1  ;;  %v15713_v15 = vpack.c.bf16 %v5743_v33, %v5740_v63  ;;  %vm5510_vm0 = vcmp.gt.f32.partialorder %v5435_v34, 0.0  ;;  %v8960_v23 = vsel %vm835_vm2, %v8876_v22, 0.0 }
 0xc3f   : > { %vm5513_vm3 = vcmp.gt.f32.partialorder %v12150_v45, 0.0  ;;  %v5577_v31 = vmul.f32 0.1, %v12150_v45  ;;  %8946 = vadd.xlane.f32.xlu1 %v8945_v47  ;;  %v5438_v37 = vpop.f32.mrb[59].mxu1  ;;  %v8954_v61 = vsel %vm835_vm2, %v8874_v44, 0.0  ;;  %v5640_v18 = vsel %vm5512_vm15, %v12149_v27, %v5576_v58 }
 0xc40   : > { %vm5511_vm4 = vcmp.gt.f32.partialorder %v5438_v37, 0.0  ;;  %v5575_v19 = vmul.f32 0.1, %v5438_v37  ;;  %11366 = vmatpush3.bf16.msra.mxu1 %v5998_v48  ;;  %v6127_v54 = vmul.bf16 %v15713_v15, %v13971_v17  ;;  %v5638_v7 = vsel %vm5510_vm0, %v5435_v34, %v5574_v1  ;;  %8955 = vadd.xlane.f32.xlu0 %v8954_v61  ;;  %v15755_v11 = vld [vmem:[%s17828_s10 + $0x20] ss:$12 sps:$4 sm:$0xff]  }
 0xc41   : > { %v5641_v38 = vsel %vm5513_vm3, %v12150_v45, %v5577_v31  ;;  %12238 = vmatpush3.bf16.msra.mxu0 %v6126_v52  ;;  %11367 = vmatprep.subr.bf16.mxu1 %v6091_v8  ;;  %v8875_v56 = vmul.f32 %v14546_v13, %v5743_v33  ;;  %v8963_v12 = vsel %vm835_vm2, %v8877_v5, 0.0  ;;  %v6094_v63 = vmul.bf16 %v15684_v6, %v13945_v46  ;;  %v15772_v48 = vld [vmem:[%s17828_s10] ss:$12 sps:$4 sm:$0xff]   ;;  %v15789_v5 = vld [vmem:[%s17828_s10 + $0x1c] ss:$12 sps:$4 sm:$0xff]  }
 0xc42   : > { %v5673_v25 = vpack.c.bf16 %v5641_v38, %v5640_v18  ;;  %v5639_v53 = vsel %vm5511_vm4, %v5438_v37, %v5575_v19  ;;  %v12181_v62 = vpop.f32.mrb[8].mxu0  ;;  %12243 = vmatprep.subr.bf16.mxu0 %v6127_v54  ;;  %v6128_v22 = vmul.bf16 %v15709_v49, %v13971_v17  ;;  %v6063_v28 = vmul.bf16 %v15713_v15, %v13904_v36 }
 0xc43   : > { %8961 = vadd.xlane.f32.xlu1 %v8960_v23  ;;  %v5756_v24 = vpop.f32.mrb[9].mxu0  ;;  %v5672_v4 = vpack.c.bf16 %v5639_v53, %v5638_v7  ;;  %v8957_v59 = vsel %vm835_vm2, %v8875_v56, 0.0  ;;  %v8880_v52 = vmul.f32 %v12181_v62, %v14546_v13  ;;  %v6030_v47 = vmul.bf16 %v15684_v6, %v13856_v26 }
 0xc44   : > { %11368 = vmatpush3.bf16.msra.mxu1 %v6027_v35  ;;  %v8878_v32 = vmul.f32 %v14546_v13, %v5756_v24  ;;  %v12182_v60 = vpop.f32.mrb[10].mxu0  ;;  %v5999_v58 = vmul.bf16 %v15713_v15, %v13792_v16  ;;  %v6064_v1 = vmul.bf16 %v15709_v49, %v13904_v36  ;;  %v6000_v38 = vmul.bf16 %v15709_v49, %v13792_v16  ;;  %v15810_v35 = vld [vmem:[%s17828_s10 + $0x18] ss:$12 sps:$4 sm:$0xff]  }
 0xc45   : > { %11369 = vmatprep.subr.bf16.mxu1 %v6092_v29  ;;  %12227 = vmatprep.mubr.bf16.mxu0 %v5672_v4  ;;  %v15734_v41 = vpack.c.bf16 %v12182_v60, %v12181_v62  ;;  %v8881_v43 = vmul.f32 %v12182_v60, %v14546_v13  ;;  %v5759_v2 = vpop.f32.mrb[11].mxu0  ;;  %v8972_v44 = vsel %vm835_vm2, %v8880_v52, 0.0  ;;  %vm9444_vm15 = vcmask 1042434  }
 0xc46   : > { %12228 = vmatmul.mubr.bf16.gmra.mrb[56].mxu0 %v5673_v25  ;;  %v8966_v10 = vsel %vm835_vm2, %v8878_v32, 0.0  ;;  %v15742_v9 = vpack.c.bf16 %v5759_v2, %v5756_v24  ;;  %v8879_v55 = vmul.f32 %v14546_v13, %v5759_v2  ;;  %vm9446_vm0 = vcmask 1043459  }
 0xc47   : > { %8964 = vadd.xlane.f32.xlu1 %v8963_v12  ;;  %8967 = vadd.xlane.f32.xlu0 %v8966_v10  ;;  %v8975_v21 = vsel %vm835_vm2, %v8881_v43, 0.0  ;;  %v6066_v4 = vmul.bf16 %v15734_v41, %v13904_v36  ;;  %v6002_v32 = vmul.bf16 %v15734_v41, %v13792_v16  ;;  %v6095_v43 = vmul.bf16 %v15713_v15, %v13945_v46 }
 0xc48   : > { %11370 = vmatpush3.bf16.msra.mxu1 %v6028_v0  ;;  %12239 = vmatprep.mubr.msk.bf16.mxu0 %vm3980_vm13, %v15732_v57  ;;  %v8969_v27 = vsel %vm835_vm2, %v8879_v55, 0.0  ;;  %v6129_v6 = vmul.bf16 %v15742_v9, %v13971_v17  ;;  %v6065_v25 = vmul.bf16 %v15742_v9, %v13904_v36  ;;  %v6001_v24 = vmul.bf16 %v15742_v9, %v13792_v16 }
 0xc49   : > { %11371 = vmatprep.subr.bf16.mxu1 %v6093_v14  ;;  %vm9450_vm3 = vcmask 1045509   ;;  %vm9452_vm4 = vcmask 1046534  }
 0xc4b   : > { %8958 = vadd.xlane.f32.xlu1 %v8957_v59  ;;  %8976 = vadd.xlane.f32.xlu0 %v8975_v21 }
 0xc4c   : > { %11372 = vmatpush3.bf16.msra.mxu1 %v6029_v40  ;;  %v6031_v40 = vmul.bf16 %v15713_v15, %v13856_v26 }
 0xc4d   : > { %11373 = vmatprep.subr.bf16.mxu1 %v6094_v63 }
 0xc4e   : > { %12240 = vmatmul.mubr.msk.bf16.vlgmr.msra.gmra.mrb[60].mxu0 %vm3980_vm13, %v15755_v11 }
 0xc4f   : > { %12244 = vmatpush3.bf16.msra.mxu0 %v6127_v54  ;;  %8970 = vadd.xlane.f32.xlu0 %v8969_v27  ;;  %v12185_v30 = vpop.f32.mrb[12].mxu0  ;;  %v6130_v54 = vmul.bf16 %v15734_v41, %v13971_v17 }
 0xc50   : > { %11374 = vmatpush3.bf16.msra.mxu1 %v6030_v47  ;;  %12245 = vmatprep.subr.bf16.mxu0 %v6128_v22  ;;  %v8884_v34 = vmul.f32 %v12185_v30, %v14546_v13  ;;  %v5772_v33 = vpop.f32.mrb[13].mxu0 }
 0xc51   : > { %11393 = vmatprep.subr.bf16.mxu1 %v6063_v28  ;;  %8973 = vadd.xlane.f32.xlu1 %v8972_v44  ;;  %v12186_v45 = vpop.f32.mrb[14].mxu0  ;;  %v8882_v19 = vmul.f32 %v14546_v13, %v5772_v33  ;;  %v6096_v28 = vmul.bf16 %v15709_v49, %v13945_v46 }
 0xc52   : > { %v15781_v8 = vpack.c.bf16 %v12186_v45, %v12185_v30  ;;  %v8885_v31 = vmul.f32 %v12186_v45, %v14546_v13  ;;  %v5775_v37 = vpop.f32.mrb[15].mxu0  ;;  %12251 = vmatprep.mubr.msk.bf16.mxu0 %vm3980_vm13, %v15732_v57  ;;  %v8984_v18 = vsel %vm835_vm2, %v8884_v34, 0.0  ;;  %v6033_v45 = vmul.bf16 %v15742_v9, %v13856_v26 }
 0xc53   : > { %12246 = vmatpush3.bf16.msra.mxu0 %v6128_v22  ;;  %6232 = vmatmul.mubr.bf16.vlgmr.msra.gmra.mrb[60].mxu1 %v15772_v48  ;;  %v15793_v23 = vpack.c.bf16 %v5775_v37, %v5772_v33  ;;  %v8883_v61 = vmul.f32 %v14546_v13, %v5775_v37  ;;  %v8978_v62 = vsel %vm835_vm2, %v8882_v19, 0.0  ;;  %v6098_v37 = vmul.bf16 %v15734_v41, %v13945_v46  ;;  %v15869_v19 = vpop.xlane.xlu1 %8771 }
 0xc54   : > { %11394 = vmatpush3.bf16.msra.mxu1 %v5999_v58  ;;  %12247 = vmatprep.subr.bf16.mxu0 %v6129_v6  ;;  %v8987_v7 = vsel %vm835_vm2, %v8885_v31, 0.0  ;;  %v6068_v12 = vmul.bf16 %v15781_v8, %v13904_v36  ;;  %v6004_v14 = vmul.bf16 %v15781_v8, %v13792_v16  ;;  %v6032_v58 = vmul.bf16 %v15709_v49, %v13856_v26  ;;  %v15865_v31 = vpop.xlane.xlu0 %8777 }
 0xc55   : > { %11395 = vmatprep.subr.bf16.mxu1 %v6064_v1  ;;  %8988 = vadd.xlane.f32.xlu1 %v8987_v7  ;;  %v8981_v53 = vsel %vm835_vm2, %v8883_v61, 0.0  ;;  %v6067_v29 = vmul.bf16 %v15793_v23, %v13904_v36  ;;  %v6003_v56 = vmul.bf16 %v15793_v23, %v13792_v16  ;;  %v6099_v49 = vmul.bf16 %v15793_v23, %v13945_v46 }
 0xc56   : > { %8985 = vadd.xlane.f32.xlu0 %v8984_v18  ;;  %6239 = vmatprep.mubr.bf16.mxu1 %v15789_v5  ;;  %v6034_v61 = vmul.bf16 %v15734_v41, %v13856_v26  ;;  %v6035_v18 = vmul.bf16 %v15793_v23, %v13856_v26  ;;  %v6036_v41 = vmul.bf16 %v15781_v8, %v13856_v26 }
 0xc57   : > { %12248 = vmatpush3.bf16.msra.mxu0 %v6129_v6  ;;  %v6097_v6 = vmul.bf16 %v15742_v9, %v13945_v46  ;;  %v6131_v9 = vmul.bf16 %v15793_v23, %v13971_v17  ;;  %v6132_v23 = vmul.bf16 %v15781_v8, %v13971_v17 }
 0xc58   : > { %11396 = vmatpush3.bf16.msra.mxu1 %v6000_v38  ;;  %12249 = vmatprep.subr.bf16.mxu0 %v6130_v54  ;;  %v6100_v38 = vmul.bf16 %v15781_v8, %v13945_v46 }
 0xc59   : > { %11397 = vmatprep.subr.bf16.mxu1 %v6065_v25  ;;  %8982 = vadd.xlane.f32.xlu1 %v8981_v53  ;;  %v15883_v25 = vpop.xlane.xlu1 %8789 }
 0xc5a   : > { %8979 = vadd.xlane.f32.xlu0 %v8978_v62 }
 0xc5b   : > { %12250 = vmatpush3.bf16.msra.mxu0 %v6130_v54  ;;  %6240 = vmatmul.mubr.bf16.gmra.mrb[64].mxu1 %v15810_v35  ;;  %v15879_v54 = vpop.xlane.xlu0 %8780 }
 0xc5c   : > { %11398 = vmatpush3.bf16.msra.mxu1 %v6001_v24  ;;  %11427 = vmatprep.subr.bf16.mxu0 %v6067_v29 }
 0xc5d   : > { %11399 = vmatprep.subr.bf16.mxu1 %v6066_v4  ;;  %6329 = vmatprep.mubr.bf16.mxu1 %v15656_v50 }
 0xc5e   : > { %12252 = vmatmul.mubr.msk.bf16.vlgmr.msra.gmra.mrb[64].mxu0 %vm3980_vm13, %v15755_v11 }
 0xc5f   : > { %v12189_v60 = vpop.f32.mrb[16].mxu0  ;;  %11428 = vmatpush3.bf16.msra.mxu0 %v6003_v56  ;;  %6427 = vmatprep.mubr.bf16.mxu0 %v15656_v50 }
 0xc60   : > { %v8888_v2 = vmul.f32 %v12189_v60, %v14546_v13  ;;  %11400 = vmatpush3.bf16.msra.mxu1 %v6002_v32  ;;  %v5788_v0 = vpop.f32.mrb[17].mxu0  ;;  %11429 = vmatprep.subr.bf16.mxu0 %v6068_v12 }
 0xc61   : > { %11401 = vmatprep.subr.bf16.mxu1 %v6095_v43  ;;  %v8886_v10 = vmul.f32 %v14546_v13, %v5788_v0  ;;  %v12190_v59 = vpop.f32.mrb[18].mxu0 }
 0xc62   : > { %v15835_v21 = vpack.c.bf16 %v12190_v59, %v12189_v60  ;;  %v8889_v55 = vmul.f32 %v12190_v59, %v14546_v13  ;;  %v5791_v52 = vpop.f32.mrb[19].mxu0  ;;  %v8996_v63 = vsel %vm835_vm2, %v8888_v2, 0.0  ;;  %v15903_v2 = vpop.xlane.xlu0 %8774 }
 0xc63   : > { %v15841_v27 = vpack.c.bf16 %v5791_v52, %v5788_v0  ;;  %v8887_v22 = vmul.f32 %v14546_v13, %v5791_v52  ;;  %8997 = vadd.xlane.f32.xlu1 %v8996_v63  ;;  %11430 = vmatpush3.bf16.msra.mxu0 %v6004_v14  ;;  %v8990_v44 = vsel %vm835_vm2, %v8886_v10, 0.0  ;;  %v15908_v59 = vpop.xlane.xlu1 %8783 }
 0xc64   : > { %11402 = vmatpush3.bf16.msra.mxu1 %v6031_v40  ;;  %v8999_v47 = vsel %vm835_vm2, %v8889_v55, 0.0  ;;  %v6070_v33 = vmul.bf16 %v15835_v21, %v13904_v36  ;;  %v6006_v1 = vmul.bf16 %v15835_v21, %v13792_v16  ;;  %v6102_v12 = vmul.bf16 %v15835_v21, %v13945_v46 }
 0xc65   : > { %11403 = vmatprep.subr.bf16.mxu1 %v6096_v28  ;;  %9000 = vadd.xlane.f32.xlu0 %v8999_v47  ;;  %v6069_v15 = vmul.bf16 %v15841_v27, %v13904_v36  ;;  %v6005_v30 = vmul.bf16 %v15841_v27, %v13792_v16  ;;  %v8993_v34 = vsel %vm835_vm2, %v8887_v22, 0.0  ;;  %v6101_v7 = vmul.bf16 %v15841_v27, %v13945_v46 }
 0xc66   : > { %v6037_v29 = vmul.bf16 %v15841_v27, %v13856_v26  ;;  %v6133_v32 = vmul.bf16 %v15841_v27, %v13971_v17  ;;  %v6038_v40 = vmul.bf16 %v15835_v21, %v13856_v26  ;;  %v6134_v63 = vmul.bf16 %v15835_v21, %v13971_v17  ;;  %v15920_v28 = vpop.xlane.xlu0 %8786 }
 0xc67   : > { %11431 = vmatprep.subr.bf16.mxu0 %v6069_v15  ;;  %8991 = vadd.xlane.f32.xlu1 %v8990_v44  ;;  %v15926_v44 = vpop.xlane.xlu1 %8792 }
 0xc68   : > { %11404 = vmatpush3.bf16.msra.mxu1 %v6032_v58  ;;  %11432 = vmatpush3.bf16.msra.mxu0 %v6005_v30 }
 0xc69   : > { %11405 = vmatprep.subr.bf16.mxu1 %v6097_v6  ;;  %8994 = vadd.xlane.f32.xlu0 %v8993_v34 }
 0xc6a   : > { %11433 = vmatprep.subr.bf16.mxu0 %v6070_v33  ;;  %v15933_v30 = vpop.xlane.xlu0 %8801 }
 0xc6b   : > { %v15937_v34 = vpop.xlane.xlu1 %8798 }
 0xc6c   : > { %11406 = vmatpush3.bf16.msra.mxu1 %v6033_v45  ;;  %11434 = vmatpush3.bf16.msra.mxu0 %v6006_v1 }
 0xc6d   : > { %11407 = vmatprep.subr.bf16.mxu1 %v6098_v37  ;;  %11435 = vmatprep.subr.bf16.mxu0 %v6099_v49 }
 0xc70   : > { %11408 = vmatpush3.bf16.msra.mxu1 %v6034_v61  ;;  %11436 = vmatpush3.bf16.msra.mxu0 %v6035_v18  ;;  %v15947_v61 = vpop.xlane.xlu1 %8813 }
 0xc71   : > { %12255 = vmatprep.subr.bf16.mxu1 %v6131_v9  ;;  %11437 = vmatprep.subr.bf16.mxu0 %v6100_v38 }
 0xc73   : > { %v12193_v53 = vpop.f32.mrb[20].mxu0  ;;  %6330 = vmatmul.mubr.bf16.vlgmr.msra.gmra.mrb[68].mxu1 %v15772_v48 }
 0xc74   : > { %v8892_v62 = vmul.f32 %v12193_v53, %v14546_v13  ;;  %12256 = vmatpush3.bf16.msra.mxu1 %v6131_v9  ;;  %11438 = vmatpush3.bf16.msra.mxu0 %v6036_v41  ;;  %v5804_v24 = vpop.f32.mrb[21].mxu0 }
 0xc75   : > { %12257 = vmatprep.subr.bf16.mxu1 %v6132_v23  ;;  %v8890_v4 = vmul.f32 %v14546_v13, %v5804_v24  ;;  %v12194_v56 = vpop.f32.mrb[22].mxu0  ;;  %11439 = vmatprep.subr.bf16.mxu0 %v6101_v7  ;;  %v15952_v7 = vpop.xlane.xlu0 %8795 }
 0xc76   : > { %v9008_v8 = vsel %vm835_vm2, %v8892_v62, 0.0  ;;  %v15899_v60 = vpack.c.bf16 %v12194_v56, %v12193_v53  ;;  %v8893_v43 = vmul.f32 %v12194_v56, %v14546_v13  ;;  %v5807_v14 = vpop.f32.mrb[23].mxu0  ;;  %6337 = vmatprep.mubr.bf16.mxu1 %v15789_v5 }
 0xc77   : > { %9009 = vadd.xlane.f32.xlu0 %v9008_v8  ;;  %v15905_v0 = vpack.c.bf16 %v5807_v14, %v5804_v24  ;;  %v9002_v10 = vsel %vm835_vm2, %v8890_v4, 0.0  ;;  %v8891_v55 = vmul.f32 %v14546_v13, %v5807_v14  ;;  %v15973_v8 = vpop.xlane.xlu1 %8807 }
 0xc78   : > { %12258 = vmatpush3.bf16.msra.mxu1 %v6132_v23  ;;  %11440 = vmatpush3.bf16.msra.mxu0 %v6037_v29  ;;  %v9011_v52 = vsel %vm835_vm2, %v8893_v43, 0.0  ;;  %v6136_v21 = vmul.bf16 %v15899_v60, %v13971_v17  ;;  %v6072_v58 = vmul.bf16 %v15899_v60, %v13904_v36  ;;  %v6008_v49 = vmul.bf16 %v15899_v60, %v13792_v16 }
 0xc79   : > { %12259 = vmatprep.subr.bf16.mxu1 %v6133_v32  ;;  %11441 = vmatprep.subr.bf16.mxu0 %v6102_v12  ;;  %v6135_v27 = vmul.bf16 %v15905_v0, %v13971_v17  ;;  %v9005_v22 = vsel %vm835_vm2, %v8891_v55, 0.0  ;;  %v6071_v47 = vmul.bf16 %v15905_v0, %v13904_v36  ;;  %v6007_v15 = vmul.bf16 %v15905_v0, %v13792_v16 }
 0xc7a   : > { %9003 = vadd.xlane.f32.xlu1 %v9002_v10  ;;  %v15978_v10 = vpop.xlane.xlu0 %8804  ;;  %v6103_v55 = vmul.bf16 %v15905_v0, %v13945_v46 }
 0xc7b   : > { %6338 = vmatmul.mubr.bf16.gmra.mrb[72].mxu1 %v15810_v35  ;;  %9012 = vadd.xlane.f32.xlu0 %v9011_v52  ;;  %v6039_v52 = vmul.bf16 %v15905_v0, %v13856_v26 }
 0xc7c   : > { %12260 = vmatpush3.bf16.msra.mxu1 %v6133_v32  ;;  %11442 = vmatpush3.bf16.msra.mxu0 %v6038_v40 }
 0xc7d   : > { %12261 = vmatprep.subr.bf16.mxu1 %v6134_v63  ;;  %12267 = vmatprep.subr.bf16.mxu0 %v6135_v27 }
 0xc7e   : > { %12263 = vmatprep.mubr.msk.bf16.mxu1 %vm3980_vm13, %v15732_v57  ;;  %v15984_v40 = vpop.xlane.xlu0 %8810 }
 0xc7f   : > { %9006 = vadd.xlane.f32.xlu0 %v9005_v22  ;;  %6428 = vmatmul.mubr.bf16.vlgmr.msra.gmra.mrb[68].mxu0 %v15772_v48 }
 0xc80   : > { %12262 = vmatpush3.bf16.msra.mxu1 %v6134_v63  ;;  %12268 = vmatpush3.bf16.msra.mxu0 %v6135_v27  ;;  %v6104_v63 = vmul.bf16 %v15899_v60, %v13945_v46  ;;  %v15988_v27 = vpop.xlane.xlu1 %8816 }
 0xc81   : > { %11461 = vmatprep.subr.bf16.mxu1 %v6071_v47  ;;  %12269 = vmatprep.subr.bf16.mxu0 %v6136_v21  ;;  %17869 = vst [vmem:[#allocation11_spill] sm:$0xff] %v15988_v27 }
 0xc82   : > { %6435 = vmatprep.mubr.bf16.mxu0 %v15789_v5  ;;  %v15995_v0 = vpop.xlane.xlu0 %8825 }
 0xc83   : > { %v12197_v33 = vpop.f32.mrb[24].mxu0  ;;  %12264 = vmatmul.mubr.msk.bf16.vlgmr.msra.gmra.mrb[76].mxu1 %vm3980_vm13, %v15755_v11 }
 0xc84   : > { %v8896_v6 = vmul.f32 %v12197_v33, %v14546_v13  ;;  %v5820_v1 = vpop.f32.mrb[25].mxu0  ;;  %11462 = vmatpush3.bf16.msra.mxu1 %v6007_v15  ;;  %12270 = vmatpush3.bf16.msra.mxu0 %v6136_v21  ;;  %v6040_v15 = vmul.bf16 %v15899_v60, %v13856_v26 }
 0xc85   : > { %v8894_v45 = vmul.f32 %v14546_v13, %v5820_v1  ;;  %v12198_v37 = vpop.f32.mrb[26].mxu0  ;;  %11463 = vmatprep.subr.bf16.mxu1 %v6072_v58  ;;  %6525 = vmatprep.mubr.bf16.mxu1 %v15656_v50 }
 0xc86   : > { %v15949_v18 = vpack.c.bf16 %v12198_v37, %v12197_v33  ;;  %v5823_v9 = vpop.f32.mrb[27].mxu0  ;;  %v9020_v38 = vsel %vm835_vm2, %v8896_v6, 0.0  ;;  %v8897_v23 = vmul.f32 %v12198_v37, %v14546_v13 }
 0xc87   : > { %v15954_v41 = vpack.c.bf16 %v5823_v9, %v5820_v1  ;;  %v8895_v53 = vmul.f32 %v14546_v13, %v5823_v9  ;;  %9021 = vadd.xlane.f32.xlu1 %v9020_v38  ;;  %6436 = vmatmul.mubr.bf16.gmra.mrb[72].mxu0 %v15810_v35  ;;  %v9014_v62 = vsel %vm835_vm2, %v8894_v45, 0.0  ;;  %v16001_v1 = vpop.xlane.xlu1 %8822 }
 0xc88   : > { %11464 = vmatpush3.bf16.msra.mxu1 %v6008_v49  ;;  %v6074_v24 = vmul.bf16 %v15949_v18, %v13904_v36  ;;  %12275 = vmatprep.mubr.msk.bf16.mxu0 %vm3980_vm13, %v15732_v57  ;;  %v6138_v12 = vmul.bf16 %v15949_v18, %v13971_v17  ;;  %v9023_v43 = vsel %vm835_vm2, %v8897_v23, 0.0  ;;  %v6010_v14 = vmul.bf16 %v15949_v18, %v13792_v16 }
 0xc89   : > { %v9017_v29 = vsel %vm835_vm2, %v8895_v53, 0.0  ;;  %v6073_v4 = vmul.bf16 %v15954_v41, %v13904_v36  ;;  %v6137_v56 = vmul.bf16 %v15954_v41, %v13971_v17  ;;  %v6009_v32 = vmul.bf16 %v15954_v41, %v13792_v16 }
 0xc8a   : > { %9018 = vadd.xlane.f32.xlu0 %v9017_v29  ;;  %v6105_v6 = vmul.bf16 %v15954_v41, %v13945_v46  ;;  %v6106_v29 = vmul.bf16 %v15949_v18, %v13945_v46 }
 0xc8b   : > { %9015 = vadd.xlane.f32.xlu1 %v9014_v62  ;;  %11465 = vmatprep.subr.bf16.mxu1 %v6073_v4  ;;  %v16020_v4 = vpop.xlane.xlu1 %8837 }
 0xc8c   : > { %12271 = vmatprep.subr.bf16.mxu0 %v6137_v56  ;;  %11466 = vmatpush3.bf16.msra.mxu1 %v6009_v32  ;;  %17870 = vst [vmem:[#allocation12_spill] sm:$0xff] %v16020_v4 }
 0xc8d   : > { %12272 = vmatpush3.bf16.msra.mxu0 %v6137_v56  ;;  %11467 = vmatprep.subr.bf16.mxu1 %v6074_v24 }
 0xc8e   : > { %12273 = vmatprep.subr.bf16.mxu0 %v6138_v12 }
 0xc8f   : > { %9024 = vadd.xlane.f32.xlu1 %v9023_v43 }
 0xc90   : > { %11468 = vmatpush3.bf16.msra.mxu1 %v6010_v14 }
 0xc91   : > { %12274 = vmatpush3.bf16.msra.mxu0 %v6138_v12  ;;  %11469 = vmatprep.subr.bf16.mxu1 %v6103_v55  ;;  %v16025_v12 = vpop.xlane.xlu0 %8819  ;;  %v16033_v55 = vpop.xlane.xlu1 %8831 }
 0xc92   : > { %17871 = vst [vmem:[#allocation13_spill] sm:$0xff] %v16033_v55 }
 0xc93   : > { %v12201_v22 = vpop.f32.mrb[28].mxu0 }
 0xc94   : > { %v8900_v47 = vmul.f32 %v12201_v22, %v14546_v13  ;;  %v5836_v21 = vpop.f32.mrb[29].mxu0  ;;  %11470 = vmatpush3.bf16.msra.mxu1 %v6039_v52  ;;  %12276 = vmatmul.mubr.msk.bf16.vlgmr.msra.gmra.mrb[76].mxu0 %vm3980_vm13, %v15755_v11 }
 0xc95   : > { %v8898_v58 = vmul.f32 %v14546_v13, %v5836_v21  ;;  %v12202_v33 = vpop.f32.mrb[30].mxu0  ;;  %11471 = vmatprep.subr.bf16.mxu1 %v6104_v63  ;;  %6623 = vmatprep.mubr.bf16.mxu0 %v15656_v50  ;;  %v6041_v50 = vmul.bf16 %v15954_v41, %v13856_v26  ;;  %v6042_v41 = vmul.bf16 %v15949_v18, %v13856_v26  ;;  %v16035_v52 = vpop.xlane.xlu0 %8828 }
 0xc96   : > { %v16003_v49 = vpack.c.bf16 %v12202_v33, %v12201_v22  ;;  %v8901_v60 = vmul.f32 %v12202_v33, %v14546_v13  ;;  %v5839_v45 = vpop.f32.mrb[31].mxu0  ;;  %v9032_v37 = vsel %vm835_vm2, %v8900_v47, 0.0  ;;  %17872 = vst [vmem:[#allocation14_spill] sm:$0xff] %v16035_v52  ;;  %v16040_v22 = vpop.xlane.xlu1 %8849 }
 0xc97   : > { %v16007_v9 = vpack.c.bf16 %v5839_v45, %v5836_v21  ;;  %v8899_v38 = vmul.f32 %v14546_v13, %v5839_v45  ;;  %9033 = vadd.xlane.f32.xlu1 %v9032_v37  ;;  %v9026_v23 = vsel %vm835_vm2, %v8898_v58, 0.0  ;;  %17873 = vst [vmem:[#allocation15_spill] sm:$0xff] %v16040_v22 }
 0xc98   : > { %11472 = vmatpush3.bf16.msra.mxu1 %v6040_v15  ;;  %v9035_v53 = vsel %vm835_vm2, %v8901_v60, 0.0  ;;  %v6076_v32 = vmul.bf16 %v16003_v49, %v13904_v36  ;;  %v6012_v43 = vmul.bf16 %v16003_v49, %v13792_v16  ;;  %v6140_v63 = vmul.bf16 %v16003_v49, %v13971_v17 }
 0xc99   : > { %11473 = vmatprep.subr.bf16.mxu1 %v6105_v6  ;;  %9036 = vadd.xlane.f32.xlu0 %v9035_v53  ;;  %v6075_v62 = vmul.bf16 %v16007_v9, %v13904_v36  ;;  %v6011_v24 = vmul.bf16 %v16007_v9, %v13792_v16  ;;  %v9029_v56 = vsel %vm835_vm2, %v8899_v38, 0.0  ;;  %v6139_v14 = vmul.bf16 %v16007_v9, %v13971_v17  ;;  %v16044_v15 = vpop.xlane.xlu0 %8840 }
 0xc9a   : > { %17874 = vst [vmem:[#allocation16_spill] sm:$0xff] %v16044_v15 }
 0xc9b   : > { %9027 = vadd.xlane.f32.xlu1 %v9026_v23  ;;  %11495 = vmatprep.subr.bf16.mxu0 %v6075_v62 }
 0xc9c   : > { %11474 = vmatpush3.bf16.msra.mxu1 %v6041_v50  ;;  %11496 = vmatpush3.bf16.msra.mxu0 %v6011_v24 }
 0xc9d   : > { %11475 = vmatprep.subr.bf16.mxu1 %v6106_v29  ;;  %9030 = vadd.xlane.f32.xlu0 %v9029_v56 }
 0xc9e   : > { %11497 = vmatprep.subr.bf16.mxu0 %v6076_v32  ;;  %v16064_v32 = vpop.xlane.xlu1 %8852 }
 0xc9f   : > { %17875 = vst [vmem:[#allocation17_spill] sm:$0xff] %v16064_v32 }
 0xca0   : > { %11476 = vmatpush3.bf16.msra.mxu1 %v6042_v41  ;;  %11498 = vmatpush3.bf16.msra.mxu0 %v6012_v43  ;;  %v16068_v43 = vpop.xlane.xlu0 %8834 }
 0xca1   : > { %12279 = vmatprep.subr.bf16.mxu1 %v6139_v14  ;;  %17876 = vst [vmem:[#allocation18_spill] sm:$0xff] %v16068_v43 }
 0xca3   : > { %v12205_v18 = vpop.f32.mrb[32].mxu0  ;;  %6526 = vmatmul.mubr.bf16.vlgmr.msra.gmra.mrb[80].mxu1 %v15772_v48 }
 0xca4   : > { %v8904_v47 = vmul.f32 %v12205_v18, %v14546_v13  ;;  %v5852_v21 = vpop.f32.mrb[33].mxu0  ;;  %12280 = vmatpush3.bf16.msra.mxu1 %v6139_v14  ;;  %6533 = vmatprep.mubr.bf16.mxu1 %v15789_v5 }
 0xca5   : > { %v8902_v58 = vmul.f32 %v14546_v13, %v5852_v21  ;;  %v12206_v33 = vpop.f32.mrb[34].mxu0  ;;  %12281 = vmatprep.subr.bf16.mxu1 %v6140_v63 }
 0xca6   : > { %v16047_v6 = vpack.c.bf16 %v12206_v33, %v12205_v18  ;;  %v8905_v60 = vmul.f32 %v12206_v33, %v14546_v13  ;;  %v5855_v45 = vpop.f32.mrb[35].mxu0  ;;  %v9044_v37 = vsel %vm835_vm2, %v8904_v47, 0.0 }
 0xca7   : > { %v16051_v38 = vpack.c.bf16 %v5855_v45, %v5852_v21  ;;  %9045 = vadd.xlane.f32.xlu0 %v9044_v37  ;;  %v9038_v53 = vsel %vm835_vm2, %v8902_v58, 0.0  ;;  %v8903_v23 = vmul.f32 %v14546_v13, %v5855_v45 }
 0xca8   : > { %12282 = vmatpush3.bf16.msra.mxu1 %v6140_v63  ;;  %9039 = vadd.xlane.f32.xlu1 %v9038_v53  ;;  %v9047_v50 = vsel %vm835_vm2, %v8905_v60, 0.0  ;;  %v6078_v56 = vmul.bf16 %v16047_v6, %v13904_v36  ;;  %v6142_v41 = vmul.bf16 %v16047_v6, %v13971_v17  ;;  %v6014_v21 = vmul.bf16 %v16047_v6, %v13792_v16  ;;  %v16079_v53 = vpop.xlane.xlu0 %8843 }
 0xca9   : > { %v6077_v62 = vmul.bf16 %v16051_v38, %v13904_v36  ;;  %v6141_v24 = vmul.bf16 %v16051_v38, %v13971_v17  ;;  %v6013_v29 = vmul.bf16 %v16051_v38, %v13792_v16  ;;  %v9041_v63 = vsel %vm835_vm2, %v8903_v23, 0.0  ;;  %17877 = vst [vmem:[#allocation19_spill] sm:$0xff] %v16079_v53 }
 0xcaa   : > { %v6107_v23 = vmul.bf16 %v16007_v9, %v13945_v46 }
 0xcab   : > { %9048 = vadd.xlane.f32.xlu0 %v9047_v50  ;;  %11499 = vmatprep.subr.bf16.mxu0 %v6077_v62  ;;  %v12209_v14 = vpop.f32.mrb[36].mxu0 }
 0xcac   : > { %12283 = vmatprep.subr.bf16.mxu1 %v6141_v24  ;;  %11500 = vmatpush3.bf16.msra.mxu0 %v6013_v29  ;;  %v8908_v18 = vmul.f32 %v12209_v14, %v14546_v13  ;;  %v5868_v47 = vpop.f32.mrb[37].mxu0 }
 0xcad   : > { %12284 = vmatpush3.bf16.msra.mxu1 %v6141_v24  ;;  %11501 = vmatprep.subr.bf16.mxu0 %v6078_v56  ;;  %v8906_v58 = vmul.f32 %v14546_v13, %v5868_v47  ;;  %v12210_v33 = vpop.f32.mrb[38].mxu0  ;;  %v16086_v24 = vpop.xlane.xlu1 %8846 }
 0xcae   : > { %12285 = vmatprep.subr.bf16.mxu1 %v6142_v41  ;;  %6534 = vmatmul.mubr.bf16.gmra.mrb[84].mxu1 %v15810_v35  ;;  %v16076_v60 = vpack.c.bf16 %v12210_v33, %v12209_v14  ;;  %v5871_v45 = vpop.f32.mrb[39].mxu0  ;;  %v9056_v37 = vsel %vm835_vm2, %v8908_v18, 0.0  ;;  %17878 = vst [vmem:[#allocation20_spill] sm:$0xff] %v16086_v24  ;;  %v8909_v29 = vmul.f32 %v12210_v33, %v14546_v13 }
 0xcaf   : > { %9042 = vadd.xlane.f32.xlu0 %v9041_v63  ;;  %v16083_v50 = vpack.c.bf16 %v5871_v45, %v5868_v47  ;;  %v8907_v62 = vmul.f32 %v14546_v13, %v5871_v45  ;;  %9057 = vadd.xlane.f32.xlu1 %v9056_v37  ;;  %v9050_v56 = vsel %vm835_vm2, %v8906_v58, 0.0  ;;  %v6043_v18 = vmul.bf16 %v16007_v9, %v13856_v26  ;;  %v16097_v47 = vpop.xlane.xlu0 %8861 }
 0xcb0   : > { %11502 = vmatpush3.bf16.msra.mxu0 %v6014_v21  ;;  %12287 = vmatprep.mubr.msk.bf16.mxu1 %vm3980_vm13, %v15732_v57  ;;  %17879 = vst [vmem:[#allocation21_spill] sm:$0xff] %v16097_v47  ;;  %v6108_v21 = vmul.bf16 %v16003_v49, %v13945_v46  ;;  %v9059_v33 = vsel %vm835_vm2, %v8909_v29, 0.0  ;;  %v6080_v45 = vmul.bf16 %v16076_v60, %v13904_v36  ;;  %v16109_v9 = vand.u32 127, %v1911_v42 }
 0xcb1   : > { %12286 = vmatpush3.bf16.msra.mxu1 %v6142_v41  ;;  %11503 = vmatprep.subr.bf16.mxu0 %v6107_v23  ;;  %v6079_v14 = vmul.bf16 %v16083_v50, %v13904_v36  ;;  %v9053_v63 = vsel %vm835_vm2, %v8907_v62, 0.0  ;;  %v6015_v58 = vmul.bf16 %v16083_v50, %v13792_v16  ;;  %v16103_v41 = vpop.xlane.xlu1 %8864  ;;  %v6109_v37 = vmul.bf16 %v16051_v38, %v13945_v46 }
 0xcb2   : > { %17880 = vst [vmem:[#allocation22_spill] sm:$0xff] %v16103_v41  ;;  %v6044_v23 = vmul.bf16 %v16003_v49, %v13856_v26  ;;  %v9533_v62 = vadd.s32 4294967248, %v16109_v9  ;;  %v6016_v29 = vmul.bf16 %v16076_v60, %v13792_v16  ;;  %v9526_v42 = vadd.s32 4294967256, %v16109_v9 }
 0xcb3   : > { %9051 = vadd.xlane.f32.xlu0 %v9050_v56  ;;  %11529 = vmatprep.subr.bf16.mxu1 %v6079_v14  ;;  %v6045_v56 = vmul.bf16 %v16051_v38, %v13856_v26  ;;  %v16123_v14 = vpop.xlane.xlu0 %8855  ;;  %v9521_v38 = vadd.s32 4294967264, %v16109_v9  ;;  %v6046_v47 = vmul.bf16 %v16047_v6, %v13856_v26 }
 0xcb4   : > { %11504 = vmatpush3.bf16.msra.mxu0 %v6043_v18  ;;  %9054 = vadd.xlane.f32.xlu1 %v9053_v63  ;;  %17881 = vst [vmem:[#allocation23_spill] sm:$0xff] %v16123_v14  ;;  %v6110_v63 = vmul.bf16 %v16047_v6, %v13945_v46  ;;  %v16130_v18 = vld [vmem:[%s17828_s10 + $0x4] ss:$12 sps:$4 sm:$0xff]   ;;  %v16142_v39 = vsub.s32 %v9526_v42, %v13771_v51  ;;  %v9547_v42 = vadd.s32 4294967232, %v16109_v9 }
 0xcb5   : > { %11505 = vmatprep.subr.bf16.mxu0 %v6108_v21  ;;  %v16133_v21 = vpop.xlane.xlu1 %8858 }
 0xcb6   : > { %12288 = vmatmul.mubr.msk.bf16.vlgmr.msra.gmra.mrb[88].mxu1 %vm3980_vm13, %v15755_v11  ;;  %17882 = vst [vmem:[#allocation24_spill] sm:$0xff] %v16133_v21 }
 0xcb7   : > { %11530 = vmatpush3.bf16.msra.mxu1 %v6015_v58  ;;  %9060 = vadd.xlane.f32.xlu0 %v9059_v33 }
 0xcb8   : > { %11506 = vmatpush3.bf16.msra.mxu0 %v6044_v23  ;;  %11531 = vmatprep.subr.bf16.mxu1 %v6080_v45 }
 0xcb9   : > { %11507 = vmatprep.subr.bf16.mxu0 %v6109_v37  ;;  %v12213_v49 = vpop.f32.mrb[40].mxu0  ;;  %6721 = vmatprep.mubr.bf16.mxu1 %v16130_v18  ;;  %v16139_v37 = vsub.s32 %v9533_v62, %v13771_v51  ;;  %v6143_v62 = vmul.bf16 %v16083_v50, %v13971_v17 }
 0xcba   : > { %v8912_v58 = vmul.f32 %v12213_v49, %v14546_v13  ;;  %v5884_v33 = vpop.f32.mrb[41].mxu0 }
 0xcbb   : > { %v8910_v45 = vmul.f32 %v14546_v13, %v5884_v33  ;;  %v12214_v23 = vpop.f32.mrb[42].mxu0  ;;  %11532 = vmatpush3.bf16.msra.mxu1 %v6016_v29  ;;  %v9540_v29 = vadd.s32 4294967240, %v16109_v9 }
 0xcbc   : > { %v16144_v3 = vpack.c.bf16 %v12214_v23, %v12213_v49  ;;  %v8913_v20 = vmul.f32 %v12214_v23, %v14546_v13  ;;  %11508 = vmatpush3.bf16.msra.mxu0 %v6045_v56  ;;  %v5887_v41 = vpop.f32.mrb[43].mxu0  ;;  %v9068_v32 = vsel %vm835_vm2, %v8912_v58, 0.0  ;;  %v16158_v58 = vsub.s32 %v9521_v38, %v13771_v51 }
 0xcbd   : > { %v8938_v21 = vpop.xlane.xlu0 %8937  ;;  %v16150_v14 = vpack.c.bf16 %v5887_v41, %v5884_v33  ;;  %11509 = vmatprep.subr.bf16.mxu0 %v6110_v63  ;;  %9069 = vadd.xlane.f32.xlu1 %v9068_v32  ;;  %v8911_v56 = vmul.f32 %v14546_v13, %v5887_v41  ;;  %v9062_v6 = vsel %vm835_vm2, %v8910_v45, 0.0  ;;  %v6144_v45 = vmul.bf16 %v16076_v60, %v13971_v17 }
 0xcbe   : > { %v8935_v49 = vpop.xlane.xlu1 %8934  ;;  %v9071_v33 = vsel %vm835_vm2, %v8913_v20, 0.0  ;;  %v6082_v41 = vmul.bf16 %v16144_v3, %v13904_v36  ;;  %v9537_v38 = vrot.slane %v8938_v21, %v16139_v37  ;;  %v16171_v20 = vsub.s32 %v9547_v42, %v13771_v51 }
 0xcbf   : > { %v6081_v32 = vmul.bf16 %v16150_v14, %v13904_v36  ;;  %v6017_v63 = vmul.bf16 %v16150_v14, %v13792_v16  ;;  %9072 = vadd.xlane.f32.xlu0 %v9071_v33  ;;  %v9530_v23 = vrot.slane %v8935_v49, %v16142_v39  ;;  %v9065_v49 = vsel %vm835_vm2, %v8911_v56, 0.0 }
 0xcc0   : > { %11510 = vmatpush3.bf16.msra.mxu0 %v6046_v47  ;;  %v16177_v47 = vsub.s32 %v9540_v29, %v13771_v51  ;;  %v6018_v21 = vmul.bf16 %v16144_v3, %v13792_v16  ;;  %v9568_v42 = vadd.s32 4294967208, %v16109_v9  ;;  %v6111_v29 = vmul.bf16 %v16083_v50, %v13945_v46 }
 0xcc1   : > { %v8932_v22 = vpop.xlane.xlu0 %8931  ;;  %12291 = vmatprep.subr.bf16.mxu0 %v6143_v62  ;;  %9063 = vadd.xlane.f32.xlu1 %v9062_v6  ;;  %v6145_v15 = vmul.bf16 %v16150_v14, %v13971_v17 }
 0xcc2   : > { %v9525_v33 = vrot.slane %v8932_v22, %v16158_v58  ;;  %11533 = vmatprep.subr.bf16.mxu1 %v6081_v32  ;;  %v9561_v32 = vadd.s32 4294967216, %v16109_v9 }
 0xcc3   : > { %6624 = vmatmul.mubr.bf16.vlgmr.msra.gmra.mrb[80].mxu0 %v15772_v48  ;;  %11534 = vmatpush3.bf16.msra.mxu1 %v6017_v63 }
 0xcc4   : > { %v9532_v6 = vsel %vm9531_vm5, %v9530_v23, %v9525_v33  ;;  %12292 = vmatpush3.bf16.msra.mxu0 %v6143_v62  ;;  %v8944_v22 = vpop.xlane.xlu1 %8943  ;;  %11535 = vmatprep.subr.bf16.mxu1 %v6082_v41  ;;  %v9554_v23 = vadd.s32 4294967224, %v16109_v9  ;;  %v16196_v41 = vsub.s32 %v9568_v42, %v13771_v51 }
 0xcc5   : > { %v8941_v56 = vpop.xlane.xlu0 %8940  ;;  %v9539_v48 = vsel %vm9538_vm6, %v9537_v38, %v9532_v6  ;;  %v9551_v63 = vrot.slane %v8944_v22, %v16171_v20  ;;  %12293 = vmatprep.subr.bf16.mxu0 %v6144_v45  ;;  %9066 = vadd.xlane.f32.xlu1 %v9065_v49  ;;  %v6047_v38 = vmul.bf16 %v16083_v50, %v13856_v26 }
 0xcc6   : > { %v9544_v62 = vrot.slane %v8941_v56, %v16177_v47  ;;  %6631 = vmatprep.mubr.bf16.mxu0 %v15789_v5  ;;  %v16202_v49 = vsub.s32 %v9561_v32, %v13771_v51  ;;  %v6112_v22 = vmul.bf16 %v16076_v60, %v13945_v46  ;;  %v16208_v42 = vsub.s32 %v9554_v23, %v13771_v51 }
 0xcc7   : > { %11536 = vmatpush3.bf16.msra.mxu1 %v6018_v21  ;;  %v6146_v50 = vmul.bf16 %v16144_v3, %v13971_v17  ;;  %v6113_v23 = vmul.bf16 %v16150_v14, %v13945_v46 }
 0xcc8   : > { %v9546_v33 = vsel %vm9545_vm7, %v9544_v62, %v9539_v48  ;;  %11537 = vmatprep.subr.bf16.mxu1 %v6111_v29  ;;  %12294 = vmatpush3.bf16.msra.mxu0 %v6144_v45  ;;  %v8953_v6 = vpop.xlane.xlu1 %8952  ;;  %v6048_v45 = vmul.bf16 %v16076_v60, %v13856_v26 }
 0xcc9   : > { %v9553_v56 = vsel %vm9552_vm8, %v9551_v63, %v9546_v33  ;;  %v8950_v21 = vpop.xlane.xlu0 %8949  ;;  %12295 = vmatprep.subr.bf16.mxu0 %v6145_v15  ;;  %v12217_v48 = vpop.f32.mrb[44].mxu0  ;;  %v9572_v62 = vrot.slane %v8953_v6, %v16196_v41 }
 0xcca   : > { %v8916_v32 = vmul.f32 %v12217_v48, %v14546_v13  ;;  %v5900_v29 = vpop.f32.mrb[45].mxu0  ;;  %v9565_v4 = vrot.slane %v8950_v21, %v16202_v49 }
 0xccb   : > { %6632 = vmatmul.mubr.bf16.gmra.mrb[84].mxu0 %v15810_v35  ;;  %11538 = vmatpush3.bf16.msra.mxu1 %v6047_v38  ;;  %v8914_v63 = vmul.f32 %v14546_v13, %v5900_v29  ;;  %v12218_v33 = vpop.f32.mrb[46].mxu0 }
 0xccc   : > { %11539 = vmatprep.subr.bf16.mxu1 %v6112_v22  ;;  %12296 = vmatpush3.bf16.msra.mxu0 %v6145_v15  ;;  %v8947_v24 = vpop.xlane.xlu1 %8946  ;;  %v16221_v53 = vpack.c.bf16 %v12218_v33, %v12217_v48  ;;  %v8917_v60 = vmul.f32 %v12218_v33, %v14546_v13  ;;  %v5903_v6 = vpop.f32.mrb[47].mxu0  ;;  %v9080_v35 = vsel %vm835_vm2, %v8916_v32, 0.0  ;;  %v6049_v15 = vmul.bf16 %v16150_v14, %v13856_v26 }
 0xccd   : > { %v9558_v38 = vrot.slane %v8947_v24, %v16208_v42  ;;  %12297 = vmatprep.subr.bf16.mxu0 %v6146_v50  ;;  %v16226_v43 = vpack.c.bf16 %v5903_v6, %v5900_v29  ;;  %v8915_v55 = vmul.f32 %v14546_v13, %v5903_v6  ;;  %9081 = vadd.xlane.f32.xlu1 %v9080_v35  ;;  %v9074_v21 = vsel %vm835_vm2, %v8914_v63, 0.0  ;;  %v8956_v24 = vpop.xlane.xlu0 %8955 }
 0xcce   : > { %9075 = vadd.xlane.f32.xlu0 %v9074_v21  ;;  %12299 = vmatprep.mubr.msk.bf16.mxu0 %vm3980_vm13, %v15732_v57  ;;  %v9083_v29 = vsel %vm835_vm2, %v8917_v60, 0.0  ;;  %v6114_v33 = vmul.bf16 %v16144_v3, %v13945_v46  ;;  %v9578_v60 = vrot.slane %v8956_v24, %v16158_v58  ;;  %v16269_v24 = vld [vmem:[%s17828_s10] ss:$12 sps:$4 sm:$0xff]  }
 0xccf   : > { %v9560_v22 = vsel %vm9559_vm9, %v9558_v38, %v9553_v56  ;;  %11540 = vmatpush3.bf16.msra.mxu1 %v6048_v45  ;;  %v6083_v48 = vmul.bf16 %v16226_v43, %v13904_v36  ;;  %v9077_v32 = vsel %vm835_vm2, %v8915_v55, 0.0  ;;  %v6019_v57 = vmul.bf16 %v16226_v43, %v13792_v16 }
 0xcd0   : > { %v9567_v63 = vsel %vm9566_vm10, %v9565_v4, %v9560_v22  ;;  %11541 = vmatprep.subr.bf16.mxu1 %v6113_v23  ;;  %12298 = vmatpush3.bf16.msra.mxu0 %v6146_v50  ;;  %v8962_v14 = vpop.xlane.xlu1 %8961  ;;  %v6084_v55 = vmul.bf16 %v16221_v53, %v13904_v36  ;;  %v6147_v45 = vmul.bf16 %v16226_v43, %v13971_v17 }
 0xcd1   : > { %v16245_v56 = vsel %vm9573_vm11, %v9572_v62, %v9567_v63  ;;  %11563 = vmatprep.subr.bf16.mxu0 %v6083_v48  ;;  %9078 = vadd.xlane.f32.xlu1 %v9077_v32  ;;  %v6020_v62 = vmul.bf16 %v16221_v53, %v13792_v16  ;;  %v6050_v23 = vmul.bf16 %v16144_v3, %v13856_v26 }
 0xcd2   : > { %9084 = vadd.xlane.f32.xlu0 %v9083_v29  ;;  %v6148_v38 = vmul.bf16 %v16221_v53, %v13971_v17 }
 0xcd3   : > { %11542 = vmatpush3.bf16.msra.mxu1 %v6049_v15  ;;  %12300 = vmatmul.mubr.msk.bf16.vlgmr.msra.gmra.mrb[88].mxu0 %vm3980_vm13, %v15755_v11  ;;  %v9587_v11 = vrot.slane %v8962_v14, %v16139_v37 }
 0xcd4   : > { %11543 = vmatprep.subr.bf16.mxu1 %v6114_v33  ;;  %v8965_v4 = vpop.xlane.xlu1 %8964  ;;  %v8968_v50 = vpop.xlane.xlu0 %8967  ;;  %11564 = vmatpush3.bf16.msra.mxu0 %v6019_v57 }
 0xcd5   : > { %11565 = vmatprep.subr.bf16.mxu0 %v6084_v55  ;;  %6819 = vmatprep.mubr.bf16.mxu0 %v16130_v18  ;;  %v9592_v21 = vrot.slane %v8965_v4, %v16177_v47  ;;  %v9597_v22 = vrot.slane %v8968_v50, %v16171_v20 }
 0xcd7   : > { %11544 = vmatpush3.bf16.msra.mxu1 %v6050_v23 }
 0xcd8   : > { %v8959_v6 = vpop.xlane.xlu1 %8958  ;;  %v8977_v35 = vpop.xlane.xlu0 %8976  ;;  %12303 = vmatprep.subr.bf16.mxu1 %v6147_v45  ;;  %11566 = vmatpush3.bf16.msra.mxu0 %v6020_v62 }
 0xcd9   : > { %v9582_v15 = vrot.slane %v8959_v6, %v16142_v39  ;;  %v12221_v3 = vpop.f32.mrb[48].mxu0  ;;  %v9612_v63 = vrot.slane %v8977_v35, %v16196_v41 }
 0xcda   : > { %v8920_v48 = vmul.f32 %v12221_v3, %v14546_v13  ;;  %6722 = vmatmul.mubr.bf16.vlgmr.msra.gmra.mrb[92].mxu1 %v16269_v24  ;;  %v5916_v32 = vpop.f32.mrb[49].mxu0 }
 0xcdb   : > { %v9583_v29 = vsel %vm9531_vm5, %v9582_v15, %v9578_v60  ;;  %v8918_v14 = vmul.f32 %v14546_v13, %v5916_v32  ;;  %12304 = vmatpush3.bf16.msra.mxu1 %v6147_v45  ;;  %v12222_v33 = vpop.f32.mrb[50].mxu0  ;;  %6729 = vmatprep.mubr.bf16.mxu1 %v15789_v5 }
 0xcdc   : > { %v9588_v57 = vsel %vm9538_vm6, %v9587_v11, %v9583_v29  ;;  %v16277_v55 = vpack.c.bf16 %v12222_v33, %v12221_v3  ;;  %v8921_v4 = vmul.f32 %v12222_v33, %v14546_v13  ;;  %12305 = vmatprep.subr.bf16.mxu1 %v6148_v38  ;;  %v8971_v50 = vpop.xlane.xlu0 %8970  ;;  %v5919_v62 = vpop.f32.mrb[51].mxu0  ;;  %v9092_v23 = vsel %vm835_vm2, %v8920_v48, 0.0 }
 0xcdd   : > { %v9593_v60 = vsel %vm9545_vm7, %v9592_v21, %v9588_v57  ;;  %v9602_v6 = vrot.slane %v8971_v50, %v16208_v42  ;;  %v16283_v35 = vpack.c.bf16 %v5919_v62, %v5916_v32  ;;  %v8919_v45 = vmul.f32 %v14546_v13, %v5919_v62  ;;  %9093 = vadd.xlane.f32.xlu1 %v9092_v23 }
 0xcde   : > { %v9598_v5 = vsel %vm9552_vm8, %v9597_v22, %v9593_v60  ;;  %v8974_v11 = vpop.xlane.xlu1 %8973  ;;  %v9086_v15 = vsel %vm835_vm2, %v8918_v14, 0.0  ;;  %v9095_v3 = vsel %vm835_vm2, %v8921_v4, 0.0  ;;  %v6086_v29 = vmul.bf16 %v16277_v55, %v13904_v36 }
 0xcdf   : > { %v9603_v48 = vsel %vm9559_vm9, %v9602_v6, %v9598_v5  ;;  %v9607_v21 = vrot.slane %v8974_v11, %v16202_v49  ;;  %12306 = vmatpush3.bf16.msra.mxu1 %v6148_v38  ;;  %9087 = vadd.xlane.f32.xlu0 %v9086_v15  ;;  %v6085_v32 = vmul.bf16 %v16283_v35, %v13904_v36  ;;  %v9089_v33 = vsel %vm835_vm2, %v8919_v45, 0.0  ;;  %v16305_v38 = vld [vmem:[%s17828_s10 + $0x18] ss:$12 sps:$4 sm:$0xff]   ;;  %v12886_v6 = vld [vmem:[%s17828_s10 + $0x8] ss:$12 sps:$4 sm:$0xff]  }
 0xce0   : > { %v6021_v22 = vmul.bf16 %v16283_v35, %v13792_v16  ;;  %v6149_v14 = vmul.bf16 %v16283_v35, %v13971_v17  ;;  %v6022_v50 = vmul.bf16 %v16277_v55, %v13792_v16  ;;  %v6150_v23 = vmul.bf16 %v16277_v55, %v13971_v17 }
 0xce1   : > { %v9608_v57 = vsel %vm9566_vm10, %v9607_v21, %v9603_v48  ;;  %11567 = vmatprep.subr.bf16.mxu0 %v6085_v32  ;;  %9096 = vadd.xlane.f32.xlu1 %v9095_v3  ;;  %v6115_v45 = vmul.bf16 %v16226_v43, %v13945_v46  ;;  %v6116_v21 = vmul.bf16 %v16221_v53, %v13945_v46 }
 0xce2   : > { %v9613_v4 = vsel %vm9573_vm11, %v9612_v63, %v9608_v57  ;;  %6730 = vmatmul.mubr.bf16.gmra.mrb[96].mxu1 %v16305_v38  ;;  %11568 = vmatpush3.bf16.msra.mxu0 %v6021_v22  ;;  %v8989_v62 = vpop.xlane.xlu1 %8988  ;;  %v6117_v22 = vmul.bf16 %v16283_v35, %v13945_v46  ;;  %v16338_v57 = vld [vmem:[%s17828_s10 + $0x20] ss:$12 sps:$4 sm:$0xff]  }
 0xce3   : > { %v9848_v60 = vsel %vm9442_vm12, %v9613_v4, %v16245_v56  ;;  %9090 = vadd.xlane.f32.xlu0 %v9089_v33  ;;  %11569 = vmatprep.subr.bf16.mxu0 %v6086_v29  ;;  %v8986_v63 = vpop.xlane.xlu0 %8985  ;;  %v9631_v3 = vrot.slane %v8989_v62, %v16177_v47  ;;  %v6051_v29 = vmul.bf16 %v16226_v43, %v13856_v26 }
 0xce4   : > { %12307 = vmatprep.subr.bf16.mxu1 %v6149_v14  ;;  %12311 = vmatprep.mubr.msk.bf16.mxu1 %vm3980_vm13, %v12886_v6  ;;  %v9626_v56 = vrot.slane %v8986_v63, %v16139_v37  ;;  %v6053_v4 = vmul.bf16 %v16283_v35, %v13856_v26  ;;  %v6054_v63 = vmul.bf16 %v16277_v55, %v13856_v26 }
 0xce5   : > { %12308 = vmatpush3.bf16.msra.mxu1 %v6149_v14  ;;  %v6052_v14 = vmul.bf16 %v16221_v53, %v13856_v26  ;;  %v6118_v53 = vmul.bf16 %v16277_v55, %v13945_v46  ;;  %v16360_v55 = vld [vmem:[%s17828_s10 + $0x1c] ss:$12 sps:$4 sm:$0xff]  }
 0xce6   : > { %11570 = vmatpush3.bf16.msra.mxu0 %v6022_v50  ;;  %12309 = vmatprep.subr.bf16.mxu1 %v6150_v23  ;;  %v8983_v5 = vpop.xlane.xlu1 %8982 }
 0xce7   : > { %11571 = vmatprep.subr.bf16.mxu0 %v6115_v45  ;;  %v9621_v11 = vrot.slane %v8983_v5, %v16142_v39  ;;  %v8980_v15 = vpop.xlane.xlu0 %8979 }
 0xce8   : > { %v9617_v48 = vrot.slane %v8980_v15, %v16158_v58 }
 0xce9   : > { %12310 = vmatpush3.bf16.msra.mxu1 %v6150_v23 }
 0xcea   : > { %11572 = vmatpush3.bf16.msra.mxu0 %v6051_v29  ;;  %v9622_v32 = vsel %vm9531_vm5, %v9621_v11, %v9617_v48 }
 0xceb   : > { %11573 = vmatprep.subr.bf16.mxu0 %v6116_v21  ;;  %v9627_v33 = vsel %vm9538_vm6, %v9626_v56, %v9622_v32 }
 0xcec   : > { %v9632_v43 = vsel %vm9545_vm7, %v9631_v3, %v9627_v33  ;;  %12312 = vmatmul.mubr.msk.bf16.vlgmr.msra.gmra.mrb[100].mxu1 %vm3980_vm13, %v16338_v57 }
 0xced   : > { %6917 = vmatprep.mubr.bf16.mxu1 %v16130_v18 }
 0xcee   : > { %11574 = vmatpush3.bf16.msra.mxu0 %v6052_v14 }
 0xcef   : > { %11575 = vmatprep.subr.bf16.mxu0 %v6117_v22 }
 0xcf0   : > { %v8998_v50 = vpop.xlane.xlu1 %8997 }
 0xcf1   : > { %v9646_v18 = vrot.slane %v8998_v50, %v16202_v49 }
 0xcf2   : > { %v9001_v62 = vpop.xlane.xlu0 %9000  ;;  %11576 = vmatpush3.bf16.msra.mxu0 %v6053_v4 }
 0xcf3   : > { %11577 = vmatprep.subr.bf16.mxu0 %v6118_v53  ;;  %v9651_v35 = vrot.slane %v9001_v62, %v16196_v41 }
 0xcf4   : > { %v8992_v23 = vpop.xlane.xlu1 %8991 }
 0xcf5   : > { %v9636_v45 = vrot.slane %v8992_v23, %v16171_v20 }
 0xcf6   : > { %v8995_v5 = vpop.xlane.xlu0 %8994  ;;  %11578 = vmatpush3.bf16.msra.mxu0 %v6054_v63 }
 0xcf7   : > { %v9637_v56 = vsel %vm9552_vm8, %v9636_v45, %v9632_v43  ;;  %v9641_v11 = vrot.slane %v8995_v5, %v16208_v42 }
 0xcf9   : > { %v9642_v15 = vsel %vm9559_vm9, %v9641_v11, %v9637_v56  ;;  %6820 = vmatmul.mubr.bf16.vlgmr.msra.gmra.mrb[92].mxu0 %v16269_v24 }
 0xcfa   : > { %v9647_v3 = vsel %vm9566_vm10, %v9646_v18, %v9642_v15  ;;  %6827 = vmatprep.mubr.bf16.mxu0 %v16360_v55 }
 0xcfb   : > { %v9652_v29 = vsel %vm9573_vm11, %v9651_v35, %v9647_v3 }
 0xcfc   : > { %v16365_v48 = vsel %vm9444_vm15, %v9652_v29, %v9848_v60 }
 0xd01   : > { %6828 = vmatmul.mubr.bf16.gmra.mrb[96].mxu0 %v16305_v38 }
 0xd02   : > { %12323 = vmatprep.mubr.msk.bf16.mxu0 %vm3980_vm13, %v12886_v6 }
 0xd04   : > { %v9010_v21 = vpop.xlane.xlu0 %9009 }
 0xd05   : > { %v9665_v53 = vrot.slane %v9010_v21, %v16139_v37 }
 0xd07   : > { %v9004_v22 = vpop.xlane.xlu1 %9003 }
 0xd08   : > { %v9013_v32 = vpop.xlane.xlu0 %9012  ;;  %v9656_v4 = vrot.slane %v9004_v22, %v16158_v58 }
 0xd09   : > { %v9670_v50 = vrot.slane %v9013_v32, %v16177_v47 }
 0xd0a   : > { %v12225_v33 = vpop.f32.mrb[52].mxu0 }
 0xd0b   : > { %v8924_v14 = vmul.f32 %v12225_v33, %v14546_v13  ;;  %v5932_v43 = vpop.f32.mrb[53].mxu0 }
 0xd0c   : > { %v8922_v60 = vmul.f32 %v14546_v13, %v5932_v43  ;;  %v12226_v62 = vpop.f32.mrb[54].mxu0  ;;  %v9007_v23 = vpop.xlane.xlu0 %9006 }
 0xd0d   : > { %v16374_v63 = vpack.c.bf16 %v12226_v62, %v12225_v33  ;;  %v8925_v6 = vmul.f32 %v12226_v62, %v14546_v13  ;;  %v9660_v45 = vrot.slane %v9007_v23, %v16142_v39  ;;  %v5935_v18 = vpop.f32.mrb[55].mxu0  ;;  %v9104_v5 = vsel %vm835_vm2, %v8924_v14, 0.0 }
 0xd0e   : > { %v16379_v35 = vpack.c.bf16 %v5935_v18, %v5932_v43  ;;  %9105 = vadd.xlane.f32.xlu1 %v9104_v5  ;;  %v9098_v56 = vsel %vm835_vm2, %v8922_v60, 0.0  ;;  %v8923_v32 = vmul.f32 %v14546_v13, %v5935_v18 }
 0xd0f   : > { %v9661_v11 = vsel %vm9531_vm5, %v9660_v45, %v9656_v4  ;;  %9099 = vadd.xlane.f32.xlu0 %v9098_v56  ;;  %v9107_v33 = vsel %vm835_vm2, %v8925_v6, 0.0  ;;  %v6088_v14 = vmul.bf16 %v16374_v63, %v13904_v36  ;;  %v6152_v43 = vmul.bf16 %v16374_v63, %v13971_v17 }
 0xd10   : > { %v9666_v15 = vsel %vm9538_vm6, %v9665_v53, %v9661_v11  ;;  %v6087_v3 = vmul.bf16 %v16379_v35, %v13904_v36  ;;  %v6151_v29 = vmul.bf16 %v16379_v35, %v13971_v17  ;;  %v6023_v21 = vmul.bf16 %v16379_v35, %v13792_v16 }
 0xd11   : > { %v9671_v22 = vsel %vm9545_vm7, %v9670_v50, %v9666_v15  ;;  %v9101_v53 = vsel %vm835_vm2, %v8923_v32, 0.0  ;;  %v6024_v60 = vmul.bf16 %v16374_v63, %v13792_v16 }
 0xd12   : > { %9108 = vadd.xlane.f32.xlu1 %v9107_v33  ;;  %11597 = vmatprep.subr.bf16.mxu1 %v6087_v3 }
 0xd13   : > { %12315 = vmatprep.subr.bf16.mxu0 %v6151_v29  ;;  %11598 = vmatpush3.bf16.msra.mxu1 %v6023_v21 }
 0xd14   : > { %12316 = vmatpush3.bf16.msra.mxu0 %v6151_v29  ;;  %v9022_v4 = vpop.xlane.xlu1 %9021  ;;  %11599 = vmatprep.subr.bf16.mxu1 %v6088_v14 }
 0xd15   : > { %12317 = vmatprep.subr.bf16.mxu0 %v6152_v43  ;;  %v9685_v6 = vrot.slane %v9022_v4, %v16202_v49 }
 0xd16   : > { %9102 = vadd.xlane.f32.xlu1 %v9101_v53 }
 0xd17   : > { %v9019_v50 = vpop.xlane.xlu0 %9018  ;;  %11600 = vmatpush3.bf16.msra.mxu1 %v6024_v60 }
 0xd18   : > { %v9680_v62 = vrot.slane %v9019_v50, %v16208_v42  ;;  %12318 = vmatpush3.bf16.msra.mxu0 %v6152_v43  ;;  %v9016_v23 = vpop.xlane.xlu1 %9015 }
 0xd19   : > { %v9675_v45 = vrot.slane %v9016_v23, %v16171_v20  ;;  %v12229_v18 = vpop.f32.mrb[56].mxu0 }
 0xd1a   : > { %v8928_v5 = vmul.f32 %v12229_v18, %v14546_v13  ;;  %v5948_v56 = vpop.f32.mrb[57].mxu0 }
 0xd1b   : > { %v9676_v11 = vsel %vm9552_vm8, %v9675_v45, %v9671_v22  ;;  %v8926_v15 = vmul.f32 %v14546_v13, %v5948_v56  ;;  %v12230_v3 = vpop.f32.mrb[58].mxu0 }
 0xd1c   : > { %v9681_v29 = vsel %vm9559_vm9, %v9680_v62, %v9676_v11  ;;  %v9025_v21 = vpop.xlane.xlu1 %9024  ;;  %v16407_v32 = vpack.c.bf16 %v12230_v3, %v12229_v18  ;;  %v8929_v33 = vmul.f32 %v12230_v3, %v14546_v13  ;;  %v5951_v14 = vpop.f32.mrb[59].mxu0  ;;  %v9116_v43 = vsel %vm835_vm2, %v8928_v5, 0.0 }
 0xd1d   : > { %v9686_v4 = vsel %vm9566_vm10, %v9685_v6, %v9681_v29  ;;  %v9690_v53 = vrot.slane %v9025_v21, %v16196_v41  ;;  %v16413_v60 = vpack.c.bf16 %v5951_v14, %v5948_v56  ;;  %9117 = vadd.xlane.f32.xlu0 %v9116_v43  ;;  %v9110_v22 = vsel %vm835_vm2, %v8926_v15, 0.0 }
 0xd1e   : > { %9111 = vadd.xlane.f32.xlu1 %v9110_v22  ;;  %v8927_v18 = vmul.f32 %v14546_v13, %v5951_v14  ;;  %v9119_v5 = vsel %vm835_vm2, %v8929_v33, 0.0  ;;  %v6090_v56 = vmul.bf16 %v16407_v32, %v13904_v36  ;;  %v6154_v15 = vmul.bf16 %v16407_v32, %v13971_v17 }
 0xd1f   : > { %v9691_v50 = vsel %vm9573_vm11, %v9690_v53, %v9686_v4  ;;  %v6089_v62 = vmul.bf16 %v16413_v60, %v13904_v36  ;;  %v6153_v23 = vmul.bf16 %v16413_v60, %v13971_v17  ;;  %v6025_v6 = vmul.bf16 %v16413_v60, %v13792_v16 }
 0xd20   : > { %v16425_v45 = vsel %vm9446_vm0, %v9691_v50, %v16365_v48  ;;  %v9113_v21 = vsel %vm835_vm2, %v8927_v18, 0.0  ;;  %v6026_v33 = vmul.bf16 %v16407_v32, %v13792_v16  ;;  %v6119_v43 = vmul.bf16 %v16379_v35, %v13945_v46  ;;  %v16441_v50 = vld [vmem:[%s17829_s11 + $0x4] ss:$8 sps:$4 sm:$0xff]  }
 0xd21   : > { %9120 = vadd.xlane.f32.xlu0 %v9119_v5  ;;  %11601 = vmatprep.subr.bf16.mxu1 %v6089_v62  ;;  %v12241_v11 = vpop.f32.mrb[60].mxu0  ;;  %v17883_v5 = vmov 0  }
 0xd22   : > { %12319 = vmatprep.subr.bf16.mxu0 %v6153_v23  ;;  %11602 = vmatpush3.bf16.msra.mxu1 %v6025_v6  ;;  %v6282_v3 = vpop.f32.mrb[61].mxu0 }
 0xd23   : > { %12320 = vmatpush3.bf16.msra.mxu0 %v6153_v23  ;;  %11603 = vmatprep.subr.bf16.mxu1 %v6090_v56  ;;  %v12242_v48 = vpop.f32.mrb[62].mxu0  ;;  %v6055_v23 = vmul.bf16 %v16379_v35, %v13856_v26 }
 0xd24   : > { %v9034_v29 = vpop.xlane.xlu1 %9033  ;;  %12321 = vmatprep.subr.bf16.mxu0 %v6154_v15  ;;  %v6285_v14 = vpop.f32.mrb[63].mxu0 }
 0xd25   : > { %9114 = vadd.xlane.f32.xlu0 %v9113_v21 }
 0xd26   : > { %v9037_v4 = vpop.xlane.xlu0 %9036  ;;  %11604 = vmatpush3.bf16.msra.mxu1 %v6026_v33  ;;  %v11375_v53 = vpop.f32.mrb[60].mxu1  ;;  %v9704_v33 = vrot.slane %v9034_v29, %v16139_v37 }
 0xd27   : > { %12322 = vmatpush3.bf16.msra.mxu0 %v6154_v15  ;;  %11605 = vmatprep.subr.bf16.mxu1 %v6119_v43  ;;  %v11376_v22 = vpop.f32.mrb[61].mxu1  ;;  %v6120_v15 = vmul.bf16 %v16374_v63, %v13945_v46  ;;  %v9709_v35 = vrot.slane %v9037_v4, %v16177_v47 }
 0xd28   : > { %v9028_v62 = vpop.xlane.xlu1 %9027  ;;  %v11377_v6 = vadd.f32 %v11376_v22, %v11375_v53  ;;  %v11378_v18 = vpop.f32.mrb[62].mxu1  ;;  %7107 = vmatprep.subr.bf16.mxu0 %v17883_v5  ;;  %v6056_v22 = vmul.bf16 %v16374_v63, %v13856_v26 }
 0xd29   : > { %v9695_v56 = vrot.slane %v9028_v62, %v16158_v58  ;;  %v11379_v21 = vpop.f32.mrb[63].mxu1 }
 0xd2a   : > { %v9031_v43 = vpop.xlane.xlu0 %9030  ;;  %11606 = vmatpush3.bf16.msra.mxu1 %v6055_v23  ;;  %12324 = vmatmul.mubr.msk.bf16.vlgmr.msra.gmra.mrb[100].mxu0 %vm3980_vm13, %v16338_v57  ;;  %v11380_v52 = vadd.f32 %v11379_v21, %v11378_v18  ;;  %v6283_v27 = vadd.f32 %v11377_v6, %v6282_v3  ;;  %v6121_v23 = vmul.bf16 %v16413_v60, %v13945_v46  ;;  %vm9448_vm13 = vcmask 1044484  }
 0xd2b   : > { %v9699_v53 = vrot.slane %v9031_v43, %v16142_v39  ;;  %11607 = vmatprep.subr.bf16.mxu1 %v6120_v15  ;;  %10739 = vmatprep.mubr.msk.bf16.mxu0 %vm3179_vm14, %v16441_v50  ;;  %v6057_v15 = vmul.bf16 %v16413_v60, %v13856_v26 }
 0xd2c   : > { %v6286_v62 = vadd.f32 %v11380_v52, %v6285_v14 }
 0xd2d   : > { %v9700_v29 = vsel %vm9531_vm5, %v9699_v53, %v9695_v56  ;;  %v6122_v56 = vmul.bf16 %v16407_v32, %v13945_v46 }
 0xd2e   : > { %v9705_v57 = vsel %vm9538_vm6, %v9704_v33, %v9700_v29  ;;  %11608 = vmatpush3.bf16.msra.mxu1 %v6056_v22  ;;  %v11381_v3 = vpop.f32.mrb[64].mxu1  ;;  %v16462_v4 = vpack.c.bf16 %v6286_v62, %v6283_v27  ;;  %v6058_v22 = vmul.bf16 %v16407_v32, %v13856_v26 }
 0xd2f   : > { %11609 = vmatprep.subr.bf16.mxu1 %v6121_v23  ;;  %v9710_v6 = vsel %vm9545_vm7, %v9709_v35, %v9705_v57  ;;  %v11382_v18 = vpop.f32.mrb[65].mxu1 }
 0xd30   : > { %v11383_v63 = vadd.f32 %v11382_v18, %v11381_v3  ;;  %v11384_v52 = vpop.f32.mrb[66].mxu1  ;;  %v6999_v14 = vmul.bf16 %v16462_v4, %v13792_v16  ;;  %v7015_v32 = vmul.bf16 %v16462_v4, %v13856_v26 }
 0xd31   : > { %v11385_v21 = vpop.f32.mrb[67].mxu1  ;;  %v16471_v33 = vpop.f32.mrb[64].mxu0 }
 0xd32   : > { %11610 = vmatpush3.bf16.msra.mxu1 %v6057_v15  ;;  %v6291_v27 = vadd.f32 %v12241_v11, %v11383_v63  ;;  %v11386_v43 = vadd.f32 %v11385_v21, %v11384_v52  ;;  %7108 = vmatpush1.bf16.msra.mxu0 %v6999_v14  ;;  %v6380_v35 = vpop.f32.mrb[65].mxu0 }
 0xd33   : > { %11611 = vmatprep.subr.bf16.mxu1 %v6122_v56  ;;  %7109 = vmatprep.subr.bf16.mxu0 %v17883_v5  ;;  %v16474_v60 = vpop.f32.mrb[66].mxu0 }
 0xd34   : > { %v9046_v53 = vpop.xlane.xlu0 %9045  ;;  %v6294_v62 = vadd.f32 %v12242_v48, %v11386_v43  ;;  %v6383_v29 = vpop.f32.mrb[67].mxu0 }
 0xd35   : > { %v9040_v23 = vpop.xlane.xlu1 %9039  ;;  %v9724_v48 = vrot.slane %v9046_v53, %v16202_v49 }
 0xd36   : > { %v9714_v57 = vrot.slane %v9040_v23, %v16171_v20  ;;  %11612 = vmatpush3.bf16.msra.mxu1 %v6058_v22  ;;  %v16479_v3 = vpack.c.bf16 %v6294_v62, %v6291_v27 }
 0xd37   : > { %7156 = vmatprep.subr.bf16.mxu1 %v17883_v5 }
 0xd38   : > { %v9715_v11 = vsel %vm9552_vm8, %v9714_v57, %v9710_v6  ;;  %v9049_v18 = vpop.xlane.xlu0 %9048  ;;  %v7000_v15 = vmul.bf16 %v16479_v3, %v13792_v16  ;;  %v7031_v57 = vmul.bf16 %v16462_v4, %v13904_v36 }
 0xd39   : > { %6918 = vmatmul.mubr.bf16.vlgmr.msra.gmra.mrb[104].mxu1 %v16269_v24  ;;  %v9729_v6 = vrot.slane %v9049_v18, %v16196_v41  ;;  %v7016_v24 = vmul.bf16 %v16479_v3, %v13856_v26 }
 0xd3a   : > { %6925 = vmatprep.mubr.bf16.mxu1 %v16360_v55  ;;  %7110 = vmatpush1.bf16.msra.mxu0 %v7000_v15 }
 0xd3b   : > { %7111 = vmatprep.subr.bf16.mxu0 %v17883_v5 }
 0xd3c   : > { %v9043_v63 = vpop.xlane.xlu0 %9042  ;;  %v9058_v52 = vpop.xlane.xlu1 %9057 }
 0xd3d   : > { %v9719_v14 = vrot.slane %v9043_v63, %v16208_v42  ;;  %v9743_v43 = vrot.slane %v9058_v52, %v16139_v37 }
 0xd3e   : > { %7112 = vmatpush1.bf16.msra.mxu0 %v7015_v32 }
 0xd3f   : > { %v9720_v55 = vsel %vm9559_vm9, %v9719_v14, %v9715_v11  ;;  %7113 = vmatprep.subr.bf16.mxu0 %v17883_v5 }
 0xd40   : > { %v9725_v56 = vsel %vm9566_vm10, %v9724_v48, %v9720_v55  ;;  %v9052_v21 = vpop.xlane.xlu0 %9051 }
 0xd41   : > { %v9730_v27 = vsel %vm9573_vm11, %v9729_v6, %v9725_v56  ;;  %6926 = vmatmul.mubr.bf16.gmra.mrb[108].mxu1 %v16305_v38  ;;  %v9734_v53 = vrot.slane %v9052_v21, %v16158_v58  ;;  %v9055_v22 = vpop.xlane.xlu1 %9054  ;;  %v7047_v21 = vmul.bf16 %v16462_v4, %v13945_v46 }
 0xd42   : > { %v9738_v62 = vrot.slane %v9055_v22, %v16142_v39  ;;  %v16505_v23 = vsel %vm9448_vm13, %v9730_v27, %v16425_v45  ;;  %7114 = vmatpush1.bf16.msra.mxu0 %v7016_v24  ;;  %10741 = vmatprep.mubr.msk.bf16.mxu1 %vm3179_vm14, %v16441_v50  ;;  %v7032_v45 = vmul.bf16 %v16479_v3, %v13904_v36 }
 0xd43   : > { %7115 = vmatprep.subr.bf16.mxu0 %v17883_v5 }
 0xd44   : > { %v9739_v38 = vsel %vm9531_vm5, %v9738_v62, %v9734_v53  ;;  %v9061_v11 = vpop.xlane.xlu0 %9060  ;;  %v7048_v62 = vmul.bf16 %v16479_v3, %v13945_v46 }
 0xd45   : > { %v9744_v18 = vsel %vm9538_vm6, %v9743_v43, %v9739_v38  ;;  %v9748_v15 = vrot.slane %v9061_v11, %v16177_v47 }
 0xd46   : > { %v11409_v32 = vpop.f32.mrb[68].mxu1  ;;  %7116 = vmatpush1.bf16.msra.mxu0 %v7031_v57 }
 0xd47   : > { %v9749_v48 = vsel %vm9545_vm7, %v9748_v15, %v9744_v18  ;;  %v11410_v63 = vpop.f32.mrb[69].mxu1  ;;  %7117 = vmatprep.subr.bf16.mxu0 %v17883_v5 }
 0xd48   : > { %v11411_v52 = vadd.f32 %v11410_v63, %v11409_v32  ;;  %v11412_v6 = vpop.f32.mrb[70].mxu1 }
 0xd49   : > { %v11413_v14 = vpop.f32.mrb[71].mxu1 }
 0xd4a   : > { %v9070_v24 = vpop.xlane.xlu1 %9069  ;;  %v11414_v55 = vadd.f32 %v11413_v14, %v11412_v6  ;;  %v6381_v56 = vadd.f32 %v11411_v52, %v6380_v35  ;;  %7118 = vmatpush1.bf16.msra.mxu0 %v7032_v45  ;;  %v7063_v45 = vmul.bf16 %v16462_v4, %v13971_v17 }
 0xd4b   : > { %7119 = vmatprep.subr.bf16.mxu0 %v17883_v5  ;;  %v9763_v63 = vrot.slane %v9070_v24, %v16202_v49 }
 0xd4c   : > { %v6384_v27 = vadd.f32 %v11414_v55, %v6383_v29  ;;  %v9073_v35 = vpop.xlane.xlu0 %9072 }
 0xd4e   : > { %v9064_v43 = vpop.xlane.xlu1 %9063  ;;  %v11415_v53 = vpop.f32.mrb[72].mxu1  ;;  %v16522_v22 = vpack.c.bf16 %v6384_v27, %v6381_v56  ;;  %7120 = vmatpush1.bf16.msra.mxu0 %v7047_v21  ;;  %v9768_v21 = vrot.slane %v9073_v35, %v16196_v41  ;;  %v7064_v35 = vmul.bf16 %v16479_v3, %v13971_v17  ;;  %v16557_v3 = vld [vmem:[%s17829_s11] ss:$8 sps:$4 sm:$0xff]  }
 0xd4f   : > { %v9753_v57 = vrot.slane %v9064_v43, %v16171_v20  ;;  %v11416_v38 = vpop.f32.mrb[73].mxu1  ;;  %7121 = vmatprep.subr.bf16.mxu0 %v17883_v5 }
 0xd50   : > { %v11417_v11 = vadd.f32 %v11416_v38, %v11415_v53  ;;  %v11418_v18 = vpop.f32.mrb[74].mxu1  ;;  %v7001_v15 = vmul.bf16 %v16522_v22, %v13792_v16 }
 0xd51   : > { %v9754_v29 = vsel %vm9552_vm8, %v9753_v57, %v9749_v48  ;;  %v11419_v32 = vpop.f32.mrb[75].mxu1 }
 0xd52   : > { %v9067_v52 = vpop.xlane.xlu1 %9066  ;;  %v6389_v6 = vadd.f32 %v16471_v33, %v11417_v11  ;;  %v11420_v14 = vadd.f32 %v11419_v32, %v11418_v18  ;;  %7157 = vmatpush1.bf16.msra.mxu1 %v7001_v15  ;;  %v11443_v55 = vpop.f32.mrb[68].mxu0  ;;  %7122 = vmatpush1.bf16.msra.mxu0 %v7048_v62 }
 0xd53   : > { %v9758_v56 = vrot.slane %v9067_v52, %v16208_v42  ;;  %7158 = vmatprep.subr.bf16.mxu1 %v17883_v5  ;;  %v11444_v48 = vpop.f32.mrb[69].mxu0  ;;  %7123 = vmatprep.subr.bf16.mxu0 %v17883_v5  ;;  %v7017_v52 = vmul.bf16 %v16522_v22, %v13856_v26 }
 0xd54   : > { %v6392_v4 = vadd.f32 %v16474_v60, %v11420_v14  ;;  %v11445_v27 = vadd.f32 %v11444_v48, %v11443_v55  ;;  %v11446_v24 = vpop.f32.mrb[70].mxu0 }
 0xd55   : > { %v9759_v43 = vsel %vm9559_vm9, %v9758_v56, %v9754_v29  ;;  %v11447_v33 = vpop.f32.mrb[71].mxu0  ;;  %v16566_v56 = vld [vmem:[%s17829_s11 + $0x14] ss:$8 sps:$4 sm:$0xff]  }
 0xd56   : > { %v9764_v53 = vsel %vm9566_vm10, %v9763_v63, %v9759_v43  ;;  %v16542_v57 = vpack.c.bf16 %v6392_v4, %v6389_v6  ;;  %v12265_v62 = vpop.f32.mrb[76].mxu1  ;;  %v11448_v38 = vadd.f32 %v11447_v33, %v11446_v24  ;;  %7124 = vmatpush1.bf16.msra.mxu0 %v7063_v45 }
 0xd57   : > { %v9769_v11 = vsel %vm9573_vm11, %v9768_v21, %v9764_v53  ;;  %v6478_v18 = vpop.f32.mrb[77].mxu1  ;;  %7125 = vmatprep.subr.bf16.mxu0 %v17883_v5 }
 0xd58   : > { %v16550_v60 = vsel %vm9450_vm3, %v9769_v11, %v16505_v23  ;;  %v7002_v15 = vmul.bf16 %v16542_v57, %v13792_v16  ;;  %v6479_v29 = vadd.f32 %v11445_v27, %v6478_v18  ;;  %v12266_v32 = vpop.f32.mrb[78].mxu1  ;;  %v7018_v43 = vmul.bf16 %v16542_v57, %v13856_v26 }
 0xd59   : > { %v6481_v63 = vpop.f32.mrb[79].mxu1 }
 0xd5a   : > { %v9082_v45 = vpop.xlane.xlu1 %9081  ;;  %7159 = vmatpush1.bf16.msra.mxu1 %v7002_v15  ;;  %v11449_v6 = vpop.f32.mrb[72].mxu0  ;;  %v6482_v14 = vadd.f32 %v11448_v38, %v6481_v63  ;;  %7126 = vmatpush1.bf16.msra.mxu0 %v7064_v35 }
 0xd5b   : > { %v9076_v23 = vpop.xlane.xlu0 %9075  ;;  %7160 = vmatprep.subr.bf16.mxu1 %v17883_v5  ;;  %v11450_v55 = vpop.f32.mrb[73].mxu0  ;;  %7205 = vmatprep.subr.bf16.mxu0 %v17883_v5  ;;  %v9782_v33 = vrot.slane %v9082_v45, %v16139_v37 }
 0xd5c   : > { %v11451_v21 = vadd.f32 %v11450_v55, %v11449_v6  ;;  %v16568_v48 = vpack.c.bf16 %v6482_v14, %v6479_v29  ;;  %v11452_v4 = vpop.f32.mrb[74].mxu0  ;;  %v9773_v27 = vrot.slane %v9076_v23, %v16158_v58  ;;  %v7033_v14 = vmul.bf16 %v16522_v22, %v13904_v36 }
 0xd5d   : > { %v11453_v24 = vpop.f32.mrb[75].mxu0  ;;  %7140 = vmatmul.mubr.bf16.vlgmr.msra.gmra.mrb[104].mxu0 %v16557_v3  ;;  %v7034_v55 = vmul.bf16 %v16542_v57, %v13904_v36 }
 0xd5e   : > { %v9079_v53 = vpop.xlane.xlu1 %9078  ;;  %7161 = vmatpush1.bf16.msra.mxu1 %v7017_v52  ;;  %v6487_v38 = vadd.f32 %v12265_v62, %v11451_v21  ;;  %v11454_v35 = vadd.f32 %v11453_v24, %v11452_v4  ;;  %v7003_v11 = vmul.bf16 %v16568_v48, %v13792_v16  ;;  %10740 = vmatprep.mubr.msk.bf16.mxu0 %vm3179_vm14, %v16566_v56  ;;  %v16587_v62 = vld [vmem:[%s17829_s11 + $0x10] ss:$8 sps:$4 sm:$0xff]  }
 0xd5f   : > { %v9777_v18 = vrot.slane %v9079_v53, %v16142_v39  ;;  %v9085_v15 = vpop.xlane.xlu0 %9084  ;;  %7162 = vmatprep.subr.bf16.mxu1 %v17883_v5  ;;  %v7019_v21 = vmul.bf16 %v16568_v48, %v13856_v26 }
 0xd60   : > { %v9787_v29 = vrot.slane %v9085_v15, %v16177_v47  ;;  %v6490_v63 = vadd.f32 %v12266_v32, %v11454_v35  ;;  %7206 = vmatpush1.bf16.msra.mxu0 %v7003_v11  ;;  %v7050_v15 = vmul.bf16 %v16542_v57, %v13945_v46 }
 0xd61   : > { %v9778_v45 = vsel %vm9531_vm5, %v9777_v18, %v9773_v27  ;;  %7207 = vmatprep.subr.bf16.mxu0 %v17883_v5 }
 0xd62   : > { %v9783_v52 = vsel %vm9538_vm6, %v9782_v33, %v9778_v45  ;;  %v16590_v6 = vpack.c.bf16 %v6490_v63, %v6487_v38  ;;  %7163 = vmatpush1.bf16.msra.mxu1 %v7018_v43  ;;  %v7049_v33 = vmul.bf16 %v16522_v22, %v13945_v46 }
 0xd63   : > { %v9788_v32 = vsel %vm9545_vm7, %v9787_v29, %v9783_v52  ;;  %7164 = vmatprep.subr.bf16.mxu1 %v17883_v5  ;;  %v7035_v29 = vmul.bf16 %v16568_v48, %v13904_v36 }
 0xd64   : > { %v7004_v23 = vmul.bf16 %v16590_v6, %v13792_v16  ;;  %v7020_v53 = vmul.bf16 %v16590_v6, %v13856_v26 }
 0xd65   : > { %7148 = vmatmul.mubr.bf16.gmra.mrb[108].mxu0 %v16587_v62 }
 0xd66   : > { %7165 = vmatpush1.bf16.msra.mxu1 %v7033_v14  ;;  %7208 = vmatpush1.bf16.msra.mxu0 %v7004_v23 }
 0xd67   : > { %7166 = vmatprep.subr.bf16.mxu1 %v17883_v5  ;;  %7209 = vmatprep.subr.bf16.mxu0 %v17883_v5  ;;  %v16605_v4 = vpop.f32.mrb[76].mxu0 }
 0xd68   : > { %v6576_v27 = vpop.f32.mrb[77].mxu0  ;;  %10743 = vmatprep.mubr.msk.bf16.mxu0 %vm3179_vm14, %v16441_v50 }
 0xd69   : > { %v16609_v24 = vpop.f32.mrb[78].mxu0 }
 0xd6a   : > { %v9094_v43 = vpop.xlane.xlu1 %9093  ;;  %7167 = vmatpush1.bf16.msra.mxu1 %v7034_v55  ;;  %7210 = vmatpush1.bf16.msra.mxu0 %v7019_v21  ;;  %v6579_v38 = vpop.f32.mrb[79].mxu0  ;;  %v7065_v55 = vmul.bf16 %v16522_v22, %v13971_v17  ;;  %v7036_v21 = vmul.bf16 %v16590_v6, %v13904_v36 }
 0xd6b   : > { %7168 = vmatprep.subr.bf16.mxu1 %v17883_v5  ;;  %7211 = vmatprep.subr.bf16.mxu0 %v17883_v5  ;;  %v9802_v45 = vrot.slane %v9094_v43, %v16202_v49 }
 0xd6c   : > { %v9088_v35 = vpop.xlane.xlu0 %9087 }
 0xd6d   : > { %v9792_v11 = vrot.slane %v9088_v35, %v16171_v20  ;;  %v7066_v35 = vmul.bf16 %v16542_v57, %v13971_v17 }
 0xd6e   : > { %v9097_v18 = vpop.xlane.xlu1 %9096  ;;  %7169 = vmatpush1.bf16.msra.mxu1 %v7049_v33  ;;  %7212 = vmatpush1.bf16.msra.mxu0 %v7020_v53 }
 0xd6f   : > { %v9793_v63 = vsel %vm9552_vm8, %v9792_v11, %v9788_v32  ;;  %7170 = vmatprep.subr.bf16.mxu1 %v17883_v5  ;;  %7213 = vmatprep.subr.bf16.mxu0 %v17883_v5  ;;  %v9807_v23 = vrot.slane %v9097_v18, %v16196_v41  ;;  %v7051_v11 = vmul.bf16 %v16568_v48, %v13945_v46 }
 0xd70   : > { %v9091_v52 = vpop.xlane.xlu0 %9090 }
 0xd71   : > { %v9797_v14 = vrot.slane %v9091_v52, %v16208_v42  ;;  %v7052_v52 = vmul.bf16 %v16590_v6, %v13945_v46 }
 0xd72   : > { %7171 = vmatpush1.bf16.msra.mxu1 %v7050_v15  ;;  %7214 = vmatpush1.bf16.msra.mxu0 %v7035_v29 }
 0xd73   : > { %v9798_v32 = vsel %vm9559_vm9, %v9797_v14, %v9793_v63  ;;  %7172 = vmatprep.subr.bf16.mxu1 %v17883_v5  ;;  %7215 = vmatprep.subr.bf16.mxu0 %v17883_v5 }
 0xd74   : > { %v9803_v43 = vsel %vm9566_vm10, %v9802_v45, %v9798_v32 }
 0xd75   : > { %v9808_v33 = vsel %vm9573_vm11, %v9807_v23, %v9803_v43  ;;  %v7067_v23 = vmul.bf16 %v16568_v48, %v13971_v17 }
 0xd76   : > { %v16639_v53 = vsel %vm9452_vm4, %v9808_v33, %v16550_v60  ;;  %v11477_v22 = vpop.f32.mrb[80].mxu1  ;;  %7173 = vmatpush1.bf16.msra.mxu1 %v7065_v55  ;;  %7216 = vmatpush1.bf16.msra.mxu0 %v7036_v21 }
 0xd77   : > { %v11478_v18 = vpop.f32.mrb[81].mxu1  ;;  %7174 = vmatprep.subr.bf16.mxu1 %v17883_v5  ;;  %7217 = vmatprep.subr.bf16.mxu0 %v17883_v5 }
 0xd78   : > { %v11479_v15 = vadd.f32 %v11478_v18, %v11477_v22  ;;  %v11480_v29 = vpop.f32.mrb[82].mxu1 }
 0xd79   : > { %v11481_v63 = vpop.f32.mrb[83].mxu1 }
 0xd7a   : > { %v11482_v45 = vadd.f32 %v11481_v63, %v11480_v29  ;;  %v6577_v60 = vadd.f32 %v11479_v15, %v6576_v27  ;;  %7175 = vmatpush1.bf16.msra.mxu1 %v7066_v35  ;;  %7218 = vmatpush1.bf16.msra.mxu0 %v7051_v11 }
 0xd7b   : > { %7254 = vmatprep.subr.bf16.mxu1 %v17883_v5  ;;  %7219 = vmatprep.subr.bf16.mxu0 %v17883_v5 }
 0xd7c   : > { %v6580_v57 = vadd.f32 %v11482_v45, %v6579_v38  ;;  %v7068_v38 = vmul.bf16 %v16590_v6, %v13971_v17 }
 0xd7d   : > { %7189 = vmatmul.mubr.bf16.vlgmr.msra.gmra.mrb[112].mxu1 %v16557_v3 }
 0xd7e   : > { %v16652_v14 = vpack.c.bf16 %v6580_v57, %v6577_v60  ;;  %7220 = vmatpush1.bf16.msra.mxu0 %v7052_v52  ;;  %10742 = vmatprep.mubr.msk.bf16.mxu1 %vm3179_vm14, %v16566_v56 }
 0xd7f   : > { %7221 = vmatprep.subr.bf16.mxu0 %v17883_v5 }
 0xd80   : > { %v7005_v27 = vmul.bf16 %v16652_v14, %v13792_v16  ;;  %v7037_v45 = vmul.bf16 %v16652_v14, %v13904_v36 }
 0xd81   : > { %v11483_v55 = vpop.f32.mrb[84].mxu1 }
 0xd82   : > { %v11484_v21 = vpop.f32.mrb[85].mxu1  ;;  %7255 = vmatpush1.bf16.msra.mxu1 %v7005_v27  ;;  %7222 = vmatpush1.bf16.msra.mxu0 %v7067_v23 }
 0xd83   : > { %v11485_v32 = vadd.f32 %v11484_v21, %v11483_v55  ;;  %v11486_v43 = vpop.f32.mrb[86].mxu1  ;;  %7256 = vmatprep.subr.bf16.mxu1 %v17883_v5  ;;  %7223 = vmatprep.subr.bf16.mxu0 %v17883_v5 }
 0xd84   : > { %v11487_v48 = vpop.f32.mrb[87].mxu1 }
 0xd85   : > { %v6585_v33 = vadd.f32 %v16605_v4, %v11485_v32  ;;  %v11488_v22 = vadd.f32 %v11487_v48, %v11486_v43  ;;  %7197 = vmatmul.mubr.bf16.gmra.mrb[116].mxu1 %v16587_v62  ;;  %v7053_v48 = vmul.bf16 %v16652_v14, %v13945_v46 }
 0xd86   : > { %7224 = vmatpush1.bf16.msra.mxu0 %v7068_v38  ;;  %10745 = vmatprep.mubr.msk.bf16.mxu1 %vm3179_vm14, %v16441_v50 }
 0xd87   : > { %v6588_v35 = vadd.f32 %v16609_v24, %v11488_v22  ;;  %7303 = vmatprep.subr.bf16.mxu0 %v17883_v5  ;;  %v7021_v24 = vmul.bf16 %v16652_v14, %v13856_v26 }
 0xd89   : > { %v16671_v6 = vpack.c.bf16 %v6588_v35, %v6585_v33  ;;  %v12289_v11 = vpop.f32.mrb[88].mxu1  ;;  %7238 = vmatmul.mubr.bf16.vlgmr.msra.gmra.mrb[112].mxu0 %v16557_v3 }
 0xd8a   : > { %v6674_v18 = vpop.f32.mrb[89].mxu1  ;;  %10744 = vmatprep.mubr.msk.bf16.mxu0 %vm3179_vm14, %v16566_v56 }
 0xd8b   : > { %v7006_v4 = vmul.bf16 %v16671_v6, %v13792_v16  ;;  %v12290_v15 = vpop.f32.mrb[90].mxu1  ;;  %v7022_v63 = vmul.bf16 %v16671_v6, %v13856_v26  ;;  %v7038_v55 = vmul.bf16 %v16671_v6, %v13904_v36 }
 0xd8c   : > { %v6677_v29 = vpop.f32.mrb[91].mxu1 }
 0xd8d   : > { %7257 = vmatpush1.bf16.msra.mxu1 %v7006_v4 }
 0xd8e   : > { %7258 = vmatprep.subr.bf16.mxu1 %v17883_v5 }
 0xd91   : > { %7259 = vmatpush1.bf16.msra.mxu1 %v7021_v24  ;;  %7246 = vmatmul.mubr.bf16.gmra.mrb[116].mxu0 %v16587_v62 }
 0xd92   : > { %7260 = vmatprep.subr.bf16.mxu1 %v17883_v5  ;;  %10747 = vmatprep.mubr.msk.bf16.mxu0 %vm3179_vm14, %v16441_v50 }
 0xd95   : > { %7261 = vmatpush1.bf16.msra.mxu1 %v7022_v63 }
 0xd96   : > { %v11511_v60 = vpop.f32.mrb[80].mxu0  ;;  %7262 = vmatprep.subr.bf16.mxu1 %v17883_v5 }
 0xd97   : > { %v11512_v52 = vpop.f32.mrb[81].mxu0 }
 0xd98   : > { %v11513_v57 = vadd.f32 %v11512_v52, %v11511_v60  ;;  %v11514_v23 = vpop.f32.mrb[82].mxu0 }
 0xd99   : > { %v11515_v27 = vpop.f32.mrb[83].mxu0  ;;  %7263 = vmatpush1.bf16.msra.mxu1 %v7037_v45 }
 0xd9a   : > { %v11516_v21 = vadd.f32 %v11515_v27, %v11514_v23  ;;  %v6675_v38 = vadd.f32 %v11513_v57, %v6674_v18  ;;  %7264 = vmatprep.subr.bf16.mxu1 %v17883_v5 }
 0xd9b   : > { %v9106_v32 = vpop.xlane.xlu1 %9105 }
 0xd9c   : > { %v6678_v43 = vadd.f32 %v11516_v21, %v6677_v29  ;;  %v9100_v45 = vpop.xlane.xlu0 %9099  ;;  %v7054_v29 = vmul.bf16 %v16671_v6, %v13945_v46 }
 0xd9d   : > { %7265 = vmatpush1.bf16.msra.mxu1 %v7038_v55  ;;  %v9812_v27 = vrot.slane %v9100_v45, %v16158_v58 }
 0xd9e   : > { %v11517_v33 = vpop.f32.mrb[84].mxu0  ;;  %v16695_v22 = vpack.c.bf16 %v6678_v43, %v6675_v38  ;;  %7266 = vmatprep.subr.bf16.mxu1 %v17883_v5  ;;  %v9821_v38 = vrot.slane %v9106_v32, %v16139_v37  ;;  %v7069_v43 = vmul.bf16 %v16652_v14, %v13971_v17 }
 0xd9f   : > { %v9109_v35 = vpop.xlane.xlu1 %9108  ;;  %v11518_v4 = vpop.f32.mrb[85].mxu0 }
 0xda0   : > { %v11519_v24 = vadd.f32 %v11518_v4, %v11517_v33  ;;  %v11520_v63 = vpop.f32.mrb[86].mxu0  ;;  %v7007_v18 = vmul.bf16 %v16695_v22, %v13792_v16 }
 0xda1   : > { %v11521_v60 = vpop.f32.mrb[87].mxu0  ;;  %7267 = vmatpush1.bf16.msra.mxu1 %v7053_v48 }
 0xda2   : > { %v6683_v52 = vadd.f32 %v12289_v11, %v11519_v24  ;;  %v11522_v57 = vadd.f32 %v11521_v60, %v11520_v63  ;;  %7304 = vmatpush1.bf16.msra.mxu0 %v7007_v18  ;;  %7268 = vmatprep.subr.bf16.mxu1 %v17883_v5  ;;  %v9826_v11 = vrot.slane %v9109_v35, %v16177_v47 }
 0xda3   : > { %v9103_v23 = vpop.xlane.xlu1 %9102  ;;  %7305 = vmatprep.subr.bf16.mxu0 %v17883_v5  ;;  %v7070_v47 = vmul.bf16 %v16671_v6, %v13971_v17  ;;  %v7023_v24 = vmul.bf16 %v16695_v22, %v13856_v26 }
 0xda4   : > { %v6686_v55 = vadd.f32 %v12290_v15, %v11522_v57  ;;  %v9816_v21 = vrot.slane %v9103_v23, %v16142_v39 }
 0xda5   : > { %7269 = vmatpush1.bf16.msra.mxu1 %v7054_v29 }
 0xda6   : > { %v16710_v48 = vpack.c.bf16 %v6686_v55, %v6683_v52  ;;  %v9817_v33 = vsel %vm9531_vm5, %v9816_v21, %v9812_v27  ;;  %v12301_v4 = vpop.f32.mrb[88].mxu0  ;;  %7270 = vmatprep.subr.bf16.mxu1 %v17883_v5  ;;  %vm9454_vm5 = vcmask 1047559  }
 0xda7   : > { %v9822_v58 = vsel %vm9538_vm6, %v9821_v38, %v9817_v33  ;;  %v6772_v15 = vpop.f32.mrb[89].mxu0  ;;  %v7039_v38 = vmul.bf16 %v16695_v22, %v13904_v36 }
 0xda8   : > { %v7008_v39 = vmul.bf16 %v16710_v48, %v13792_v16  ;;  %v9827_v37 = vsel %vm9545_vm7, %v9826_v11, %v9822_v58  ;;  %v12302_v32 = vpop.f32.mrb[90].mxu0  ;;  %v7024_v29 = vmul.bf16 %v16710_v48, %v13856_v26 }
 0xda9   : > { %7271 = vmatpush1.bf16.msra.mxu1 %v7069_v43  ;;  %v6775_v14 = vpop.f32.mrb[91].mxu0 }
 0xdaa   : > { %7306 = vmatpush1.bf16.msra.mxu0 %v7008_v39  ;;  %v9118_v35 = vpop.xlane.xlu0 %9117  ;;  %7272 = vmatprep.subr.bf16.mxu1 %v17883_v5 }
 0xdab   : > { %7307 = vmatprep.subr.bf16.mxu0 %v17883_v5  ;;  %v9112_v63 = vpop.xlane.xlu1 %9111 }
 0xdac   : > { %v9831_v57 = vrot.slane %v9112_v63, %v16171_v20  ;;  %v9841_v20 = vrot.slane %v9118_v35, %v16202_v49 }
 0xdad   : > { %v11545_v18 = vpop.f32.mrb[92].mxu1  ;;  %7273 = vmatpush1.bf16.msra.mxu1 %v7070_v47 }
 0xdae   : > { %7308 = vmatpush1.bf16.msra.mxu0 %v7023_v24  ;;  %v9121_v45 = vpop.xlane.xlu0 %9120  ;;  %v11546_v60 = vpop.f32.mrb[93].mxu1  ;;  %7352 = vmatprep.subr.bf16.mxu1 %v17883_v5  ;;  %v9832_v33 = vsel %vm9552_vm8, %v9831_v57, %v9827_v37 }
 0xdaf   : > { %7309 = vmatprep.subr.bf16.mxu0 %v17883_v5  ;;  %v11547_v6 = vadd.f32 %v11546_v60, %v11545_v18  ;;  %v11548_v52 = vpop.f32.mrb[94].mxu1  ;;  %v9846_v58 = vrot.slane %v9121_v45, %v16196_v41 }
 0xdb0   : > { %v11549_v23 = vpop.f32.mrb[95].mxu1  ;;  %7287 = vmatmul.mubr.bf16.vlgmr.msra.gmra.mrb[120].mxu1 %v16557_v3 }
 0xdb1   : > { %v11550_v27 = vadd.f32 %v11549_v23, %v11548_v52  ;;  %v6773_v55 = vadd.f32 %v11547_v6, %v6772_v15  ;;  %10746 = vmatprep.mubr.msk.bf16.mxu1 %vm3179_vm14, %v16566_v56 }
 0xdb2   : > { %7310 = vmatpush1.bf16.msra.mxu0 %v7024_v29  ;;  %v9115_v21 = vpop.xlane.xlu0 %9114  ;;  %v7055_v29 = vmul.bf16 %v16695_v22, %v13945_v46 }
 0xdb3   : > { %v9836_v43 = vrot.slane %v9115_v21, %v16208_v42  ;;  %7311 = vmatprep.subr.bf16.mxu0 %v17883_v5  ;;  %v6776_v11 = vadd.f32 %v11550_v27, %v6775_v14  ;;  %v7040_v42 = vmul.bf16 %v16710_v48, %v13904_v36 }
 0xdb5   : > { %v9837_v15 = vsel %vm9559_vm9, %v9836_v43, %v9832_v33  ;;  %v11551_v39 = vpop.f32.mrb[96].mxu1  ;;  %v16740_v47 = vpack.c.bf16 %v6776_v11, %v6773_v55  ;;  %v7071_v55 = vmul.bf16 %v16695_v22, %v13971_v17  ;;  %v7072_v43 = vmul.bf16 %v16710_v48, %v13971_v17 }
 0xdb6   : > { %v9842_v24 = vsel %vm9566_vm10, %v9841_v20, %v9837_v15  ;;  %v11552_v63 = vpop.f32.mrb[97].mxu1  ;;  %7312 = vmatpush1.bf16.msra.mxu0 %v7039_v38 }
 0xdb7   : > { %v9847_v14 = vsel %vm9573_vm11, %v9846_v58, %v9842_v24  ;;  %v11553_v18 = vadd.f32 %v11552_v63, %v11551_v39  ;;  %v11554_v49 = vpop.f32.mrb[98].mxu1  ;;  %7313 = vmatprep.subr.bf16.mxu0 %v17883_v5  ;;  %v7009_v41 = vmul.bf16 %v16740_v47, %v13792_v16  ;;  %v7025_v27 = vmul.bf16 %v16740_v47, %v13856_v26 }
 0xdb8   : > { %v11555_v37 = vpop.f32.mrb[99].mxu1  ;;  %7295 = vmatmul.mubr.bf16.gmra.mrb[124].mxu1 %v16587_v62  ;;  %v16752_v35 = vsel %vm9454_vm5, %v9847_v14, %v16639_v53  ;;  %v7056_v53 = vmul.bf16 %v16710_v48, %v13945_v46  ;;  %v7041_v11 = vmul.bf16 %v16740_v47, %v13904_v36  ;;  %v7057_v63 = vmul.bf16 %v16740_v47, %v13945_v46 }
 0xdb9   : > { %v6781_v45 = vadd.f32 %v12301_v4, %v11553_v18  ;;  %v11556_v60 = vadd.f32 %v11555_v37, %v11554_v49  ;;  %7353 = vmatpush1.bf16.msra.mxu1 %v7009_v41  ;;  %10749 = vmatprep.mubr.msk.bf16.mxu1 %vm3179_vm14, %v16441_v50 }
 0xdba   : > { %7314 = vmatpush1.bf16.msra.mxu0 %v7040_v42  ;;  %7354 = vmatprep.subr.bf16.mxu1 %v17883_v5 }
 0xdbb   : > { %v6784_v6 = vadd.f32 %v12302_v32, %v11556_v60  ;;  %7315 = vmatprep.subr.bf16.mxu0 %v17883_v5 }
 0xdbd   : > { %v16760_v52 = vpack.c.bf16 %v6784_v6, %v6781_v45 }
 0xdbe   : > { %7316 = vmatpush1.bf16.msra.mxu0 %v7055_v29 }
 0xdbf   : > { %7317 = vmatprep.subr.bf16.mxu0 %v17883_v5  ;;  %v7010_v4 = vmul.bf16 %v16760_v52, %v13792_v16  ;;  %v12313_v57 = vpop.f32.mrb[100].mxu1  ;;  %v7026_v38 = vmul.bf16 %v16760_v52, %v13856_v26  ;;  %v7042_v20 = vmul.bf16 %v16760_v52, %v13904_v36  ;;  %v7058_v41 = vmul.bf16 %v16760_v52, %v13945_v46 }
 0xdc0   : > { %v6870_v23 = vpop.f32.mrb[101].mxu1 }
 0xdc1   : > { %7355 = vmatpush1.bf16.msra.mxu1 %v7010_v4  ;;  %v12314_v32 = vpop.f32.mrb[102].mxu1  ;;  %v7073_v4 = vmul.bf16 %v16740_v47, %v13971_v17 }
 0xdc2   : > { %7318 = vmatpush1.bf16.msra.mxu0 %v7056_v53  ;;  %7356 = vmatprep.subr.bf16.mxu1 %v17883_v5  ;;  %v6873_v21 = vpop.f32.mrb[103].mxu1 }
 0xdc3   : > { %7319 = vmatprep.subr.bf16.mxu0 %v17883_v5 }
 0xdc5   : > { %7357 = vmatpush1.bf16.msra.mxu1 %v7025_v27 }
 0xdc6   : > { %7320 = vmatpush1.bf16.msra.mxu0 %v7071_v55  ;;  %7358 = vmatprep.subr.bf16.mxu1 %v17883_v5  ;;  %v7074_v55 = vmul.bf16 %v16760_v52, %v13971_v17 }
 0xdc7   : > { %7321 = vmatprep.subr.bf16.mxu0 %v17883_v5 }
 0xdc9   : > { %7359 = vmatpush1.bf16.msra.mxu1 %v7026_v38 }
 0xdca   : > { %7322 = vmatpush1.bf16.msra.mxu0 %v7072_v43  ;;  %7360 = vmatprep.subr.bf16.mxu1 %v17883_v5 }
 0xdcb   : > { %7401 = vmatprep.subr.bf16.mxu0 %v17883_v5 }
 0xdcc   : > { %v11579_v22 = vpop.f32.mrb[92].mxu0 }
 0xdcd   : > { %7336 = vmatmul.mubr.bf16.vlgmr.msra.gmra.mrb[120].mxu0 %v16557_v3  ;;  %7361 = vmatpush1.bf16.msra.mxu1 %v7041_v11  ;;  %v11580_v33 = vpop.f32.mrb[93].mxu0 }
 0xdce   : > { %7362 = vmatprep.subr.bf16.mxu1 %v17883_v5  ;;  %v11581_v48 = vadd.f32 %v11580_v33, %v11579_v22  ;;  %v11582_v58 = vpop.f32.mrb[94].mxu0  ;;  %10748 = vmatprep.mubr.msk.bf16.mxu0 %vm3179_vm14, %v16566_v56 }
 0xdcf   : > { %v11583_v15 = vpop.f32.mrb[95].mxu0 }
 0xdd0   : > { %v11584_v39 = vadd.f32 %v11583_v15, %v11582_v58  ;;  %v6871_v24 = vadd.f32 %v11581_v48, %v6870_v23  ;;  %v12889_v58 = vld [vmem:[%s17823_s5] sm:$0xff]   ;;  %v12890_v15 = vld [vmem:[%s17823_s5 + $0x8] sm:$0xff]  }
 0xdd1   : > { %7363 = vmatpush1.bf16.msra.mxu1 %v7042_v20 }
 0xdd2   : > { %7364 = vmatprep.subr.bf16.mxu1 %v17883_v5  ;;  %v6874_v42 = vadd.f32 %v11584_v39, %v6873_v21  ;;  %v12891_v39 = vld [vmem:[%s17823_s5 + $0x10] sm:$0xff]  }
 0xdd4   : > { %v11585_v14 = vpop.f32.mrb[96].mxu0  ;;  %v6995_v18 = vpack.c.bf16 %v6874_v42, %v6871_v24 }
 0xdd5   : > { %7344 = vmatmul.mubr.bf16.gmra.mrb[124].mxu0 %v16587_v62  ;;  %7365 = vmatpush1.bf16.msra.mxu1 %v7057_v63  ;;  %v11586_v49 = vpop.f32.mrb[97].mxu0 }
 0xdd6   : > { %v11587_v37 = vadd.f32 %v11586_v49, %v11585_v14  ;;  %v11588_v45 = vpop.f32.mrb[98].mxu0  ;;  %7366 = vmatprep.subr.bf16.mxu1 %v17883_v5  ;;  %v7011_v60 = vmul.bf16 %v6995_v18, %v13792_v16  ;;  %10751 = vmatprep.mubr.msk.bf16.mxu0 %vm3179_vm14, %v16441_v50  ;;  %v7027_v21 = vmul.bf16 %v6995_v18, %v13856_v26 }
 0xdd7   : > { %v11589_v29 = vpop.f32.mrb[99].mxu0  ;;  %v7043_v52 = vmul.bf16 %v6995_v18, %v13904_v36  ;;  %v7059_v38 = vmul.bf16 %v6995_v18, %v13945_v46  ;;  %v7075_v11 = vmul.bf16 %v6995_v18, %v13971_v17 }
 0xdd8   : > { %v6879_v6 = vadd.f32 %v12313_v57, %v11587_v37  ;;  %v11590_v53 = vadd.f32 %v11589_v29, %v11588_v45  ;;  %7402 = vmatpush1.bf16.msra.mxu0 %v7011_v60 }
 0xdd9   : > { %7367 = vmatpush1.bf16.msra.mxu1 %v7058_v41  ;;  %7403 = vmatprep.subr.bf16.mxu0 %v17883_v5 }
 0xdda   : > { %v6882_v23 = vadd.f32 %v12314_v32, %v11590_v53  ;;  %7368 = vmatprep.subr.bf16.mxu1 %v17883_v5 }
 0xddc   : > { %v6996_v27 = vpack.c.bf16 %v6882_v23, %v6879_v6 }
 0xddd   : > { %7369 = vmatpush1.bf16.msra.mxu1 %v7073_v4 }
 0xdde   : > { %7370 = vmatprep.subr.bf16.mxu1 %v17883_v5  ;;  %v7012_v57 = vmul.bf16 %v6996_v27, %v13792_v16  ;;  %v7028_v47 = vmul.bf16 %v6996_v27, %v13856_v26  ;;  %v7044_v32 = vmul.bf16 %v6996_v27, %v13904_v36  ;;  %v7060_v43 = vmul.bf16 %v6996_v27, %v13945_v46 }
 0xde0   : > { %7404 = vmatpush1.bf16.msra.mxu0 %v7012_v57 }
 0xde1   : > { %7371 = vmatpush1.bf16.msra.mxu1 %v7074_v55  ;;  %7405 = vmatprep.subr.bf16.mxu0 %v17883_v5 }
 0xde2   : > { %7450 = vmatprep.subr.bf16.mxu1 %v17883_v5 }
 0xde4   : > { %7385 = vmatmul.mubr.bf16.vlgmr.msra.gmra.mrb[128].mxu1 %v16557_v3  ;;  %7406 = vmatpush1.bf16.msra.mxu0 %v7027_v21 }
 0xde5   : > { %7407 = vmatprep.subr.bf16.mxu0 %v17883_v5  ;;  %10750 = vmatprep.mubr.msk.bf16.mxu1 %vm3179_vm14, %v16566_v56 }
 0xde8   : > { %7408 = vmatpush1.bf16.msra.mxu0 %v7028_v47 }
 0xde9   : > { %7409 = vmatprep.subr.bf16.mxu0 %v17883_v5 }
 0xdec   : > { %7393 = vmatmul.mubr.bf16.gmra.mrb[132].mxu1 %v16587_v62  ;;  %7410 = vmatpush1.bf16.msra.mxu0 %v7043_v52 }
 0xded   : > { %7411 = vmatprep.subr.bf16.mxu0 %v17883_v5  ;;  %10753 = vmatprep.mubr.msk.bf16.mxu1 %vm3179_vm14, %v16441_v50  ;;  %v7076_v50 = vmul.bf16 %v6996_v27, %v13971_v17 }
 0xdf0   : > { %7412 = vmatpush1.bf16.msra.mxu0 %v7044_v32 }
 0xdf1   : > { %7413 = vmatprep.subr.bf16.mxu0 %v17883_v5 }
 0xdf4   : > { %7414 = vmatpush1.bf16.msra.mxu0 %v7059_v38 }
 0xdf5   : > { %7415 = vmatprep.subr.bf16.mxu0 %v17883_v5 }
 0xdf8   : > { %7416 = vmatpush1.bf16.msra.mxu0 %v7060_v43 }
 0xdf9   : > { %7417 = vmatprep.subr.bf16.mxu0 %v17883_v5 }
 0xdfc   : > { %7418 = vmatpush1.bf16.msra.mxu0 %v7075_v11 }
 0xdfd   : > { %7419 = vmatprep.subr.bf16.mxu0 %v17883_v5  ;;  %v12325_v22 = vpop.f32.mrb[100].mxu0 }
 0xdfe   : > { %v6968_v20 = vpop.f32.mrb[101].mxu0 }
 0xdff   : > { %v12326_v33 = vpop.f32.mrb[102].mxu0 }
 0xe00   : > { %7420 = vmatpush1.bf16.msra.mxu0 %v7076_v50  ;;  %v6971_v48 = vpop.f32.mrb[103].mxu0 }
 0xe01   : > { %12327 = vmatprep.subr.bf16.mxu0 %v12889_v58 }
 0xe03   : > { %7434 = vmatmul.mubr.bf16.vlgmr.msra.gmra.mrb[128].mxu0 %v16557_v3 }
 0xe04   : > { %10752 = vmatprep.mubr.msk.bf16.mxu0 %vm3179_vm14, %v16566_v56  ;;  %12328 = vmatpush3.bf16.msra.mxu0 %v12889_v58 }
 0xe05   : > { %12329 = vmatprep.subr.bf16.mxu0 %v12890_v15 }
 0xe08   : > { %12330 = vmatpush3.bf16.msra.mxu0 %v12890_v15 }
 0xe09   : > { %12331 = vmatprep.subr.bf16.mxu0 %v12891_v39 }
 0xe0b   : > { %7442 = vmatmul.mubr.bf16.gmra.mrb[132].mxu0 %v16587_v62 }
 0xe0c   : > { %v11613_v24 = vpop.f32.mrb[104].mxu1  ;;  %12332 = vmatpush3.bf16.msra.mxu0 %v12891_v39 }
 0xe0d   : > { %v11614_v63 = vpop.f32.mrb[105].mxu1  ;;  %8107 = vmatprep.subr.bf16.mxu0 %v17883_v5 }
 0xe0e   : > { %v11615_v42 = vadd.f32 %v11614_v63, %v11613_v24  ;;  %v11616_v14 = vpop.f32.mrb[106].mxu1 }
 0xe0f   : > { %v11617_v18 = vpop.f32.mrb[107].mxu1 }
 0xe10   : > { %v11618_v49 = vadd.f32 %v11617_v18, %v11616_v14  ;;  %v6969_v41 = vadd.f32 %v11615_v42, %v6968_v20 }
 0xe12   : > { %v6972_v37 = vadd.f32 %v11618_v49, %v6971_v48  ;;  %v12892_v49 = vld [vmem:[%s17824_s6] sm:$0xff]  }
 0xe14   : > { %v11619_v45 = vpop.f32.mrb[108].mxu1  ;;  %v6997_v60 = vpack.c.bf16 %v6972_v37, %v6969_v41  ;;  %v12893_v41 = vld [vmem:[%s17824_s6 + $0x8] sm:$0xff]   ;;  %v12894_v37 = vld [vmem:[%s17824_s6 + $0x10] sm:$0xff]  }
 0xe15   : > { %v11620_v29 = vpop.f32.mrb[109].mxu1 }
 0xe16   : > { %v11621_v6 = vadd.f32 %v11620_v29, %v11619_v45  ;;  %v11622_v53 = vpop.f32.mrb[110].mxu1  ;;  %v7013_v4 = vmul.bf16 %v6997_v60, %v13792_v16  ;;  %v7029_v52 = vmul.bf16 %v6997_v60, %v13856_v26  ;;  %v7045_v38 = vmul.bf16 %v6997_v60, %v13904_v36 }
 0xe17   : > { %v11623_v23 = vpop.f32.mrb[111].mxu1  ;;  %v7061_v50 = vmul.bf16 %v6997_v60, %v13945_v46  ;;  %v7077_v24 = vmul.bf16 %v6997_v60, %v13971_v17  ;;  %v12896_v60 = vld [vmem:[%s17824_s6 + $0x20] sm:$0xff]  }
 0xe18   : > { %v6977_v27 = vadd.f32 %v12325_v22, %v11621_v6  ;;  %v11624_v55 = vadd.f32 %v11623_v23, %v11622_v53  ;;  %7451 = vmatpush1.bf16.msra.mxu1 %v7013_v4 }
 0xe19   : > { %7452 = vmatprep.subr.bf16.mxu1 %v17883_v5 }
 0xe1a   : > { %v6980_v57 = vadd.f32 %v12326_v33, %v11624_v55 }
 0xe1c   : > { %v6998_v21 = vpack.c.bf16 %v6980_v57, %v6977_v27  ;;  %v12898_v27 = vld [vmem:[%s17824_s6 + $0x30] sm:$0xff]  }
 0xe1e   : > { %v7014_v47 = vmul.bf16 %v6998_v21, %v13792_v16  ;;  %v7030_v32 = vmul.bf16 %v6998_v21, %v13856_v26  ;;  %v7046_v43 = vmul.bf16 %v6998_v21, %v13904_v36  ;;  %v7062_v58 = vmul.bf16 %v6998_v21, %v13945_v46 }
 0xe1f   : > { %v7078_v18 = vmul.bf16 %v6998_v21, %v13971_v17 }
 0xe20   : > { %7453 = vmatpush1.bf16.msra.mxu1 %v7014_v47 }
 0xe21   : > { %7454 = vmatprep.subr.bf16.mxu1 %v17883_v5 }
 0xe24   : > { %7455 = vmatpush1.bf16.msra.mxu1 %v7029_v52 }
 0xe25   : > { %7456 = vmatprep.subr.bf16.mxu1 %v17883_v5 }
 0xe28   : > { %7457 = vmatpush1.bf16.msra.mxu1 %v7030_v32  ;;  %v12899_v32 = vld [vmem:[%s17824_s6 + $0x38] sm:$0xff]  }
 0xe29   : > { %7458 = vmatprep.subr.bf16.mxu1 %v17883_v5 }
 0xe2c   : > { %7459 = vmatpush1.bf16.msra.mxu1 %v7045_v38 }
 0xe2d   : > { %7460 = vmatprep.subr.bf16.mxu1 %v17883_v5 }
 0xe30   : > { %7461 = vmatpush1.bf16.msra.mxu1 %v7046_v43  ;;  %v7141_v11 = vpop.f32.mrb[104].mxu0 }
 0xe31   : > { %7462 = vmatprep.subr.bf16.mxu1 %v17883_v5  ;;  %v7143_v22 = vpop.f32.mrb[105].mxu0 }
 0xe32   : > { %v7144_v20 = vpop.f32.mrb[106].mxu0 }
 0xe33   : > { %v7499_v33 = vpack.c.bf16 %v7144_v20, %v7141_v11  ;;  %v7146_v48 = vpop.f32.mrb[107].mxu0 }
 0xe34   : > { %7463 = vmatpush1.bf16.msra.mxu1 %v7061_v50 }
 0xe35   : > { %7464 = vmatprep.subr.bf16.mxu1 %v17883_v5  ;;  %12333 = vmatprep.mubr.msk.bf16.mxu0 %vm835_vm2, %v7499_v33 }
 0xe38   : > { %7465 = vmatpush1.bf16.msra.mxu1 %v7062_v58  ;;  %v7149_v15 = vpop.f32.mrb[108].mxu0 }
 0xe39   : > { %7466 = vmatprep.subr.bf16.mxu1 %v17883_v5  ;;  %v7151_v39 = vpop.f32.mrb[109].mxu0 }
 0xe3a   : > { %v7152_v63 = vpop.f32.mrb[110].mxu0 }
 0xe3b   : > { %v7500_v42 = vpack.c.bf16 %v7152_v63, %v7149_v15  ;;  %v7154_v14 = vpop.f32.mrb[111].mxu0 }
 0xe3c   : > { %7467 = vmatpush1.bf16.msra.mxu1 %v7077_v24 }
 0xe3d   : > { %7468 = vmatprep.subr.bf16.mxu1 %v17883_v5  ;;  %12334 = vmatmul.mubr.msk.bf16.vlgmr.msra.gmra.mrb[136].mxu0 %vm835_vm2, %v7500_v42 }
 0xe40   : > { %7469 = vmatpush1.bf16.msra.mxu1 %v7078_v18 }
 0xe41   : > { %12365 = vmatprep.subr.bf16.mxu1 %v12892_v49 }
 0xe43   : > { %7483 = vmatmul.mubr.bf16.vlgmr.msra.gmra.mrb[136].mxu1 %v16557_v3  ;;  %v12895_v3 = vld [vmem:[%s17824_s6 + $0x18] sm:$0xff]  }
 0xe44   : > { %10754 = vmatprep.mubr.msk.bf16.mxu1 %vm3179_vm14, %v16566_v56  ;;  %12366 = vmatpush3.bf16.msra.mxu1 %v12892_v49 }
 0xe45   : > { %12367 = vmatprep.subr.bf16.mxu1 %v12893_v41 }
 0xe48   : > { %12368 = vmatpush3.bf16.msra.mxu1 %v12893_v41 }
 0xe49   : > { %12369 = vmatprep.subr.bf16.mxu1 %v12894_v37 }
 0xe4b   : > { %7491 = vmatmul.mubr.bf16.gmra.mrb[140].mxu1 %v16587_v62  ;;  %v12897_v62 = vld [vmem:[%s17824_s6 + $0x28] sm:$0xff]  }
 0xe4c   : > { %12370 = vmatpush3.bf16.msra.mxu1 %v12894_v37 }
 0xe4d   : > { %12371 = vmatprep.subr.bf16.mxu1 %v12895_v3 }
 0xe50   : > { %v7190_v56 = vpop.f32.mrb[112].mxu1  ;;  %12372 = vmatpush3.bf16.msra.mxu1 %v12895_v3 }
 0xe51   : > { %v7192_v45 = vpop.f32.mrb[113].mxu1  ;;  %12373 = vmatprep.subr.bf16.mxu1 %v12896_v60 }
 0xe52   : > { %v7193_v29 = vpop.f32.mrb[114].mxu1 }
 0xe53   : > { %v7501_v6 = vpack.c.bf16 %v7193_v29, %v7190_v56  ;;  %v7195_v53 = vpop.f32.mrb[115].mxu1 }
 0xe54   : > { %12374 = vmatpush3.bf16.msra.mxu1 %v12896_v60 }
 0xe55   : > { %12337 = vmatprep.mubr.msk.bf16.mxu0 %vm835_vm2, %v7501_v6  ;;  %12375 = vmatprep.subr.bf16.mxu1 %v12897_v62 }
 0xe58   : > { %v7198_v4 = vpop.f32.mrb[116].mxu1  ;;  %12376 = vmatpush3.bf16.msra.mxu1 %v12897_v62 }
 0xe59   : > { %v7200_v23 = vpop.f32.mrb[117].mxu1  ;;  %12377 = vmatprep.subr.bf16.mxu1 %v12898_v27 }
 0xe5a   : > { %v7201_v55 = vpop.f32.mrb[118].mxu1 }
 0xe5b   : > { %v7502_v57 = vpack.c.bf16 %v7201_v55, %v7198_v4  ;;  %v7203_v21 = vpop.f32.mrb[119].mxu1 }
 0xe5c   : > { %v7239_v47 = vpop.f32.mrb[112].mxu0  ;;  %12378 = vmatpush3.bf16.msra.mxu1 %v12898_v27 }
 0xe5d   : > { %12338 = vmatmul.mubr.msk.bf16.gmra.mrb[140].mxu0 %vm835_vm2, %v7502_v57  ;;  %v7241_v52 = vpop.f32.mrb[113].mxu0  ;;  %12379 = vmatprep.subr.bf16.mxu1 %v12899_v32 }
 0xe5e   : > { %v7242_v38 = vpop.f32.mrb[114].mxu0 }
 0xe5f   : > { %v7503_v43 = vpack.c.bf16 %v7242_v38, %v7239_v47  ;;  %v7244_v11 = vpop.f32.mrb[115].mxu0 }
 0xe60   : > { %12380 = vmatpush3.bf16.msra.mxu1 %v12899_v32 }
 0xe61   : > { %12341 = vmatprep.mubr.msk.bf16.mxu0 %vm835_vm2, %v7503_v43  ;;  %8148 = vmatprep.subr.bf16.mxu1 %v17883_v5 }
 0xe64   : > { %v7247_v22 = vpop.f32.mrb[116].mxu0 }
 0xe65   : > { %v7249_v50 = vpop.f32.mrb[117].mxu0 }
 0xe66   : > { %v7250_v20 = vpop.f32.mrb[118].mxu0 }
 0xe67   : > { %v7504_v33 = vpack.c.bf16 %v7250_v20, %v7247_v22  ;;  %v7252_v48 = vpop.f32.mrb[119].mxu0 }
 0xe69   : > { %12342 = vmatmul.mubr.msk.bf16.gmra.mrb[144].mxu0 %vm835_vm2, %v7504_v33 }
 0xe83   : > { %v7288_v58 = vpop.f32.mrb[120].mxu1 }
 0xe84   : > { %v7290_v15 = vpop.f32.mrb[121].mxu1 }
 0xe85   : > { %v7291_v39 = vpop.f32.mrb[122].mxu1 }
 0xe86   : > { %v7505_v24 = vpack.c.bf16 %v7291_v39, %v7288_v58  ;;  %v7293_v63 = vpop.f32.mrb[123].mxu1 }
 0xe88   : > { %12345 = vmatprep.mubr.msk.bf16.mxu0 %vm835_vm2, %v7505_v24 }
 0xe8b   : > { %v7296_v42 = vpop.f32.mrb[124].mxu1 }
 0xe8c   : > { %v7298_v14 = vpop.f32.mrb[125].mxu1 }
 0xe8d   : > { %v7299_v18 = vpop.f32.mrb[126].mxu1 }
 0xe8e   : > { %v7506_v49 = vpack.c.bf16 %v7299_v18, %v7296_v42  ;;  %v7301_v41 = vpop.f32.mrb[127].mxu1 }
 0xe90   : > { %12346 = vmatmul.mubr.msk.bf16.gmra.mrb[148].mxu0 %vm835_vm2, %v7506_v49 }
 0xea0   : > { %v7337_v37 = vpop.f32.mrb[120].mxu0 }
 0xea1   : > { %v7339_v3 = vpop.f32.mrb[121].mxu0 }
 0xea2   : > { %v7340_v56 = vpop.f32.mrb[122].mxu0 }
 0xea3   : > { %v7507_v45 = vpack.c.bf16 %v7340_v56, %v7337_v37  ;;  %v7342_v60 = vpop.f32.mrb[123].mxu0 }
 0xea5   : > { %12349 = vmatprep.mubr.msk.bf16.mxu0 %vm835_vm2, %v7507_v45 }
 0xea8   : > { %v7345_v29 = vpop.f32.mrb[124].mxu0 }
 0xea9   : > { %v7347_v6 = vpop.f32.mrb[125].mxu0 }
 0xeaa   : > { %v7348_v53 = vpop.f32.mrb[126].mxu0 }
 0xeab   : > { %v7508_v62 = vpack.c.bf16 %v7348_v53, %v7345_v29  ;;  %v7350_v4 = vpop.f32.mrb[127].mxu0 }
 0xead   : > { %12350 = vmatmul.mubr.msk.bf16.gmra.mrb[152].mxu0 %vm835_vm2, %v7508_v62 }
 0xeb7   : > { %v7386_v23 = vpop.f32.mrb[128].mxu1 }
 0xeb8   : > { %v7388_v27 = vpop.f32.mrb[129].mxu1 }
 0xeb9   : > { %v7389_v55 = vpop.f32.mrb[130].mxu1 }
 0xeba   : > { %v7509_v57 = vpack.c.bf16 %v7389_v55, %v7386_v23  ;;  %v7391_v21 = vpop.f32.mrb[131].mxu1 }
 0xebc   : > { %12353 = vmatprep.mubr.msk.bf16.mxu0 %vm835_vm2, %v7509_v57 }
 0xebf   : > { %v7394_v47 = vpop.f32.mrb[132].mxu1 }
 0xec0   : > { %v7396_v52 = vpop.f32.mrb[133].mxu1 }
 0xec1   : > { %v7397_v32 = vpop.f32.mrb[134].mxu1 }
 0xec2   : > { %v7510_v38 = vpack.c.bf16 %v7397_v32, %v7394_v47  ;;  %v7399_v43 = vpop.f32.mrb[135].mxu1 }
 0xec4   : > { %12354 = vmatmul.mubr.msk.bf16.gmra.mrb[156].mxu0 %vm835_vm2, %v7510_v38 }
 0xed6   : > { %v7435_v11 = vpop.f32.mrb[128].mxu0 }
 0xed7   : > { %v7437_v22 = vpop.f32.mrb[129].mxu0 }
 0xed8   : > { %v7438_v50 = vpop.f32.mrb[130].mxu0 }
 0xed9   : > { %v7511_v20 = vpack.c.bf16 %v7438_v50, %v7435_v11  ;;  %v7440_v33 = vpop.f32.mrb[131].mxu0 }
 0xedb   : > { %12357 = vmatprep.mubr.msk.bf16.mxu0 %vm835_vm2, %v7511_v20 }
 0xede   : > { %v7443_v48 = vpop.f32.mrb[132].mxu0 }
 0xedf   : > { %v7445_v58 = vpop.f32.mrb[133].mxu0 }
 0xee0   : > { %v7446_v15 = vpop.f32.mrb[134].mxu0 }
 0xee1   : > { %v7512_v39 = vpack.c.bf16 %v7446_v15, %v7443_v48  ;;  %v7448_v24 = vpop.f32.mrb[135].mxu0 }
 0xee3   : > { %12358 = vmatmul.mubr.msk.bf16.gmra.mrb[160].mxu0 %vm835_vm2, %v7512_v39 }
 0xf10   : > { %v12335_v63 = vpop.f32.mrb[136].mxu0 }
 0xf11   : > { %vm7726_vm6 = vcmp.gt.f32.partialorder %v12335_v63, 0.0  ;;  %v7758_v42 = vmul.f32 0.1, %v12335_v63  ;;  %v7597_v14 = vpop.f32.mrb[137].mxu0 }
 0xf12   : > { %vm7724_vm7 = vcmp.gt.f32.partialorder %v7597_v14, 0.0  ;;  %v7756_v18 = vmul.f32 0.1, %v7597_v14  ;;  %v12336_v49 = vpop.f32.mrb[138].mxu0 }
 0xf13   : > { %v7790_v41 = vsel %vm7726_vm6, %v12335_v63, %v7758_v42  ;;  %vm7727_vm8 = vcmp.gt.f32.partialorder %v12336_v49, 0.0  ;;  %v7759_v37 = vmul.f32 0.1, %v12336_v49  ;;  %v7600_v3 = vpop.f32.mrb[139].mxu0 }
 0xf14   : > { %v7788_v56 = vsel %vm7724_vm7, %v7597_v14, %v7756_v18  ;;  %vm7725_vm9 = vcmp.gt.f32.partialorder %v7600_v3, 0.0  ;;  %v7757_v45 = vmul.f32 0.1, %v7600_v3 }
 0xf15   : > { %v7791_v60 = vsel %vm7727_vm8, %v12336_v49, %v7759_v37 }
 0xf16   : > { %v7484_v29 = vpop.f32.mrb[136].mxu1  ;;  %v7821_v6 = vpack.c.bf16 %v7791_v60, %v7790_v41  ;;  %v7789_v53 = vsel %vm7725_vm9, %v7600_v3, %v7757_v45 }
 0xf17   : > { %v7486_v62 = vpop.f32.mrb[137].mxu1  ;;  %v7820_v4 = vpack.c.bf16 %v7789_v53, %v7788_v56 }
 0xf18   : > { %v7487_v23 = vpop.f32.mrb[138].mxu1 }
 0xf19   : > { %v7513_v27 = vpack.c.bf16 %v7487_v23, %v7484_v29  ;;  %v7489_v55 = vpop.f32.mrb[139].mxu1  ;;  %12381 = vmatprep.mubr.bf16.mxu1 %v7820_v4 }
 0xf1a   : > { %12382 = vmatmul.mubr.bf16.vlgmr.msra.gmra.mrb[144].mxu1 %v7821_v6 }
 0xf1b   : > { %12361 = vmatprep.mubr.msk.bf16.mxu0 %vm835_vm2, %v7513_v27 }
 0xf1e   : > { %v7492_v57 = vpop.f32.mrb[140].mxu1 }
 0xf1f   : > { %v7494_v21 = vpop.f32.mrb[141].mxu1 }
 0xf20   : > { %v7495_v47 = vpop.f32.mrb[142].mxu1 }
 0xf21   : > { %v7514_v52 = vpack.c.bf16 %v7495_v47, %v7492_v57  ;;  %v7497_v32 = vpop.f32.mrb[143].mxu1 }
 0xf23   : > { %12362 = vmatmul.mubr.msk.bf16.gmra.mrb[164].mxu0 %vm835_vm2, %v7514_v52 }
 0xf30   : > { %v12339_v38 = vpop.f32.mrb[140].mxu0 }
 0xf31   : > { %vm7730_vm10 = vcmp.gt.f32.partialorder %v12339_v38, 0.0  ;;  %v7762_v43 = vmul.f32 0.1, %v12339_v38  ;;  %v7613_v11 = vpop.f32.mrb[141].mxu0 }
 0xf32   : > { %vm7728_vm11 = vcmp.gt.f32.partialorder %v7613_v11, 0.0  ;;  %v7760_v22 = vmul.f32 0.1, %v7613_v11  ;;  %v12340_v50 = vpop.f32.mrb[142].mxu0 }
 0xf33   : > { %v7794_v20 = vsel %vm7730_vm10, %v12339_v38, %v7762_v43  ;;  %vm7731_vm6 = vcmp.gt.f32.partialorder %v12340_v50, 0.0  ;;  %v7763_v33 = vmul.f32 0.1, %v12340_v50  ;;  %v7616_v48 = vpop.f32.mrb[143].mxu0 }
 0xf34   : > { %v7792_v58 = vsel %vm7728_vm11, %v7613_v11, %v7760_v22  ;;  %vm7729_vm7 = vcmp.gt.f32.partialorder %v7616_v48, 0.0  ;;  %v7761_v15 = vmul.f32 0.1, %v7616_v48 }
 0xf35   : > { %v7795_v39 = vsel %vm7731_vm6, %v12340_v50, %v7763_v33 }
 0xf36   : > { %v7823_v24 = vpack.c.bf16 %v7795_v39, %v7794_v20  ;;  %v7793_v63 = vsel %vm7729_vm7, %v7616_v48, %v7761_v15 }
 0xf37   : > { %v7822_v42 = vpack.c.bf16 %v7793_v63, %v7792_v58 }
 0xf39   : > { %12385 = vmatprep.mubr.bf16.mxu1 %v7822_v42 }
 0xf3a   : > { %12386 = vmatmul.mubr.bf16.gmra.mrb[148].mxu1 %v7823_v24 }
 0xf3c   : > { %v12343_v14 = vpop.f32.mrb[144].mxu0 }
 0xf3d   : > { %vm7734_vm8 = vcmp.gt.f32.partialorder %v12343_v14, 0.0  ;;  %v7766_v18 = vmul.f32 0.1, %v12343_v14  ;;  %v7629_v49 = vpop.f32.mrb[145].mxu0 }
 0xf3e   : > { %vm7732_vm9 = vcmp.gt.f32.partialorder %v7629_v49, 0.0  ;;  %v7764_v41 = vmul.f32 0.1, %v7629_v49  ;;  %v12344_v37 = vpop.f32.mrb[146].mxu0 }
 0xf3f   : > { %v7798_v3 = vsel %vm7734_vm8, %v12343_v14, %v7766_v18  ;;  %vm7735_vm10 = vcmp.gt.f32.partialorder %v12344_v37, 0.0  ;;  %v7767_v56 = vmul.f32 0.1, %v12344_v37  ;;  %v7632_v45 = vpop.f32.mrb[147].mxu0 }
 0xf40   : > { %v7796_v60 = vsel %vm7732_vm9, %v7629_v49, %v7764_v41  ;;  %vm7733_vm11 = vcmp.gt.f32.partialorder %v7632_v45, 0.0  ;;  %v7765_v29 = vmul.f32 0.1, %v7632_v45 }
 0xf41   : > { %v7799_v6 = vsel %vm7735_vm10, %v12344_v37, %v7767_v56 }
 0xf42   : > { %v7825_v53 = vpack.c.bf16 %v7799_v6, %v7798_v3  ;;  %v7797_v62 = vsel %vm7733_vm11, %v7632_v45, %v7765_v29 }
 0xf43   : > { %v7824_v4 = vpack.c.bf16 %v7797_v62, %v7796_v60 }
 0xf45   : > { %12389 = vmatprep.mubr.bf16.mxu1 %v7824_v4 }
 0xf46   : > { %12390 = vmatmul.mubr.bf16.gmra.mrb[152].mxu1 %v7825_v53 }
 0xf63   : > { %v12347_v23 = vpop.f32.mrb[148].mxu0 }
 0xf64   : > { %vm7738_vm6 = vcmp.gt.f32.partialorder %v12347_v23, 0.0  ;;  %v7770_v27 = vmul.f32 0.1, %v12347_v23  ;;  %v7645_v55 = vpop.f32.mrb[149].mxu0 }
 0xf65   : > { %vm7736_vm7 = vcmp.gt.f32.partialorder %v7645_v55, 0.0  ;;  %v7768_v57 = vmul.f32 0.1, %v7645_v55  ;;  %v12348_v21 = vpop.f32.mrb[150].mxu0 }
 0xf66   : > { %v7802_v47 = vsel %vm7738_vm6, %v12347_v23, %v7770_v27  ;;  %vm7739_vm8 = vcmp.gt.f32.partialorder %v12348_v21, 0.0  ;;  %v7771_v52 = vmul.f32 0.1, %v12348_v21  ;;  %v7648_v32 = vpop.f32.mrb[151].mxu0 }
 0xf67   : > { %v7800_v38 = vsel %vm7736_vm7, %v7645_v55, %v7768_v57  ;;  %vm7737_vm9 = vcmp.gt.f32.partialorder %v7648_v32, 0.0  ;;  %v7769_v43 = vmul.f32 0.1, %v7648_v32 }
 0xf68   : > { %v7803_v11 = vsel %vm7739_vm8, %v12348_v21, %v7771_v52 }
 0xf69   : > { %v7827_v22 = vpack.c.bf16 %v7803_v11, %v7802_v47  ;;  %v7801_v50 = vsel %vm7737_vm9, %v7648_v32, %v7769_v43 }
 0xf6a   : > { %v7826_v20 = vpack.c.bf16 %v7801_v50, %v7800_v38 }
 0xf6c   : > { %12393 = vmatprep.mubr.bf16.mxu1 %v7826_v20 }
 0xf6d   : > { %12394 = vmatmul.mubr.bf16.gmra.mrb[156].mxu1 %v7827_v22 }
 0xf80   : > { %v12351_v33 = vpop.f32.mrb[152].mxu0 }
 0xf81   : > { %vm7742_vm10 = vcmp.gt.f32.partialorder %v12351_v33, 0.0  ;;  %v7774_v48 = vmul.f32 0.1, %v12351_v33  ;;  %v7661_v58 = vpop.f32.mrb[153].mxu0 }
 0xf82   : > { %vm7740_vm11 = vcmp.gt.f32.partialorder %v7661_v58, 0.0  ;;  %v7772_v15 = vmul.f32 0.1, %v7661_v58  ;;  %v12352_v39 = vpop.f32.mrb[154].mxu0 }
 0xf83   : > { %v7806_v24 = vsel %vm7742_vm10, %v12351_v33, %v7774_v48  ;;  %vm7743_vm6 = vcmp.gt.f32.partialorder %v12352_v39, 0.0  ;;  %v7775_v63 = vmul.f32 0.1, %v12352_v39  ;;  %v7664_v42 = vpop.f32.mrb[155].mxu0 }
 0xf84   : > { %v7804_v14 = vsel %vm7740_vm11, %v7661_v58, %v7772_v15  ;;  %vm7741_vm7 = vcmp.gt.f32.partialorder %v7664_v42, 0.0  ;;  %v7773_v18 = vmul.f32 0.1, %v7664_v42 }
 0xf85   : > { %v7807_v49 = vsel %vm7743_vm6, %v12352_v39, %v7775_v63  ;;  %v16911_v63 = vld [vmem:[%s17830_s12 + $0x4] ss:$8 sps:$4 sm:$0xff]  }
 0xf86   : > { %v7829_v41 = vpack.c.bf16 %v7807_v49, %v7806_v24  ;;  %v7805_v37 = vsel %vm7741_vm7, %v7664_v42, %v7773_v18  ;;  %10773 = vmatprep.mubr.msk.bf16.mxu0 %vm3179_vm14, %v16911_v63 }
 0xf87   : > { %v7828_v3 = vpack.c.bf16 %v7805_v37, %v7804_v14 }
 0xf89   : > { %12397 = vmatprep.mubr.bf16.mxu1 %v7828_v3 }
 0xf8a   : > { %12398 = vmatmul.mubr.bf16.gmra.mrb[160].mxu1 %v7829_v41 }
 0xf97   : > { %v12355_v56 = vpop.f32.mrb[156].mxu0 }
 0xf98   : > { %vm7746_vm8 = vcmp.gt.f32.partialorder %v12355_v56, 0.0  ;;  %v7778_v45 = vmul.f32 0.1, %v12355_v56  ;;  %v7677_v60 = vpop.f32.mrb[157].mxu0 }
 0xf99   : > { %vm7744_vm9 = vcmp.gt.f32.partialorder %v7677_v60, 0.0  ;;  %v7776_v29 = vmul.f32 0.1, %v7677_v60  ;;  %v12356_v6 = vpop.f32.mrb[158].mxu0 }
 0xf9a   : > { %v7810_v53 = vsel %vm7746_vm8, %v12355_v56, %v7778_v45  ;;  %vm7747_vm10 = vcmp.gt.f32.partialorder %v12356_v6, 0.0  ;;  %v7779_v62 = vmul.f32 0.1, %v12356_v6  ;;  %v7680_v4 = vpop.f32.mrb[159].mxu0 }
 0xf9b   : > { %v7808_v23 = vsel %vm7744_vm9, %v7677_v60, %v7776_v29  ;;  %vm7745_vm11 = vcmp.gt.f32.partialorder %v7680_v4, 0.0  ;;  %v7777_v27 = vmul.f32 0.1, %v7680_v4 }
 0xf9c   : > { %v7811_v55 = vsel %vm7747_vm10, %v12356_v6, %v7779_v62 }
 0xf9d   : > { %v7831_v57 = vpack.c.bf16 %v7811_v55, %v7810_v53  ;;  %v7809_v21 = vsel %vm7745_vm11, %v7680_v4, %v7777_v27 }
 0xf9e   : > { %v7830_v47 = vpack.c.bf16 %v7809_v21, %v7808_v23 }
 0xfa0   : > { %12401 = vmatprep.mubr.bf16.mxu1 %v7830_v47 }
 0xfa1   : > { %12402 = vmatmul.mubr.bf16.gmra.mrb[164].mxu1 %v7831_v57 }
 0xfb6   : > { %v12359_v52 = vpop.f32.mrb[160].mxu0 }
 0xfb7   : > { %vm7750_vm6 = vcmp.gt.f32.partialorder %v12359_v52, 0.0  ;;  %v7782_v32 = vmul.f32 0.1, %v12359_v52  ;;  %v7693_v38 = vpop.f32.mrb[161].mxu0 }
 0xfb8   : > { %vm7748_vm7 = vcmp.gt.f32.partialorder %v7693_v38, 0.0  ;;  %v7780_v43 = vmul.f32 0.1, %v7693_v38  ;;  %v12360_v11 = vpop.f32.mrb[162].mxu0 }
 0xfb9   : > { %v7814_v22 = vsel %vm7750_vm6, %v12359_v52, %v7782_v32  ;;  %vm7751_vm8 = vcmp.gt.f32.partialorder %v12360_v11, 0.0  ;;  %v7783_v50 = vmul.f32 0.1, %v12360_v11  ;;  %v7696_v20 = vpop.f32.mrb[163].mxu0 }
 0xfba   : > { %v7812_v33 = vsel %vm7748_vm7, %v7693_v38, %v7780_v43  ;;  %vm7749_vm9 = vcmp.gt.f32.partialorder %v7696_v20, 0.0  ;;  %v7781_v48 = vmul.f32 0.1, %v7696_v20 }
 0xfbb   : > { %v7815_v58 = vsel %vm7751_vm8, %v12360_v11, %v7783_v50  ;;  %vm9293_vm8 = vcmask 130112  }
 0xfbc   : > { %v7833_v15 = vpack.c.bf16 %v7815_v58, %v7814_v22  ;;  %v7813_v39 = vsel %vm7749_vm9, %v7696_v20, %v7781_v48  ;;  %vm9300_vm9 = vcmask 195712  }
 0xfbd   : > { %v7832_v24 = vpack.c.bf16 %v7813_v39, %v7812_v33 }
 0xfbf   : > { %12405 = vmatprep.mubr.bf16.mxu1 %v7832_v24 }
 0xfc0   : > { %12406 = vmatmul.mubr.bf16.gmra.mrb[168].mxu1 %v7833_v15 }
 0xfed   : > { %v12383_v42 = vpop.f32.mrb[144].mxu1 }
 0xfee   : > { %v9124_v14 = vmul.f32 %v12383_v42, %v14546_v13  ;;  %v7870_v18 = vpop.f32.mrb[145].mxu1 }
 0xfef   : > { %v9122_v49 = vmul.f32 %v14546_v13, %v7870_v18  ;;  %v12384_v41 = vpop.f32.mrb[146].mxu1 }
 0xff0   : > { %v16917_v37 = vpack.c.bf16 %v12384_v41, %v12383_v42  ;;  %v7873_v3 = vpop.f32.mrb[147].mxu1  ;;  %v9160_v56 = vsel %vm835_vm2, %v9124_v14, 0.0  ;;  %v9125_v29 = vmul.f32 %v12384_v41, %v14546_v13 }
 0xff1   : > { %v16920_v45 = vpack.c.bf16 %v7873_v3, %v7870_v18  ;;  %v9123_v60 = vmul.f32 %v14546_v13, %v7873_v3  ;;  %9161 = vadd.xlane.f32.xlu0 %v9160_v56  ;;  %v9154_v6 = vsel %vm835_vm2, %v9122_v49, 0.0 }
 0xff2   : > { %v8014_v4 = vmul.bf16 %v16917_v37, %v13792_v16  ;;  %v9163_v27 = vsel %vm835_vm2, %v9125_v29, 0.0  ;;  %v8030_v58 = vmul.bf16 %v16917_v37, %v13856_v26  ;;  %v8046_v39 = vmul.bf16 %v16917_v37, %v13904_v36 }
 0xff3   : > { %v8013_v53 = vmul.bf16 %v16920_v45, %v13792_v16  ;;  %v9157_v62 = vsel %vm835_vm2, %v9123_v60, 0.0  ;;  %v8029_v38 = vmul.bf16 %v16920_v45, %v13856_v26  ;;  %v8045_v15 = vmul.bf16 %v16920_v45, %v13904_v36 }
 0xff4   : > { %9158 = vadd.xlane.f32.xlu1 %v9157_v62  ;;  %v8061_v24 = vmul.bf16 %v16920_v45, %v13945_v46  ;;  %v8062_v14 = vmul.bf16 %v16917_v37, %v13945_v46 }
 0xff5   : > { %8108 = vmatpush1.bf16.msra.mxu0 %v8013_v53  ;;  %9155 = vadd.xlane.f32.xlu0 %v9154_v6 }
 0xff6   : > { %v12363_v23 = vpop.f32.mrb[164].mxu0  ;;  %8109 = vmatprep.subr.bf16.mxu0 %v17883_v5 }
 0xff7   : > { %v7786_v55 = vmul.f32 0.1, %v12363_v23  ;;  %v7709_v57 = vpop.f32.mrb[165].mxu0  ;;  %vm7754_vm10 = vcmp.gt.f32.partialorder %v12363_v23, 0.0 }
 0xff8   : > { %v7784_v21 = vmul.f32 0.1, %v7709_v57  ;;  %v12364_v47 = vpop.f32.mrb[166].mxu0  ;;  %vm7752_vm11 = vcmp.gt.f32.partialorder %v7709_v57, 0.0 }
 0xff9   : > { %vm7755_vm6 = vcmp.gt.f32.partialorder %v12364_v47, 0.0  ;;  %v7787_v52 = vmul.f32 0.1, %v12364_v47  ;;  %v7712_v32 = vpop.f32.mrb[167].mxu0  ;;  %8110 = vmatpush1.bf16.msra.mxu0 %v8014_v4  ;;  %9164 = vadd.xlane.f32.xlu0 %v9163_v27  ;;  %v7818_v11 = vsel %vm7754_vm10, %v12363_v23, %v7786_v55  ;;  %v8077_v27 = vmul.bf16 %v16920_v45, %v13971_v17 }
 0xffa   : > { %vm7753_vm7 = vcmp.gt.f32.partialorder %v7712_v32, 0.0  ;;  %v7785_v43 = vmul.f32 0.1, %v7712_v32  ;;  %8111 = vmatprep.subr.bf16.mxu0 %v17883_v5  ;;  %v7816_v50 = vsel %vm7752_vm11, %v7709_v57, %v7784_v21  ;;  %vm9307_vm10 = vcmask 261312  }
 0xffb   : > { %v7819_v22 = vsel %vm7755_vm6, %v12364_v47, %v7787_v52  ;;  %v8078_v47 = vmul.bf16 %v16917_v37, %v13971_v17  ;;  %vm9898_vm11 = vcmask 917312   ;;  %vm9905_vm6 = vcmask 982912  }
 0xffc   : > { %v7835_v20 = vpack.c.bf16 %v7819_v22, %v7818_v11  ;;  %v7817_v33 = vsel %vm7753_vm7, %v7712_v32, %v7785_v43  ;;  %v16982_v43 = vld [vmem:[%s17830_s12] ss:$8 sps:$4 sm:$0xff]   ;;  %vm9912_vm7 = vcmask 1048512  }
 0xffd   : > { %v7834_v48 = vpack.c.bf16 %v7817_v33, %v7816_v50  ;;  %8112 = vmatpush1.bf16.msra.mxu0 %v8029_v38 }
 0xffe   : > { %8113 = vmatprep.subr.bf16.mxu0 %v17883_v5 }
 0xfff   : > { %12409 = vmatprep.mubr.bf16.mxu1 %v7834_v48 }
0x1000   : > { %12410 = vmatmul.mubr.bf16.gmra.mrb[172].mxu1 %v7835_v20 }
0x1001   : > { %8114 = vmatpush1.bf16.msra.mxu0 %v8030_v58  ;;  %10774 = vmatprep.mubr.msk.bf16.mxu1 %vm3179_vm14, %v16911_v63 }
0x1002   : > { %8115 = vmatprep.subr.bf16.mxu0 %v17883_v5 }
0x1005   : > { %8116 = vmatpush1.bf16.msra.mxu0 %v8045_v15 }
0x1006   : > { %8117 = vmatprep.subr.bf16.mxu0 %v17883_v5 }
0x1009   : > { %8118 = vmatpush1.bf16.msra.mxu0 %v8046_v39 }
0x100a   : > { %8119 = vmatprep.subr.bf16.mxu0 %v17883_v5 }
0x100d   : > { %v12387_v42 = vpop.f32.mrb[148].mxu1  ;;  %8120 = vmatpush1.bf16.msra.mxu0 %v8061_v24 }
0x100e   : > { %v9128_v18 = vmul.f32 %v12387_v42, %v14546_v13  ;;  %v7886_v49 = vpop.f32.mrb[149].mxu1  ;;  %8121 = vmatprep.subr.bf16.mxu0 %v17883_v5 }
0x100f   : > { %v9126_v41 = vmul.f32 %v14546_v13, %v7886_v49  ;;  %v12388_v3 = vpop.f32.mrb[150].mxu1 }
0x1010   : > { %v16954_v56 = vpack.c.bf16 %v12388_v3, %v12387_v42  ;;  %v9129_v60 = vmul.f32 %v12388_v3, %v14546_v13  ;;  %v7889_v29 = vpop.f32.mrb[151].mxu1  ;;  %v9172_v6 = vsel %vm835_vm2, %v9128_v18, 0.0 }
0x1011   : > { %v16958_v53 = vpack.c.bf16 %v7889_v29, %v7886_v49  ;;  %9173 = vadd.xlane.f32.xlu1 %v9172_v6  ;;  %v9166_v62 = vsel %vm835_vm2, %v9126_v41, 0.0  ;;  %8122 = vmatpush1.bf16.msra.mxu0 %v8062_v14  ;;  %v9127_v4 = vmul.f32 %v14546_v13, %v7889_v29 }
0x1012   : > { %9167 = vadd.xlane.f32.xlu0 %v9166_v62  ;;  %v9175_v23 = vsel %vm835_vm2, %v9129_v60, 0.0  ;;  %8123 = vmatprep.subr.bf16.mxu0 %v17883_v5  ;;  %v8016_v57 = vmul.bf16 %v16954_v56, %v13792_v16  ;;  %v8032_v58 = vmul.bf16 %v16954_v56, %v13856_v26  ;;  %v8048_v41 = vmul.bf16 %v16954_v56, %v13904_v36 }
0x1013   : > { %v8015_v55 = vmul.bf16 %v16958_v53, %v13792_v16  ;;  %v9169_v21 = vsel %vm835_vm2, %v9127_v4, 0.0  ;;  %v8031_v52 = vmul.bf16 %v16958_v53, %v13856_v26  ;;  %v8047_v14 = vmul.bf16 %v16958_v53, %v13904_v36 }
0x1014   : > { %v8063_v60 = vmul.bf16 %v16958_v53, %v13945_v46  ;;  %v8064_v6 = vmul.bf16 %v16954_v56, %v13945_v46  ;;  %v8079_v4 = vmul.bf16 %v16958_v53, %v13971_v17 }
0x1015   : > { %8149 = vmatpush1.bf16.msra.mxu1 %v8015_v55  ;;  %9176 = vadd.xlane.f32.xlu1 %v9175_v23 }
0x1016   : > { %8150 = vmatprep.subr.bf16.mxu1 %v17883_v5  ;;  %8124 = vmatpush1.bf16.msra.mxu0 %v8077_v27  ;;  %v8080_v27 = vmul.bf16 %v16954_v56, %v13971_v17 }
0x1017   : > { %8125 = vmatprep.subr.bf16.mxu0 %v17883_v5 }
0x1019   : > { %8151 = vmatpush1.bf16.msra.mxu1 %v8016_v57  ;;  %v12391_v45 = vpop.f32.mrb[152].mxu1  ;;  %9170 = vadd.xlane.f32.xlu1 %v9169_v21 }
0x101a   : > { %v9132_v32 = vmul.f32 %v12391_v45, %v14546_v13  ;;  %8152 = vmatprep.subr.bf16.mxu1 %v17883_v5  ;;  %v7902_v38 = vpop.f32.mrb[153].mxu1  ;;  %8126 = vmatpush1.bf16.msra.mxu0 %v8078_v47 }
0x101b   : > { %v9130_v37 = vmul.f32 %v14546_v13, %v7902_v38  ;;  %v12392_v11 = vpop.f32.mrb[154].mxu1  ;;  %8189 = vmatprep.subr.bf16.mxu0 %v17883_v5 }
0x101c   : > { %v16986_v22 = vpack.c.bf16 %v12392_v11, %v12391_v45  ;;  %v9184_v50 = vsel %vm835_vm2, %v9132_v32, 0.0  ;;  %v7905_v20 = vpop.f32.mrb[155].mxu1  ;;  %v9133_v15 = vmul.f32 %v12392_v11, %v14546_v13 }
0x101d   : > { %8153 = vmatpush1.bf16.msra.mxu1 %v8031_v52  ;;  %9185 = vadd.xlane.f32.xlu0 %v9184_v50  ;;  %v16989_v33 = vpack.c.bf16 %v7905_v20, %v7902_v38  ;;  %v9131_v48 = vmul.f32 %v14546_v13, %v7905_v20  ;;  %v9178_v39 = vsel %vm835_vm2, %v9130_v37, 0.0 }
0x101e   : > { %8154 = vmatprep.subr.bf16.mxu1 %v17883_v5  ;;  %8140 = vmatmul.mubr.bf16.vlgmr.msra.gmra.mrb[168].mxu0 %v16982_v43  ;;  %v9187_v18 = vsel %vm835_vm2, %v9133_v15, 0.0  ;;  %v8018_v49 = vmul.bf16 %v16986_v22, %v13792_v16  ;;  %v8034_v29 = vmul.bf16 %v16986_v22, %v13856_v26  ;;  %v8050_v23 = vmul.bf16 %v16986_v22, %v13904_v36 }
0x101f   : > { %v9181_v24 = vsel %vm835_vm2, %v9131_v48, 0.0  ;;  %v8017_v42 = vmul.bf16 %v16989_v33, %v13792_v16  ;;  %10775 = vmatprep.mubr.msk.bf16.mxu0 %vm3179_vm14, %v16911_v63  ;;  %v8033_v3 = vmul.bf16 %v16989_v33, %v13856_v26  ;;  %v8049_v62 = vmul.bf16 %v16989_v33, %v13904_v36 }
0x1020   : > { %9182 = vadd.xlane.f32.xlu1 %v9181_v24  ;;  %v8065_v55 = vmul.bf16 %v16989_v33, %v13945_v46  ;;  %v8066_v53 = vmul.bf16 %v16986_v22, %v13945_v46  ;;  %v8081_v56 = vmul.bf16 %v16989_v33, %v13971_v17  ;;  %v8082_v32 = vmul.bf16 %v16986_v22, %v13971_v17 }
0x1021   : > { %8155 = vmatpush1.bf16.msra.mxu1 %v8032_v58  ;;  %9179 = vadd.xlane.f32.xlu0 %v9178_v39 }
0x1022   : > { %8156 = vmatprep.subr.bf16.mxu1 %v17883_v5  ;;  %8190 = vmatpush1.bf16.msra.mxu0 %v8017_v42 }
0x1023   : > { %8191 = vmatprep.subr.bf16.mxu0 %v17883_v5 }
0x1025   : > { %8157 = vmatpush1.bf16.msra.mxu1 %v8047_v14  ;;  %9188 = vadd.xlane.f32.xlu0 %v9187_v18 }
0x1026   : > { %8158 = vmatprep.subr.bf16.mxu1 %v17883_v5  ;;  %8192 = vmatpush1.bf16.msra.mxu0 %v8018_v49 }
0x1027   : > { %8193 = vmatprep.subr.bf16.mxu0 %v17883_v5 }
0x1029   : > { %8159 = vmatpush1.bf16.msra.mxu1 %v8048_v41 }
0x102a   : > { %8160 = vmatprep.subr.bf16.mxu1 %v17883_v5  ;;  %8194 = vmatpush1.bf16.msra.mxu0 %v8033_v3 }
0x102b   : > { %8195 = vmatprep.subr.bf16.mxu0 %v17883_v5 }
0x102d   : > { %8161 = vmatpush1.bf16.msra.mxu1 %v8063_v60 }
0x102e   : > { %8162 = vmatprep.subr.bf16.mxu1 %v17883_v5  ;;  %8196 = vmatpush1.bf16.msra.mxu0 %v8034_v29 }
0x102f   : > { %8197 = vmatprep.subr.bf16.mxu0 %v17883_v5 }
0x1031   : > { %8163 = vmatpush1.bf16.msra.mxu1 %v8064_v6 }
0x1032   : > { %8164 = vmatprep.subr.bf16.mxu1 %v17883_v5  ;;  %8198 = vmatpush1.bf16.msra.mxu0 %v8049_v62 }
0x1033   : > { %8199 = vmatprep.subr.bf16.mxu0 %v17883_v5 }
0x1035   : > { %8165 = vmatpush1.bf16.msra.mxu1 %v8079_v4 }
0x1036   : > { %8166 = vmatprep.subr.bf16.mxu1 %v17883_v5  ;;  %8200 = vmatpush1.bf16.msra.mxu0 %v8050_v23 }
0x1037   : > { %8201 = vmatprep.subr.bf16.mxu0 %v17883_v5 }
0x1039   : > { %8167 = vmatpush1.bf16.msra.mxu1 %v8080_v27 }
0x103a   : > { %8230 = vmatprep.subr.bf16.mxu1 %v17883_v5  ;;  %8202 = vmatpush1.bf16.msra.mxu0 %v8065_v55 }
0x103b   : > { %8203 = vmatprep.subr.bf16.mxu0 %v17883_v5 }
0x103c   : > { %8181 = vmatmul.mubr.bf16.vlgmr.msra.gmra.mrb[176].mxu1 %v16982_v43 }
0x103d   : > { %10776 = vmatprep.mubr.msk.bf16.mxu1 %vm3179_vm14, %v16911_v63 }
0x103e   : > { %8204 = vmatpush1.bf16.msra.mxu0 %v8066_v53 }
0x103f   : > { %8205 = vmatprep.subr.bf16.mxu0 %v17883_v5 }
0x1040   : > { %v12395_v57 = vpop.f32.mrb[156].mxu1 }
0x1041   : > { %v9136_v21 = vmul.f32 %v12395_v57, %v14546_v13  ;;  %v7918_v47 = vpop.f32.mrb[157].mxu1 }
0x1042   : > { %v9134_v45 = vmul.f32 %v14546_v13, %v7918_v47  ;;  %v12396_v52 = vpop.f32.mrb[158].mxu1  ;;  %8206 = vmatpush1.bf16.msra.mxu0 %v8081_v56 }
0x1043   : > { %v9196_v38 = vsel %vm835_vm2, %v9136_v21, 0.0  ;;  %v17055_v37 = vpack.c.bf16 %v12396_v52, %v12395_v57  ;;  %v9137_v11 = vmul.f32 %v12396_v52, %v14546_v13  ;;  %v7921_v50 = vpop.f32.mrb[159].mxu1  ;;  %8207 = vmatprep.subr.bf16.mxu0 %v17883_v5 }
0x1044   : > { %9197 = vadd.xlane.f32.xlu1 %v9196_v38  ;;  %v8003_v20 = vpack.c.bf16 %v7921_v50, %v7918_v47  ;;  %v9135_v33 = vmul.f32 %v14546_v13, %v7921_v50  ;;  %v9190_v48 = vsel %vm835_vm2, %v9134_v45, 0.0 }
0x1045   : > { %v9199_v58 = vsel %vm835_vm2, %v9137_v11, 0.0  ;;  %v8020_v39 = vmul.bf16 %v17055_v37, %v13792_v16  ;;  %v8036_v42 = vmul.bf16 %v17055_v37, %v13856_v26  ;;  %v8052_v18 = vmul.bf16 %v17055_v37, %v13904_v36 }
0x1046   : > { %9200 = vadd.xlane.f32.xlu0 %v9199_v58  ;;  %v8019_v22 = vmul.bf16 %v8003_v20, %v13792_v16  ;;  %8208 = vmatpush1.bf16.msra.mxu0 %v8082_v32  ;;  %v9193_v15 = vsel %vm835_vm2, %v9135_v33, 0.0  ;;  %v8035_v24 = vmul.bf16 %v8003_v20, %v13856_v26  ;;  %v8051_v14 = vmul.bf16 %v8003_v20, %v13904_v36 }
0x1047   : > { %8271 = vmatprep.subr.bf16.mxu0 %v17883_v5  ;;  %v8067_v49 = vmul.bf16 %v8003_v20, %v13945_v46  ;;  %v8068_v55 = vmul.bf16 %v17055_v37, %v13945_v46  ;;  %v8083_v45 = vmul.bf16 %v8003_v20, %v13971_v17  ;;  %v8084_v38 = vmul.bf16 %v17055_v37, %v13971_v17 }
0x1048   : > { %9191 = vadd.xlane.f32.xlu1 %v9190_v48  ;;  %8231 = vmatpush1.bf16.msra.mxu1 %v8019_v22 }
0x1049   : > { %8232 = vmatprep.subr.bf16.mxu1 %v17883_v5  ;;  %8222 = vmatmul.mubr.bf16.vlgmr.msra.gmra.mrb[172].mxu0 %v16982_v43 }
0x104a   : > { %9194 = vadd.xlane.f32.xlu0 %v9193_v15  ;;  %10777 = vmatprep.mubr.msk.bf16.mxu0 %vm3179_vm14, %v16911_v63 }
0x104c   : > { %8233 = vmatpush1.bf16.msra.mxu1 %v8020_v39 }
0x104d   : > { %8234 = vmatprep.subr.bf16.mxu1 %v17883_v5 }
0x1050   : > { %8235 = vmatpush1.bf16.msra.mxu1 %v8035_v24 }
0x1051   : > { %8236 = vmatprep.subr.bf16.mxu1 %v17883_v5 }
0x1054   : > { %8237 = vmatpush1.bf16.msra.mxu1 %v8036_v42 }
0x1055   : > { %8238 = vmatprep.subr.bf16.mxu1 %v17883_v5 }
0x1058   : > { %8239 = vmatpush1.bf16.msra.mxu1 %v8051_v14 }
0x1059   : > { %8240 = vmatprep.subr.bf16.mxu1 %v17883_v5 }
0x105c   : > { %8241 = vmatpush1.bf16.msra.mxu1 %v8052_v18 }
0x105d   : > { %v12399_v41 = vpop.f32.mrb[160].mxu1  ;;  %8242 = vmatprep.subr.bf16.mxu1 %v17883_v5 }
0x105e   : > { %v9140_v3 = vmul.f32 %v12399_v41, %v14546_v13  ;;  %v7934_v60 = vpop.f32.mrb[161].mxu1 }
0x105f   : > { %v9138_v29 = vmul.f32 %v14546_v13, %v7934_v60  ;;  %v12400_v6 = vpop.f32.mrb[162].mxu1 }
0x1060   : > { %v9208_v62 = vsel %vm835_vm2, %v9140_v3, 0.0  ;;  %v17086_v4 = vpack.c.bf16 %v12400_v6, %v12399_v41  ;;  %v9141_v23 = vmul.f32 %v12400_v6, %v14546_v13  ;;  %v7937_v27 = vpop.f32.mrb[163].mxu1  ;;  %8243 = vmatpush1.bf16.msra.mxu1 %v8067_v49 }
0x1061   : > { %9209 = vadd.xlane.f32.xlu1 %v9208_v62  ;;  %v17091_v53 = vpack.c.bf16 %v7937_v27, %v7934_v60  ;;  %v9202_v56 = vsel %vm835_vm2, %v9138_v29, 0.0  ;;  %8244 = vmatprep.subr.bf16.mxu1 %v17883_v5  ;;  %v9139_v21 = vmul.f32 %v14546_v13, %v7937_v27 }
0x1062   : > { %v9211_v57 = vsel %vm835_vm2, %v9141_v23, 0.0  ;;  %9203 = vadd.xlane.f32.xlu0 %v9202_v56  ;;  %v8022_v32 = vmul.bf16 %v17086_v4, %v13792_v16  ;;  %v8038_v50 = vmul.bf16 %v17086_v4, %v13856_v26  ;;  %v8054_v15 = vmul.bf16 %v17086_v4, %v13904_v36 }
0x1063   : > { %v8021_v47 = vmul.bf16 %v17091_v53, %v13792_v16  ;;  %v9205_v52 = vsel %vm835_vm2, %v9139_v21, 0.0  ;;  %v8037_v11 = vmul.bf16 %v17091_v53, %v13856_v26  ;;  %v8053_v37 = vmul.bf16 %v17091_v53, %v13904_v36 }
0x1064   : > { %8245 = vmatpush1.bf16.msra.mxu1 %v8068_v55  ;;  %v8069_v29 = vmul.bf16 %v17091_v53, %v13945_v46  ;;  %v8070_v23 = vmul.bf16 %v17086_v4, %v13945_v46  ;;  %v8085_v55 = vmul.bf16 %v17091_v53, %v13971_v17 }
0x1065   : > { %9212 = vadd.xlane.f32.xlu1 %v9211_v57  ;;  %8246 = vmatprep.subr.bf16.mxu1 %v17883_v5  ;;  %v8086_v57 = vmul.bf16 %v17086_v4, %v13971_v17 }
0x1066   : > { %8272 = vmatpush1.bf16.msra.mxu0 %v8021_v47 }
0x1067   : > { %8273 = vmatprep.subr.bf16.mxu0 %v17883_v5 }
0x1068   : > { %8247 = vmatpush1.bf16.msra.mxu1 %v8083_v45 }
0x1069   : > { %9206 = vadd.xlane.f32.xlu1 %v9205_v52  ;;  %8248 = vmatprep.subr.bf16.mxu1 %v17883_v5 }
0x106a   : > { %8274 = vmatpush1.bf16.msra.mxu0 %v8022_v32 }
0x106b   : > { %8275 = vmatprep.subr.bf16.mxu0 %v17883_v5 }
0x106c   : > { %8249 = vmatpush1.bf16.msra.mxu1 %v8084_v38 }
0x106d   : > { %8312 = vmatprep.subr.bf16.mxu1 %v17883_v5 }
0x106e   : > { %8276 = vmatpush1.bf16.msra.mxu0 %v8037_v11 }
0x106f   : > { %8263 = vmatmul.mubr.bf16.vlgmr.msra.gmra.mrb[180].mxu1 %v16982_v43  ;;  %8277 = vmatprep.subr.bf16.mxu0 %v17883_v5 }
0x1070   : > { %10778 = vmatprep.mubr.msk.bf16.mxu1 %vm3179_vm14, %v16911_v63 }
0x1072   : > { %8278 = vmatpush1.bf16.msra.mxu0 %v8038_v50 }
0x1073   : > { %8279 = vmatprep.subr.bf16.mxu0 %v17883_v5 }
0x1074   : > { %v12403_v20 = vpop.f32.mrb[164].mxu1 }
0x1075   : > { %v9144_v33 = vmul.f32 %v12403_v20, %v14546_v13  ;;  %v7950_v48 = vpop.f32.mrb[165].mxu1 }
0x1076   : > { %v9142_v58 = vmul.f32 %v14546_v13, %v7950_v48  ;;  %v12404_v22 = vpop.f32.mrb[166].mxu1  ;;  %8280 = vmatpush1.bf16.msra.mxu0 %v8053_v37 }
0x1077   : > { %v17125_v39 = vpack.c.bf16 %v12404_v22, %v12403_v20  ;;  %v9145_v24 = vmul.f32 %v12404_v22, %v14546_v13  ;;  %v9220_v42 = vsel %vm835_vm2, %v9144_v33, 0.0  ;;  %v7953_v14 = vpop.f32.mrb[167].mxu1  ;;  %8281 = vmatprep.subr.bf16.mxu0 %v17883_v5 }
0x1078   : > { %9221 = vadd.xlane.f32.xlu0 %v9220_v42  ;;  %v17130_v18 = vpack.c.bf16 %v7953_v14, %v7950_v48  ;;  %v9143_v49 = vmul.f32 %v14546_v13, %v7953_v14  ;;  %v9214_v3 = vsel %vm835_vm2, %v9142_v58, 0.0 }
0x1079   : > { %v9223_v41 = vsel %vm835_vm2, %v9145_v24, 0.0  ;;  %v8024_v62 = vmul.bf16 %v17125_v39, %v13792_v16  ;;  %v8040_v56 = vmul.bf16 %v17125_v39, %v13856_v26  ;;  %v8056_v53 = vmul.bf16 %v17125_v39, %v13904_v36 }
0x107a   : > { %9224 = vadd.xlane.f32.xlu1 %v9223_v41  ;;  %v8023_v60 = vmul.bf16 %v17130_v18, %v13792_v16  ;;  %8282 = vmatpush1.bf16.msra.mxu0 %v8054_v15  ;;  %v9217_v6 = vsel %vm835_vm2, %v9143_v49, 0.0  ;;  %v8039_v27 = vmul.bf16 %v17130_v18, %v13856_v26  ;;  %v8055_v21 = vmul.bf16 %v17130_v18, %v13904_v36 }
0x107b   : > { %8283 = vmatprep.subr.bf16.mxu0 %v17883_v5  ;;  %v8071_v4 = vmul.bf16 %v17130_v18, %v13945_v46  ;;  %v8072_v32 = vmul.bf16 %v17125_v39, %v13945_v46  ;;  %v8087_v15 = vmul.bf16 %v17130_v18, %v13971_v17  ;;  %v8088_v41 = vmul.bf16 %v17125_v39, %v13971_v17 }
0x107c   : > { %9215 = vadd.xlane.f32.xlu0 %v9214_v3  ;;  %8313 = vmatpush1.bf16.msra.mxu1 %v8023_v60 }
0x107d   : > { %8314 = vmatprep.subr.bf16.mxu1 %v17883_v5 }
0x107e   : > { %9218 = vadd.xlane.f32.xlu1 %v9217_v6  ;;  %8284 = vmatpush1.bf16.msra.mxu0 %v8069_v29 }
0x107f   : > { %8285 = vmatprep.subr.bf16.mxu0 %v17883_v5 }
0x1080   : > { %8315 = vmatpush1.bf16.msra.mxu1 %v8024_v62 }
0x1081   : > { %8316 = vmatprep.subr.bf16.mxu1 %v17883_v5 }
0x1082   : > { %8286 = vmatpush1.bf16.msra.mxu0 %v8070_v23  ;;  %v12900_v23 = vld [vmem:[%s17823_s5] sm:$0xff]  }
0x1083   : > { %8287 = vmatprep.subr.bf16.mxu0 %v17883_v5 }
0x1084   : > { %8317 = vmatpush1.bf16.msra.mxu1 %v8039_v27  ;;  %v12901_v27 = vld [vmem:[%s17823_s5 + $0x8] sm:$0xff]  }
0x1085   : > { %8318 = vmatprep.subr.bf16.mxu1 %v17883_v5 }
0x1086   : > { %8288 = vmatpush1.bf16.msra.mxu0 %v8085_v55  ;;  %v12902_v55 = vld [vmem:[%s17823_s5 + $0x10] sm:$0xff]  }
0x1087   : > { %8289 = vmatprep.subr.bf16.mxu0 %v17883_v5 }
0x1088   : > { %8319 = vmatpush1.bf16.msra.mxu1 %v8040_v56  ;;  %v17225_v56 = vld [vmem:[%s17824_s6] sm:$0xff]  }
0x1089   : > { %8320 = vmatprep.subr.bf16.mxu1 %v17883_v5 }
0x108a   : > { %8290 = vmatpush1.bf16.msra.mxu0 %v8086_v57 }
0x108b   : > { %8353 = vmatprep.subr.bf16.mxu0 %v17883_v5 }
0x108c   : > { %8321 = vmatpush1.bf16.msra.mxu1 %v8055_v21 }
0x108d   : > { %8322 = vmatprep.subr.bf16.mxu1 %v17883_v5  ;;  %8304 = vmatmul.mubr.bf16.vlgmr.msra.gmra.mrb[176].mxu0 %v16982_v43 }
0x108e   : > { %10779 = vmatprep.mubr.msk.bf16.mxu0 %vm3179_vm14, %v16911_v63 }
0x1090   : > { %8323 = vmatpush1.bf16.msra.mxu1 %v8056_v53 }
0x1091   : > { %8324 = vmatprep.subr.bf16.mxu1 %v17883_v5 }
0x1093   : > { %v12407_v47 = vpop.f32.mrb[168].mxu1 }
0x1094   : > { %v9148_v45 = vmul.f32 %v12407_v47, %v14546_v13  ;;  %v7966_v52 = vpop.f32.mrb[169].mxu1  ;;  %8325 = vmatpush1.bf16.msra.mxu1 %v8071_v4 }
0x1095   : > { %v9146_v38 = vmul.f32 %v14546_v13, %v7966_v52  ;;  %v12408_v11 = vpop.f32.mrb[170].mxu1  ;;  %8326 = vmatprep.subr.bf16.mxu1 %v17883_v5 }
0x1096   : > { %v8010_v50 = vpack.c.bf16 %v12408_v11, %v12407_v47  ;;  %v9149_v37 = vmul.f32 %v12408_v11, %v14546_v13  ;;  %v9232_v20 = vsel %vm835_vm2, %v9148_v45, 0.0  ;;  %v7969_v33 = vpop.f32.mrb[171].mxu1 }
0x1097   : > { %9233 = vadd.xlane.f32.xlu0 %v9232_v20  ;;  %v8009_v48 = vpack.c.bf16 %v7969_v33, %v7966_v52  ;;  %v9147_v58 = vmul.f32 %v14546_v13, %v7969_v33  ;;  %v9226_v22 = vsel %vm835_vm2, %v9146_v38, 0.0 }
0x1098   : > { %9227 = vadd.xlane.f32.xlu1 %v9226_v22  ;;  %8327 = vmatpush1.bf16.msra.mxu1 %v8072_v32  ;;  %v9235_v42 = vsel %vm835_vm2, %v9149_v37, 0.0  ;;  %v8026_v49 = vmul.bf16 %v8010_v50, %v13792_v16  ;;  %v8042_v3 = vmul.bf16 %v8010_v50, %v13856_v26  ;;  %v8058_v60 = vmul.bf16 %v8010_v50, %v13904_v36 }
0x1099   : > { %v9229_v24 = vsel %vm835_vm2, %v9147_v58, 0.0  ;;  %8328 = vmatprep.subr.bf16.mxu1 %v17883_v5  ;;  %v8025_v14 = vmul.bf16 %v8009_v48, %v13792_v16  ;;  %v8041_v18 = vmul.bf16 %v8009_v48, %v13856_v26  ;;  %v8057_v39 = vmul.bf16 %v8009_v48, %v13904_v36 }
0x109a   : > { %v8073_v29 = vmul.bf16 %v8009_v48, %v13945_v46  ;;  %v8074_v6 = vmul.bf16 %v8010_v50, %v13945_v46  ;;  %v8090_v62 = vmul.bf16 %v8010_v50, %v13971_v17 }
0x109b   : > { %9230 = vadd.xlane.f32.xlu0 %v9229_v24  ;;  %8354 = vmatpush1.bf16.msra.mxu0 %v8025_v14 }
0x109c   : > { %9236 = vadd.xlane.f32.xlu1 %v9235_v42  ;;  %8329 = vmatpush1.bf16.msra.mxu1 %v8087_v15 }
0x109d   : > { %8330 = vmatprep.subr.bf16.mxu1 %v17883_v5  ;;  %8355 = vmatprep.subr.bf16.mxu0 %v17883_v5 }
0x109f   : > { %8356 = vmatpush1.bf16.msra.mxu0 %v8026_v49 }
0x10a0   : > { %8331 = vmatpush1.bf16.msra.mxu1 %v8088_v41  ;;  %8357 = vmatprep.subr.bf16.mxu0 %v17883_v5 }
0x10a1   : > { %8394 = vmatprep.subr.bf16.mxu1 %v17883_v5 }
0x10a3   : > { %8358 = vmatpush1.bf16.msra.mxu0 %v8041_v18  ;;  %8345 = vmatmul.mubr.bf16.vlgmr.msra.gmra.mrb[184].mxu1 %v16982_v43 }
0x10a4   : > { %8359 = vmatprep.subr.bf16.mxu0 %v17883_v5  ;;  %10780 = vmatprep.mubr.msk.bf16.mxu1 %vm3179_vm14, %v16911_v63  ;;  %v8089_v63 = vmul.bf16 %v8009_v48, %v13971_v17 }
0x10a7   : > { %8360 = vmatpush1.bf16.msra.mxu0 %v8042_v3  ;;  %v10058_v3 = vld [vmem:[%s17833_s15] sm:$0xff] }
0x10a8   : > { %8361 = vmatprep.subr.bf16.mxu0 %v17883_v5 }
0x10ab   : > { %8362 = vmatpush1.bf16.msra.mxu0 %v8057_v39  ;;  %v10059_v39 = vld [vmem:[%s17833_s15 + $0x8] sm:$0xff] }
0x10ac   : > { %8363 = vmatprep.subr.bf16.mxu0 %v17883_v5 }
0x10af   : > { %8364 = vmatpush1.bf16.msra.mxu0 %v8058_v60  ;;  %v12647_v60 = vpack.c.bf16 %v10059_v39, %v10058_v3  ;;  %v12907_v39 = vld [vmem:[%s17824_s6 + $0x20] sm:$0xff]  }
0x10b0   : > { %8365 = vmatprep.subr.bf16.mxu0 %v17883_v5 }
0x10b3   : > { %8366 = vmatpush1.bf16.msra.mxu0 %v8073_v29  ;;  %v17884_v29 = vmov 0.0|0.0  }
0x10b4   : > { %8367 = vmatprep.subr.bf16.mxu0 %v17883_v5 }
0x10b7   : > { %8368 = vmatpush1.bf16.msra.mxu0 %v8074_v6  ;;  %v10060_v6 = vld [vmem:[%s17833_s15 + $0x10] sm:$0xff] }
0x10b8   : > { %8369 = vmatprep.subr.bf16.mxu0 %v17883_v5 }
0x10bb   : > { %8370 = vmatpush1.bf16.msra.mxu0 %v8089_v63 }
0x10bc   : > { %8371 = vmatprep.subr.bf16.mxu0 %v17883_v5 }
0x10bf   : > { %8372 = vmatpush1.bf16.msra.mxu0 %v8090_v62  ;;  %v17885_v62 = vmov 0.0  }
0x10c0   : > { %12413 = vmatprep.subr.bf16.mxu0 %v12900_v23 }
0x10c2   : > { %8386 = vmatmul.mubr.bf16.vlgmr.msra.gmra.mrb[180].mxu0 %v16982_v43 }
0x10c3   : > { %12414 = vmatpush3.bf16.msra.mxu0 %v12900_v23  ;;  %v10063_v23 = vld [vmem:[%s17833_s15 + $0x28] sm:$0xff] }
0x10c4   : > { %12415 = vmatprep.subr.bf16.mxu0 %v12901_v27 }
0x10c7   : > { %12416 = vmatpush3.bf16.msra.mxu0 %v12901_v27 }
0x10c8   : > { %12417 = vmatprep.subr.bf16.mxu0 %v12902_v55 }
0x10cb   : > { %12418 = vmatpush3.bf16.msra.mxu0 %v12902_v55  ;;  %v10065_v55 = vld [vmem:[%s17833_s15 + $0x38] sm:$0xff] }
0x10cc   : > { %12435 = vmatprep.subr.bf16.mxu0 %v17225_v56 }
0x10d3   : > { %v12411_v57 = vpop.f32.mrb[172].mxu1 }
0x10d4   : > { %v7982_v21 = vpop.f32.mrb[173].mxu1  ;;  %v9152_v50 = vmul.f32 %v12411_v57, %v14546_v13 }
0x10d5   : > { %v9150_v53 = vmul.f32 %v14546_v13, %v7982_v21  ;;  %v12412_v4 = vpop.f32.mrb[174].mxu1 }
0x10d6   : > { %v8012_v47 = vpack.c.bf16 %v12412_v4, %v12411_v57  ;;  %v7985_v45 = vpop.f32.mrb[175].mxu1  ;;  %v9153_v52 = vmul.f32 %v12412_v4, %v14546_v13  ;;  %v9244_v48 = vsel %vm835_vm2, %v9152_v50, 0.0 }
0x10d7   : > { %v8011_v32 = vpack.c.bf16 %v7985_v45, %v7982_v21  ;;  %v9151_v38 = vmul.f32 %v14546_v13, %v7985_v45  ;;  %v9238_v11 = vsel %vm835_vm2, %v9150_v53, 0.0  ;;  %v10066_v21 = vld [vmem:[%s17833_s15 + $0x40] sm:$0xff]  ;;  %v10067_v53 = vld [vmem:[%s17833_s15 + $0x48] sm:$0xff]  ;;  %v10068_v45 = vld [vmem:[%s17833_s15 + $0x50] sm:$0xff] }
0x10d8   : > { %9239 = vadd.xlane.f32.xlu1 %v9238_v11  ;;  %v9247_v33 = vsel %vm835_vm2, %v9153_v52, 0.0  ;;  %v8028_v58 = vmul.bf16 %v8012_v47, %v13792_v16  ;;  %v8044_v22 = vmul.bf16 %v8012_v47, %v13856_v26  ;;  %v8076_v18 = vmul.bf16 %v8012_v47, %v13945_v46  ;;  %v10069_v52 = vld [vmem:[%s17833_s15 + $0x58] sm:$0xff] }
0x10d9   : > { %v9241_v37 = vsel %vm835_vm2, %v9151_v38, 0.0  ;;  %v8027_v20 = vmul.bf16 %v8011_v32, %v13792_v16  ;;  %v8043_v13 = vmul.bf16 %v8011_v32, %v13856_v26  ;;  %v8059_v15 = vmul.bf16 %v8011_v32, %v13904_v36 }
0x10da   : > { %9242 = vadd.xlane.f32.xlu0 %v9241_v37  ;;  %v8060_v16 = vmul.bf16 %v8012_v47, %v13904_v36  ;;  %v8075_v24 = vmul.bf16 %v8011_v32, %v13945_v46  ;;  %v8091_v36 = vmul.bf16 %v8011_v32, %v13971_v17  ;;  %v8092_v46 = vmul.bf16 %v8012_v47, %v13971_v17  ;;  %v10062_v17 = vld [vmem:[%s17833_s15 + $0x20] sm:$0xff] }
0x10db   : > { %8395 = vmatpush1.bf16.msra.mxu1 %v8027_v20  ;;  %v12653_v27 = vpack.c.bf16 %v10063_v23, %v10062_v17  ;;  %v12659_v4 = vpack.c.bf16 %v10067_v53, %v10066_v21  ;;  %v12662_v37 = vpack.c.bf16 %v10069_v52, %v10068_v45  ;;  %v10070_v20 = vld [vmem:[%s17833_s15 + $0x60] sm:$0xff]  ;;  %v12910_v23 = vld [vmem:[%s17824_s6 + $0x38] sm:$0xff]   ;;  %v9295_v52 = vadd.s32 4294967280, %v16109_v9 }
0x10dc   : > { %8396 = vmatprep.subr.bf16.mxu1 %v17883_v5  ;;  %9248 = vadd.xlane.f32.xlu1 %v9247_v33  ;;  %v10071_v33 = vld [vmem:[%s17833_s15 + $0x68] sm:$0xff] }
0x10de   : > { %9245 = vadd.xlane.f32.xlu0 %v9244_v48  ;;  %v12904_v48 = vld [vmem:[%s17824_s6 + $0x8] sm:$0xff]  }
0x10df   : > { %8397 = vmatpush1.bf16.msra.mxu1 %v8028_v58  ;;  %v17312_v58 = vpop.xlane.xlu0 %9161 }
0x10e0   : > { %8398 = vmatprep.subr.bf16.mxu1 %v17883_v5 }
0x10e3   : > { %8399 = vmatpush1.bf16.msra.mxu1 %v8043_v13  ;;  %v12665_v13 = vpack.c.bf16 %v10071_v33, %v10070_v20  ;;  %v9302_v20 = vadd.s32 4294967272, %v16109_v9 }
0x10e4   : > { %8400 = vmatprep.subr.bf16.mxu1 %v17883_v5 }
0x10e7   : > { %8401 = vmatpush1.bf16.msra.mxu1 %v8044_v22  ;;  %v10072_v22 = vld [vmem:[%s17833_s15 + $0x70] sm:$0xff] }
0x10e8   : > { %8402 = vmatprep.subr.bf16.mxu1 %v17883_v5 }
0x10eb   : > { %8403 = vmatpush1.bf16.msra.mxu1 %v8059_v15  ;;  %v10073_v15 = vld [vmem:[%s17833_s15 + $0x78] sm:$0xff] }
0x10ec   : > { %8404 = vmatprep.subr.bf16.mxu1 %v17883_v5 }
0x10ef   : > { %8405 = vmatpush1.bf16.msra.mxu1 %v8060_v16  ;;  %v12905_v16 = vld [vmem:[%s17824_s6 + $0x10] sm:$0xff]  }
0x10f0   : > { %8406 = vmatprep.subr.bf16.mxu1 %v17883_v5 }
0x10f1   : > { %v8141_v42 = vpop.f32.mrb[168].mxu0 }
0x10f2   : > { %v8143_v14 = vpop.f32.mrb[169].mxu0 }
0x10f3   : > { %8407 = vmatpush1.bf16.msra.mxu1 %v8075_v24  ;;  %v8144_v49 = vpop.f32.mrb[170].mxu0  ;;  %v12668_v24 = vpack.c.bf16 %v10073_v15, %v10072_v22  ;;  %v17327_v14 = vpop.xlane.xlu0 %9155 }
0x10f4   : > { %8408 = vmatprep.subr.bf16.mxu1 %v17883_v5  ;;  %v8435_v26 = vpack.c.bf16 %v8144_v49, %v8141_v42  ;;  %v8146_v41 = vpop.f32.mrb[171].mxu0 }
0x10f5   : > { %v12906_v41 = vld [vmem:[%s17824_s6 + $0x18] sm:$0xff]  }
0x10f6   : > { %12419 = vmatprep.mubr.msk.bf16.mxu0 %vm835_vm2, %v8435_v26 }
0x10f7   : > { %8409 = vmatpush1.bf16.msra.mxu1 %v8076_v18 }
0x10f8   : > { %8410 = vmatprep.subr.bf16.mxu1 %v17883_v5 }
0x10fb   : > { %8411 = vmatpush1.bf16.msra.mxu1 %v8091_v36 }
0x10fc   : > { %8412 = vmatprep.subr.bf16.mxu1 %v17883_v5  ;;  %v10061_v5 = vld [vmem:[%s17833_s15 + $0x18] sm:$0xff] }
0x10fd   : > { %v12650_v63 = vpack.c.bf16 %v10061_v5, %v10060_v6  ;;  %v12908_v6 = vld [vmem:[%s17824_s6 + $0x28] sm:$0xff]  }
0x10ff   : > { %8413 = vmatpush1.bf16.msra.mxu1 %v8092_v46  ;;  %v17339_v46 = vpop.xlane.xlu0 %9164 }
0x1100   : > { %12646 = vmatprep.subr.bf16.mxu1 %v17884_v29 }
0x1102   : > { %8427 = vmatmul.mubr.bf16.vlgmr.msra.gmra.mrb[188].mxu1 %v16982_v43  ;;  %v10064_v43 = vld [vmem:[%s17833_s15 + $0x30] sm:$0xff] }
0x1103   : > { %12648 = vmatpush3.bf16.msra.mxu1 %v12647_v60  ;;  %12499 = vmatprep.mubr.msk.f32.mxu1 %vm12976_vm1, %v17885_v62  ;;  %v12656_v57 = vpack.c.bf16 %v10065_v55, %v10064_v43  ;;  %v17346_v5 = vpop.xlane.xlu0 %9167 }
0x1104   : > { %12649 = vmatprep.subr.bf16.mxu1 %v17884_v29 }
0x1107   : > { %12651 = vmatpush3.bf16.msra.mxu1 %v12650_v63  ;;  %v12909_v63 = vld [vmem:[%s17824_s6 + $0x30] sm:$0xff]  }
0x1108   : > { %12652 = vmatprep.subr.bf16.mxu1 %v17884_v29 }
0x110b   : > { %12654 = vmatpush3.bf16.msra.mxu1 %v12653_v27  ;;  %v17356_v27 = vpop.xlane.xlu0 %9185 }
0x110c   : > { %12655 = vmatprep.subr.bf16.mxu1 %v17884_v29 }
0x110f   : > { %12657 = vmatpush3.bf16.msra.mxu1 %v12656_v57  ;;  %v8182_v47 = vpop.f32.mrb[176].mxu1  ;;  %v17361_v55 = vpop.xlane.xlu0 %9179 }
0x1110   : > { %12658 = vmatprep.subr.bf16.mxu1 %v17884_v29  ;;  %v8184_v32 = vpop.f32.mrb[177].mxu1 }
0x1111   : > { %v8185_v38 = vpop.f32.mrb[178].mxu1 }
0x1112   : > { %v8436_v11 = vpack.c.bf16 %v8185_v38, %v8182_v47  ;;  %v8187_v50 = vpop.f32.mrb[179].mxu1  ;;  %v17377_v38 = vsub.s32 %v16109_v9, %v13771_v51 }
0x1113   : > { %12660 = vmatpush3.bf16.msra.mxu1 %v12659_v4  ;;  %v17365_v21 = vpop.xlane.xlu0 %9188  ;;  %v9288_v4 = vadd.s32 4294967288, %v16109_v9 }
0x1114   : > { %12661 = vmatprep.subr.bf16.mxu1 %v17884_v29  ;;  %12420 = vmatmul.mubr.msk.bf16.vlgmr.msra.gmra.mrb[184].mxu0 %vm835_vm2, %v8436_v11  ;;  %v9287_v22 = vrot.slane %v15869_v19, %v17377_v38 }
0x1115   : > { %12436 = vmatpush3.bf16.msra.mxu0 %v17225_v56  ;;  %v17321_v56 = vpop.xlane.xlu1 %9158  ;;  %v17380_v11 = vsub.s32 %v9288_v4, %v13771_v51  ;;  %v9893_v4 = vadd.s32 4294967192, %v16109_v9 }
0x1116   : > { %12437 = vmatprep.subr.bf16.mxu0 %v12904_v48 }
0x1117   : > { %12663 = vmatpush3.bf16.msra.mxu1 %v12662_v37  ;;  %v17370_v47 = vpop.xlane.xlu0 %9200  ;;  %v9292_v15 = vrot.slane %v15903_v2, %v17380_v11  ;;  %v9331_v2 = vrot.slane %v15952_v7, %v17377_v38 }
0x1118   : > { %12664 = vmatprep.subr.bf16.mxu1 %v17884_v29 }
0x1119   : > { %12438 = vmatpush3.bf16.msra.mxu0 %v12904_v48  ;;  %v17332_v18 = vpop.xlane.xlu1 %9173 }
0x111a   : > { %12439 = vmatprep.subr.bf16.mxu0 %v12905_v16 }
0x111b   : > { %12666 = vmatpush3.bf16.msra.mxu1 %v12665_v13  ;;  %v17384_v13 = vsub.s32 %v9295_v52, %v13771_v51 }
0x111c   : > { %12667 = vmatprep.subr.bf16.mxu1 %v17884_v29  ;;  %v8223_v42 = vpop.f32.mrb[172].mxu0 }
0x111d   : > { %v8225_v49 = vpop.f32.mrb[173].mxu0  ;;  %12440 = vmatpush3.bf16.msra.mxu0 %v12905_v16  ;;  %v17341_v60 = vpop.xlane.xlu1 %9176  ;;  %v9299_v19 = vrot.slane %v15865_v31, %v17384_v13 }
0x111e   : > { %v8226_v26 = vpop.f32.mrb[174].mxu0  ;;  %12441 = vmatprep.subr.bf16.mxu0 %v12906_v41  ;;  %v17390_v16 = vpop.xlane.xlu0 %9194  ;;  %v9312_v49 = vrot.slane %v15908_v59, %v17377_v38  ;;  %v9321_v59 = vrot.slane %v15883_v25, %v17384_v13  ;;  %v9350_v25 = vrot.slane %v15973_v8, %v17377_v38  ;;  %v9373_v8 = vrot.slane %v16001_v1, %v17380_v11 }
0x111f   : > { %12669 = vmatpush3.bf16.msra.mxu1 %v12668_v24  ;;  %v8437_v36 = vpack.c.bf16 %v8226_v26, %v8223_v42  ;;  %v8228_v3 = vpop.f32.mrb[175].mxu0  ;;  %v17396_v42 = vsub.s32 %v9302_v20, %v13771_v51  ;;  %v9316_v26 = vrot.slane %v15920_v28, %v17380_v11  ;;  %v9359_v20 = vrot.slane %v15947_v61, %v17384_v13 }
0x1120   : > { %12694 = vmatprep.subr.bf16.mxu1 %v17884_v29  ;;  %v17452_v1 = vsub.s32 %v9893_v4, %v13771_v51 }
0x1121   : > { %12423 = vmatprep.mubr.msk.bf16.mxu0 %vm835_vm2, %v8437_v36  ;;  %12442 = vmatpush3.bf16.msra.mxu0 %v12906_v41  ;;  %v17351_v17 = vpop.xlane.xlu1 %9170  ;;  %v9335_v41 = vrot.slane %v15937_v34, %v17380_v11  ;;  %v9294_v36 = vsel %vm9293_vm8, %v9292_v15, %v9287_v22  ;;  %v9306_v28 = vrot.slane %v15879_v54, %v17396_v42 }
0x1122   : > { %12443 = vmatprep.subr.bf16.mxu0 %v12907_v39  ;;  %v17409_v3 = vpop.xlane.xlu0 %9203  ;;  %v9301_v7 = vsel %vm9300_vm9, %v9299_v19, %v9294_v36  ;;  %v9326_v34 = vrot.slane %v15926_v44, %v17396_v42  ;;  %v9354_v54 = vrot.slane %v15984_v40, %v17380_v11  ;;  %v9345_v44 = vrot.slane %v15978_v10, %v17396_v42 }
0x1123   : > { %v9308_v40 = vsel %vm9307_vm10, %v9306_v28, %v9301_v7  ;;  %v9378_v22 = vrot.slane %v15995_v0, %v17384_v13  ;;  %v9907_v19 = vadd.s32 4294967176, %v16109_v9  ;;  %v9897_v7 = vrot.slane %v17321_v56, %v17452_v1 }
0x1124   : > { %v9355_v10 = vsel %vm9293_vm8, %v9354_v54, %v9350_v25 }
0x1125   : > { %12444 = vmatpush3.bf16.msra.mxu0 %v12907_v39  ;;  %v17358_v43 = vpop.xlane.xlu1 %9182  ;;  %v9317_v39 = vsel %vm9293_vm8, %v9316_v26, %v9312_v49  ;;  %v17886_v49 = vld [vmem:[#allocation11_spill] sm:$0xff]  ;;  %v9360_v36 = vsel %vm9300_vm9, %v9359_v20, %v9355_v10  ;;  %v17492_v4 = vsub.s32 %v9907_v19, %v13771_v51  ;;  %v17892_v10 = vld [vmem:[#allocation12_spill] sm:$0xff] }
0x1126   : > { %12445 = vmatprep.subr.bf16.mxu0 %v12908_v6  ;;  %v17430_v52 = vpop.xlane.xlu0 %9221  ;;  %v9364_v61 = vrot.slane %v17886_v49, %v17396_v42 }
0x1128   : > { %v17485_v54 = vsel %vm9307_vm10, %v9364_v61, %v9360_v36  ;;  %v9931_v36 = vrot.slane %v17341_v60, %v17492_v4 }
0x1129   : > { %12446 = vmatpush3.bf16.msra.mxu0 %v12908_v6  ;;  %v17363_v57 = vpop.xlane.xlu1 %9197  ;;  %v9340_v6 = vrot.slane %v15933_v30, %v17384_v13  ;;  %v9369_v30 = vrot.slane %v16025_v12, %v17377_v38 }
0x112a   : > { %12447 = vmatprep.subr.bf16.mxu0 %v12909_v63 }
0x112b   : > { %v9374_v26 = vsel %vm9293_vm8, %v9373_v8, %v9369_v30  ;;  %v17891_v30 = vld [vmem:[#allocation20_spill] sm:$0xff] }
0x112c   : > { %v9379_v25 = vsel %vm9300_vm9, %v9378_v22, %v9374_v26  ;;  %v9411_v8 = vrot.slane %v17891_v30, %v17380_v11  ;;  %v9397_v22 = vrot.slane %v17892_v10, %v17384_v13  ;;  %v17894_v26 = vld [vmem:[#allocation15_spill] sm:$0xff] }
0x112d   : > { %12448 = vmatpush3.bf16.msra.mxu0 %v12909_v63  ;;  %v17367_v53 = vpop.xlane.xlu1 %9191  ;;  %v9336_v63 = vsel %vm9293_vm8, %v9335_v41, %v9331_v2  ;;  %v17461_v2 = vpop.xlane.xlu0 %9215  ;;  %v9416_v19 = vrot.slane %v17894_v26, %v17384_v13 }
0x112e   : > { %12449 = vmatprep.subr.bf16.mxu0 %v12910_v23 }
0x1131   : > { %12450 = vmatpush3.bf16.msra.mxu0 %v12910_v23  ;;  %v17372_v45 = vpop.xlane.xlu1 %9209  ;;  %v9888_v23 = vadd.s32 4294967200, %v16109_v9 }
0x1132   : > { %12670 = vmatprep.subr.bf16.mxu0 %v17884_v29 }
0x1133   : > { %v17449_v12 = vsub.s32 %v9888_v23, %v13771_v51  ;;  %v17889_v23 = vld [vmem:[#allocation18_spill] sm:$0xff] }
0x1135   : > { %v17392_v24 = vpop.xlane.xlu1 %9212 }
0x1139   : > { %v17416_v31 = vpop.xlane.xlu1 %9206 }
0x1142   : > { %v8264_v32 = vpop.f32.mrb[180].mxu1 }
0x1143   : > { %v8266_v50 = vpop.f32.mrb[181].mxu1 }
0x1144   : > { %v8267_v37 = vpop.f32.mrb[182].mxu1  ;;  %v17439_v50 = vpop.xlane.xlu1 %9224 }
0x1145   : > { %v8438_v33 = vpack.c.bf16 %v8267_v37, %v8264_v32  ;;  %v8269_v48 = vpop.f32.mrb[183].mxu1  ;;  %v9322_v32 = vsel %vm9300_vm9, %v9321_v59, %v9317_v39  ;;  %v9341_v37 = vsel %vm9300_vm9, %v9340_v6, %v9336_v63  ;;  %v17887_v59 = vld [vmem:[#allocation14_spill] sm:$0xff]  ;;  %v9892_v39 = vrot.slane %v17327_v14, %v17449_v12  ;;  %v17888_v14 = vld [vmem:[#allocation13_spill] sm:$0xff] }
0x1146   : > { %v9327_v48 = vsel %vm9307_vm10, %v9326_v34, %v9322_v32  ;;  %v9346_v15 = vsel %vm9307_vm10, %v9345_v44, %v9341_v37  ;;  %v9383_v28 = vrot.slane %v17887_v59, %v17396_v42  ;;  %v9921_v34 = vrot.slane %v17351_v17, %v17452_v1  ;;  %v17494_v17 = vpop.xlane.xlu0 %9233  ;;  %v17890_v32 = vld [vmem:[#allocation19_spill] sm:$0xff] }
0x1147   : > { %12424 = vmatmul.mubr.msk.bf16.gmra.mrb[188].mxu0 %vm835_vm2, %v8438_v33  ;;  %v9900_v33 = vadd.s32 4294967184, %v16109_v9  ;;  %v9443_v41 = vsel %vm9442_vm12, %v9327_v48, %v9308_v40  ;;  %v9917_v9 = vrot.slane %v17346_v5, %v17449_v12  ;;  %v9388_v56 = vrot.slane %v17888_v14, %v17377_v38 }
0x1148   : > { %v17478_v6 = vpop.xlane.xlu1 %9218  ;;  %v17481_v63 = vsel %vm9444_vm15, %v9346_v15, %v9443_v41  ;;  %v9392_v5 = vrot.slane %v17889_v23, %v17380_v11  ;;  %v9407_v44 = vrot.slane %v17890_v32, %v17377_v38  ;;  %v17505_v20 = vsel %vm9307_vm10, %v9383_v28, %v9379_v25  ;;  %v17893_v15 = vld [vmem:[#allocation16_spill] sm:$0xff] }
0x1149   : > { %v17468_v0 = vsub.s32 %v9900_v33, %v13771_v51  ;;  %v9899_v51 = vsel %vm9898_vm11, %v9897_v7, %v9892_v39  ;;  %v9922_v33 = vsel %vm9898_vm11, %v9921_v34, %v9917_v9  ;;  %v9402_v49 = vrot.slane %v17893_v15, %v17396_v42  ;;  %v17896_v34 = vld [vmem:[#allocation24_spill] sm:$0xff] }
0x114a   : > { %v9393_v61 = vsel %vm9293_vm8, %v9392_v5, %v9388_v56  ;;  %v9911_v41 = vrot.slane %v17339_v46, %v17492_v4  ;;  %v9412_v59 = vsel %vm9293_vm8, %v9411_v8, %v9407_v44  ;;  %v9955_v9 = vrot.slane %v17367_v53, %v17449_v12  ;;  %v9231_v60 = vpop.xlane.xlu0 %9230 }
0x114b   : > { %v9904_v40 = vrot.slane %v17312_v58, %v17468_v0  ;;  %v9926_v37 = vrot.slane %v17332_v18, %v17468_v0  ;;  %v9936_v58 = vrot.slane %v17361_v55, %v17449_v12  ;;  %v9940_v18 = vrot.slane %v17358_v43, %v17452_v1  ;;  %v17895_v43 = vld [vmem:[#allocation23_spill] sm:$0xff] }
0x114c   : > { %v9228_v48 = vpop.xlane.xlu1 %9227  ;;  %v9426_v39 = vrot.slane %v17895_v43, %v17377_v38  ;;  %v9945_v7 = vrot.slane %v17356_v27, %v17468_v0  ;;  %v9959_v46 = vrot.slane %v17390_v16, %v17452_v1  ;;  %v9430_v25 = vrot.slane %v17896_v34, %v17380_v11 }
0x114d   : > { %v9906_v28 = vsel %vm9905_vm6, %v9904_v40, %v9899_v51  ;;  %v9927_v55 = vsel %vm9905_vm6, %v9926_v37, %v9922_v33  ;;  %v9941_v14 = vsel %vm9898_vm11, %v9940_v18, %v9936_v58  ;;  %v9974_v56 = vrot.slane %v17409_v3, %v17449_v12  ;;  %v17897_v33 = vld [vmem:[#allocation21_spill] sm:$0xff] }
0x114e   : > { %v9978_v38 = vrot.slane %v17416_v31, %v17452_v1  ;;  %v9913_v27 = vsel %vm9912_vm7, %v9911_v41, %v9906_v28  ;;  %v9932_v53 = vsel %vm9912_vm7, %v9931_v36, %v9927_v55  ;;  %v9993_v16 = vrot.slane %v17461_v2, %v17449_v12 }
0x114f   : > { %v9997_v5 = vrot.slane %v17478_v6, %v17452_v1  ;;  %v9950_v44 = vrot.slane %v17365_v21, %v17492_v4  ;;  %v9964_v3 = vrot.slane %v17363_v57, %v17468_v0  ;;  %v10012_v31 = vrot.slane %v9228_v48, %v17449_v12 }
0x1150   : > { %v9237_v11 = vpop.xlane.xlu1 %9236  ;;  %v10016_v30 = vrot.slane %v9231_v60, %v17452_v1  ;;  %v9946_v40 = vsel %vm9905_vm6, %v9945_v7, %v9941_v14  ;;  %v9960_v2 = vsel %vm9898_vm11, %v9959_v46, %v9955_v9  ;;  %v9983_v6 = vrot.slane %v17372_v45, %v17468_v0 }
0x1151   : > { %v9435_v21 = vrot.slane %v17897_v33, %v17384_v13  ;;  %v9431_v10 = vsel %vm9293_vm8, %v9430_v25, %v9426_v39  ;;  %v9979_v57 = vsel %vm9898_vm11, %v9978_v38, %v9974_v56  ;;  %v10002_v48 = vrot.slane %v17430_v52, %v17468_v0 }
0x1152   : > { %v10047_v58 = vsel %vm9442_vm12, %v9932_v53, %v9913_v27  ;;  %v9969_v18 = vrot.slane %v17370_v47, %v17492_v4  ;;  %v9998_v26 = vsel %vm9898_vm11, %v9997_v5, %v9993_v16  ;;  %v10021_v45 = vrot.slane %v17494_v17, %v17468_v0  ;;  %v17898_v47 = vld [vmem:[#allocation17_spill] sm:$0xff] }
0x1153   : > { %v9951_v13 = vsel %vm9912_vm7, %v9950_v44, %v9946_v40  ;;  %v9965_v36 = vsel %vm9905_vm6, %v9964_v3, %v9960_v2  ;;  %v9988_v52 = vrot.slane %v17392_v24, %v17492_v4  ;;  %v10017_v28 = vsel %vm9898_vm11, %v10016_v30, %v10012_v31 }
0x1154   : > { %v9398_v55 = vsel %vm9300_vm9, %v9397_v22, %v9393_v61  ;;  %v9421_v43 = vrot.slane %v17898_v47, %v17396_v42  ;;  %v9984_v39 = vsel %vm9905_vm6, %v9983_v6, %v9979_v57  ;;  %v10007_v17 = vrot.slane %v17439_v50, %v17492_v4 }
0x1155   : > { %v9417_v9 = vsel %vm9300_vm9, %v9416_v19, %v9412_v59  ;;  %v9436_v46 = vsel %vm9300_vm9, %v9435_v21, %v9431_v10  ;;  %v10003_v60 = vsel %vm9905_vm6, %v10002_v48, %v9998_v26  ;;  %v10026_v24 = vrot.slane %v9237_v11, %v17492_v4  ;;  %v17899_v59 = vld [vmem:[#allocation22_spill] sm:$0xff] }
0x1156   : > { %v10048_v34 = vsel %vm9444_vm15, %v9951_v13, %v10047_v58  ;;  %v9970_v22 = vsel %vm9912_vm7, %v9969_v18, %v9965_v36  ;;  %v10022_v61 = vsel %vm9905_vm6, %v10021_v45, %v10017_v28  ;;  %v9447_v50 = vsel %vm9446_vm0, %v17485_v54, %v17481_v63 }
0x1157   : > { %v9403_v19 = vsel %vm9307_vm10, %v9402_v49, %v9398_v55  ;;  %v9440_v14 = vrot.slane %v17899_v59, %v17396_v42  ;;  %v9989_v56 = vsel %vm9912_vm7, %v9988_v52, %v9984_v39  ;;  %v10008_v27 = vsel %vm9912_vm7, %v10007_v17, %v10003_v60  ;;  %v10080_v59 = vld [vmem:[%s17834_s16 + $0x28] sm:$0xff] }
0x1158   : > { %v10049_v49 = vsel %vm9446_vm0, %v9970_v22, %v10048_v34  ;;  %v10027_v53 = vsel %vm9912_vm7, %v10026_v24, %v10022_v61  ;;  %vm10056_vm12 = vcmask 785408   ;;  %v10077_v61 = vld [vmem:[%s17834_s16 + $0x10] sm:$0xff] }
0x1159   : > { %v9441_v15 = vsel %vm9307_vm10, %v9440_v14, %v9436_v46  ;;  %v10050_v5 = vsel %vm9448_vm13, %v9989_v56, %v10049_v49  ;;  %v10081_v56 = vld [vmem:[%s17834_s16 + $0x30] sm:$0xff] }
0x1160   : > { %v8305_v23 = vpop.f32.mrb[176].mxu0 }
0x1161   : > { %v8307_v32 = vpop.f32.mrb[177].mxu0 }
0x1162   : > { %v8308_v8 = vpop.f32.mrb[178].mxu0 }
0x1163   : > { %v8439_v37 = vpack.c.bf16 %v8308_v8, %v8305_v23  ;;  %v8310_v51 = vpop.f32.mrb[179].mxu0  ;;  %v9449_v23 = vsel %vm9448_vm13, %v17505_v20, %v9447_v50 }
0x1164   : > { %v9451_v16 = vsel %vm9450_vm3, %v9403_v19, %v9449_v23  ;;  %v10079_v19 = vld [vmem:[%s17834_s16 + $0x20] sm:$0xff] }
0x1165   : > { %v9240_v41 = vpop.xlane.xlu1 %9239  ;;  %12427 = vmatprep.mubr.msk.bf16.mxu0 %vm835_vm2, %v8439_v37  ;;  %v12677_v14 = vpack.c.bf16 %v10080_v59, %v10079_v19 }
0x1166   : > { %v10031_v63 = vrot.slane %v9240_v41, %v17449_v12  ;;  %v10051_v12 = vsel %vm9450_vm3, %v10008_v27, %v10050_v5 }
0x1167   : > { %v9243_v7 = vpop.xlane.xlu0 %9242  ;;  %v10052_v3 = vsel %vm9452_vm4, %v10027_v53, %v10051_v12 }
0x1168   : > { %v10035_v25 = vrot.slane %v9243_v7, %v17452_v1  ;;  %v9422_v1 = vsel %vm9307_vm10, %v9421_v43, %v9417_v9  ;;  %v10075_v7 = vld [vmem:[%s17834_s16] sm:$0xff]  ;;  %v10076_v9 = vld [vmem:[%s17834_s16 + $0x8] sm:$0xff] }
0x1169   : > { %v9249_v38 = vpop.xlane.xlu1 %9248  ;;  %v9453_v32 = vsel %vm9452_vm4, %v9422_v1, %v9451_v16  ;;  %v12671_v22 = vpack.c.bf16 %v10076_v9, %v10075_v7  ;;  %v10095_v7 = vld [vmem:[%s17835_s17 + $0x18] sm:$0xff] }
0x116a   : > { %v10036_v20 = vsel %vm9898_vm11, %v10035_v25, %v10031_v63  ;;  %v10045_v11 = vrot.slane %v9249_v38, %v17492_v4  ;;  %v9455_v31 = vsel %vm9454_vm5, %v9441_v15, %v9453_v32  ;;  %v10078_v25 = vld [vmem:[%s17834_s16 + $0x18] sm:$0xff] }
0x116b   : > { %v9246_v54 = vpop.xlane.xlu0 %9245  ;;  %v10055_v8 = vsel %vm3179_vm14, %v9455_v31, %v16752_v35  ;;  %v12674_v50 = vpack.c.bf16 %v10078_v25, %v10077_v61  ;;  %v10082_v38 = vld [vmem:[%s17834_s16 + $0x38] sm:$0xff] }
0x116c   : > { %v10040_v42 = vrot.slane %v9246_v54, %v17468_v0  ;;  %v12680_v23 = vpack.c.bf16 %v10082_v38, %v10081_v56  ;;  %v10099_v56 = vld [vmem:[%s17835_s17 + $0x38] sm:$0xff] }
0x116e   : > { %v10041_v44 = vsel %vm9905_vm6, %v10040_v42, %v10036_v20 }
0x116f   : > { %v10046_v0 = vsel %vm9912_vm7, %v10045_v11, %v10041_v44  ;;  %v10083_v44 = vld [vmem:[%s17834_s16 + $0x40] sm:$0xff] }
0x1170   : > { %v10053_v30 = vsel %vm9454_vm5, %v10046_v0, %v10052_v3  ;;  %v10084_v3 = vld [vmem:[%s17834_s16 + $0x48] sm:$0xff]  ;;  %v10085_v0 = vld [vmem:[%s17834_s16 + $0x50] sm:$0xff] }
0x1171   : > { %v10057_v40 = vsel %vm10056_vm12, %v10055_v8, %v10053_v30  ;;  %v12683_v31 = vpack.c.bf16 %v10084_v3, %v10083_v44  ;;  %v10086_v30 = vld [vmem:[%s17834_s16 + $0x58] sm:$0xff]  ;;  %v605_v3 = vld [vmem:[%s17865_s26 + $0x40] sm:$0xff] }
0x1172   : > { %12500 = vmatmul.mubr.f32.vlgmr.msra.gmra.mrb[192].mxu1 %v10057_v40  ;;  %v12686_v8 = vpack.c.bf16 %v10086_v30, %v10085_v0  ;;  %v10087_v40 = vld [vmem:[%s17834_s16 + $0x60] sm:$0xff]  ;;  %v606_v0 = vld [vmem:[%s17865_s26 + $0x48] sm:$0xff] }
0x1173   : > { %12569 = vmatprep.mubr.msk.f32.mxu1 %vm12976_vm1, %v17885_v62 }
0x1176   : > { %v8346_v4 = vpop.f32.mrb[184].mxu1 }
0x1177   : > { %v8348_v2 = vpop.f32.mrb[185].mxu1 }
0x1178   : > { %v8349_v6 = vpop.f32.mrb[186].mxu1 }
0x1179   : > { %v8440_v37 = vpack.c.bf16 %v8349_v6, %v8346_v4  ;;  %v8351_v51 = vpop.f32.mrb[187].mxu1  ;;  %v10088_v4 = vld [vmem:[%s17834_s16 + $0x68] sm:$0xff]  ;;  %v10089_v6 = vld [vmem:[%s17834_s16 + $0x70] sm:$0xff] }
0x117a   : > { %v12689_v2 = vpack.c.bf16 %v10088_v4, %v10087_v40 }
0x117b   : > { %12428 = vmatmul.mubr.msk.bf16.gmra.mrb[192].mxu0 %vm835_vm2, %v8440_v37  ;;  %v10090_v37 = vld [vmem:[%s17834_s16 + $0x78] sm:$0xff] }
0x117c   : > { %v12692_v51 = vpack.c.bf16 %v10090_v37, %v10089_v6 }
0x1195   : > { %v8387_v33 = vpop.f32.mrb[180].mxu0 }
0x1196   : > { %v8389_v21 = vpop.f32.mrb[181].mxu0 }
0x1197   : > { %v8390_v10 = vpop.f32.mrb[182].mxu0 }
0x1198   : > { %v8441_v57 = vpack.c.bf16 %v8390_v10, %v8387_v33  ;;  %v8392_v48 = vpop.f32.mrb[183].mxu0 }
0x119a   : > { %12431 = vmatprep.mubr.msk.bf16.mxu0 %vm835_vm2, %v8441_v57 }
0x11d5   : > { %v8428_v35 = vpop.f32.mrb[188].mxu1 }
0x11d6   : > { %v8430_v58 = vpop.f32.mrb[189].mxu1 }
0x11d7   : > { %v8431_v18 = vpop.f32.mrb[190].mxu1 }
0x11d8   : > { %v8442_v26 = vpack.c.bf16 %v8431_v18, %v8428_v35  ;;  %v8433_v45 = vpop.f32.mrb[191].mxu1 }
0x11da   : > { %12432 = vmatmul.mubr.msk.bf16.gmra.mrb[196].mxu0 %vm835_vm2, %v8442_v26 }
0x11e7   : > { %v12421_v41 = vpop.f32.mrb[184].mxu0 }
0x11e8   : > { %vm8566_vm14 = vcmp.gt.f32.partialorder %v12421_v41, 0.0  ;;  %v8582_v13 = vmul.f32 0.1, %v12421_v41  ;;  %v8501_v36 = vpop.f32.mrb[185].mxu0 }
0x11e9   : > { %vm8564_vm15 = vcmp.gt.f32.partialorder %v8501_v36, 0.0  ;;  %v8580_v52 = vmul.f32 0.1, %v8501_v36  ;;  %v12422_v28 = vpop.f32.mrb[186].mxu0 }
0x11ea   : > { %v8598_v55 = vsel %vm8566_vm14, %v12421_v41, %v8582_v13  ;;  %vm8567_vm0 = vcmp.gt.f32.partialorder %v12422_v28, 0.0  ;;  %v8583_v47 = vmul.f32 0.1, %v12422_v28  ;;  %v8504_v43 = vpop.f32.mrb[187].mxu0 }
0x11eb   : > { %v8596_v39 = vsel %vm8564_vm15, %v8501_v36, %v8580_v52  ;;  %vm8565_vm13 = vcmp.gt.f32.partialorder %v8504_v43, 0.0  ;;  %v8581_v17 = vmul.f32 0.1, %v8504_v43 }
0x11ec   : > { %v8599_v46 = vsel %vm8567_vm0, %v12422_v28, %v8583_v47  ;;  %v10092_v47 = vld [vmem:[%s17835_s17] sm:$0xff] }
0x11ed   : > { %v8613_v60 = vpack.c.bf16 %v8599_v46, %v8598_v55  ;;  %v8597_v24 = vsel %vm8565_vm13, %v8504_v43, %v8581_v17  ;;  %v10093_v43 = vld [vmem:[%s17835_s17 + $0x8] sm:$0xff]  ;;  %v10096_v46 = vld [vmem:[%s17835_s17 + $0x20] sm:$0xff] }
0x11ee   : > { %v8612_v34 = vpack.c.bf16 %v8597_v24, %v8596_v39  ;;  %v10094_v39 = vld [vmem:[%s17835_s17 + $0x10] sm:$0xff]  ;;  %v12695_v17 = vpack.c.bf16 %v10093_v43, %v10092_v47 }
0x11ef   : > { %v12698_v9 = vpack.c.bf16 %v10095_v7, %v10094_v39 }
0x11f0   : > { %12451 = vmatprep.mubr.bf16.mxu0 %v8612_v34  ;;  %12696 = vmatpush3.bf16.msra.mxu1 %v12695_v17 }
0x11f1   : > { %12452 = vmatmul.mubr.bf16.vlgmr.msra.gmra.mrb[200].mxu0 %v8613_v60  ;;  %12697 = vmatprep.subr.bf16.mxu1 %v17884_v29  ;;  %v10097_v60 = vld [vmem:[%s17835_s17 + $0x28] sm:$0xff] }
0x11f2   : > { %12672 = vmatpush3.bf16.msra.mxu0 %v12671_v22  ;;  %v12701_v24 = vpack.c.bf16 %v10097_v60, %v10096_v46 }
0x11f3   : > { %12673 = vmatprep.subr.bf16.mxu0 %v17884_v29 }
0x11f4   : > { %12699 = vmatpush3.bf16.msra.mxu1 %v12698_v9 }
0x11f5   : > { %12700 = vmatprep.subr.bf16.mxu1 %v17884_v29 }
0x11f6   : > { %12675 = vmatpush3.bf16.msra.mxu0 %v12674_v50 }
0x11f7   : > { %12676 = vmatprep.subr.bf16.mxu0 %v17884_v29 }
0x11f8   : > { %12702 = vmatpush3.bf16.msra.mxu1 %v12701_v24 }
0x11f9   : > { %12703 = vmatprep.subr.bf16.mxu1 %v17884_v29 }
0x11fa   : > { %12678 = vmatpush3.bf16.msra.mxu0 %v12677_v14  ;;  %v10098_v14 = vld [vmem:[%s17835_s17 + $0x30] sm:$0xff] }
0x11fb   : > { %12679 = vmatprep.subr.bf16.mxu0 %v17884_v29 }
0x11fe   : > { %12681 = vmatpush3.bf16.msra.mxu0 %v12680_v23  ;;  %v12704_v23 = vpack.c.bf16 %v10099_v56, %v10098_v14 }
0x11ff   : > { %12682 = vmatprep.subr.bf16.mxu0 %v17884_v29 }
0x1200   : > { %12705 = vmatpush3.bf16.msra.mxu1 %v12704_v23 }
0x1201   : > { %12706 = vmatprep.subr.bf16.mxu1 %v17884_v29 }
0x1202   : > { %12684 = vmatpush3.bf16.msra.mxu0 %v12683_v31 }
0x1203   : > { %12685 = vmatprep.subr.bf16.mxu0 %v17884_v29 }
0x1206   : > { %12687 = vmatpush3.bf16.msra.mxu0 %v12686_v8 }
0x1207   : > { %12688 = vmatprep.subr.bf16.mxu0 %v17884_v29 }
0x120a   : > { %12690 = vmatpush3.bf16.msra.mxu0 %v12689_v2 }
0x120b   : > { %12691 = vmatprep.subr.bf16.mxu0 %v17884_v29 }
0x120e   : > { %12693 = vmatpush3.bf16.msra.mxu0 %v12692_v51 }
0x121a   : > { %v12425_v1 = vpop.f32.mrb[188].mxu0 }
0x121b   : > { %vm8570_vm3 = vcmp.gt.f32.partialorder %v12425_v1, 0.0  ;;  %v8586_v27 = vmul.f32 0.1, %v12425_v1  ;;  %v8517_v63 = vpop.f32.mrb[189].mxu0 }
0x121c   : > { %vm8568_vm4 = vcmp.gt.f32.partialorder %v8517_v63, 0.0  ;;  %v8584_v54 = vmul.f32 0.1, %v8517_v63  ;;  %v12426_v15 = vpop.f32.mrb[190].mxu0 }
0x121d   : > { %v8602_v49 = vsel %vm8570_vm3, %v12425_v1, %v8586_v27  ;;  %vm8571_vm5 = vcmp.gt.f32.partialorder %v12426_v15, 0.0  ;;  %v8587_v53 = vmul.f32 0.1, %v12426_v15  ;;  %v8520_v42 = vpop.f32.mrb[191].mxu0  ;;  %v10100_v1 = vld [vmem:[%s17835_s17 + $0x40] sm:$0xff]  ;;  %v10101_v27 = vld [vmem:[%s17835_s17 + $0x48] sm:$0xff] }
0x121e   : > { %v8600_v16 = vsel %vm8568_vm4, %v8517_v63, %v8584_v54  ;;  %vm8569_vm8 = vcmp.gt.f32.partialorder %v8520_v42, 0.0  ;;  %v8585_v5 = vmul.f32 0.1, %v8520_v42 }
0x121f   : > { %v8603_v20 = vsel %vm8571_vm5, %v12426_v15, %v8587_v53 }
0x1220   : > { %v8615_v11 = vpack.c.bf16 %v8603_v20, %v8602_v49  ;;  %v8601_v32 = vsel %vm8569_vm8, %v8520_v42, %v8585_v5  ;;  %v12707_v42 = vpack.c.bf16 %v10101_v27, %v10100_v1  ;;  %v10102_v5 = vld [vmem:[%s17835_s17 + $0x50] sm:$0xff]  ;;  %v10103_v20 = vld [vmem:[%s17835_s17 + $0x58] sm:$0xff]  ;;  %v10790_v27 = vld [vmem:[%s17834_s16 + $0x80] ss:$0 sm:$0xff] }
0x1221   : > { %v8614_v12 = vpack.c.bf16 %v8601_v32, %v8600_v16  ;;  %v12710_v32 = vpack.c.bf16 %v10103_v20, %v10102_v5 }
0x1222   : > { %12708 = vmatpush3.bf16.msra.mxu1 %v12707_v42 }
0x1223   : > { %12455 = vmatprep.mubr.bf16.mxu0 %v8614_v12  ;;  %12709 = vmatprep.subr.bf16.mxu1 %v17884_v29 }
0x1224   : > { %12456 = vmatmul.mubr.bf16.gmra.mrb[204].mxu0 %v8615_v11  ;;  %v10789_v11 = vld [vmem:[%s17833_s15 + $0x80] ss:$0 sm:$0xff] }
0x1226   : > { %12711 = vmatpush3.bf16.msra.mxu1 %v12710_v32 }
0x1227   : > { %12712 = vmatprep.subr.bf16.mxu1 %v17884_v29 }
0x1245   : > { %v17682_v33 = vpop.f32.mrb[192].mxu1 }
0x1246   : > { %v12501_v21 = vpop.f32.mrb[193].mxu1  ;;  %v10180_v12 = vadd.f32 %v10789_v11, %v17682_v33 }
0x1248   : > { %v10183_v44 = vmax.f32 %v10180_v12, 0.0 }
0x124e   : > { %v12429_v10 = vpop.f32.mrb[192].mxu0 }
0x124f   : > { %vm8574_vm9 = vcmp.gt.f32.partialorder %v12429_v10, 0.0  ;;  %v8590_v57 = vmul.f32 0.1, %v12429_v10  ;;  %v8533_v48 = vpop.f32.mrb[193].mxu0 }
0x1250   : > { %vm8572_vm10 = vcmp.gt.f32.partialorder %v8533_v48, 0.0  ;;  %v8588_v35 = vmul.f32 0.1, %v8533_v48  ;;  %v12430_v58 = vpop.f32.mrb[194].mxu0 }
0x1251   : > { %v8606_v18 = vsel %vm8574_vm9, %v12429_v10, %v8590_v57  ;;  %vm8575_vm11 = vcmp.gt.f32.partialorder %v12430_v58, 0.0  ;;  %v8591_v26 = vmul.f32 0.1, %v12430_v58  ;;  %v8536_v45 = vpop.f32.mrb[195].mxu0 }
0x1252   : > { %v8604_v41 = vsel %vm8572_vm10, %v8533_v48, %v8588_v35  ;;  %vm8573_vm6 = vcmp.gt.f32.partialorder %v8536_v45, 0.0  ;;  %v8589_v13 = vmul.f32 0.1, %v8536_v45 }
0x1253   : > { %v8607_v36 = vsel %vm8575_vm11, %v12430_v58, %v8591_v26 }
0x1254   : > { %v8617_v52 = vpack.c.bf16 %v8607_v36, %v8606_v18  ;;  %v8605_v28 = vsel %vm8573_vm6, %v8536_v45, %v8589_v13  ;;  %v10104_v13 = vld [vmem:[%s17835_s17 + $0x60] sm:$0xff]  ;;  %v10105_v36 = vld [vmem:[%s17835_s17 + $0x68] sm:$0xff] }
0x1255   : > { %v8616_v55 = vpack.c.bf16 %v8605_v28, %v8604_v41  ;;  %v10106_v28 = vld [vmem:[%s17835_s17 + $0x70] sm:$0xff] }
0x1257   : > { %12459 = vmatprep.mubr.bf16.mxu0 %v8616_v55  ;;  %v10107_v55 = vld [vmem:[%s17835_s17 + $0x78] sm:$0xff] }
0x1258   : > { %12460 = vmatmul.mubr.bf16.gmra.mrb[208].mxu0 %v8617_v52  ;;  %v12713_v52 = vpack.c.bf16 %v10105_v36, %v10104_v13  ;;  %v12716_v47 = vpack.c.bf16 %v10107_v55, %v10106_v28 }
0x125a   : > { %12714 = vmatpush3.bf16.msra.mxu1 %v12713_v52 }
0x125b   : > { %12715 = vmatprep.subr.bf16.mxu1 %v17884_v29 }
0x125e   : > { %12717 = vmatpush3.bf16.msra.mxu1 %v12716_v47 }
0x125f   : > { %12718 = vmatprep.subr.bf16.mxu1 %v17884_v29 }
0x12ad   : > { %v12433_v34 = vpop.f32.mrb[196].mxu0 }
0x12ae   : > { %v8594_v22 = vmul.f32 0.1, %v12433_v34  ;;  %v8549_v61 = vpop.f32.mrb[197].mxu0  ;;  %vm8578_vm7 = vcmp.gt.f32.partialorder %v12433_v34, 0.0 }
0x12af   : > { %vm8576_vm12 = vcmp.gt.f32.partialorder %v8549_v61, 0.0  ;;  %v8592_v25 = vmul.f32 0.1, %v8549_v61  ;;  %v12434_v50 = vpop.f32.mrb[198].mxu0 }
0x12b0   : > { %vm8579_vm14 = vcmp.gt.f32.partialorder %v12434_v50, 0.0  ;;  %v8595_v19 = vmul.f32 0.1, %v12434_v50  ;;  %v8552_v59 = vpop.f32.mrb[199].mxu0  ;;  %v8610_v63 = vsel %vm8578_vm7, %v12433_v34, %v8594_v22 }
0x12b1   : > { %vm8577_vm15 = vcmp.gt.f32.partialorder %v8552_v59, 0.0  ;;  %v8593_v38 = vmul.f32 0.1, %v8552_v59  ;;  %v8608_v15 = vsel %vm8576_vm12, %v8549_v61, %v8592_v25 }
0x12b2   : > { %v8611_v54 = vsel %vm8579_vm14, %v12434_v50, %v8595_v19 }
0x12b3   : > { %v8619_v49 = vpack.c.bf16 %v8611_v54, %v8610_v63  ;;  %v8609_v53 = vsel %vm8577_vm15, %v8552_v59, %v8593_v38 }
0x12b4   : > { %v8618_v16 = vpack.c.bf16 %v8609_v53, %v8608_v15  ;;  %v10791_v53 = vld [vmem:[%s17835_s17 + $0x80] ss:$0 sm:$0xff] }
0x12b6   : > { %12463 = vmatprep.mubr.bf16.mxu0 %v8618_v16 }
0x12b7   : > { %12464 = vmatmul.mubr.bf16.gmra.mrb[212].mxu0 %v8619_v49 }
0x12b8   : > { %12534 = vmatprep.mubr.msk.f32.mxu0 %vm12976_vm1, %v17885_v62 }
0x12bf   : > { %12535 = vmatmul.mubr.f32.vlgmr.msra.gmra.mrb[216].mxu0 %v10183_v44 }
0x12c4   : > { %v12453_v31 = vpop.f32.mrb[200].mxu0 }
0x12c5   : > { %v8720_v30 = vmul.f32 %v12453_v31, %v605_v3  ;;  %v8654_v8 = vpop.f32.mrb[201].mxu0 }
0x12c6   : > { %v8718_v40 = vmul.f32 %v8654_v8, %v605_v3  ;;  %v12454_v4 = vpop.f32.mrb[202].mxu0 }
0x12c7   : > { %v8721_v2 = vmul.f32 %v12454_v4, %v606_v0  ;;  %v8657_v6 = vpop.f32.mrb[203].mxu0 }
0x12c8   : > { %v8719_v37 = vmul.f32 %v8657_v6, %v606_v0 }
0x12c9   : > { %v12722_v51 = vpack.c.bf16 %v8721_v2, %v8720_v30 }
0x12ca   : > { %v12719_v33 = vpack.c.bf16 %v8719_v37, %v8718_v40 }
0x12f7   : > { %v12457_v21 = vpop.f32.mrb[204].mxu0 }
0x12f8   : > { %v8724_v10 = vmul.f32 %v12457_v21, %v605_v3  ;;  %v8670_v57 = vpop.f32.mrb[205].mxu0 }
0x12f9   : > { %v8722_v48 = vmul.f32 %v8670_v57, %v605_v3  ;;  %v12458_v35 = vpop.f32.mrb[206].mxu0 }
0x12fa   : > { %v8725_v58 = vmul.f32 %v12458_v35, %v606_v0  ;;  %v8673_v18 = vpop.f32.mrb[207].mxu0 }
0x12fb   : > { %v8723_v26 = vmul.f32 %v8673_v18, %v606_v0 }
0x12fc   : > { %v12728_v45 = vpack.c.bf16 %v8725_v58, %v8724_v10 }
0x12fd   : > { %v12725_v41 = vpack.c.bf16 %v8723_v26, %v8722_v48 }
0x132b   : > { %v12461_v43 = vpop.f32.mrb[208].mxu0 }
0x132c   : > { %v8728_v39 = vmul.f32 %v12461_v43, %v605_v3  ;;  %v8686_v17 = vpop.f32.mrb[209].mxu0 }
0x132d   : > { %v8726_v7 = vmul.f32 %v8686_v17, %v605_v3  ;;  %v12462_v9 = vpop.f32.mrb[210].mxu0 }
0x132e   : > { %v8729_v46 = vmul.f32 %v12462_v9, %v606_v0  ;;  %v8689_v60 = vpop.f32.mrb[211].mxu0 }
0x132f   : > { %v8727_v24 = vmul.f32 %v8689_v60, %v606_v0 }
0x1330   : > { %v12734_v34 = vpack.c.bf16 %v8729_v46, %v8728_v39 }
0x1331   : > { %v12731_v22 = vpack.c.bf16 %v8727_v24, %v8726_v7 }
0x138a   : > { %v12465_v61 = vpop.f32.mrb[212].mxu0 }
0x138b   : > { %v8702_v25 = vpop.f32.mrb[213].mxu0  ;;  %v8732_v19 = vmul.f32 %v12465_v61, %v605_v3 }
0x138c   : > { %v12466_v50 = vpop.f32.mrb[214].mxu0  ;;  %v8730_v56 = vmul.f32 %v8702_v25, %v605_v3 }
0x138d   : > { %v8733_v59 = vmul.f32 %v12466_v50, %v606_v0  ;;  %v8705_v14 = vpop.f32.mrb[215].mxu0 }
0x138e   : > { %v8731_v38 = vmul.f32 %v8705_v14, %v606_v0 }
0x138f   : > { %v12740_v23 = vpack.c.bf16 %v8733_v59, %v8732_v19 }
0x1390   : > { %v12737_v1 = vpack.c.bf16 %v8731_v38, %v8730_v56 }
0x1392   : > { %v10254_v63 = vpop.f32.mrb[216].mxu0 }
0x1393   : > { %v10255_v54 = vadd.f32 %v10790_v27, %v10254_v63  ;;  %v12536_v15 = vpop.f32.mrb[217].mxu0 }
0x1395   : > { %v10258_v49 = vmax.f32 %v10255_v54, 0.0 }
0x1397   : > { %12570 = vmatmul.mubr.f32.vlgmr.msra.gmra.mrb[194].mxu1 %v10258_v49 }
0x1398   : > { %12720 = vmatpush3.bf16.msra.mxu1 %v12719_v33  ;;  %12604 = vmatprep.mubr.msk.f32.mxu1 %vm12976_vm1, %v17885_v62  ;;  %v8717_v62 = vld [vmem:[%s17822_s4] sm:$0xff] }
0x1399   : > { %12721 = vmatprep.subr.bf16.mxu1 %v17884_v29 }
0x139c   : > { %12723 = vmatpush3.bf16.msra.mxu1 %v12722_v51 }
0x139d   : > { %12724 = vmatprep.subr.bf16.mxu1 %v17884_v29 }
0x13a0   : > { %12726 = vmatpush3.bf16.msra.mxu1 %v12725_v41 }
0x13a1   : > { %12727 = vmatprep.subr.bf16.mxu1 %v17884_v29 }
0x13a4   : > { %12729 = vmatpush3.bf16.msra.mxu1 %v12728_v45 }
0x13a5   : > { %12730 = vmatprep.subr.bf16.mxu1 %v17884_v29 }
0x13a8   : > { %12732 = vmatpush3.bf16.msra.mxu1 %v12731_v22 }
0x13a9   : > { %12733 = vmatprep.subr.bf16.mxu1 %v17884_v29 }
0x13ac   : > { %12735 = vmatpush3.bf16.msra.mxu1 %v12734_v34 }
0x13ad   : > { %12736 = vmatprep.subr.bf16.mxu1 %v17884_v29 }
0x13b0   : > { %12738 = vmatpush3.bf16.msra.mxu1 %v12737_v1 }
0x13b1   : > { %12739 = vmatprep.subr.bf16.mxu1 %v17884_v29 }
0x13b4   : > { %12741 = vmatpush3.bf16.msra.mxu1 %v12740_v23 }
0x13b7   : > { %12605 = vmatmul.mubr.f32.vlgmr.msra.gmra.mrb[194].mxu1 %v8717_v62 }
0x148a   : > { %v10399_v42 = vpop.f32.mrb[194].mxu1 }
0x148b   : > { %v12744_v16 = vadd.f32 %v10791_v53, %v10399_v42  ;;  %v12606_v5 = vpop.f32.mrb[195].mxu1 }
0x148d   : > { %10403 = vst.msk [vmem:[%s584_s23] sm:$0xff] %vm835_vm2, %v12744_v16 }
0x148e   : > { %12924 = shalt.err (!%p12921_p4)
}
0x148f   : > { %s12925_s20 = scalar_lea.hbm %s17775_s3, 128  ;;  %s12929_s23 = scalar_lea.hbm %s17900_s19, 256 }
0x1490   : > { %p12926_p7 = scmp.ne.s32.totalorder %s17775_s3, %s12925_s20  ;;  %p12930_p10 = scmp.lt.u32.totalorder %s17775_s3, %s17900_s19 }
0x1491   : > { %p12931_p11 = scmp.lt.u32.totalorder %s12929_s23, %s12925_s20  ;;  %p12933_p13 = scmp.lt.u32.totalorder %s12925_s20, %s17775_s3 }
0x1492   : > { %p12927_p8 = pnand %p12926_p7, %p13114_p5 }
0x1493   : > { %p12932_p12 = por %p12931_p11, %p12930_p10 }
0x1494   : > { %p12928_p9 = pneg %p12927_p8 }
0x1495   : > { %p12934_p0 = por %p12933_p13, %p12932_p12 }
0x1497   : > { %p12935_p1 = pnand %p12934_p0, %p12928_p9 }
0x1499   : > { %12938 = shalt.err (!%p12935_p1)
}
0x149a   : > { %12747 = dma.vmem_to_hbm [thread:$0]  (%p13114_p5), %s17777_s22, 128, %s17775_s3, %s10405_s24  }
0x149b PF: > { %s17901_s27 = sld [smem:[#allocation7_spill]]  ;;  %s17902_s0 = sld [smem:[#allocation5_spill]] }
0x14a1   : > { %p12753_p2 = scmp.ge.s32.totalorder %s17901_s27, 2  ;;  %s10430_s18 = sand.u32 1, %s17902_s0  }
0x14a2   : > { %s10431_s30 = scalar_lea.sflag [#allocation3], %s10430_s18 }
0x14a3   : > { %p12750_p3 = pnand %p12753_p2, %p13118_p6 }
0x14a5   : > { %12956 = dma.done.wait (!%p12750_p3), %s10431_s30, 128  }
0x14a6   : > { %12958 = vsyncadd (!%p12750_p3), %s10431_s30, 4294967168  ;;  %s17904_s30 = sld [smem:[#allocation8_spill]]  ;;  %s17905_s20 = sld [smem:[#allocation6_spill]] }
0x14a7   : > { %s17906_s29 = sld [smem:[#allocation9_spill]]  ;;  %s17907_s27 = smov %s12965_s28 }
0x14ac   : > { %p28_p4 = scmp.ge.s32.totalorder %s17904_s30, 4   ;;  %s17908_s28 = smov %s17905_s20 }
0x14ae   :  { %30 = sbr.rel (!%p28_p4) target bundleno = 9 (0x9), region = 130 }
0x14b5   :  { %10436 = vsyncpa [#allocation3], 1 }
0x14b6   :  { %10438 = vsyncpa [#allocation3 + $0x1], 1 }

</bundles_post_ra>
